<compile_context>
chip_gen: v7x
topology: tpu7x:2x2x1
jax: 0.10.0
libtpu: 0.0.40
codegen_flags: <defaults>
</compile_context>

<pallas_src>
import functools
import numpy as np
import jax
import jax.numpy as jnp
from jax.experimental import pallas as pl
from jax.experimental.pallas import tpu as pltpu


def _round_up(x, m):
    return (x + m - 1) // m * m


def _pick_tile(n, max_tile, align=1, min_steps=2):
    """Largest tile <= max_tile, multiple of `align`, dividing n, preferring >= min_steps
    grid steps (so v7x's two TensorCores both get work). Falls back to padding."""
    cands = [t for t in range(align, min(max_tile, n) + 1, align) if n % t == 0]
    if not cands:
        return min(_round_up(n, align), _round_up(max_tile, align))
    pref = [t for t in cands if n // t >= min_steps]
    return max(pref) if pref else max(cands)


def _vmem_limit(step_bytes):
    # explicit scoped-VMEM limit: ~3x per-step footprint (double buffering + headroom),
    # clamped to [16 MiB, 64 MiB] so it is valid on v5e / v6e / v7x.
    return int(min(max(3 * step_bytes, 16 * 1024 * 1024), 64 * 1024 * 1024))


# ---------------------------------------------------------------------------
# Pallas kernels
# ---------------------------------------------------------------------------
def _qkv_linear_kernel(x_ref, wmh_ref, wch_ref, bmh_ref, bch_ref, omh_ref, och_ref):
    # x: (tm, C) f32 -> two bf16 outputs (tm, 3*mh*hd) and (tm, 3*ch*hd), f32 accumulate.
    xb = x_ref[...].astype(jnp.bfloat16)              # in-kernel cast: no extra HBM pass
    acc = jnp.dot(xb, wmh_ref[...], preferred_element_type=jnp.float32) + bmh_ref[...]
    omh_ref[...] = acc.astype(omh_ref.dtype)
    acc = jnp.dot(xb, wch_ref[...], preferred_element_type=jnp.float32) + bch_ref[...]
    och_ref[...] = acc.astype(och_ref.dtype)


def qkv_linear_pallas(x, w_mh, w_ch, b_mh, b_ch, max_tile_m=512):
    # x: (M, C) f32, w_*: (C, D*) bf16, b_*: (1, D*) f32 -> bf16 (M, Dmh), (M, Dch)
    M, C = x.shape
    Dmh, Dch = w_mh.shape[1], w_ch.shape[1]
    tm = _pick_tile(M, max_tile_m, align=8, min_steps=2)
    Mp = _round_up(M, tm)
    if Mp != M:  # TODO(synk): ragged tail could use a masked last block instead of a pad.
        x = jnp.pad(x, ((0, Mp - M), (0, 0)))
    step_bytes = tm * C * 4 + C * (Dmh + Dch) * 2 + tm * (Dmh + Dch) * 2 + (Dmh + Dch) * 4
    o_mh, o_ch = pl.pallas_call(
        _qkv_linear_kernel,
        out_shape=(jax.ShapeDtypeStruct((Mp, Dmh), jnp.bfloat16),
                   jax.ShapeDtypeStruct((Mp, Dch), jnp.bfloat16)),
        grid=(Mp // tm,),
        in_specs=[pl.BlockSpec((tm, C), lambda i: (i, 0)),
                  pl.BlockSpec((C, Dmh), lambda i: (0, 0)),      # resident weights
                  pl.BlockSpec((C, Dch), lambda i: (0, 0)),
                  pl.BlockSpec((1, Dmh), lambda i: (0, 0)),      # resident biases
                  pl.BlockSpec((1, Dch), lambda i: (0, 0))],
        out_specs=(pl.BlockSpec((tm, Dmh), lambda i: (i, 0)),
                   pl.BlockSpec((tm, Dch), lambda i: (i, 0))),
        compiler_params=pltpu.CompilerParams(
            dimension_semantics=("parallel",),
            vmem_limit_bytes=_vmem_limit(step_bytes)),
        cost_estimate=pl.CostEstimate(
            flops=2 * Mp * C * (Dmh + Dch), transcendentals=0,
            bytes_accessed=Mp * C * 4 + C * (Dmh + Dch) * 2 + Mp * (Dmh + Dch) * 2),
    )(x, w_mh, w_ch, b_mh, b_ch)
    if Mp != M:
        o_mh, o_ch = o_mh[:M], o_ch[:M]
    return o_mh, o_ch


def _linear_kernel(x_ref, w_ref, b_ref, o_ref):
    acc = jnp.dot(x_ref[...], w_ref[...], preferred_element_type=jnp.float32)
    o_ref[...] = (acc + b_ref[...]).astype(o_ref.dtype)


def linear_pallas(x, w, b, out_dtype=jnp.float32, max_tile_m=512):
    # x: (M, K) bf16, w: (K, N) bf16, b: (N,) f32 -> (M, N) out_dtype
    M, K = x.shape
    _, N = w.shape
    tm = _pick_tile(M, max_tile_m, align=8, min_steps=2)
    Mp = _round_up(M, tm)
    if Mp != M:
        x = jnp.pad(x, ((0, Mp - M), (0, 0)))
    out_bytes = jnp.dtype(out_dtype).itemsize
    step_bytes = tm * K * x.dtype.itemsize + K * N * w.dtype.itemsize + tm * N * out_bytes
    out = pl.pallas_call(
        _linear_kernel,
        out_shape=jax.ShapeDtypeStruct((Mp, N), out_dtype),
        grid=(Mp // tm,),
        in_specs=[pl.BlockSpec((tm, K), lambda i: (i, 0)),
                  pl.BlockSpec((K, N), lambda i: (0, 0)),
                  pl.BlockSpec((1, N), lambda i: (0, 0))],
        out_specs=pl.BlockSpec((tm, N), lambda i: (i, 0)),
        compiler_params=pltpu.CompilerParams(
            dimension_semantics=("parallel",),
            vmem_limit_bytes=_vmem_limit(step_bytes)),
        cost_estimate=pl.CostEstimate(
            flops=2 * Mp * K * N, transcendentals=0,
            bytes_accessed=Mp * K * x.dtype.itemsize + K * N * w.dtype.itemsize + Mp * N * out_bytes),
    )(x, w, b.reshape(1, N))
    return out[:M] if Mp != M else out


def _window_mhsa_kernel(wm_ref, bias_ref, o_ref, *, scale):
    # wm_ref: (3, TB, mh, Wa, hd) bf16, bias_ref: (mh, Wa, Wa) f32, o_ref: (TB, mh, Wa, hd) bf16
    _, TB, mh, Wa, hd = wm_ref.shape
    bh = TB * mh
    # leading-dim-only reshapes (layout preserving): flatten (TB, mh) into one batch dim
    q = wm_ref[0].reshape(bh, Wa, hd)
    k = wm_ref[1].reshape(bh, Wa, hd)
    v = wm_ref[2].reshape(bh, Wa, hd)
    s = jnp.einsum('bqd,bkd->bqk', q, k, preferred_element_type=jnp.float32) * scale
    s = s.reshape(TB, mh, Wa, Wa) + bias_ref[...][None]
    s = s - jnp.max(s, axis=-1, keepdims=True)
    p = jnp.exp(s)
    p = p * pl.reciprocal(jnp.sum(p, axis=-1, keepdims=True), approx=True)
    p = p.reshape(bh, Wa, Wa).astype(jnp.bfloat16)
    o = jnp.einsum('bqk,bkd->bqd', p, v, preferred_element_type=jnp.float32)
    o_ref[...] = o.reshape(TB, mh, Wa, hd).astype(o_ref.dtype)


def window_mhsa_pallas(wm, bias, scale, max_tile_windows=64):
    # wm: (3, Bw, mh, Wa, hd) bf16, bias: (mh, Wa, Wa) f32 -> (Bw, mh, Wa, hd) bf16
    _, Bw, mh, Wa, hd = wm.shape
    TB = _pick_tile(Bw, max_tile_windows, align=1, min_steps=2)
    Bw_p = _round_up(Bw, TB)
    if Bw_p != Bw:
        wm = jnp.pad(wm, ((0, 0), (0, Bw_p - Bw), (0, 0), (0, 0), (0, 0)))
    # rough per-step footprint (inputs + bias + output + f32 score intermediates)
    step_bytes = 3 * TB * mh * Wa * hd * 2 + mh * Wa * Wa * 4 + TB * mh * Wa * hd * 2 \
                 + 2 * TB * mh * Wa * Wa * 4
    out = pl.pallas_call(
        functools.partial(_window_mhsa_kernel, scale=scale),
        out_shape=jax.ShapeDtypeStruct((Bw_p, mh, Wa, hd), jnp.bfloat16),
        grid=(Bw_p // TB,),
        in_specs=[pl.BlockSpec((3, TB, mh, Wa, hd), lambda i: (0, i, 0, 0, 0)),
                  pl.BlockSpec((mh, Wa, Wa), lambda i: (0, 0, 0))],     # bias resident
        out_specs=pl.BlockSpec((TB, mh, Wa, hd), lambda i: (i, 0, 0, 0)),
        compiler_params=pltpu.CompilerParams(
            dimension_semantics=("parallel",),
            vmem_limit_bytes=_vmem_limit(step_bytes)),
        cost_estimate=pl.CostEstimate(
            flops=4 * Bw_p * mh * Wa * Wa * hd,
            transcendentals=Bw_p * mh * Wa * Wa,
            bytes_accessed=3 * Bw_p * mh * Wa * hd * 2 + mh * Wa * Wa * 4 + Bw_p * mh * Wa * hd * 2),
    )(wm, bias)
    return out[:Bw] if Bw_p != Bw else out


def _channel_attn_kernel(qkv_ref, t_ref, o_ref):
    # qkv_ref: (3, TB, ch, hd, N) bf16, t_ref: (ch,) f32 SMEM, o_ref: (TB, ch, hd, N) bf16
    eps = 1e-12
    _, TB, ch, hd, N = qkv_ref.shape
    bh = TB * ch
    q = qkv_ref[0]                                   # (TB, ch, hd, N) bf16
    k = qkv_ref[1]
    v = qkv_ref[2].reshape(bh, hd, N)
    # F.normalize(dim=-1): x * rsqrt(max(||x||^2, eps^2)); squares in bf16 with f32
    # accumulation, rsqrt scale (and temperature) folded back into the bf16 operands so
    # no full-size f32 copies of q / k are kept live.
    q_ss = jnp.sum((q * q).astype(jnp.float32), axis=-1, keepdims=True)
    k_ss = jnp.sum((k * k).astype(jnp.float32), axis=-1, keepdims=True)
    inv_q = jax.lax.rsqrt(jnp.maximum(q_ss, eps * eps))       # (TB, ch, hd, 1) f32
    inv_k = jax.lax.rsqrt(jnp.maximum(k_ss, eps * eps))
    # fold temperature (per channel-head) into the q scale: (q*t) @ k^T == (q @ k^T) * t
    if ch == 1:
        inv_q = inv_q * t_ref[0]
    else:
        # concat only over the tiny (TB, 1, hd, 1) scale slices, never the score tensor
        inv_q = jnp.concatenate([inv_q[:, h:h + 1] * t_ref[h] for h in range(ch)], axis=1)
    qn = (q * inv_q.astype(jnp.bfloat16)).reshape(bh, hd, N)
    kn = (k * inv_k.astype(jnp.bfloat16)).reshape(bh, hd, N)
    s = jnp.einsum('bdn,ben->bde', qn, kn, preferred_element_type=jnp.float32)
    s = s - jnp.max(s, axis=-1, keepdims=True)
    p = jnp.exp(s)
    p = p * pl.reciprocal(jnp.sum(p, axis=-1, keepdims=True), approx=True)
    o = jnp.einsum('bde,ben->bdn', p.astype(jnp.bfloat16), v, preferred_element_type=jnp.float32)
    o_ref[...] = o.reshape(TB, ch, hd, N).astype(o_ref.dtype)


def channel_attn_pallas(qkv_t, temperature, max_tile_b=8):
    # qkv_t: (3, B, ch, hd, N) bf16, temperature: (ch, 1, 1) f32 -> (B, ch, hd, N) bf16
    _, B, ch, hd, N = qkv_t.shape
    TB = _pick_tile(B, max_tile_b, align=1, min_steps=2)
    Bp = _round_up(B, TB)
    if Bp != B:
        qkv_t = jnp.pad(qkv_t, ((0, 0), (0, Bp - B), (0, 0), (0, 0), (0, 0)))
    t = temperature.reshape(-1).astype(jnp.float32)
    Np = max(N, 128)
    step_bytes = 3 * TB * ch * hd * Np * 2 * 2 + TB * ch * hd * Np * 2 * 2 + 3 * TB * ch * hd * Np * 4
    out = pl.pallas_call(
        _channel_attn_kernel,
        out_shape=jax.ShapeDtypeStruct((Bp, ch, hd, N), jnp.bfloat16),
        grid=(Bp // TB,),
        in_specs=[pl.BlockSpec((3, TB, ch, hd, N), lambda i: (0, i, 0, 0, 0)),
                  pl.BlockSpec(memory_space=pltpu.MemorySpace.SMEM)],   # temperature scalars
        out_specs=pl.BlockSpec((TB, ch, hd, N), lambda i: (i, 0, 0, 0)),
        compiler_params=pltpu.CompilerParams(
            dimension_semantics=("parallel",),
            vmem_limit_bytes=_vmem_limit(step_bytes)),
        cost_estimate=pl.CostEstimate(
            flops=4 * Bp * ch * hd * hd * N,
            transcendentals=Bp * ch * hd * hd,
            bytes_accessed=3 * Bp * ch * hd * N * 2 + Bp * ch * hd * N * 2),
    )(qkv_t, t)
    return out[:B] if Bp != B else out


# ---------------------------------------------------------------------------
# Pure-JAX reference implementations (same math / same bf16 casts) for checking
# ---------------------------------------------------------------------------
def qkv_linear_ref(x, w_mh, w_ch, b_mh, b_ch):
    xb = x.astype(w_mh.dtype)
    o_mh = (jnp.dot(xb, w_mh, preferred_element_type=jnp.float32) + b_mh).astype(w_mh.dtype)
    o_ch = (jnp.dot(xb, w_ch, preferred_element_type=jnp.float32) + b_ch).astype(w_ch.dtype)
    return o_mh, o_ch


def linear_ref(x, w, b, out_dtype=jnp.float32, max_tile_m=512):
    return (jnp.dot(x, w, preferred_element_type=jnp.float32) + b[None, :]).astype(out_dtype)


def mhsa_ref(wm, bias, scale, max_tile_windows=64):
    q, k, v = wm[0], wm[1], wm[2]
    s = jnp.einsum('bhqd,bhkd->bhqk', q, k, preferred_element_type=jnp.float32) * scale
    s = s + bias[None]
    p = jax.nn.softmax(s, axis=-1)
    return jnp.einsum('bhqk,bhkd->bhqd', p.astype(wm.dtype), v,
                      preferred_element_type=jnp.float32)


def chan_ref(qkv_t, temperature, max_tile_b=8):
    eps = 1e-12
    q = qkv_t[0].astype(jnp.float32)
    k = qkv_t[1].astype(jnp.float32)
    v = qkv_t[2]
    qn = q * jax.lax.rsqrt(jnp.maximum(jnp.sum(q * q, -1, keepdims=True), eps * eps))
    kn = k * jax.lax.rsqrt(jnp.maximum(jnp.sum(k * k, -1, keepdims=True), eps * eps))
    s = jnp.einsum('bhdn,bhen->bhde', qn.astype(qkv_t.dtype), kn.astype(qkv_t.dtype),
                   preferred_element_type=jnp.float32)
    s = s * temperature[None]
    p = jax.nn.softmax(s, axis=-1)
    return jnp.einsum('bhde,bhen->bhdn', p.astype(qkv_t.dtype), v,
                      preferred_element_type=jnp.float32)


# ---------------------------------------------------------------------------
# Forward pass (reproduces the PyTorch forward semantics, mask=None, eval mode)
# ---------------------------------------------------------------------------
def channelwise_attention_forward(x, params, cfg, qkv_linear_fn, linear_fn, mhsa_fn, chan_fn,
                                  compute_dtype=jnp.bfloat16):
    dim = cfg['dim']
    num_heads = cfg['num_heads']
    chan_heads = cfg['chan_heads']
    ws0, ws1 = cfg['window_size']
    # The reference window_partition_v2 mixes window_size[0]/[1]; it only works for
    # square windows, so we require that (same implicit assumption as the reference).
    assert ws0 == ws1, "window_partition_v2 (reference) only supports square windows"
    hd = dim // num_heads
    mh = num_heads - chan_heads
    assert mh >= 1, "this implementation always runs the windowed multi-head branch"
    dim_mh = mh * hd
    dim_ch = chan_heads * hd
    scale = hd ** (-0.5)

    B, H, W, C = x.shape
    N = H * W
    Wa = ws0 * ws1

    # ---- fused qkv projection: head split + bf16 cast folded into the linear ----
    # columns of w_qkv are ordered (3, num_heads, hd); select mh-heads / chan-heads once.
    w3 = params['w_qkv'].reshape(C, 3, num_heads, hd)
    b3 = params['b_qkv'].reshape(3, num_heads, hd)
    w_mh = w3[:, :, :mh, :].reshape(C, 3 * dim_mh).astype(compute_dtype)
    w_ch = w3[:, :, mh:, :].reshape(C, 3 * dim_ch).astype(compute_dtype)
    b_mh = b3[:, :mh, :].reshape(1, 3 * dim_mh)
    b_ch = b3[:, mh:, :].reshape(1, 3 * dim_ch)

    x2d = x.reshape(B * N, C)
    o_mh, o_ch = qkv_linear_fn(x2d, w_mh, w_ch, b_mh, b_ch)   # bf16, column order (3, heads, hd)

    # ---- multi-head windowed branch (replicates the reference's scrambled reshapes) ----
    qkv_mh = o_mh.reshape(B, N, 3, mh, hd).transpose(3, 0, 1, 2, 4)   # (mh, B, N, 3, hd)
    qkv_mh = qkv_mh.reshape(3, B, N, mh, hd)                  # reference's raw reinterpret
    wm = qkv_mh.reshape(3, B, H // ws0, ws1, W // ws0, ws1, mh, hd)
    wm = wm.transpose(0, 1, 2, 4, 3, 5, 6, 7).reshape(3, -1, mh, Wa, hd)   # window_partition_v2

    rel_bias = params['rel_table'][params['rel_index'].reshape(-1)]
    rel_bias = rel_bias.reshape(Wa, Wa, mh).transpose(2, 0, 1)   # (mh, Wa, Wa) f32

    x1 = mhsa_fn(wm, rel_bias, scale)                         # (Bw, mh, Wa, hd) bf16
    Bw = x1.shape[0]
    # Reference: .transpose(1,2) then .permute(0,2,1,3) cancel; the remaining reshape is
    # a row-major reinterpretation of (mh, Wa, hd) -> (Wa, mh*hd) per window.
    x1 = x1.reshape(Bw * Wa, dim_mh)

    # TODO(synk): the reference declares self.proj = nn.Linear(dim, dim) but feeds it a
    # tensor whose last dim is (num_heads - chan_heads) * head_dim (< dim), which would
    # raise a shape error in PyTorch; we keep the dimensionally consistent dim_mh -> dim_mh
    # projection so the concatenated output width is exactly `dim`.
    x1 = linear_fn(x1.astype(compute_dtype),
                   params['w_proj'].astype(compute_dtype), params['b_proj'])
    x1 = x1.reshape(Bw, Wa, dim_mh)

    # ---- channel-wise branch ----
    qkv_ch = o_ch.reshape(B, N, 3, chan_heads, hd).transpose(3, 0, 1, 2, 4)
    qkv_ch = qkv_ch.reshape(3, B, N, chan_heads, hd)          # reference's raw reinterpret
    qkv_ch_t = qkv_ch.transpose(0, 1, 3, 4, 2)                # (3, B, ch, hd, N) bf16
    x2 = chan_fn(qkv_ch_t, params['temperature'])             # (B, ch, hd, N)
    x2 = x2.transpose(0, 3, 1, 2)                             # (B, N, ch, hd)
    x2 = x2.reshape(B, H // ws0, ws0, W // ws1, ws1, chan_heads, hd)
    x2 = x2.transpose(0, 1, 3, 2, 4, 5, 6)
    x2 = x2.reshape(-1, Wa, dim_ch)

    # attn_drop / proj_drop have p=0.0 -> identity in eval.
    out = jnp.concatenate([x1.astype(jnp.float32), x2.astype(jnp.float32)], axis=2)
    return out                                                # (Bw, Wa, dim) f32


# ---------------------------------------------------------------------------
# Deterministic parameter init (mirrors the __init__ shapes)
# ---------------------------------------------------------------------------
def make_params(key, dim, num_heads, chan_heads, window_size):
    ws0, ws1 = window_size
    hd = dim // num_heads
    mh = num_heads - chan_heads
    dim_mh = mh * hd
    k1, k2, k3, k4, k5 = jax.random.split(key, 5)

    # relative_position_index (same construction as the reference buffer)
    coords_h = np.arange(ws0)
    coords_w = np.arange(ws1)
    coords = np.stack(np.meshgrid(coords_h, coords_w, indexing='ij'))   # (2, Wh, Ww)
    coords_flatten = coords.reshape(2, -1)
    rel = coords_flatten[:, :, None] - coords_flatten[:, None, :]
    rel = rel.transpose(1, 2, 0).copy()
    rel[:, :, 0] += ws0 - 1
    rel[:, :, 1] += ws1 - 1
    rel[:, :, 0] *= 2 * ws1 - 1
    rel_index = rel.sum(-1).astype(np.int32)                            # (Wa, Wa)

    params = {
        # stored transposed relative to torch Linear: y = x @ w + b
        'w_qkv': jax.random.normal(k1, (dim, 3 * dim), jnp.float32) * 0.02,
        'b_qkv': jax.random.normal(k2, (3 * dim,), jnp.float32) * 0.02,
        'rel_table': jax.random.truncated_normal(
            k3, -2.0, 2.0, ((2 * ws0 - 1) * (2 * ws1 - 1), mh), jnp.float32) * 0.02,
        'temperature': jnp.ones((chan_heads, 1, 1), jnp.float32),
        'w_proj': jax.random.normal(k4, (dim_mh, dim_mh), jnp.float32) * 0.02,
        'b_proj': jax.random.normal(k5, (dim_mh,), jnp.float32) * 0.02,
        'rel_index': jnp.asarray(rel_index),
    }
    return params


# ---------------------------------------------------------------------------
if __name__ == "__main__":
    cfg = dict(dim=32, num_heads=4, chan_heads=1, window_size=(4, 4))
    B, H, W = 2, 16, 16

    key = jax.random.PRNGKey(0)
    kp, kx = jax.random.split(key)
    params = make_params(kp, cfg['dim'], cfg['num_heads'], cfg['chan_heads'],
                         cfg['window_size'])
    x = jax.random.normal(kx, (B, H, W, cfg['dim']), jnp.float32)

    fwd_pallas = jax.jit(functools.partial(
        channelwise_attention_forward, cfg=cfg,
        qkv_linear_fn=qkv_linear_pallas, linear_fn=linear_pallas,
        mhsa_fn=window_mhsa_pallas, chan_fn=channel_attn_pallas))
    fwd_ref = jax.jit(functools.partial(
        channelwise_attention_forward, cfg=cfg,
        qkv_linear_fn=qkv_linear_ref, linear_fn=linear_ref,
        mhsa_fn=mhsa_ref, chan_fn=chan_ref))

    out = jax.block_until_ready(fwd_pallas(x, params))
    ref = jax.block_until_ready(fwd_ref(x, params))

    nWin = (H // cfg['window_size'][0]) * (W // cfg['window_size'][1])
    Wa = cfg['window_size'][0] * cfg['window_size'][1]
    assert out.shape == (B * nWin, Wa, cfg['dim']), out.shape
    # bf16 MXU operands / bf16 stores + approx reciprocal in-kernel -> bf16-level tolerance
    np.testing.assert_allclose(np.asarray(out), np.asarray(ref), rtol=2e-2, atol=2e-2)
    print("KERNEL_OK")
</pallas_src>

<mosaic_0001>
module attributes {stable_mosaic.version = 11 : i64} {
  func.func @_qkv_linear_kernel(%arg0: i32, %arg1: memref<256x32xf32, #tpu.memory_space<vmem>>, %arg2: memref<32x72xbf16, #tpu.memory_space<vmem>>, %arg3: memref<32x24xbf16, #tpu.memory_space<vmem>>, %arg4: memref<1x72xf32, #tpu.memory_space<vmem>>, %arg5: memref<1x24xf32, #tpu.memory_space<vmem>>, %arg6: memref<256x72xbf16, #tpu.memory_space<vmem>>, %arg7: memref<256x24xbf16, #tpu.memory_space<vmem>>) attributes {dimension_semantics = [#tpu.dimension_semantics<parallel>], iteration_bounds = array<i64: 2>, scalar_prefetch = 0 : i64, scratch_operands = 0 : i64, tpu.core_type = #tpu.core_type<tc>, window_params = [{transform_indices = @transform_0, window_bounds = array<i64: 256, 32>}, {pipeline_mode = #tpu.pipeline_mode<synchronous>, transform_indices = @transform_1, window_bounds = array<i64: 32, 72>}, {pipeline_mode = #tpu.pipeline_mode<synchronous>, transform_indices = @transform_2, window_bounds = array<i64: 32, 24>}, {pipeline_mode = #tpu.pipeline_mode<synchronous>, transform_indices = @transform_3, window_bounds = array<i64: 1, 72>}, {pipeline_mode = #tpu.pipeline_mode<synchronous>, transform_indices = @transform_4, window_bounds = array<i64: 1, 24>}, {transform_indices = @transform_5, window_bounds = array<i64: 256, 72>}, {transform_indices = @transform_6, window_bounds = array<i64: 256, 24>}]} {
    %c0 = arith.constant 0 : index
    %c0_0 = arith.constant 0 : index
    %0 = vector.load %arg1[%c0, %c0_0] : memref<256x32xf32, #tpu.memory_space<vmem>>, vector<256x32xf32>
    %1 = arith.truncf %0 : vector<256x32xf32> to vector<256x32xbf16>
    %c0_1 = arith.constant 0 : index
    %c0_2 = arith.constant 0 : index
    %2 = vector.load %arg2[%c0_1, %c0_2] : memref<32x72xbf16, #tpu.memory_space<vmem>>, vector<32x72xbf16>
    %cst = arith.constant dense<0.000000e+00> : vector<256x72xf32>
    %3 = tpu.matmul %1, %2, %cst {dimension_numbers = #tpu.dot_dimension_numbers<[1], [0], [0], [1], [0, 0, 1, 1], [], []>} : vector<256x32xbf16>, vector<32x72xbf16>, vector<256x72xf32> -> vector<256x72xf32>
    %c0_3 = arith.constant 0 : index
    %c0_4 = arith.constant 0 : index
    %4 = vector.load %arg4[%c0_3, %c0_4] : memref<1x72xf32, #tpu.memory_space<vmem>>, vector<1x72xf32>
    %5 = vector.broadcast %4 : vector<1x72xf32> to vector<256x72xf32>
    %6 = arith.addf %3, %5 : vector<256x72xf32>
    %7 = arith.truncf %6 : vector<256x72xf32> to vector<256x72xbf16>
    %c0_5 = arith.constant 0 : index
    %c0_6 = arith.constant 0 : index
    %8 = vector.load %arg6[%c0_5, %c0_6] : memref<256x72xbf16, #tpu.memory_space<vmem>>, vector<256x72xbf16>
    tpu.vector_store %arg6[%c0_5, %c0_6], %7 {strides = array<i32>} : memref<256x72xbf16, #tpu.memory_space<vmem>>, vector<256x72xbf16>,
    %c0_7 = arith.constant 0 : index
    %c0_8 = arith.constant 0 : index
    %9 = vector.load %arg3[%c0_7, %c0_8] : memref<32x24xbf16, #tpu.memory_space<vmem>>, vector<32x24xbf16>
    %cst_9 = arith.constant dense<0.000000e+00> : vector<256x24xf32>
    %10 = tpu.matmul %1, %9, %cst_9 {dimension_numbers = #tpu.dot_dimension_numbers<[1], [0], [0], [1], [0, 0, 1, 1], [], []>} : vector<256x32xbf16>, vector<32x24xbf16>, vector<256x24xf32> -> vector<256x24xf32>
    %c0_10 = arith.constant 0 : index
    %c0_11 = arith.constant 0 : index
    %11 = vector.load %arg5[%c0_10, %c0_11] : memref<1x24xf32, #tpu.memory_space<vmem>>, vector<1x24xf32>
    %12 = vector.broadcast %11 : vector<1x24xf32> to vector<256x24xf32>
    %13 = arith.addf %10, %12 : vector<256x24xf32>
    %14 = arith.truncf %13 : vector<256x24xf32> to vector<256x24xbf16>
    %c0_12 = arith.constant 0 : index
    %c0_13 = arith.constant 0 : index
    %15 = vector.load %arg7[%c0_12, %c0_13] : memref<256x24xbf16, #tpu.memory_space<vmem>>, vector<256x24xbf16>
    tpu.vector_store %arg7[%c0_12, %c0_13], %14 {strides = array<i32>} : memref<256x24xbf16, #tpu.memory_space<vmem>>, vector<256x24xbf16>,
    return
  }
  func.func @transform_0(%arg0: i32) -> (i32, i32) {
    %c0_i32 = arith.constant 0 : i32
    %c0_i32_0 = arith.constant 0 : i32
    return %arg0, %c0_i32 : i32, i32
  }
  func.func @transform_1(%arg0: i32) -> (i32, i32) {
    %c0_i32 = arith.constant 0 : i32
    %c0_i32_0 = arith.constant 0 : i32
    %c0_i32_1 = arith.constant 0 : i32
    return %c0_i32, %c0_i32_0 : i32, i32
  }
  func.func @transform_2(%arg0: i32) -> (i32, i32) {
    %c0_i32 = arith.constant 0 : i32
    %c0_i32_0 = arith.constant 0 : i32
    %c0_i32_1 = arith.constant 0 : i32
    return %c0_i32, %c0_i32_0 : i32, i32
  }
  func.func @transform_3(%arg0: i32) -> (i32, i32) {
    %c0_i32 = arith.constant 0 : i32
    %c0_i32_0 = arith.constant 0 : i32
    %c0_i32_1 = arith.constant 0 : i32
    return %c0_i32, %c0_i32_0 : i32, i32
  }
  func.func @transform_4(%arg0: i32) -> (i32, i32) {
    %c0_i32 = arith.constant 0 : i32
    %c0_i32_0 = arith.constant 0 : i32
    %c0_i32_1 = arith.constant 0 : i32
    return %c0_i32, %c0_i32_0 : i32, i32
  }
  func.func @transform_5(%arg0: i32) -> (i32, i32) {
    %c0_i32 = arith.constant 0 : i32
    %c0_i32_0 = arith.constant 0 : i32
    return %arg0, %c0_i32 : i32, i32
  }
  func.func @transform_6(%arg0: i32) -> (i32, i32) {
    %c0_i32 = arith.constant 0 : i32
    %c0_i32_0 = arith.constant 0 : i32
    return %arg0, %c0_i32 : i32, i32
  }
}

module attributes {stable_mosaic.version = 11 : i64} {
  func.func @_window_mhsa_kernel(%arg0: i32, %arg1: memref<3x16x3x16x8xbf16, #tpu.memory_space<vmem>>, %arg2: memref<3x16x16xf32, #tpu.memory_space<vmem>>, %arg3: memref<16x3x16x8xbf16, #tpu.memory_space<vmem>>) attributes {dimension_semantics = [#tpu.dimension_semantics<parallel>], iteration_bounds = array<i64: 2>, scalar_prefetch = 0 : i64, scratch_operands = 0 : i64, tpu.core_type = #tpu.core_type<tc>, window_params = [{transform_indices = @transform_0, window_bounds = array<i64: 3, 16, 3, 16, 8>}, {pipeline_mode = #tpu.pipeline_mode<synchronous>, transform_indices = @transform_1, window_bounds = array<i64: 3, 16, 16>}, {transform_indices = @transform_2, window_bounds = array<i64: 16, 3, 16, 8>}]} {
    %c0 = arith.constant 0 : index
    %c0_0 = arith.constant 0 : index
    %c0_1 = arith.constant 0 : index
    %c0_2 = arith.constant 0 : index
    %c0_3 = arith.constant 0 : index
    %0 = vector.load %arg1[%c0, %c0_0, %c0_1, %c0_2, %c0_3] : memref<3x16x3x16x8xbf16, #tpu.memory_space<vmem>>, vector<1x16x3x16x8xbf16>
    %1 = vector.shape_cast %0 : vector<1x16x3x16x8xbf16> to vector<16x3x16x8xbf16>
    %2 = vector.shape_cast %1 : vector<16x3x16x8xbf16> to vector<48x16x8xbf16>
    %c1 = arith.constant 1 : index
    %c0_4 = arith.constant 0 : index
    %c0_5 = arith.constant 0 : index
    %c0_6 = arith.constant 0 : index
    %c0_7 = arith.constant 0 : index
    %3 = vector.load %arg1[%c1, %c0_4, %c0_5, %c0_6, %c0_7] : memref<3x16x3x16x8xbf16, #tpu.memory_space<vmem>>, vector<1x16x3x16x8xbf16>
    %4 = vector.shape_cast %3 : vector<1x16x3x16x8xbf16> to vector<16x3x16x8xbf16>
    %5 = vector.shape_cast %4 : vector<16x3x16x8xbf16> to vector<48x16x8xbf16>
    %c2 = arith.constant 2 : index
    %c0_8 = arith.constant 0 : index
    %c0_9 = arith.constant 0 : index
    %c0_10 = arith.constant 0 : index
    %c0_11 = arith.constant 0 : index
    %6 = vector.load %arg1[%c2, %c0_8, %c0_9, %c0_10, %c0_11] : memref<3x16x3x16x8xbf16, #tpu.memory_space<vmem>>, vector<1x16x3x16x8xbf16>
    %7 = vector.shape_cast %6 : vector<1x16x3x16x8xbf16> to vector<16x3x16x8xbf16>
    %8 = vector.shape_cast %7 : vector<16x3x16x8xbf16> to vector<48x16x8xbf16>
    "tpu.trace_start"() <{level = 10 : i32, message = "bqd,bkd->bqk"}> : () -> ()
    %cst = arith.constant dense<0.000000e+00> : vector<48x16x16xf32>
    %9 = tpu.matmul %2, %5, %cst {dimension_numbers = #tpu.dot_dimension_numbers<[2], [2], [1], [1], [0, 0, 0, 1, 1, 1], [0], [0]>} : vector<48x16x8xbf16>, vector<48x16x8xbf16>, vector<48x16x16xf32> -> vector<48x16x16xf32>
    "tpu.trace_stop"() : () -> ()
    %cst_12 = arith.constant 0.353553385 : f32
    %10 = vector.broadcast %cst_12 : f32 to vector<48x16x16xf32>
    %11 = arith.mulf %9, %10 : vector<48x16x16xf32>
    %12 = vector.shape_cast %11 : vector<48x16x16xf32> to vector<16x3x16x16xf32>
    %c0_13 = arith.constant 0 : index
    %c0_14 = arith.constant 0 : index
    %c0_15 = arith.constant 0 : index
    %13 = vector.load %arg2[%c0_13, %c0_14, %c0_15] : memref<3x16x16xf32, #tpu.memory_space<vmem>>, vector<3x16x16xf32>
    %14 = vector.shape_cast %13 : vector<3x16x16xf32> to vector<1x3x16x16xf32>
    %15 = vector.broadcast %14 : vector<1x3x16x16xf32> to vector<16x3x16x16xf32>
    %16 = arith.addf %12, %15 : vector<16x3x16x16xf32>
    %cst_16 = arith.constant dense<0xFF800000> : vector<16x3x16xf32>
    %17 = vector.multi_reduction <maximumf>, %16, %cst_16 [3] : vector<16x3x16x16xf32> to vector<16x3x16xf32>
    %18 = vector.shape_cast %17 : vector<16x3x16xf32> to vector<16x3x16x1xf32>
    %19 = vector.broadcast %18 : vector<16x3x16x1xf32> to vector<16x3x16x16xf32>
    %20 = arith.subf %16, %19 : vector<16x3x16x16xf32>
    %21 = math.exp %20 : vector<16x3x16x16xf32>
    %cst_17 = arith.constant dense<0.000000e+00> : vector<16x3x16xf32>
    %22 = vector.multi_reduction <add>, %21, %cst_17 [3] : vector<16x3x16x16xf32> to vector<16x3x16xf32>
    %23 = vector.shape_cast %22 : vector<16x3x16xf32> to vector<16x3x16x1xf32>
    %24 = tpu.reciprocal %23 {approx = true} : vector<16x3x16x1xf32> -> vector<16x3x16x1xf32>
    %25 = vector.broadcast %24 : vector<16x3x16x1xf32> to vector<16x3x16x16xf32>
    %26 = arith.mulf %21, %25 : vector<16x3x16x16xf32>
    %27 = vector.shape_cast %26 : vector<16x3x16x16xf32> to vector<48x16x16xf32>
    %28 = arith.truncf %27 : vector<48x16x16xf32> to vector<48x16x16xbf16>
    "tpu.trace_start"() <{level = 10 : i32, message = "bqk,bkd->bqd"}> : () -> ()
    %cst_18 = arith.constant dense<0.000000e+00> : vector<48x16x8xf32>
    %29 = tpu.matmul %28, %8, %cst_18 {dimension_numbers = #tpu.dot_dimension_numbers<[2], [1], [1], [2], [0, 0, 0, 1, 1, 2], [0], [0]>} : vector<48x16x16xbf16>, vector<48x16x8xbf16>, vector<48x16x8xf32> -> vector<48x16x8xf32>
    "tpu.trace_stop"() : () -> ()
    %30 = vector.shape_cast %29 : vector<48x16x8xf32> to vector<16x3x16x8xf32>
    %31 = arith.truncf %30 : vector<16x3x16x8xf32> to vector<16x3x16x8xbf16>
    %c0_19 = arith.constant 0 : index
    %c0_20 = arith.constant 0 : index
    %c0_21 = arith.constant 0 : index
    %c0_22 = arith.constant 0 : index
    %32 = vector.load %arg3[%c0_19, %c0_20, %c0_21, %c0_22] : memref<16x3x16x8xbf16, #tpu.memory_space<vmem>>, vector<16x3x16x8xbf16>
    tpu.vector_store %arg3[%c0_19, %c0_20, %c0_21, %c0_22], %31 {strides = array<i32>} : memref<16x3x16x8xbf16, #tpu.memory_space<vmem>>, vector<16x3x16x8xbf16>,
    return
  }
  func.func @transform_0(%arg0: i32) -> (i32, i32, i32, i32, i32) {
    %c0_i32 = arith.constant 0 : i32
    %c0_i32_0 = arith.constant 0 : i32
    %c0_i32_1 = arith.constant 0 : i32
    %c0_i32_2 = arith.constant 0 : i32
    %c0_i32_3 = arith.constant 0 : i32
    return %c0_i32, %arg0, %c0_i32_0, %c0_i32_1, %c0_i32_2 : i32, i32, i32, i32, i32
  }
  func.func @transform_1(%arg0: i32) -> (i32, i32, i32) {
    %c0_i32 = arith.constant 0 : i32
    %c0_i32_0 = arith.constant 0 : i32
    %c0_i32_1 = arith.constant 0 : i32
    %c0_i32_2 = arith.constant 0 : i32
    return %c0_i32, %c0_i32_0, %c0_i32_1 : i32, i32, i32
  }
  func.func @transform_2(%arg0: i32) -> (i32, i32, i32, i32) {
    %c0_i32 = arith.constant 0 : i32
    %c0_i32_0 = arith.constant 0 : i32
    %c0_i32_1 = arith.constant 0 : i32
    %c0_i32_2 = arith.constant 0 : i32
    return %arg0, %c0_i32, %c0_i32_0, %c0_i32_1 : i32, i32, i32, i32
  }
}

module attributes {stable_mosaic.version = 11 : i64} {
  func.func @_linear_kernel(%arg0: i32, %arg1: memref<256x24xbf16, #tpu.memory_space<vmem>>, %arg2: memref<24x24xbf16, #tpu.memory_space<vmem>>, %arg3: memref<1x24xf32, #tpu.memory_space<vmem>>, %arg4: memref<256x24xf32, #tpu.memory_space<vmem>>) attributes {dimension_semantics = [#tpu.dimension_semantics<parallel>], iteration_bounds = array<i64: 2>, scalar_prefetch = 0 : i64, scratch_operands = 0 : i64, tpu.core_type = #tpu.core_type<tc>, window_params = [{transform_indices = @transform_0, window_bounds = array<i64: 256, 24>}, {pipeline_mode = #tpu.pipeline_mode<synchronous>, transform_indices = @transform_1, window_bounds = array<i64: 24, 24>}, {pipeline_mode = #tpu.pipeline_mode<synchronous>, transform_indices = @transform_2, window_bounds = array<i64: 1, 24>}, {transform_indices = @transform_3, window_bounds = array<i64: 256, 24>}]} {
    %c0 = arith.constant 0 : index
    %c0_0 = arith.constant 0 : index
    %0 = vector.load %arg1[%c0, %c0_0] : memref<256x24xbf16, #tpu.memory_space<vmem>>, vector<256x24xbf16>
    %c0_1 = arith.constant 0 : index
    %c0_2 = arith.constant 0 : index
    %1 = vector.load %arg2[%c0_1, %c0_2] : memref<24x24xbf16, #tpu.memory_space<vmem>>, vector<24x24xbf16>
    %cst = arith.constant dense<0.000000e+00> : vector<256x24xf32>
    %2 = tpu.matmul %0, %1, %cst {dimension_numbers = #tpu.dot_dimension_numbers<[1], [0], [0], [1], [0, 0, 1, 1], [], []>} : vector<256x24xbf16>, vector<24x24xbf16>, vector<256x24xf32> -> vector<256x24xf32>
    %c0_3 = arith.constant 0 : index
    %c0_4 = arith.constant 0 : index
    %3 = vector.load %arg3[%c0_3, %c0_4] : memref<1x24xf32, #tpu.memory_space<vmem>>, vector<1x24xf32>
    %4 = vector.broadcast %3 : vector<1x24xf32> to vector<256x24xf32>
    %5 = arith.addf %2, %4 : vector<256x24xf32>
    %c0_5 = arith.constant 0 : index
    %c0_6 = arith.constant 0 : index
    %6 = vector.load %arg4[%c0_5, %c0_6] : memref<256x24xf32, #tpu.memory_space<vmem>>, vector<256x24xf32>
    tpu.vector_store %arg4[%c0_5, %c0_6], %5 {strides = array<i32>} : memref<256x24xf32, #tpu.memory_space<vmem>>, vector<256x24xf32>,
    return
  }
  func.func @transform_0(%arg0: i32) -> (i32, i32) {
    %c0_i32 = arith.constant 0 : i32
    %c0_i32_0 = arith.constant 0 : i32
    return %arg0, %c0_i32 : i32, i32
  }
  func.func @transform_1(%arg0: i32) -> (i32, i32) {
    %c0_i32 = arith.constant 0 : i32
    %c0_i32_0 = arith.constant 0 : i32
    %c0_i32_1 = arith.constant 0 : i32
    return %c0_i32, %c0_i32_0 : i32, i32
  }
  func.func @transform_2(%arg0: i32) -> (i32, i32) {
    %c0_i32 = arith.constant 0 : i32
    %c0_i32_0 = arith.constant 0 : i32
    %c0_i32_1 = arith.constant 0 : i32
    return %c0_i32, %c0_i32_0 : i32, i32
  }
  func.func @transform_3(%arg0: i32) -> (i32, i32) {
    %c0_i32 = arith.constant 0 : i32
    %c0_i32_0 = arith.constant 0 : i32
    return %arg0, %c0_i32 : i32, i32
  }
}

module attributes {stable_mosaic.version = 11 : i64} {
  func.func @_channel_attn_kernel(%arg0: i32, %arg1: memref<3x1x1x8x256xbf16, #tpu.memory_space<vmem>>, %arg2: memref<1xf32, #tpu.memory_space<smem>>, %arg3: memref<1x1x8x256xbf16, #tpu.memory_space<vmem>>) attributes {dimension_semantics = [#tpu.dimension_semantics<parallel>], iteration_bounds = array<i64: 2>, scalar_prefetch = 0 : i64, scratch_operands = 0 : i64, tpu.core_type = #tpu.core_type<tc>, window_params = [{transform_indices = @transform_0, window_bounds = array<i64: 3, 1, 1, 8, 256>}, {transform_indices = @transform_1, window_bounds = array<i64: 1>}, {transform_indices = @transform_2, window_bounds = array<i64: 1, 1, 8, 256>}]} {
    %c0 = arith.constant 0 : index
    %c0_0 = arith.constant 0 : index
    %c0_1 = arith.constant 0 : index
    %c0_2 = arith.constant 0 : index
    %c0_3 = arith.constant 0 : index
    %0 = vector.load %arg1[%c0, %c0_0, %c0_1, %c0_2, %c0_3] : memref<3x1x1x8x256xbf16, #tpu.memory_space<vmem>>, vector<1x1x1x8x256xbf16>
    %1 = vector.shape_cast %0 : vector<1x1x1x8x256xbf16> to vector<1x1x8x256xbf16>
    %c1 = arith.constant 1 : index
    %c0_4 = arith.constant 0 : index
    %c0_5 = arith.constant 0 : index
    %c0_6 = arith.constant 0 : index
    %c0_7 = arith.constant 0 : index
    %2 = vector.load %arg1[%c1, %c0_4, %c0_5, %c0_6, %c0_7] : memref<3x1x1x8x256xbf16, #tpu.memory_space<vmem>>, vector<1x1x1x8x256xbf16>
    %3 = vector.shape_cast %2 : vector<1x1x1x8x256xbf16> to vector<1x1x8x256xbf16>
    %c2 = arith.constant 2 : index
    %c0_8 = arith.constant 0 : index
    %c0_9 = arith.constant 0 : index
    %c0_10 = arith.constant 0 : index
    %c0_11 = arith.constant 0 : index
    %4 = vector.load %arg1[%c2, %c0_8, %c0_9, %c0_10, %c0_11] : memref<3x1x1x8x256xbf16, #tpu.memory_space<vmem>>, vector<1x1x1x8x256xbf16>
    %5 = vector.shape_cast %4 : vector<1x1x1x8x256xbf16> to vector<1x1x8x256xbf16>
    %6 = vector.shape_cast %5 : vector<1x1x8x256xbf16> to vector<1x8x256xbf16>
    %7 = arith.mulf %1, %1 : vector<1x1x8x256xbf16>
    %8 = arith.extf %7 : vector<1x1x8x256xbf16> to vector<1x1x8x256xf32>
    %cst = arith.constant dense<0.000000e+00> : vector<1x1x8xf32>
    %9 = vector.multi_reduction <add>, %8, %cst [3] : vector<1x1x8x256xf32> to vector<1x1x8xf32>
    %10 = vector.shape_cast %9 : vector<1x1x8xf32> to vector<1x1x8x1xf32>
    %11 = arith.mulf %3, %3 : vector<1x1x8x256xbf16>
    %12 = arith.extf %11 : vector<1x1x8x256xbf16> to vector<1x1x8x256xf32>
    %cst_12 = arith.constant dense<0.000000e+00> : vector<1x1x8xf32>
    %13 = vector.multi_reduction <add>, %12, %cst_12 [3] : vector<1x1x8x256xf32> to vector<1x1x8xf32>
    %14 = vector.shape_cast %13 : vector<1x1x8xf32> to vector<1x1x8x1xf32>
    %cst_13 = arith.constant 1.000000e-24 : f32
    %15 = vector.broadcast %cst_13 : f32 to vector<1x1x8x1xf32>
    %16 = arith.maximumf %10, %15 : vector<1x1x8x1xf32>
    %17 = math.rsqrt %16 : vector<1x1x8x1xf32>
    %cst_14 = arith.constant 1.000000e-24 : f32
    %18 = vector.broadcast %cst_14 : f32 to vector<1x1x8x1xf32>
    %19 = arith.maximumf %14, %18 : vector<1x1x8x1xf32>
    %20 = math.rsqrt %19 : vector<1x1x8x1xf32>
    %c0_15 = arith.constant 0 : index
    %21 = memref.load %arg2[%c0_15] : memref<1xf32, #tpu.memory_space<smem>>
    %22 = vector.broadcast %21 : f32 to vector<1x1x8x1xf32>
    %23 = arith.mulf %17, %22 : vector<1x1x8x1xf32>
    %24 = arith.truncf %23 : vector<1x1x8x1xf32> to vector<1x1x8x1xbf16>
    %25 = vector.broadcast %24 : vector<1x1x8x1xbf16> to vector<1x1x8x256xbf16>
    %26 = arith.mulf %1, %25 : vector<1x1x8x256xbf16>
    %27 = vector.shape_cast %26 : vector<1x1x8x256xbf16> to vector<1x8x256xbf16>
    %28 = arith.truncf %20 : vector<1x1x8x1xf32> to vector<1x1x8x1xbf16>
    %29 = vector.broadcast %28 : vector<1x1x8x1xbf16> to vector<1x1x8x256xbf16>
    %30 = arith.mulf %3, %29 : vector<1x1x8x256xbf16>
    %31 = vector.shape_cast %30 : vector<1x1x8x256xbf16> to vector<1x8x256xbf16>
    "tpu.trace_start"() <{level = 10 : i32, message = "bdn,ben->bde"}> : () -> ()
    %cst_16 = arith.constant dense<0.000000e+00> : vector<1x8x8xf32>
    %32 = tpu.matmul %27, %31, %cst_16 {dimension_numbers = #tpu.dot_dimension_numbers<[2], [2], [1], [1], [0, 0, 0, 1, 1, 1], [0], [0]>} : vector<1x8x256xbf16>, vector<1x8x256xbf16>, vector<1x8x8xf32> -> vector<1x8x8xf32>
    "tpu.trace_stop"() : () -> ()
    %cst_17 = arith.constant dense<0xFF800000> : vector<1x8xf32>
    %33 = vector.multi_reduction <maximumf>, %32, %cst_17 [2] : vector<1x8x8xf32> to vector<1x8xf32>
    %34 = vector.shape_cast %33 : vector<1x8xf32> to vector<1x8x1xf32>
    %35 = vector.broadcast %34 : vector<1x8x1xf32> to vector<1x8x8xf32>
    %36 = arith.subf %32, %35 : vector<1x8x8xf32>
    %37 = math.exp %36 : vector<1x8x8xf32>
    %cst_18 = arith.constant dense<0.000000e+00> : vector<1x8xf32>
    %38 = vector.multi_reduction <add>, %37, %cst_18 [2] : vector<1x8x8xf32> to vector<1x8xf32>
    %39 = vector.shape_cast %38 : vector<1x8xf32> to vector<1x8x1xf32>
    %40 = tpu.reciprocal %39 {approx = true} : vector<1x8x1xf32> -> vector<1x8x1xf32>
    %41 = vector.broadcast %40 : vector<1x8x1xf32> to vector<1x8x8xf32>
    %42 = arith.mulf %37, %41 : vector<1x8x8xf32>
    %43 = arith.truncf %42 : vector<1x8x8xf32> to vector<1x8x8xbf16>
    "tpu.trace_start"() <{level = 10 : i32, message = "bde,ben->bdn"}> : () -> ()
    %cst_19 = arith.constant dense<0.000000e+00> : vector<1x8x256xf32>
    %44 = tpu.matmul %43, %6, %cst_19 {dimension_numbers = #tpu.dot_dimension_numbers<[2], [1], [1], [2], [0, 0, 0, 1, 1, 2], [0], [0]>} : vector<1x8x8xbf16>, vector<1x8x256xbf16>, vector<1x8x256xf32> -> vector<1x8x256xf32>
    "tpu.trace_stop"() : () -> ()
    %45 = vector.shape_cast %44 : vector<1x8x256xf32> to vector<1x1x8x256xf32>
    %46 = arith.truncf %45 : vector<1x1x8x256xf32> to vector<1x1x8x256xbf16>
    %c0_20 = arith.constant 0 : index
    %c0_21 = arith.constant 0 : index
    %c0_22 = arith.constant 0 : index
    %c0_23 = arith.constant 0 : index
    %47 = vector.load %arg3[%c0_20, %c0_21, %c0_22, %c0_23] : memref<1x1x8x256xbf16, #tpu.memory_space<vmem>>, vector<1x1x8x256xbf16>
    tpu.vector_store %arg3[%c0_20, %c0_21, %c0_22, %c0_23], %46 {strides = array<i32>} : memref<1x1x8x256xbf16, #tpu.memory_space<vmem>>, vector<1x1x8x256xbf16>,
    return
  }
  func.func @transform_0(%arg0: i32) -> (i32, i32, i32, i32, i32) {
    %c0_i32 = arith.constant 0 : i32
    %c0_i32_0 = arith.constant 0 : i32
    %c0_i32_1 = arith.constant 0 : i32
    %c0_i32_2 = arith.constant 0 : i32
    %c0_i32_3 = arith.constant 0 : i32
    return %c0_i32, %arg0, %c0_i32_0, %c0_i32_1, %c0_i32_2 : i32, i32, i32, i32, i32
  }
  func.func @transform_1(%arg0: i32) -> i32 {
    %c0_i32 = arith.constant 0 : i32
    %c0_i32_0 = arith.constant 0 : i32
    return %c0_i32 : i32
  }
  func.func @transform_2(%arg0: i32) -> (i32, i32, i32, i32) {
    %c0_i32 = arith.constant 0 : i32
    %c0_i32_0 = arith.constant 0 : i32
    %c0_i32_1 = arith.constant 0 : i32
    %c0_i32_2 = arith.constant 0 : i32
    return %arg0, %c0_i32, %c0_i32_0, %c0_i32_1 : i32, i32, i32, i32
  }
}

</mosaic_0001>

<bundles_post_ra>
// kernel: channelwise_attention_forward.4
= control target key start
LH: loop header
LB: loop body
LE: loop exit
PB: predicated region body
PF: predicated region fallthrough
CT: control target
= control target key end

     0   :  { %12 = vsyncpa [#allocation3], 0  ;;  %s2010_s0 = inlined_call_operand.hbm [shape: f32[512,32], index: 0, kind: input, shape index: {}]   ;;  %s2011_s1 = inlined_call_operand.vmem [shape: bf16[32,72], index: 1, kind: input, shape index: {}]   ;;  %s2012_s2 = inlined_call_operand.vmem [shape: bf16[32,24], index: 2, kind: input, shape index: {}]   ;;  %s2013_s3 = inlined_call_operand.vmem [shape: f32[1,72], index: 3, kind: input, shape index: {}]   ;;  %s2014_s4 = inlined_call_operand.vmem [shape: f32[1,24], index: 4, kind: input, shape index: {}]   ;;  %s2015_s5 = inlined_call_operand.vmem [shape: bf16[512,72], index: 5, kind: output, shape index: {0}]   ;;  %s2016_s6 = inlined_call_operand.vmem [shape: bf16[512,24], index: 6, kind: output, shape index: {1}]  }
   0x1   :  { %14 = vsyncpa [#allocation3 + $0x1], 0  ;;  %s1616_s21 = smov 0   ;;  %s1618_s22 = smov 0  }
   0x2   :  { %s1620_s23 = smov 0   ;;  %s1622_s24 = smov 0  }
   0x3 LB: > { %s1177_s25 = sadd.s32 4294967295, %s1576_s24   ;;  %s1636_s26 = sadd.s32 1, %s1576_s24   ;;  %s1576_s24 = sphi %s1622_s24, %s2023_s24   ;;  %s1572_s23 = sphi %s1620_s23, %s2022_s23   ;;  %s1568_s22 = sphi %s1618_s22, %s2021_s22   ;;  %s1564_s21 = sphi %s1616_s21, %s2020_s21  }
   0x4   : > { %s24_s27 = ssub.s32 %s1576_s24, %s1636_s26  ;;  %s27_s28 = sadd.s32 1, %s1572_s23 }
   0x5   : > { %p25_p0 = scmp.eq.s32.totalorder %s24_s27, 0  ;;  %p34_p1 = scmp.ne.s32.totalorder %s1572_s23, %s1568_s22 }
   0x6   : > { %p35_p2 = scmp.eq.s32.totalorder %s1576_s24, 0  ;;  %p40_p3 = scmp.ne.s32.totalorder %s1568_s22, %s1564_s21 }
   0x7   : > { %s1646_s29 = scalar_select %p25_p0, %s1572_s23, %s27_s28  }
   0x8   : > { %p36_p4 = por %p35_p2, %p34_p1  ;;  %p41_p5 = scmp.eq.s32.totalorder %s1177_s25, 0 }
   0x9   : > { %p1473_p6 = scmp.lt.s32.totalorder %s1576_s24, 2  ;;  %s212_s7 = sand.u32 1, %s1572_s23  }
   0xa   : > { %p1651_p7 = por %p41_p5, %p40_p3  ;;  %s1181_s8 = sshll.u32 %s212_s7, 8 }
   0xb   : > { %s1294_s9 = sshll.u32 %s1576_s24, 12  ;;  %s216_s13 = scalar_lea.vmem [#allocation2], %s1181_s8 }
   0xc   : > { %s1660_s12 = scalar_lea.hbm %s2010_s0, %s1294_s9  ;;  %s223_s14 = sshll.u32 %s216_s13, 4  ;;  %s1662_s14 = int_to_ptr.vmem [resolvable:$true] %s223_s14 }
   0xd   : > { %p1664_p8 = pnand %p1473_p6, %p36_p4  ;;  %s1669_s16 = scalar_lea.sflag [#allocation3], %s212_s7 }
   0xe   : > { %s1512_s17 = scalar_lea.hbm %s1660_s12, 4096  ;;  %s1517_s20 = scalar_lea.hbm %s2010_s0, 8192 }
   0xf   : > { %p1513_p10 = scmp.ne.s32.totalorder %s1660_s12, %s1512_s17  ;;  %p1514_p11 = pneg %p1664_p8 }
  0x10   : > { %p1518_p0 = scmp.lt.u32.totalorder %s1660_s12, %s2010_s0  ;;  %p1519_p1 = scmp.lt.u32.totalorder %s1517_s20, %s1512_s17 }
  0x11   : > { %p1515_p12 = pnand %p1514_p11, %p1513_p10  ;;  %p1521_p3 = scmp.lt.u32.totalorder %s1512_s17, %s1660_s12 }
  0x12   : > { %p1520_p2 = por %p1519_p1, %p1518_p0 }
  0x13   : > { %p1516_p13 = pneg %p1515_p12 }
  0x14   : > { %p1522_p4 = por %p1521_p3, %p1520_p2 }
  0x16   : > { %p1523_p5 = pnand %p1522_p4, %p1516_p13 }
  0x18   : > { %1526 = shalt.err (!%p1523_p5)
}
  0x19   : > { %s1527_s28 = scalar_lea.vmem %s1662_s14, 4096  ;;  %s1578_s7 = smov [#allocation2]  }
  0x1a   : > { %p1528_p6 = scmp.ne.s32.totalorder %s1662_s14, %s1527_s28  ;;  %s1532_s8 = sshll.u32 %s1578_s7, 4  ;;  %s1533_s8 = int_to_ptr.vmem [resolvable:$false] %s1532_s8 }
  0x1b   : > { %s1534_s9 = scalar_lea.vmem %s1533_s8, 8192  ;;  %p1535_p9 = scmp.lt.s32.totalorder %s1662_s14, %s1533_s8 }
  0x1c   : > { %p1530_p10 = pnand %p1528_p6, %p1514_p11  ;;  %p1536_p0 = scmp.lt.s32.totalorder %s1534_s9, %s1527_s28 }
  0x1e   : > { %p1531_p12 = pneg %p1530_p10  ;;  %p1537_p1 = por %p1536_p0, %p1535_p9 }
  0x20   : > { %p1538_p2 = pnand %p1537_p1, %p1531_p12 }
  0x22   : > { %1541 = shalt.err (!%p1538_p2)
}
  0x23   : > { %s1579_s10 = smov 128   ;;  %s1580_s11 = smov 8  }
  0x24   : > { %1472 = dma.hbm_to_vmem [thread:$0]  (!%p1664_p8), %s1660_s12, 4096, %s1662_s14, %s1669_s16, %s1579_s10, %s1579_s10, %s1580_s11  }
  0x25   : > { %p231_p11 = scmp.lt.s32.totalorder %s1576_s24, 3  ;;  %p2019_p13 = scmp.ge.s32.totalorder %s1576_s24, 1 }
  0x27   : > { %p232_p3 = pnand %p2019_p13, %p231_p11 }
  0x28   : > { %s237_s13 = sand.u32 (!%p232_p3), 1, %s1568_s22  }
  0x29   : > { %235 = sbr.rel (%p232_p3) target bundleno = 336 (0x150), region = 40  ;;  %s1185_s17 = sshll.u32 (!%p232_p3), %s237_s13, 8 }
  0x2a   : > { %s238_s18 = scalar_lea.sflag (!%p232_p3), [#allocation3], %s237_s13  ;;  %s1701_s19 = scalar_lea.vmem (!%p232_p3), [#allocation2], %s1185_s17 }
  0x30   : > { %1559 = dma.done.wait (%p1651_p7), %s238_s18, 4096  }
  0x31   : > { %1561 = vsyncadd (%p1651_p7), %s238_s18, 4294963200  ;;  %v1508_v0 = vld [vmem:[%s2011_s1] sm:$0xff]   ;;  %v1510_v2 = vld [vmem:[%s2011_s1 + $0x8] sm:$0xff]   ;;  %vm360_vm0 = vcmask 261120   ;;  %s1186_s28 = sshll.u32 %s1177_s25, 5  ;;  %vm698_vm1 = vcmask 584704  }
  0x32   : > { %v1509_v1 = vld [vmem:[%s2012_s2] sm:$0xff]   ;;  %1395 = vmatprep.subr.bf16.mxu0 %v1508_v0  ;;  %v1511_v3 = vld [vmem:[%s2012_s2 + $0x8] sm:$0xff]   ;;  %v291_v6 = vld [vmem:[%s1701_s19 + $0x10] sm:$0xff]  ;;  %p277_p7 = scmp.lt.s32.totalorder %s1186_s28, 63  ;;  %vm1043_vm2 = vcmask 191488  }
  0x33   : > { %1431 = vmatprep.subr.bf16.mxu1 %v1509_v1  ;;  %1396 = vmatpush3.bf16.msra.mxu0 %v1508_v0  ;;  %v289_v4 = vld [vmem:[%s1701_s19] sm:$0xff]  ;;  %v290_v5 = vld [vmem:[%s1701_s19 + $0x8] sm:$0xff]  ;;  %v292_v8 = vld [vmem:[%s1701_s19 + $0x18] sm:$0xff] }
  0x34   : > { %1432 = vmatpush3.bf16.msra.mxu1 %v1509_v1  ;;  %1397 = vmatprep.subr.bf16.mxu0 %v1510_v2  ;;  %v321_v7 = vpack.c.bf16 %v290_v5, %v289_v4  ;;  %v293_v9 = vld [vmem:[%s1701_s19 + $0x20] sm:$0xff]  ;;  %v294_v10 = vld [vmem:[%s1701_s19 + $0x28] sm:$0xff]  ;;  %v322_v11 = vpack.c.bf16 %v292_v8, %v291_v6  ;;  %v295_v13 = vld [vmem:[%s1701_s19 + $0x30] sm:$0xff]  ;;  %s2025_s28 = smov (!%p277_p7, %s1186_s28), 63 }
  0x35   : > { %1433 = vmatprep.subr.bf16.mxu1 %v1511_v3  ;;  %v323_v12 = vpack.c.bf16 %v294_v10, %v293_v9  ;;  %v296_v14 = vld [vmem:[%s1701_s19 + $0x38] sm:$0xff]  ;;  %v297_v15 = vld [vmem:[%s1701_s19 + $0x40] sm:$0xff]  ;;  %v298_v16 = vld [vmem:[%s1701_s19 + $0x48] sm:$0xff]  ;;  %s1187_s9 = sshll.u32 %s2025_s28, 2 }
  0x36   : > { %1399 = vmatprep.mubr.msk.bf16.mxu0 %vm360_vm0, %v321_v7  ;;  %1435 = vmatprep.mubr.msk.bf16.mxu1 %vm360_vm0, %v321_v7  ;;  %v324_v17 = vpack.c.bf16 %v296_v14, %v295_v13  ;;  %v325_v18 = vpack.c.bf16 %v298_v16, %v297_v15  ;;  %v299_v19 = vld [vmem:[%s1701_s19 + $0x50] sm:$0xff]  ;;  %v300_v20 = vld [vmem:[%s1701_s19 + $0x58] sm:$0xff]  ;;  %v301_v21 = vld [vmem:[%s1701_s19 + $0x60] sm:$0xff]  ;;  %s1799_s13 = scalar_lea.vmem %s2015_s5, %s1187_s9 }
  0x37   : > { %1398 = vmatpush3.bf16.msra.mxu0 %v1510_v2  ;;  %v302_v22 = vld [vmem:[%s1701_s19 + $0x68] sm:$0xff]  ;;  %v326_v23 = vpack.c.bf16 %v300_v20, %v299_v19  ;;  %v303_v25 = vld [vmem:[%s1701_s19 + $0x70] sm:$0xff]  ;;  %v304_v26 = vld [vmem:[%s1701_s19 + $0x78] sm:$0xff] }
  0x38   : > { %1434 = vmatpush3.bf16.msra.mxu1 %v1511_v3  ;;  %v327_v24 = vpack.c.bf16 %v302_v22, %v301_v21  ;;  %v305_v27 = vld [vmem:[%s1701_s19 + $0x80] sm:$0xff]  ;;  %v306_v28 = vld [vmem:[%s1701_s19 + $0x88] sm:$0xff]  ;;  %v328_v29 = vpack.c.bf16 %v304_v26, %v303_v25  ;;  %v307_v31 = vld [vmem:[%s1701_s19 + $0x90] sm:$0xff] }
  0x39   : > { %v329_v30 = vpack.c.bf16 %v306_v28, %v305_v27  ;;  %v308_v32 = vld [vmem:[%s1701_s19 + $0x98] sm:$0xff]  ;;  %v309_v33 = vld [vmem:[%s1701_s19 + $0xa0] sm:$0xff]  ;;  %v310_v34 = vld [vmem:[%s1701_s19 + $0xa8] sm:$0xff] }
  0x3a   : > { %1400 = vmatmul.mubr.msk.bf16.vlgmr.msra.gmra.mrb[0].mxu0 %vm360_vm0, %v322_v11  ;;  %v330_v35 = vpack.c.bf16 %v308_v32, %v307_v31  ;;  %v331_v36 = vpack.c.bf16 %v310_v34, %v309_v33  ;;  %v311_v37 = vld [vmem:[%s1701_s19 + $0xb0] sm:$0xff]  ;;  %v312_v38 = vld [vmem:[%s1701_s19 + $0xb8] sm:$0xff]  ;;  %v313_v39 = vld [vmem:[%s1701_s19 + $0xc0] sm:$0xff] }
  0x3b   : > { %1436 = vmatmul.mubr.msk.bf16.vlgmr.msra.gmra.mrb[0].mxu1 %vm360_vm0, %v322_v11  ;;  %1403 = vmatprep.mubr.msk.bf16.mxu0 %vm360_vm0, %v323_v12  ;;  %v314_v40 = vld [vmem:[%s1701_s19 + $0xc8] sm:$0xff]  ;;  %v332_v41 = vpack.c.bf16 %v312_v38, %v311_v37  ;;  %v315_v43 = vld [vmem:[%s1701_s19 + $0xd0] sm:$0xff]  ;;  %v316_v44 = vld [vmem:[%s1701_s19 + $0xd8] sm:$0xff] }
  0x3c   : > { %1439 = vmatprep.mubr.msk.bf16.mxu1 %vm360_vm0, %v323_v12  ;;  %v333_v42 = vpack.c.bf16 %v314_v40, %v313_v39  ;;  %v317_v45 = vld [vmem:[%s1701_s19 + $0xe0] sm:$0xff]  ;;  %v318_v46 = vld [vmem:[%s1701_s19 + $0xe8] sm:$0xff]  ;;  %v334_v47 = vpack.c.bf16 %v316_v44, %v315_v43  ;;  %v319_v49 = vld [vmem:[%s1701_s19 + $0xf0] sm:$0xff] }
  0x3d   : > { %v335_v48 = vpack.c.bf16 %v318_v46, %v317_v45  ;;  %v320_v50 = vld [vmem:[%s1701_s19 + $0xf8] sm:$0xff]  ;;  %v1788_v52 = vld [vmem:[%s2013_s3] ss:$0 sm:$0xff]  ;;  %s1806_s19 = scalar_lea.vmem %s2016_s6, %s1187_s9 }
  0x3e   : > { %v336_v51 = vpack.c.bf16 %v320_v50, %v319_v49  ;;  %v1793_v53 = vld [vmem:[%s2014_s4] ss:$0 sm:$0xff] }
  0x42   : > { %1404 = vmatmul.mubr.msk.bf16.gmra.mrb[4].mxu0 %vm360_vm0, %v324_v17 }
  0x43   : > { %1440 = vmatmul.mubr.msk.bf16.gmra.mrb[4].mxu1 %vm360_vm0, %v324_v17  ;;  %1407 = vmatprep.mubr.msk.bf16.mxu0 %vm360_vm0, %v325_v18 }
  0x44   : > { %1443 = vmatprep.mubr.msk.bf16.mxu1 %vm360_vm0, %v325_v18 }
  0x4a   : > { %1408 = vmatmul.mubr.msk.bf16.gmra.mrb[8].mxu0 %vm360_vm0, %v326_v23 }
  0x4b   : > { %1444 = vmatmul.mubr.msk.bf16.gmra.mrb[8].mxu1 %vm360_vm0, %v326_v23  ;;  %1411 = vmatprep.mubr.msk.bf16.mxu0 %vm360_vm0, %v327_v24 }
  0x4c   : > { %1447 = vmatprep.mubr.msk.bf16.mxu1 %vm360_vm0, %v327_v24 }
  0x52   : > { %1412 = vmatmul.mubr.msk.bf16.gmra.mrb[12].mxu0 %vm360_vm0, %v328_v29 }
  0x53   : > { %1448 = vmatmul.mubr.msk.bf16.gmra.mrb[12].mxu1 %vm360_vm0, %v328_v29  ;;  %1415 = vmatprep.mubr.msk.bf16.mxu0 %vm360_vm0, %v329_v30 }
  0x54   : > { %1451 = vmatprep.mubr.msk.bf16.mxu1 %vm360_vm0, %v329_v30 }
  0x5a   : > { %1416 = vmatmul.mubr.msk.bf16.gmra.mrb[16].mxu0 %vm360_vm0, %v330_v35 }
  0x5b   : > { %1452 = vmatmul.mubr.msk.bf16.gmra.mrb[16].mxu1 %vm360_vm0, %v330_v35  ;;  %1419 = vmatprep.mubr.msk.bf16.mxu0 %vm360_vm0, %v331_v36 }
  0x5c   : > { %1455 = vmatprep.mubr.msk.bf16.mxu1 %vm360_vm0, %v331_v36 }
  0x62   : > { %1420 = vmatmul.mubr.msk.bf16.gmra.mrb[20].mxu0 %vm360_vm0, %v332_v41 }
  0x63   : > { %1456 = vmatmul.mubr.msk.bf16.gmra.mrb[20].mxu1 %vm360_vm0, %v332_v41  ;;  %1423 = vmatprep.mubr.msk.bf16.mxu0 %vm360_vm0, %v333_v42 }
  0x64   : > { %1459 = vmatprep.mubr.msk.bf16.mxu1 %vm360_vm0, %v333_v42 }
  0x6a   : > { %1424 = vmatmul.mubr.msk.bf16.gmra.mrb[24].mxu0 %vm360_vm0, %v334_v47 }
  0x6b   : > { %1460 = vmatmul.mubr.msk.bf16.gmra.mrb[24].mxu1 %vm360_vm0, %v334_v47  ;;  %1427 = vmatprep.mubr.msk.bf16.mxu0 %vm360_vm0, %v335_v48 }
  0x6c   : > { %1463 = vmatprep.mubr.msk.bf16.mxu1 %vm360_vm0, %v335_v48 }
  0x72   : > { %1428 = vmatmul.mubr.msk.bf16.gmra.mrb[28].mxu0 %vm360_vm0, %v336_v51 }
  0x73   : > { %1464 = vmatmul.mubr.msk.bf16.gmra.mrb[28].mxu1 %vm360_vm0, %v336_v51 }
 0x10d   : > { %v1401_v54 = vpop.f32.mrb[0].mxu0 }
 0x10e   : > { %v452_v55 = vadd.f32 %v1401_v54, %v1788_v52  ;;  %v1437_v56 = vpop.f32.mrb[0].mxu1  ;;  %v443_v57 = vpop.f32.mrb[1].mxu0 }
 0x10f   : > { %v797_v58 = vadd.f32 %v1437_v56, %v1793_v53  ;;  %v444_v59 = vadd.f32 %v1788_v52, %v443_v57  ;;  %v788_v60 = vpop.f32.mrb[1].mxu1  ;;  %v1402_v61 = vpop.f32.mrb[2].mxu0 }
 0x110   : > { %v1297_v62 = vpack.c.bf16 %v452_v55, %v452_v55  ;;  %v789_v63 = vadd.f32 %v1793_v53, %v788_v60  ;;  %v455_v0 = vadd.f32 %v1402_v61, %v1788_v52  ;;  %v1438_v1 = vpop.f32.mrb[2].mxu1  ;;  %v446_v2 = vpop.f32.mrb[3].mxu0 }
 0x111   : > { %v1329_v3 = vpack.c.bf16 %v797_v58, %v797_v58  ;;  %v1295_v4 = vpack.c.bf16 %v444_v59, %v444_v59  ;;  %v800_v5 = vadd.f32 %v1438_v1, %v1793_v53  ;;  %v447_v6 = vadd.f32 %v1788_v52, %v446_v2  ;;  %v791_v7 = vpop.f32.mrb[3].mxu1 }
 0x112   : > { %701 = vst.msk [vmem:[%s1799_s13 + $0x8] sm:$0xf] %vm698_vm1, %v1297_v62  ;;  %v1327_v8 = vpack.c.bf16 %v789_v63, %v789_v63  ;;  %v1298_v9 = vpack.c.bf16 %v455_v0, %v455_v0  ;;  %v792_v10 = vadd.f32 %v1793_v53, %v791_v7 }
 0x113   : > { %1046 = vst.msk [vmem:[%s1806_s19 + $0x8] sm:$0xf] %vm1043_vm2, %v1329_v3  ;;  %v1330_v11 = vpack.c.bf16 %v800_v5, %v800_v5  ;;  %v1296_v12 = vpack.c.bf16 %v447_v6, %v447_v6 }
 0x114   : > { %699 = vst.msk [vmem:[%s1799_s13] sm:$0xf] %vm698_vm1, %v1295_v4  ;;  %702 = vst.msk [vmem:[%s1799_s13 + $0xc] sm:$0xf] %vm698_vm1, %v1298_v9  ;;  %v1328_v13 = vpack.c.bf16 %v792_v10, %v792_v10 }
 0x115   : > { %1044 = vst.msk [vmem:[%s1806_s19] sm:$0xf] %vm1043_vm2, %v1327_v8  ;;  %1047 = vst.msk [vmem:[%s1806_s19 + $0xc] sm:$0xf] %vm1043_vm2, %v1330_v11  ;;  %v1405_v14 = vpop.f32.mrb[4].mxu0 }
 0x116   : > { %700 = vst.msk [vmem:[%s1799_s13 + $0x4] sm:$0xf] %vm698_vm1, %v1296_v12  ;;  %v468_v15 = vadd.f32 %v1405_v14, %v1788_v52  ;;  %v1441_v16 = vpop.f32.mrb[4].mxu1  ;;  %v459_v17 = vpop.f32.mrb[5].mxu0 }
 0x117   : > { %1045 = vst.msk [vmem:[%s1806_s19 + $0x4] sm:$0xf] %vm1043_vm2, %v1328_v13  ;;  %v813_v18 = vadd.f32 %v1441_v16, %v1793_v53  ;;  %v460_v19 = vadd.f32 %v1788_v52, %v459_v17  ;;  %v804_v20 = vpop.f32.mrb[5].mxu1  ;;  %v1406_v21 = vpop.f32.mrb[6].mxu0 }
 0x118   : > { %v1301_v22 = vpack.c.bf16 %v468_v15, %v468_v15  ;;  %v805_v23 = vadd.f32 %v1793_v53, %v804_v20  ;;  %v471_v24 = vadd.f32 %v1406_v21, %v1788_v52  ;;  %v1442_v25 = vpop.f32.mrb[6].mxu1  ;;  %v462_v26 = vpop.f32.mrb[7].mxu0 }
 0x119   : > { %v1333_v27 = vpack.c.bf16 %v813_v18, %v813_v18  ;;  %v1299_v28 = vpack.c.bf16 %v460_v19, %v460_v19  ;;  %v816_v29 = vadd.f32 %v1442_v25, %v1793_v53  ;;  %v463_v30 = vadd.f32 %v1788_v52, %v462_v26  ;;  %v807_v31 = vpop.f32.mrb[7].mxu1 }
 0x11a   : > { %705 = vst.msk [vmem:[%s1799_s13 + $0x18] sm:$0xf] %vm698_vm1, %v1301_v22  ;;  %v1331_v32 = vpack.c.bf16 %v805_v23, %v805_v23  ;;  %v1302_v33 = vpack.c.bf16 %v471_v24, %v471_v24  ;;  %v808_v34 = vadd.f32 %v1793_v53, %v807_v31 }
 0x11b   : > { %1050 = vst.msk [vmem:[%s1806_s19 + $0x18] sm:$0xf] %vm1043_vm2, %v1333_v27  ;;  %v1334_v35 = vpack.c.bf16 %v816_v29, %v816_v29  ;;  %v1300_v36 = vpack.c.bf16 %v463_v30, %v463_v30 }
 0x11c   : > { %703 = vst.msk [vmem:[%s1799_s13 + $0x10] sm:$0xf] %vm698_vm1, %v1299_v28  ;;  %706 = vst.msk [vmem:[%s1799_s13 + $0x1c] sm:$0xf] %vm698_vm1, %v1302_v33  ;;  %v1332_v37 = vpack.c.bf16 %v808_v34, %v808_v34 }
 0x11d   : > { %1048 = vst.msk [vmem:[%s1806_s19 + $0x10] sm:$0xf] %vm1043_vm2, %v1331_v32  ;;  %1051 = vst.msk [vmem:[%s1806_s19 + $0x1c] sm:$0xf] %vm1043_vm2, %v1334_v35  ;;  %v1409_v38 = vpop.f32.mrb[8].mxu0 }
 0x11e   : > { %704 = vst.msk [vmem:[%s1799_s13 + $0x14] sm:$0xf] %vm698_vm1, %v1300_v36  ;;  %v484_v39 = vadd.f32 %v1409_v38, %v1788_v52  ;;  %v1445_v40 = vpop.f32.mrb[8].mxu1  ;;  %v475_v41 = vpop.f32.mrb[9].mxu0 }
 0x11f   : > { %1049 = vst.msk [vmem:[%s1806_s19 + $0x14] sm:$0xf] %vm1043_vm2, %v1332_v37  ;;  %v829_v42 = vadd.f32 %v1445_v40, %v1793_v53  ;;  %v476_v43 = vadd.f32 %v1788_v52, %v475_v41  ;;  %v820_v44 = vpop.f32.mrb[9].mxu1  ;;  %v1410_v45 = vpop.f32.mrb[10].mxu0 }
 0x120   : > { %v1305_v46 = vpack.c.bf16 %v484_v39, %v484_v39  ;;  %v821_v47 = vadd.f32 %v1793_v53, %v820_v44  ;;  %v487_v48 = vadd.f32 %v1410_v45, %v1788_v52  ;;  %v1446_v49 = vpop.f32.mrb[10].mxu1  ;;  %v478_v50 = vpop.f32.mrb[11].mxu0 }
 0x121   : > { %v1337_v51 = vpack.c.bf16 %v829_v42, %v829_v42  ;;  %v1303_v54 = vpack.c.bf16 %v476_v43, %v476_v43  ;;  %v832_v55 = vadd.f32 %v1446_v49, %v1793_v53  ;;  %v479_v56 = vadd.f32 %v1788_v52, %v478_v50  ;;  %v823_v57 = vpop.f32.mrb[11].mxu1 }
 0x122   : > { %709 = vst.msk [vmem:[%s1799_s13 + $0x28] sm:$0xf] %vm698_vm1, %v1305_v46  ;;  %v1335_v58 = vpack.c.bf16 %v821_v47, %v821_v47  ;;  %v1306_v59 = vpack.c.bf16 %v487_v48, %v487_v48  ;;  %v824_v60 = vadd.f32 %v1793_v53, %v823_v57 }
 0x123   : > { %1054 = vst.msk [vmem:[%s1806_s19 + $0x28] sm:$0xf] %vm1043_vm2, %v1337_v51  ;;  %v1338_v61 = vpack.c.bf16 %v832_v55, %v832_v55  ;;  %v1304_v62 = vpack.c.bf16 %v479_v56, %v479_v56 }
 0x124   : > { %707 = vst.msk [vmem:[%s1799_s13 + $0x20] sm:$0xf] %vm698_vm1, %v1303_v54  ;;  %710 = vst.msk [vmem:[%s1799_s13 + $0x2c] sm:$0xf] %vm698_vm1, %v1306_v59  ;;  %v1336_v63 = vpack.c.bf16 %v824_v60, %v824_v60 }
 0x125   : > { %1052 = vst.msk [vmem:[%s1806_s19 + $0x20] sm:$0xf] %vm1043_vm2, %v1335_v58  ;;  %1055 = vst.msk [vmem:[%s1806_s19 + $0x2c] sm:$0xf] %vm1043_vm2, %v1338_v61  ;;  %v1413_v0 = vpop.f32.mrb[12].mxu0 }
 0x126   : > { %708 = vst.msk [vmem:[%s1799_s13 + $0x24] sm:$0xf] %vm698_vm1, %v1304_v62  ;;  %v500_v1 = vadd.f32 %v1413_v0, %v1788_v52  ;;  %v1449_v2 = vpop.f32.mrb[12].mxu1  ;;  %v491_v3 = vpop.f32.mrb[13].mxu0 }
 0x127   : > { %1053 = vst.msk [vmem:[%s1806_s19 + $0x24] sm:$0xf] %vm1043_vm2, %v1336_v63  ;;  %v845_v4 = vadd.f32 %v1449_v2, %v1793_v53  ;;  %v492_v5 = vadd.f32 %v1788_v52, %v491_v3  ;;  %v836_v6 = vpop.f32.mrb[13].mxu1  ;;  %v1414_v7 = vpop.f32.mrb[14].mxu0 }
 0x128   : > { %v1309_v8 = vpack.c.bf16 %v500_v1, %v500_v1  ;;  %v837_v9 = vadd.f32 %v1793_v53, %v836_v6  ;;  %v503_v10 = vadd.f32 %v1414_v7, %v1788_v52  ;;  %v1450_v11 = vpop.f32.mrb[14].mxu1  ;;  %v494_v12 = vpop.f32.mrb[15].mxu0 }
 0x129   : > { %v1341_v13 = vpack.c.bf16 %v845_v4, %v845_v4  ;;  %v1307_v14 = vpack.c.bf16 %v492_v5, %v492_v5  ;;  %v848_v15 = vadd.f32 %v1450_v11, %v1793_v53  ;;  %v495_v16 = vadd.f32 %v1788_v52, %v494_v12  ;;  %v839_v17 = vpop.f32.mrb[15].mxu1 }
 0x12a   : > { %713 = vst.msk [vmem:[%s1799_s13 + $0x38] sm:$0xf] %vm698_vm1, %v1309_v8  ;;  %v1339_v18 = vpack.c.bf16 %v837_v9, %v837_v9  ;;  %v1310_v19 = vpack.c.bf16 %v503_v10, %v503_v10  ;;  %v840_v20 = vadd.f32 %v1793_v53, %v839_v17 }
 0x12b   : > { %1058 = vst.msk [vmem:[%s1806_s19 + $0x38] sm:$0xf] %vm1043_vm2, %v1341_v13  ;;  %v1342_v21 = vpack.c.bf16 %v848_v15, %v848_v15  ;;  %v1308_v22 = vpack.c.bf16 %v495_v16, %v495_v16 }
 0x12c   : > { %711 = vst.msk [vmem:[%s1799_s13 + $0x30] sm:$0xf] %vm698_vm1, %v1307_v14  ;;  %714 = vst.msk [vmem:[%s1799_s13 + $0x3c] sm:$0xf] %vm698_vm1, %v1310_v19  ;;  %v1340_v23 = vpack.c.bf16 %v840_v20, %v840_v20 }
 0x12d   : > { %1056 = vst.msk [vmem:[%s1806_s19 + $0x30] sm:$0xf] %vm1043_vm2, %v1339_v18  ;;  %1059 = vst.msk [vmem:[%s1806_s19 + $0x3c] sm:$0xf] %vm1043_vm2, %v1342_v21  ;;  %v1417_v24 = vpop.f32.mrb[16].mxu0 }
 0x12e   : > { %712 = vst.msk [vmem:[%s1799_s13 + $0x34] sm:$0xf] %vm698_vm1, %v1308_v22  ;;  %v516_v25 = vadd.f32 %v1417_v24, %v1788_v52  ;;  %v1453_v26 = vpop.f32.mrb[16].mxu1  ;;  %v507_v27 = vpop.f32.mrb[17].mxu0 }
 0x12f   : > { %1057 = vst.msk [vmem:[%s1806_s19 + $0x34] sm:$0xf] %vm1043_vm2, %v1340_v23  ;;  %v861_v28 = vadd.f32 %v1453_v26, %v1793_v53  ;;  %v508_v29 = vadd.f32 %v1788_v52, %v507_v27  ;;  %v852_v30 = vpop.f32.mrb[17].mxu1  ;;  %v1418_v31 = vpop.f32.mrb[18].mxu0 }
 0x130   : > { %v1313_v32 = vpack.c.bf16 %v516_v25, %v516_v25  ;;  %v853_v33 = vadd.f32 %v1793_v53, %v852_v30  ;;  %v519_v34 = vadd.f32 %v1418_v31, %v1788_v52  ;;  %v1454_v35 = vpop.f32.mrb[18].mxu1  ;;  %v510_v36 = vpop.f32.mrb[19].mxu0 }
 0x131   : > { %v1345_v37 = vpack.c.bf16 %v861_v28, %v861_v28  ;;  %v1311_v38 = vpack.c.bf16 %v508_v29, %v508_v29  ;;  %v864_v39 = vadd.f32 %v1454_v35, %v1793_v53  ;;  %v511_v40 = vadd.f32 %v1788_v52, %v510_v36  ;;  %v855_v41 = vpop.f32.mrb[19].mxu1 }
 0x132   : > { %717 = vst.msk [vmem:[%s1799_s13 + $0x48] sm:$0xf] %vm698_vm1, %v1313_v32  ;;  %v1343_v42 = vpack.c.bf16 %v853_v33, %v853_v33  ;;  %v1314_v43 = vpack.c.bf16 %v519_v34, %v519_v34  ;;  %v856_v44 = vadd.f32 %v1793_v53, %v855_v41 }
 0x133   : > { %1062 = vst.msk [vmem:[%s1806_s19 + $0x48] sm:$0xf] %vm1043_vm2, %v1345_v37  ;;  %v1346_v45 = vpack.c.bf16 %v864_v39, %v864_v39  ;;  %v1312_v46 = vpack.c.bf16 %v511_v40, %v511_v40 }
 0x134   : > { %715 = vst.msk [vmem:[%s1799_s13 + $0x40] sm:$0xf] %vm698_vm1, %v1311_v38  ;;  %718 = vst.msk [vmem:[%s1799_s13 + $0x4c] sm:$0xf] %vm698_vm1, %v1314_v43  ;;  %v1344_v47 = vpack.c.bf16 %v856_v44, %v856_v44 }
 0x135   : > { %1060 = vst.msk [vmem:[%s1806_s19 + $0x40] sm:$0xf] %vm1043_vm2, %v1343_v42  ;;  %1063 = vst.msk [vmem:[%s1806_s19 + $0x4c] sm:$0xf] %vm1043_vm2, %v1346_v45  ;;  %v1421_v48 = vpop.f32.mrb[20].mxu0 }
 0x136   : > { %716 = vst.msk [vmem:[%s1799_s13 + $0x44] sm:$0xf] %vm698_vm1, %v1312_v46  ;;  %v532_v49 = vadd.f32 %v1421_v48, %v1788_v52  ;;  %v1457_v50 = vpop.f32.mrb[20].mxu1  ;;  %v523_v51 = vpop.f32.mrb[21].mxu0 }
 0x137   : > { %1061 = vst.msk [vmem:[%s1806_s19 + $0x44] sm:$0xf] %vm1043_vm2, %v1344_v47  ;;  %v877_v54 = vadd.f32 %v1457_v50, %v1793_v53  ;;  %v524_v55 = vadd.f32 %v1788_v52, %v523_v51  ;;  %v868_v56 = vpop.f32.mrb[21].mxu1  ;;  %v1422_v57 = vpop.f32.mrb[22].mxu0 }
 0x138   : > { %v1317_v58 = vpack.c.bf16 %v532_v49, %v532_v49  ;;  %v869_v59 = vadd.f32 %v1793_v53, %v868_v56  ;;  %v535_v60 = vadd.f32 %v1422_v57, %v1788_v52  ;;  %v1458_v61 = vpop.f32.mrb[22].mxu1  ;;  %v526_v62 = vpop.f32.mrb[23].mxu0 }
 0x139   : > { %v1349_v63 = vpack.c.bf16 %v877_v54, %v877_v54  ;;  %v1315_v0 = vpack.c.bf16 %v524_v55, %v524_v55  ;;  %v880_v1 = vadd.f32 %v1458_v61, %v1793_v53  ;;  %v527_v2 = vadd.f32 %v1788_v52, %v526_v62  ;;  %v871_v3 = vpop.f32.mrb[23].mxu1 }
 0x13a   : > { %721 = vst.msk [vmem:[%s1799_s13 + $0x58] sm:$0xf] %vm698_vm1, %v1317_v58  ;;  %v1347_v4 = vpack.c.bf16 %v869_v59, %v869_v59  ;;  %v1318_v5 = vpack.c.bf16 %v535_v60, %v535_v60  ;;  %v872_v6 = vadd.f32 %v1793_v53, %v871_v3 }
 0x13b   : > { %1066 = vst.msk [vmem:[%s1806_s19 + $0x58] sm:$0xf] %vm1043_vm2, %v1349_v63  ;;  %v1350_v7 = vpack.c.bf16 %v880_v1, %v880_v1  ;;  %v1316_v8 = vpack.c.bf16 %v527_v2, %v527_v2 }
 0x13c   : > { %719 = vst.msk [vmem:[%s1799_s13 + $0x50] sm:$0xf] %vm698_vm1, %v1315_v0  ;;  %722 = vst.msk [vmem:[%s1799_s13 + $0x5c] sm:$0xf] %vm698_vm1, %v1318_v5  ;;  %v1348_v9 = vpack.c.bf16 %v872_v6, %v872_v6 }
 0x13d   : > { %1064 = vst.msk [vmem:[%s1806_s19 + $0x50] sm:$0xf] %vm1043_vm2, %v1347_v4  ;;  %1067 = vst.msk [vmem:[%s1806_s19 + $0x5c] sm:$0xf] %vm1043_vm2, %v1350_v7  ;;  %v1425_v10 = vpop.f32.mrb[24].mxu0 }
 0x13e   : > { %720 = vst.msk [vmem:[%s1799_s13 + $0x54] sm:$0xf] %vm698_vm1, %v1316_v8  ;;  %v548_v11 = vadd.f32 %v1425_v10, %v1788_v52  ;;  %v1461_v12 = vpop.f32.mrb[24].mxu1  ;;  %v539_v13 = vpop.f32.mrb[25].mxu0 }
 0x13f   : > { %1065 = vst.msk [vmem:[%s1806_s19 + $0x54] sm:$0xf] %vm1043_vm2, %v1348_v9  ;;  %v893_v14 = vadd.f32 %v1461_v12, %v1793_v53  ;;  %v540_v15 = vadd.f32 %v1788_v52, %v539_v13  ;;  %v884_v16 = vpop.f32.mrb[25].mxu1  ;;  %v1426_v17 = vpop.f32.mrb[26].mxu0 }
 0x140   : > { %v1321_v18 = vpack.c.bf16 %v548_v11, %v548_v11  ;;  %v885_v19 = vadd.f32 %v1793_v53, %v884_v16  ;;  %v551_v20 = vadd.f32 %v1426_v17, %v1788_v52  ;;  %v1462_v21 = vpop.f32.mrb[26].mxu1  ;;  %v542_v22 = vpop.f32.mrb[27].mxu0 }
 0x141   : > { %v1353_v23 = vpack.c.bf16 %v893_v14, %v893_v14  ;;  %v1319_v24 = vpack.c.bf16 %v540_v15, %v540_v15  ;;  %v896_v25 = vadd.f32 %v1462_v21, %v1793_v53  ;;  %v543_v26 = vadd.f32 %v1788_v52, %v542_v22  ;;  %v887_v27 = vpop.f32.mrb[27].mxu1 }
 0x142   : > { %725 = vst.msk [vmem:[%s1799_s13 + $0x68] sm:$0xf] %vm698_vm1, %v1321_v18  ;;  %v1351_v28 = vpack.c.bf16 %v885_v19, %v885_v19  ;;  %v1322_v29 = vpack.c.bf16 %v551_v20, %v551_v20  ;;  %v888_v30 = vadd.f32 %v1793_v53, %v887_v27 }
 0x143   : > { %1070 = vst.msk [vmem:[%s1806_s19 + $0x68] sm:$0xf] %vm1043_vm2, %v1353_v23  ;;  %v1354_v31 = vpack.c.bf16 %v896_v25, %v896_v25  ;;  %v1320_v32 = vpack.c.bf16 %v543_v26, %v543_v26 }
 0x144   : > { %723 = vst.msk [vmem:[%s1799_s13 + $0x60] sm:$0xf] %vm698_vm1, %v1319_v24  ;;  %726 = vst.msk [vmem:[%s1799_s13 + $0x6c] sm:$0xf] %vm698_vm1, %v1322_v29  ;;  %v1352_v33 = vpack.c.bf16 %v888_v30, %v888_v30 }
 0x145   : > { %1068 = vst.msk [vmem:[%s1806_s19 + $0x60] sm:$0xf] %vm1043_vm2, %v1351_v28  ;;  %1071 = vst.msk [vmem:[%s1806_s19 + $0x6c] sm:$0xf] %vm1043_vm2, %v1354_v31  ;;  %v1429_v34 = vpop.f32.mrb[28].mxu0 }
 0x146   : > { %724 = vst.msk [vmem:[%s1799_s13 + $0x64] sm:$0xf] %vm698_vm1, %v1320_v32  ;;  %v564_v35 = vadd.f32 %v1429_v34, %v1788_v52  ;;  %v1465_v36 = vpop.f32.mrb[28].mxu1  ;;  %v555_v37 = vpop.f32.mrb[29].mxu0 }
 0x147   : > { %1069 = vst.msk [vmem:[%s1806_s19 + $0x64] sm:$0xf] %vm1043_vm2, %v1352_v33  ;;  %v909_v38 = vadd.f32 %v1465_v36, %v1793_v53  ;;  %v556_v39 = vadd.f32 %v1788_v52, %v555_v37  ;;  %v900_v40 = vpop.f32.mrb[29].mxu1  ;;  %v1430_v41 = vpop.f32.mrb[30].mxu0 }
 0x148   : > { %v1325_v42 = vpack.c.bf16 %v564_v35, %v564_v35  ;;  %v901_v43 = vadd.f32 %v1793_v53, %v900_v40  ;;  %v567_v44 = vadd.f32 %v1430_v41, %v1788_v52  ;;  %v1466_v45 = vpop.f32.mrb[30].mxu1  ;;  %v558_v46 = vpop.f32.mrb[31].mxu0 }
 0x149   : > { %v1357_v47 = vpack.c.bf16 %v909_v38, %v909_v38  ;;  %v1323_v48 = vpack.c.bf16 %v556_v39, %v556_v39  ;;  %v912_v49 = vadd.f32 %v1466_v45, %v1793_v53  ;;  %v559_v50 = vadd.f32 %v1788_v52, %v558_v46  ;;  %v903_v51 = vpop.f32.mrb[31].mxu1 }
 0x14a   : > { %729 = vst.msk [vmem:[%s1799_s13 + $0x78] sm:$0xf] %vm698_vm1, %v1325_v42  ;;  %v1355_v54 = vpack.c.bf16 %v901_v43, %v901_v43  ;;  %v1326_v55 = vpack.c.bf16 %v567_v44, %v567_v44  ;;  %v904_v56 = vadd.f32 %v1793_v53, %v903_v51 }
 0x14b   : > { %1074 = vst.msk [vmem:[%s1806_s19 + $0x78] sm:$0xf] %vm1043_vm2, %v1357_v47  ;;  %v1358_v57 = vpack.c.bf16 %v912_v49, %v912_v49  ;;  %v1324_v58 = vpack.c.bf16 %v559_v50, %v559_v50 }
 0x14c   : > { %727 = vst.msk [vmem:[%s1799_s13 + $0x70] sm:$0xf] %vm698_vm1, %v1323_v48  ;;  %730 = vst.msk [vmem:[%s1799_s13 + $0x7c] sm:$0xf] %vm698_vm1, %v1326_v55  ;;  %v1356_v59 = vpack.c.bf16 %v904_v56, %v904_v56 }
 0x14d   : > { %1072 = vst.msk [vmem:[%s1806_s19 + $0x70] sm:$0xf] %vm1043_vm2, %v1355_v54  ;;  %1075 = vst.msk [vmem:[%s1806_s19 + $0x7c] sm:$0xf] %vm1043_vm2, %v1358_v57 }
 0x14e   : > { %728 = vst.msk [vmem:[%s1799_s13 + $0x74] sm:$0xf] %vm698_vm1, %v1324_v58 }
 0x14f   : > { %1073 = vst.msk [vmem:[%s1806_s19 + $0x74] sm:$0xf] %vm1043_vm2, %v1356_v59 }
 0x150 PF: > { %p17_p8 = scmp.ge.s32.totalorder %s1636_s26, 4   ;;  %s2020_s21 = smov %s1568_s22 }
 0x151   : > { %s2021_s22 = smov %s1572_s23  ;;  %s2022_s23 = smov %s1646_s29 }
 0x152   : > { %s2023_s24 = smov %s1636_s26  ;;  %19 = sbr.rel (!%p17_p8) target bundleno = 3 (0x3), region = 92 }
 0x159   :  { %1115 = vsyncpa [#allocation3], 1 }
 0x15a   :  { %1117 = vsyncpa [#allocation3 + $0x1], 1 }

// kernel: channelwise_attention_forward.6
= control target key start
LH: loop header
LB: loop body
LE: loop exit
PB: predicated region body
PF: predicated region fallthrough
CT: control target
= control target key end

     0   :  { %s768_s12 = smov 0   ;;  %s932_s0 = inlined_call_operand.vmem [shape: bf16[512,24], index: 0, kind: input, shape index: {}]   ;;  %s933_s1 = inlined_call_operand.vmem [shape: bf16[24,24], index: 1, kind: input, shape index: {}]   ;;  %s934_s2 = inlined_call_operand.vmem [shape: f32[1,24], index: 2, kind: input, shape index: {}]   ;;  %s935_s3 = inlined_call_operand.vmem [shape: f32[512,24], index: 3, kind: output, shape index: {}]  }
   0x1 LB: > { %s608_s13 = sadd.s32 4294967295, %s746_s12   ;;  %p612_p0 = scmp.ge.s32.totalorder %s746_s12, 1  ;;  %s746_s12 = sphi %s768_s12, %s13_s12  }
   0x2   : > { %p138_p1 = scmp.lt.s32.totalorder %s746_s12, 3 }
   0x4   : > { %p139_p2 = pnand %p612_p0, %p138_p1 }
   0x5   : > { %v722_v0 = vld [vmem:[%s933_s1] sm:$0xff] (!%p139_p2)   ;;  %v723_v1 = vld [vmem:[%s933_s1 + $0x8] ss:$0 sps:$4 sm:$0xff] (!%p139_p2)   ;;  %vm355_vm0 = vcmask (!%p139_p2), 1043456   ;;  %s613_s18 = sshll.u32 (!%p139_p2), %s608_s13, 5  ;;  %vm306_vm1 = vcmask (!%p139_p2), 195584  }
   0x6   : > { %142 = sbr.rel (%p139_p2) target bundleno = 261 (0x105), region = 32  ;;  %672 = vmatprep.subr.bf16.mxu0 (!%p139_p2), %v722_v0  ;;  %708 = vmatprep.subr.bf16.mxu1 (!%p139_p2), %v722_v0  ;;  %p163_p3 = scmp.lt.s32.totalorder (!%p139_p2), %s613_s18, 63  ;;  %v357_v2 = vsel (!%p139_p2), %vm355_vm0, %v723_v1, 0  ;;  %v826_v19 = vld [vmem:[%s934_s2] ss:$0 sm:$0xff] (!%p139_p2) }
   0x7   : > { %673 = vmatpush3.bf16.msra.mxu0 (!%p139_p2), %v722_v0  ;;  %710 = vmatpush3.bf16.msra.mxu1 (!%p139_p2), %v722_v0 }
   0x8   : > { %712 = vmatprep.subr.msk.bf16.mxu0 (!%p139_p2), %vm355_vm0, %v723_v1  ;;  %713 = vmatprep.subr.msk.bf16.mxu1 (!%p139_p2), %vm355_vm0, %v723_v1 }
   0xb   : > { %675 = vmatpush3.bf16.msra.mxu0 (!%p139_p2), %v357_v2  ;;  %711 = vmatpush3.bf16.msra.mxu1 (!%p139_p2), %v357_v2 }
   0xd   : > { %s937_s18 = smov (!%p163_p3, %s613_s18), 63 }
   0xe   : > { %s614_s19 = sshll.u32 %s937_s18, 2  ;;  %s616_s23 = sshll.u32 %s937_s18, 3 }
   0xf   : > { %s788_s22 = scalar_lea.vmem %s932_s0, %s614_s19  ;;  %s831_s28 = scalar_lea.vmem %s935_s3, %s616_s23 }
  0x10   : > { %v724_v3 = vld [vmem:[%s788_s22] sm:$0xff]   ;;  %v726_v5 = vld [vmem:[%s788_s22 + $0x8] sm:$0xff]   ;;  %v728_v7 = vld [vmem:[%s788_s22 + $0x10] sm:$0xff]  }
  0x11   : > { %v725_v4 = vld [vmem:[%s788_s22 + $0x40] sm:$0xff]   ;;  %676 = vmatprep.mubr.msk.bf16.mxu0 %vm306_vm1, %v724_v3  ;;  %v727_v6 = vld [vmem:[%s788_s22 + $0x48] sm:$0xff]   ;;  %v729_v8 = vld [vmem:[%s788_s22 + $0x50] sm:$0xff]  }
  0x12   : > { %692 = vmatprep.mubr.msk.bf16.mxu1 %vm306_vm1, %v725_v4  ;;  %677 = vmatmul.mubr.msk.bf16.vlgmr.msra.gmra.mrb[0].mxu0 %vm306_vm1, %v726_v5  ;;  %v730_v9 = vld [vmem:[%s788_s22 + $0x18] sm:$0xff]   ;;  %v732_v11 = vld [vmem:[%s788_s22 + $0x20] sm:$0xff]   ;;  %v734_v13 = vld [vmem:[%s788_s22 + $0x28] sm:$0xff]  }
  0x13   : > { %693 = vmatmul.mubr.msk.bf16.vlgmr.msra.gmra.mrb[0].mxu1 %vm306_vm1, %v727_v6  ;;  %680 = vmatprep.mubr.msk.bf16.mxu0 %vm306_vm1, %v728_v7  ;;  %v731_v10 = vld [vmem:[%s788_s22 + $0x58] sm:$0xff]   ;;  %v733_v12 = vld [vmem:[%s788_s22 + $0x60] sm:$0xff]   ;;  %v735_v14 = vld [vmem:[%s788_s22 + $0x68] sm:$0xff]  }
  0x14   : > { %696 = vmatprep.mubr.msk.bf16.mxu1 %vm306_vm1, %v729_v8  ;;  %v736_v15 = vld [vmem:[%s788_s22 + $0x30] sm:$0xff]   ;;  %v738_v17 = vld [vmem:[%s788_s22 + $0x38] sm:$0xff]  }
  0x15   : > { %v737_v16 = vld [vmem:[%s788_s22 + $0x70] sm:$0xff]   ;;  %v739_v18 = vld [vmem:[%s788_s22 + $0x78] sm:$0xff]  }
  0x1a   : > { %681 = vmatmul.mubr.msk.bf16.gmra.mrb[4].mxu0 %vm306_vm1, %v730_v9 }
  0x1b   : > { %697 = vmatmul.mubr.msk.bf16.gmra.mrb[4].mxu1 %vm306_vm1, %v731_v10  ;;  %684 = vmatprep.mubr.msk.bf16.mxu0 %vm306_vm1, %v732_v11 }
  0x1c   : > { %700 = vmatprep.mubr.msk.bf16.mxu1 %vm306_vm1, %v733_v12 }
  0x22   : > { %685 = vmatmul.mubr.msk.bf16.gmra.mrb[8].mxu0 %vm306_vm1, %v734_v13 }
  0x23   : > { %701 = vmatmul.mubr.msk.bf16.gmra.mrb[8].mxu1 %vm306_vm1, %v735_v14  ;;  %688 = vmatprep.mubr.msk.bf16.mxu0 %vm306_vm1, %v736_v15 }
  0x24   : > { %704 = vmatprep.mubr.msk.bf16.mxu1 %vm306_vm1, %v737_v16 }
  0x2a   : > { %689 = vmatmul.mubr.msk.bf16.gmra.mrb[12].mxu0 %vm306_vm1, %v738_v17 }
  0x2b   : > { %705 = vmatmul.mubr.msk.bf16.gmra.mrb[12].mxu1 %vm306_vm1, %v739_v18 }
  0xe5   : > { %v678_v20 = vpop.f32.mrb[0].mxu0 }
  0xe6   : > { %v402_v21 = vadd.f32 %v678_v20, %v826_v19  ;;  %v694_v22 = vpop.f32.mrb[0].mxu1  ;;  %v393_v23 = vpop.f32.mrb[1].mxu0 }
  0xe7   : > { %v466_v24 = vadd.f32 %v694_v22, %v826_v19  ;;  %v394_v25 = vadd.f32 %v826_v19, %v393_v23  ;;  %v457_v26 = vpop.f32.mrb[1].mxu1  ;;  %v679_v27 = vpop.f32.mrb[2].mxu0 }
  0xe8   : > { %522 = vst.msk [vmem:[%s831_s28 + $0x10] sm:$0xff] %vm306_vm1, %v402_v21  ;;  %v458_v28 = vadd.f32 %v826_v19, %v457_v26  ;;  %v405_v29 = vadd.f32 %v679_v27, %v826_v19  ;;  %v695_v30 = vpop.f32.mrb[2].mxu1  ;;  %v396_v31 = vpop.f32.mrb[3].mxu0 }
  0xe9   : > { %538 = vst.msk [vmem:[%s831_s28 + $0x90] sm:$0xff] %vm306_vm1, %v466_v24  ;;  %520 = vst.msk [vmem:[%s831_s28] sm:$0xff] %vm306_vm1, %v394_v25  ;;  %v469_v32 = vadd.f32 %v695_v30, %v826_v19  ;;  %v397_v33 = vadd.f32 %v826_v19, %v396_v31  ;;  %v460_v34 = vpop.f32.mrb[3].mxu1 }
  0xea   : > { %536 = vst.msk [vmem:[%s831_s28 + $0x80] sm:$0xff] %vm306_vm1, %v458_v28  ;;  %523 = vst.msk [vmem:[%s831_s28 + $0x18] sm:$0xff] %vm306_vm1, %v405_v29  ;;  %v461_v35 = vadd.f32 %v826_v19, %v460_v34 }
  0xeb   : > { %539 = vst.msk [vmem:[%s831_s28 + $0x98] sm:$0xff] %vm306_vm1, %v469_v32  ;;  %521 = vst.msk [vmem:[%s831_s28 + $0x8] sm:$0xff] %vm306_vm1, %v397_v33 }
  0xec   : > { %537 = vst.msk [vmem:[%s831_s28 + $0x88] sm:$0xff] %vm306_vm1, %v461_v35 }
  0xed   : > { %v682_v36 = vpop.f32.mrb[4].mxu0 }
  0xee   : > { %v418_v37 = vadd.f32 %v682_v36, %v826_v19  ;;  %v698_v38 = vpop.f32.mrb[4].mxu1  ;;  %v409_v39 = vpop.f32.mrb[5].mxu0 }
  0xef   : > { %v482_v40 = vadd.f32 %v698_v38, %v826_v19  ;;  %v410_v41 = vadd.f32 %v826_v19, %v409_v39  ;;  %v473_v42 = vpop.f32.mrb[5].mxu1  ;;  %v683_v43 = vpop.f32.mrb[6].mxu0 }
  0xf0   : > { %526 = vst.msk [vmem:[%s831_s28 + $0x30] sm:$0xff] %vm306_vm1, %v418_v37  ;;  %v474_v44 = vadd.f32 %v826_v19, %v473_v42  ;;  %v421_v45 = vadd.f32 %v683_v43, %v826_v19  ;;  %v699_v46 = vpop.f32.mrb[6].mxu1  ;;  %v412_v47 = vpop.f32.mrb[7].mxu0 }
  0xf1   : > { %542 = vst.msk [vmem:[%s831_s28 + $0xb0] sm:$0xff] %vm306_vm1, %v482_v40  ;;  %524 = vst.msk [vmem:[%s831_s28 + $0x20] sm:$0xff] %vm306_vm1, %v410_v41  ;;  %v485_v48 = vadd.f32 %v699_v46, %v826_v19  ;;  %v413_v49 = vadd.f32 %v826_v19, %v412_v47  ;;  %v476_v50 = vpop.f32.mrb[7].mxu1 }
  0xf2   : > { %540 = vst.msk [vmem:[%s831_s28 + $0xa0] sm:$0xff] %vm306_vm1, %v474_v44  ;;  %527 = vst.msk [vmem:[%s831_s28 + $0x38] sm:$0xff] %vm306_vm1, %v421_v45  ;;  %v477_v51 = vadd.f32 %v826_v19, %v476_v50 }
  0xf3   : > { %543 = vst.msk [vmem:[%s831_s28 + $0xb8] sm:$0xff] %vm306_vm1, %v485_v48  ;;  %525 = vst.msk [vmem:[%s831_s28 + $0x28] sm:$0xff] %vm306_vm1, %v413_v49 }
  0xf4   : > { %541 = vst.msk [vmem:[%s831_s28 + $0xa8] sm:$0xff] %vm306_vm1, %v477_v51 }
  0xf5   : > { %v686_v52 = vpop.f32.mrb[8].mxu0 }
  0xf6   : > { %v434_v53 = vadd.f32 %v686_v52, %v826_v19  ;;  %v702_v54 = vpop.f32.mrb[8].mxu1  ;;  %v425_v55 = vpop.f32.mrb[9].mxu0 }
  0xf7   : > { %v498_v56 = vadd.f32 %v702_v54, %v826_v19  ;;  %v426_v57 = vadd.f32 %v826_v19, %v425_v55  ;;  %v489_v58 = vpop.f32.mrb[9].mxu1  ;;  %v687_v59 = vpop.f32.mrb[10].mxu0 }
  0xf8   : > { %530 = vst.msk [vmem:[%s831_s28 + $0x50] sm:$0xff] %vm306_vm1, %v434_v53  ;;  %v490_v60 = vadd.f32 %v826_v19, %v489_v58  ;;  %v437_v61 = vadd.f32 %v687_v59, %v826_v19  ;;  %v703_v62 = vpop.f32.mrb[10].mxu1  ;;  %v428_v63 = vpop.f32.mrb[11].mxu0 }
  0xf9   : > { %546 = vst.msk [vmem:[%s831_s28 + $0xd0] sm:$0xff] %vm306_vm1, %v498_v56  ;;  %528 = vst.msk [vmem:[%s831_s28 + $0x40] sm:$0xff] %vm306_vm1, %v426_v57  ;;  %v501_v0 = vadd.f32 %v703_v62, %v826_v19  ;;  %v429_v1 = vadd.f32 %v826_v19, %v428_v63  ;;  %v492_v2 = vpop.f32.mrb[11].mxu1 }
  0xfa   : > { %544 = vst.msk [vmem:[%s831_s28 + $0xc0] sm:$0xff] %vm306_vm1, %v490_v60  ;;  %531 = vst.msk [vmem:[%s831_s28 + $0x58] sm:$0xff] %vm306_vm1, %v437_v61  ;;  %v493_v3 = vadd.f32 %v826_v19, %v492_v2 }
  0xfb   : > { %547 = vst.msk [vmem:[%s831_s28 + $0xd8] sm:$0xff] %vm306_vm1, %v501_v0  ;;  %529 = vst.msk [vmem:[%s831_s28 + $0x48] sm:$0xff] %vm306_vm1, %v429_v1 }
  0xfc   : > { %545 = vst.msk [vmem:[%s831_s28 + $0xc8] sm:$0xff] %vm306_vm1, %v493_v3 }
  0xfd   : > { %v690_v4 = vpop.f32.mrb[12].mxu0 }
  0xfe   : > { %v450_v5 = vadd.f32 %v690_v4, %v826_v19  ;;  %v706_v6 = vpop.f32.mrb[12].mxu1  ;;  %v441_v7 = vpop.f32.mrb[13].mxu0 }
  0xff   : > { %v514_v8 = vadd.f32 %v706_v6, %v826_v19  ;;  %v442_v9 = vadd.f32 %v826_v19, %v441_v7  ;;  %v505_v10 = vpop.f32.mrb[13].mxu1  ;;  %v691_v11 = vpop.f32.mrb[14].mxu0 }
 0x100   : > { %534 = vst.msk [vmem:[%s831_s28 + $0x70] sm:$0xff] %vm306_vm1, %v450_v5  ;;  %v506_v12 = vadd.f32 %v826_v19, %v505_v10  ;;  %v453_v13 = vadd.f32 %v691_v11, %v826_v19  ;;  %v707_v14 = vpop.f32.mrb[14].mxu1  ;;  %v444_v15 = vpop.f32.mrb[15].mxu0 }
 0x101   : > { %550 = vst.msk [vmem:[%s831_s28 + $0xf0] sm:$0xff] %vm306_vm1, %v514_v8  ;;  %532 = vst.msk [vmem:[%s831_s28 + $0x60] sm:$0xff] %vm306_vm1, %v442_v9  ;;  %v517_v16 = vadd.f32 %v707_v14, %v826_v19  ;;  %v445_v17 = vadd.f32 %v826_v19, %v444_v15  ;;  %v508_v18 = vpop.f32.mrb[15].mxu1 }
 0x102   : > { %548 = vst.msk [vmem:[%s831_s28 + $0xe0] sm:$0xff] %vm306_vm1, %v506_v12  ;;  %535 = vst.msk [vmem:[%s831_s28 + $0x78] sm:$0xff] %vm306_vm1, %v453_v13  ;;  %v509_v20 = vadd.f32 %v826_v19, %v508_v18 }
 0x103   : > { %551 = vst.msk [vmem:[%s831_s28 + $0xf8] sm:$0xff] %vm306_vm1, %v517_v16  ;;  %533 = vst.msk [vmem:[%s831_s28 + $0x68] sm:$0xff] %vm306_vm1, %v445_v17 }
 0x104   : > { %549 = vst.msk [vmem:[%s831_s28 + $0xe8] sm:$0xff] %vm306_vm1, %v509_v20 }
 0x105 PF: > { %s13_s12 = sadd.s32 1, %s746_s12  }
 0x106   : > { %p10_p4 = scmp.ge.s32.totalorder %s13_s12, 4  }
 0x108   :  { %12 = sbr.rel (!%p10_p4) target bundleno = 1 (0x1), region = 62 }

// kernel: channelwise_attention_forward.5
= control target key start
LH: loop header
LB: loop body
LE: loop exit
PB: predicated region body
PF: predicated region fallthrough
CT: control target
= control target key end

     0   :  { %s10624_s9 = smov 0   ;;  %s10626_s10 = smov 0   ;;  %s13121_s0 = inlined_call_operand.vmem [shape: bf16[3,32,3,16,8], index: 0, kind: input, shape index: {}]   ;;  %s13122_s1 = inlined_call_operand.vmem [shape: f32[3,16,16], index: 1, kind: input, shape index: {}]   ;;  %s13123_s2 = inlined_call_operand.vmem [shape: bf16[32,3,16,8], index: 2, kind: output, shape index: {}]  }
   0x1   :  { %s10628_s11 = smov 0  }
   0x2 LB: > { %s8615_s12 = sadd.s32 4294967295, %s10605_s11   ;;  %s10641_s13 = sadd.s32 1, %s10605_s11   ;;  %s10605_s11 = sphi %s10628_s11, %s13420_s11   ;;  %s10601_s10 = sphi %s10626_s10, %s13419_s10   ;;  %s10597_s9 = sphi %s10624_s9, %s13418_s9  }
   0x3   : > { %s16_s14 = ssub.s32 %s10605_s11, %s10641_s13  ;;  %s19_s15 = sadd.s32 1, %s10601_s10 }
   0x4   : > { %p17_p0 = scmp.eq.s32.totalorder %s16_s14, 0  ;;  %p26_p1 = scmp.ne.s32.totalorder %s10601_s10, %s10597_s9 }
   0x5   : > { %p27_p2 = scmp.eq.s32.totalorder %s10605_s11, 0  ;;  %p8618_p4 = scmp.ge.s32.totalorder %s10605_s11, 2 }
   0x6   : > { %s10650_s16 = scalar_select %p17_p0, %s10601_s10, %s19_s15  }
   0x7   : > { %p28_p3 = por %p27_p2, %p26_p1  ;;  %102 = sbr.rel (%p8618_p4) target bundleno = 91 (0x5b), region = 20 }
   0xe   : > { %105 = sbr.rel (!%p28_p3) target bundleno = 91 (0x5b), region = 24  ;;  %s107_s17 = sand.u32 (%p28_p3), 1, %s10601_s10  }
   0xf   : > { %s10020_s18 = smul.u32 (%p28_p3), 384, %s10605_s11 }
  0x10   : > { %s10019_s19 = smul.u32 (%p28_p3), 1152, %s107_s17 }
  0x11   : > { %s10658_s22 = scalar_lea.vmem (%p28_p3), %s13121_s0, %s10020_s18 }
  0x12   : > { %v129_v0 = vld [vmem:[%s10658_s22] sm:$0xff] (%p28_p3)   ;;  %v133_v1 = vld [vmem:[%s10658_s22 + $0x8] sm:$0xff] (%p28_p3)   ;;  %v137_v2 = vld [vmem:[%s10658_s22 + $0x10] sm:$0xff] (%p28_p3)   ;;  %s10663_s23 = scalar_lea.vmem (%p28_p3), [#allocation2], %s10019_s19 }
  0x13   : > { %130 = vst [vmem:[%s10663_s23] sm:$0xff] (%p28_p3), %v129_v0   ;;  %134 = vst [vmem:[%s10663_s23 + $0x8] sm:$0xff] (%p28_p3), %v133_v1   ;;  %v141_v3 = vld [vmem:[%s10658_s22 + $0x18] sm:$0xff] (%p28_p3)   ;;  %v145_v4 = vld [vmem:[%s10658_s22 + $0x20] sm:$0xff] (%p28_p3)  }
  0x14   : > { %138 = vst [vmem:[%s10663_s23 + $0x10] sm:$0xff] (%p28_p3), %v137_v2   ;;  %v149_v5 = vld [vmem:[%s10658_s22 + $0x28] sm:$0xff] (%p28_p3)   ;;  %142 = vst [vmem:[%s10663_s23 + $0x18] sm:$0xff] (%p28_p3), %v141_v3   ;;  %v153_v6 = vld [vmem:[%s10658_s22 + $0x30] sm:$0xff] (%p28_p3)  }
  0x15   : > { %146 = vst [vmem:[%s10663_s23 + $0x20] sm:$0xff] %v145_v4   ;;  %150 = vst [vmem:[%s10663_s23 + $0x28] sm:$0xff] %v149_v5   ;;  %v157_v7 = vld [vmem:[%s10658_s22 + $0x38] sm:$0xff]   ;;  %v161_v8 = vld [vmem:[%s10658_s22 + $0x40] sm:$0xff]  }
  0x16   : > { %154 = vst [vmem:[%s10663_s23 + $0x30] sm:$0xff] %v153_v6   ;;  %158 = vst [vmem:[%s10663_s23 + $0x38] sm:$0xff] %v157_v7   ;;  %v165_v9 = vld [vmem:[%s10658_s22 + $0x48] sm:$0xff]   ;;  %v169_v10 = vld [vmem:[%s10658_s22 + $0x50] sm:$0xff]  }
  0x17   : > { %162 = vst [vmem:[%s10663_s23 + $0x40] sm:$0xff] %v161_v8   ;;  %v173_v11 = vld [vmem:[%s10658_s22 + $0x58] sm:$0xff]   ;;  %166 = vst [vmem:[%s10663_s23 + $0x48] sm:$0xff] %v165_v9   ;;  %v177_v12 = vld [vmem:[%s10658_s22 + $0x60] sm:$0xff]  }
  0x18   : > { %170 = vst [vmem:[%s10663_s23 + $0x50] sm:$0xff] %v169_v10   ;;  %174 = vst [vmem:[%s10663_s23 + $0x58] sm:$0xff] %v173_v11   ;;  %v181_v13 = vld [vmem:[%s10658_s22 + $0x68] sm:$0xff]   ;;  %v185_v14 = vld [vmem:[%s10658_s22 + $0x70] sm:$0xff]  }
  0x19   : > { %178 = vst [vmem:[%s10663_s23 + $0x60] sm:$0xff] %v177_v12   ;;  %182 = vst [vmem:[%s10663_s23 + $0x68] sm:$0xff] %v181_v13   ;;  %v189_v15 = vld [vmem:[%s10658_s22 + $0x78] sm:$0xff]   ;;  %v193_v16 = vld [vmem:[%s10658_s22 + $0x80] sm:$0xff]  }
  0x1a   : > { %186 = vst [vmem:[%s10663_s23 + $0x70] sm:$0xff] %v185_v14   ;;  %v197_v17 = vld [vmem:[%s10658_s22 + $0x88] sm:$0xff]   ;;  %190 = vst [vmem:[%s10663_s23 + $0x78] sm:$0xff] %v189_v15   ;;  %v201_v18 = vld [vmem:[%s10658_s22 + $0x90] sm:$0xff]  }
  0x1b   : > { %194 = vst [vmem:[%s10663_s23 + $0x80] sm:$0xff] %v193_v16   ;;  %198 = vst [vmem:[%s10663_s23 + $0x88] sm:$0xff] %v197_v17   ;;  %v205_v19 = vld [vmem:[%s10658_s22 + $0x98] sm:$0xff]   ;;  %v209_v20 = vld [vmem:[%s10658_s22 + $0xa0] sm:$0xff]  }
  0x1c   : > { %202 = vst [vmem:[%s10663_s23 + $0x90] sm:$0xff] %v201_v18   ;;  %206 = vst [vmem:[%s10663_s23 + $0x98] sm:$0xff] %v205_v19   ;;  %v213_v21 = vld [vmem:[%s10658_s22 + $0xa8] sm:$0xff]   ;;  %v217_v22 = vld [vmem:[%s10658_s22 + $0xb0] sm:$0xff]  }
  0x1d   : > { %210 = vst [vmem:[%s10663_s23 + $0xa0] sm:$0xff] %v209_v20   ;;  %v221_v23 = vld [vmem:[%s10658_s22 + $0xb8] sm:$0xff]   ;;  %214 = vst [vmem:[%s10663_s23 + $0xa8] sm:$0xff] %v213_v21   ;;  %v225_v24 = vld [vmem:[%s10658_s22 + $0xc0] sm:$0xff]  }
  0x1e   : > { %218 = vst [vmem:[%s10663_s23 + $0xb0] sm:$0xff] %v217_v22   ;;  %222 = vst [vmem:[%s10663_s23 + $0xb8] sm:$0xff] %v221_v23   ;;  %v229_v25 = vld [vmem:[%s10658_s22 + $0xc8] sm:$0xff]   ;;  %v233_v26 = vld [vmem:[%s10658_s22 + $0xd0] sm:$0xff]  }
  0x1f   : > { %226 = vst [vmem:[%s10663_s23 + $0xc0] sm:$0xff] %v225_v24   ;;  %230 = vst [vmem:[%s10663_s23 + $0xc8] sm:$0xff] %v229_v25   ;;  %v237_v27 = vld [vmem:[%s10658_s22 + $0xd8] sm:$0xff]   ;;  %v241_v28 = vld [vmem:[%s10658_s22 + $0xe0] sm:$0xff]  }
  0x20   : > { %234 = vst [vmem:[%s10663_s23 + $0xd0] sm:$0xff] %v233_v26   ;;  %v245_v29 = vld [vmem:[%s10658_s22 + $0xe8] sm:$0xff]   ;;  %238 = vst [vmem:[%s10663_s23 + $0xd8] sm:$0xff] %v237_v27   ;;  %v249_v30 = vld [vmem:[%s10658_s22 + $0xf0] sm:$0xff]  }
  0x21   : > { %242 = vst [vmem:[%s10663_s23 + $0xe0] sm:$0xff] %v241_v28   ;;  %246 = vst [vmem:[%s10663_s23 + $0xe8] sm:$0xff] %v245_v29   ;;  %v253_v31 = vld [vmem:[%s10658_s22 + $0xf8] sm:$0xff]   ;;  %v257_v32 = vld [vmem:[%s10658_s22 + $0x100] sm:$0xff]  }
  0x22   : > { %250 = vst [vmem:[%s10663_s23 + $0xf0] sm:$0xff] %v249_v30   ;;  %254 = vst [vmem:[%s10663_s23 + $0xf8] sm:$0xff] %v253_v31   ;;  %v261_v33 = vld [vmem:[%s10658_s22 + $0x108] sm:$0xff]   ;;  %v265_v34 = vld [vmem:[%s10658_s22 + $0x110] sm:$0xff]  }
  0x23   : > { %258 = vst [vmem:[%s10663_s23 + $0x100] sm:$0xff] %v257_v32   ;;  %v269_v35 = vld [vmem:[%s10658_s22 + $0x118] sm:$0xff]   ;;  %262 = vst [vmem:[%s10663_s23 + $0x108] sm:$0xff] %v261_v33   ;;  %v273_v36 = vld [vmem:[%s10658_s22 + $0x120] sm:$0xff]  }
  0x24   : > { %266 = vst [vmem:[%s10663_s23 + $0x110] sm:$0xff] %v265_v34   ;;  %270 = vst [vmem:[%s10663_s23 + $0x118] sm:$0xff] %v269_v35   ;;  %v277_v37 = vld [vmem:[%s10658_s22 + $0x128] sm:$0xff]   ;;  %v281_v38 = vld [vmem:[%s10658_s22 + $0x130] sm:$0xff]  }
  0x25   : > { %274 = vst [vmem:[%s10663_s23 + $0x120] sm:$0xff] %v273_v36   ;;  %278 = vst [vmem:[%s10663_s23 + $0x128] sm:$0xff] %v277_v37   ;;  %v285_v39 = vld [vmem:[%s10658_s22 + $0x138] sm:$0xff]   ;;  %v289_v40 = vld [vmem:[%s10658_s22 + $0x140] sm:$0xff]  }
  0x26   : > { %282 = vst [vmem:[%s10663_s23 + $0x130] sm:$0xff] %v281_v38   ;;  %v293_v41 = vld [vmem:[%s10658_s22 + $0x148] sm:$0xff]   ;;  %286 = vst [vmem:[%s10663_s23 + $0x138] sm:$0xff] %v285_v39   ;;  %v297_v42 = vld [vmem:[%s10658_s22 + $0x150] sm:$0xff]  }
  0x27   : > { %290 = vst [vmem:[%s10663_s23 + $0x140] sm:$0xff] %v289_v40   ;;  %294 = vst [vmem:[%s10663_s23 + $0x148] sm:$0xff] %v293_v41   ;;  %v301_v43 = vld [vmem:[%s10658_s22 + $0x158] sm:$0xff]   ;;  %v305_v44 = vld [vmem:[%s10658_s22 + $0x160] sm:$0xff]  }
  0x28   : > { %298 = vst [vmem:[%s10663_s23 + $0x150] sm:$0xff] %v297_v42   ;;  %302 = vst [vmem:[%s10663_s23 + $0x158] sm:$0xff] %v301_v43   ;;  %v309_v45 = vld [vmem:[%s10658_s22 + $0x168] sm:$0xff]   ;;  %v313_v46 = vld [vmem:[%s10658_s22 + $0x170] sm:$0xff]  }
  0x29   : > { %306 = vst [vmem:[%s10663_s23 + $0x160] sm:$0xff] %v305_v44   ;;  %v317_v47 = vld [vmem:[%s10658_s22 + $0x178] sm:$0xff]   ;;  %310 = vst [vmem:[%s10663_s23 + $0x168] sm:$0xff] %v309_v45   ;;  %v321_v48 = vld [vmem:[%s10658_s22 + $0x300] sm:$0xff]  }
  0x2a   : > { %314 = vst [vmem:[%s10663_s23 + $0x170] sm:$0xff] %v313_v46   ;;  %318 = vst [vmem:[%s10663_s23 + $0x178] sm:$0xff] %v317_v47   ;;  %v325_v49 = vld [vmem:[%s10658_s22 + $0x308] sm:$0xff]   ;;  %v329_v50 = vld [vmem:[%s10658_s22 + $0x310] sm:$0xff]  }
  0x2b   : > { %322 = vst [vmem:[%s10663_s23 + $0x180] sm:$0xff] %v321_v48   ;;  %326 = vst [vmem:[%s10663_s23 + $0x188] sm:$0xff] %v325_v49   ;;  %v333_v51 = vld [vmem:[%s10658_s22 + $0x318] sm:$0xff]   ;;  %v337_v52 = vld [vmem:[%s10658_s22 + $0x320] sm:$0xff]  }
  0x2c   : > { %330 = vst [vmem:[%s10663_s23 + $0x190] sm:$0xff] %v329_v50   ;;  %v341_v53 = vld [vmem:[%s10658_s22 + $0x328] sm:$0xff]   ;;  %334 = vst [vmem:[%s10663_s23 + $0x198] sm:$0xff] %v333_v51   ;;  %v345_v54 = vld [vmem:[%s10658_s22 + $0x330] sm:$0xff]  }
  0x2d   : > { %338 = vst [vmem:[%s10663_s23 + $0x1a0] sm:$0xff] %v337_v52   ;;  %342 = vst [vmem:[%s10663_s23 + $0x1a8] sm:$0xff] %v341_v53   ;;  %v349_v55 = vld [vmem:[%s10658_s22 + $0x338] sm:$0xff]   ;;  %v353_v56 = vld [vmem:[%s10658_s22 + $0x340] sm:$0xff]  }
  0x2e   : > { %346 = vst [vmem:[%s10663_s23 + $0x1b0] sm:$0xff] %v345_v54   ;;  %350 = vst [vmem:[%s10663_s23 + $0x1b8] sm:$0xff] %v349_v55   ;;  %v357_v57 = vld [vmem:[%s10658_s22 + $0x348] sm:$0xff]   ;;  %v361_v58 = vld [vmem:[%s10658_s22 + $0x350] sm:$0xff]  }
  0x2f   : > { %354 = vst [vmem:[%s10663_s23 + $0x1c0] sm:$0xff] %v353_v56   ;;  %v365_v59 = vld [vmem:[%s10658_s22 + $0x358] sm:$0xff]   ;;  %358 = vst [vmem:[%s10663_s23 + $0x1c8] sm:$0xff] %v357_v57   ;;  %v369_v60 = vld [vmem:[%s10658_s22 + $0x360] sm:$0xff]  }
  0x30   : > { %362 = vst [vmem:[%s10663_s23 + $0x1d0] sm:$0xff] %v361_v58   ;;  %366 = vst [vmem:[%s10663_s23 + $0x1d8] sm:$0xff] %v365_v59   ;;  %v373_v61 = vld [vmem:[%s10658_s22 + $0x368] sm:$0xff]   ;;  %v377_v62 = vld [vmem:[%s10658_s22 + $0x370] sm:$0xff]  }
  0x31   : > { %370 = vst [vmem:[%s10663_s23 + $0x1e0] sm:$0xff] %v369_v60   ;;  %374 = vst [vmem:[%s10663_s23 + $0x1e8] sm:$0xff] %v373_v61   ;;  %v381_v63 = vld [vmem:[%s10658_s22 + $0x378] sm:$0xff]   ;;  %v385_v0 = vld [vmem:[%s10658_s22 + $0x380] sm:$0xff]  }
  0x32   : > { %378 = vst [vmem:[%s10663_s23 + $0x1f0] sm:$0xff] %v377_v62   ;;  %v389_v1 = vld [vmem:[%s10658_s22 + $0x388] sm:$0xff]   ;;  %382 = vst [vmem:[%s10663_s23 + $0x1f8] sm:$0xff] %v381_v63   ;;  %v393_v2 = vld [vmem:[%s10658_s22 + $0x390] sm:$0xff]  }
  0x33   : > { %386 = vst [vmem:[%s10663_s23 + $0x200] sm:$0xff] %v385_v0   ;;  %390 = vst [vmem:[%s10663_s23 + $0x208] sm:$0xff] %v389_v1   ;;  %v397_v3 = vld [vmem:[%s10658_s22 + $0x398] sm:$0xff]   ;;  %v401_v4 = vld [vmem:[%s10658_s22 + $0x3a0] sm:$0xff]  }
  0x34   : > { %394 = vst [vmem:[%s10663_s23 + $0x210] sm:$0xff] %v393_v2   ;;  %398 = vst [vmem:[%s10663_s23 + $0x218] sm:$0xff] %v397_v3   ;;  %v405_v5 = vld [vmem:[%s10658_s22 + $0x3a8] sm:$0xff]   ;;  %v409_v6 = vld [vmem:[%s10658_s22 + $0x3b0] sm:$0xff]  }
  0x35   : > { %402 = vst [vmem:[%s10663_s23 + $0x220] sm:$0xff] %v401_v4   ;;  %v413_v7 = vld [vmem:[%s10658_s22 + $0x3b8] sm:$0xff]   ;;  %406 = vst [vmem:[%s10663_s23 + $0x228] sm:$0xff] %v405_v5   ;;  %v417_v8 = vld [vmem:[%s10658_s22 + $0x3c0] sm:$0xff]  }
  0x36   : > { %410 = vst [vmem:[%s10663_s23 + $0x230] sm:$0xff] %v409_v6   ;;  %414 = vst [vmem:[%s10663_s23 + $0x238] sm:$0xff] %v413_v7   ;;  %v421_v9 = vld [vmem:[%s10658_s22 + $0x3c8] sm:$0xff]   ;;  %v425_v10 = vld [vmem:[%s10658_s22 + $0x3d0] sm:$0xff]  }
  0x37   : > { %418 = vst [vmem:[%s10663_s23 + $0x240] sm:$0xff] %v417_v8   ;;  %422 = vst [vmem:[%s10663_s23 + $0x248] sm:$0xff] %v421_v9   ;;  %v429_v11 = vld [vmem:[%s10658_s22 + $0x3d8] sm:$0xff]   ;;  %v433_v12 = vld [vmem:[%s10658_s22 + $0x3e0] sm:$0xff]  }
  0x38   : > { %426 = vst [vmem:[%s10663_s23 + $0x250] sm:$0xff] %v425_v10   ;;  %v437_v13 = vld [vmem:[%s10658_s22 + $0x3e8] sm:$0xff]   ;;  %430 = vst [vmem:[%s10663_s23 + $0x258] sm:$0xff] %v429_v11   ;;  %v441_v14 = vld [vmem:[%s10658_s22 + $0x3f0] sm:$0xff]  }
  0x39   : > { %434 = vst [vmem:[%s10663_s23 + $0x260] sm:$0xff] %v433_v12   ;;  %438 = vst [vmem:[%s10663_s23 + $0x268] sm:$0xff] %v437_v13   ;;  %v445_v15 = vld [vmem:[%s10658_s22 + $0x3f8] sm:$0xff]   ;;  %v449_v16 = vld [vmem:[%s10658_s22 + $0x400] sm:$0xff]  }
  0x3a   : > { %442 = vst [vmem:[%s10663_s23 + $0x270] sm:$0xff] %v441_v14   ;;  %446 = vst [vmem:[%s10663_s23 + $0x278] sm:$0xff] %v445_v15   ;;  %v453_v17 = vld [vmem:[%s10658_s22 + $0x408] sm:$0xff]   ;;  %v457_v18 = vld [vmem:[%s10658_s22 + $0x410] sm:$0xff]  }
  0x3b   : > { %450 = vst [vmem:[%s10663_s23 + $0x280] sm:$0xff] %v449_v16   ;;  %v461_v19 = vld [vmem:[%s10658_s22 + $0x418] sm:$0xff]   ;;  %454 = vst [vmem:[%s10663_s23 + $0x288] sm:$0xff] %v453_v17   ;;  %v465_v20 = vld [vmem:[%s10658_s22 + $0x420] sm:$0xff]  }
  0x3c   : > { %458 = vst [vmem:[%s10663_s23 + $0x290] sm:$0xff] %v457_v18   ;;  %462 = vst [vmem:[%s10663_s23 + $0x298] sm:$0xff] %v461_v19   ;;  %v469_v21 = vld [vmem:[%s10658_s22 + $0x428] sm:$0xff]   ;;  %v473_v22 = vld [vmem:[%s10658_s22 + $0x430] sm:$0xff]  }
  0x3d   : > { %466 = vst [vmem:[%s10663_s23 + $0x2a0] sm:$0xff] %v465_v20   ;;  %470 = vst [vmem:[%s10663_s23 + $0x2a8] sm:$0xff] %v469_v21   ;;  %v477_v23 = vld [vmem:[%s10658_s22 + $0x438] sm:$0xff]   ;;  %v481_v24 = vld [vmem:[%s10658_s22 + $0x440] sm:$0xff]  }
  0x3e   : > { %474 = vst [vmem:[%s10663_s23 + $0x2b0] sm:$0xff] %v473_v22   ;;  %v485_v25 = vld [vmem:[%s10658_s22 + $0x448] sm:$0xff]   ;;  %478 = vst [vmem:[%s10663_s23 + $0x2b8] sm:$0xff] %v477_v23   ;;  %v489_v26 = vld [vmem:[%s10658_s22 + $0x450] sm:$0xff]  }
  0x3f   : > { %482 = vst [vmem:[%s10663_s23 + $0x2c0] sm:$0xff] %v481_v24   ;;  %486 = vst [vmem:[%s10663_s23 + $0x2c8] sm:$0xff] %v485_v25   ;;  %v493_v27 = vld [vmem:[%s10658_s22 + $0x458] sm:$0xff]   ;;  %v497_v28 = vld [vmem:[%s10658_s22 + $0x460] sm:$0xff]  }
  0x40   : > { %490 = vst [vmem:[%s10663_s23 + $0x2d0] sm:$0xff] %v489_v26   ;;  %494 = vst [vmem:[%s10663_s23 + $0x2d8] sm:$0xff] %v493_v27   ;;  %v501_v29 = vld [vmem:[%s10658_s22 + $0x468] sm:$0xff]   ;;  %v505_v30 = vld [vmem:[%s10658_s22 + $0x470] sm:$0xff]  }
  0x41   : > { %498 = vst [vmem:[%s10663_s23 + $0x2e0] sm:$0xff] %v497_v28   ;;  %v509_v31 = vld [vmem:[%s10658_s22 + $0x478] sm:$0xff]   ;;  %502 = vst [vmem:[%s10663_s23 + $0x2e8] sm:$0xff] %v501_v29   ;;  %v513_v32 = vld [vmem:[%s10658_s22 + $0x600] sm:$0xff]  }
  0x42   : > { %506 = vst [vmem:[%s10663_s23 + $0x2f0] sm:$0xff] %v505_v30   ;;  %510 = vst [vmem:[%s10663_s23 + $0x2f8] sm:$0xff] %v509_v31   ;;  %v517_v33 = vld [vmem:[%s10658_s22 + $0x608] sm:$0xff]   ;;  %v521_v34 = vld [vmem:[%s10658_s22 + $0x610] sm:$0xff]  }
  0x43   : > { %514 = vst [vmem:[%s10663_s23 + $0x300] sm:$0xff] %v513_v32   ;;  %518 = vst [vmem:[%s10663_s23 + $0x308] sm:$0xff] %v517_v33   ;;  %v525_v35 = vld [vmem:[%s10658_s22 + $0x618] sm:$0xff]   ;;  %v529_v36 = vld [vmem:[%s10658_s22 + $0x620] sm:$0xff]  }
  0x44   : > { %522 = vst [vmem:[%s10663_s23 + $0x310] sm:$0xff] %v521_v34   ;;  %v533_v37 = vld [vmem:[%s10658_s22 + $0x628] sm:$0xff]   ;;  %526 = vst [vmem:[%s10663_s23 + $0x318] sm:$0xff] %v525_v35   ;;  %v537_v38 = vld [vmem:[%s10658_s22 + $0x630] sm:$0xff]  }
  0x45   : > { %530 = vst [vmem:[%s10663_s23 + $0x320] sm:$0xff] %v529_v36   ;;  %534 = vst [vmem:[%s10663_s23 + $0x328] sm:$0xff] %v533_v37   ;;  %v541_v39 = vld [vmem:[%s10658_s22 + $0x638] sm:$0xff]   ;;  %v545_v40 = vld [vmem:[%s10658_s22 + $0x640] sm:$0xff]  }
  0x46   : > { %538 = vst [vmem:[%s10663_s23 + $0x330] sm:$0xff] %v537_v38   ;;  %542 = vst [vmem:[%s10663_s23 + $0x338] sm:$0xff] %v541_v39   ;;  %v549_v41 = vld [vmem:[%s10658_s22 + $0x648] sm:$0xff]   ;;  %v553_v42 = vld [vmem:[%s10658_s22 + $0x650] sm:$0xff]  }
  0x47   : > { %546 = vst [vmem:[%s10663_s23 + $0x340] sm:$0xff] %v545_v40   ;;  %v557_v43 = vld [vmem:[%s10658_s22 + $0x658] sm:$0xff]   ;;  %550 = vst [vmem:[%s10663_s23 + $0x348] sm:$0xff] %v549_v41   ;;  %v561_v44 = vld [vmem:[%s10658_s22 + $0x660] sm:$0xff]  }
  0x48   : > { %554 = vst [vmem:[%s10663_s23 + $0x350] sm:$0xff] %v553_v42   ;;  %558 = vst [vmem:[%s10663_s23 + $0x358] sm:$0xff] %v557_v43   ;;  %v565_v45 = vld [vmem:[%s10658_s22 + $0x668] sm:$0xff]   ;;  %v569_v46 = vld [vmem:[%s10658_s22 + $0x670] sm:$0xff]  }
  0x49   : > { %562 = vst [vmem:[%s10663_s23 + $0x360] sm:$0xff] %v561_v44   ;;  %566 = vst [vmem:[%s10663_s23 + $0x368] sm:$0xff] %v565_v45   ;;  %v573_v47 = vld [vmem:[%s10658_s22 + $0x678] sm:$0xff]   ;;  %v577_v48 = vld [vmem:[%s10658_s22 + $0x680] sm:$0xff]  }
  0x4a   : > { %570 = vst [vmem:[%s10663_s23 + $0x370] sm:$0xff] %v569_v46   ;;  %v581_v49 = vld [vmem:[%s10658_s22 + $0x688] sm:$0xff]   ;;  %574 = vst [vmem:[%s10663_s23 + $0x378] sm:$0xff] %v573_v47   ;;  %v585_v50 = vld [vmem:[%s10658_s22 + $0x690] sm:$0xff]  }
  0x4b   : > { %578 = vst [vmem:[%s10663_s23 + $0x380] sm:$0xff] %v577_v48   ;;  %582 = vst [vmem:[%s10663_s23 + $0x388] sm:$0xff] %v581_v49   ;;  %v589_v51 = vld [vmem:[%s10658_s22 + $0x698] sm:$0xff]   ;;  %v593_v52 = vld [vmem:[%s10658_s22 + $0x6a0] sm:$0xff]  }
  0x4c   : > { %586 = vst [vmem:[%s10663_s23 + $0x390] sm:$0xff] %v585_v50   ;;  %590 = vst [vmem:[%s10663_s23 + $0x398] sm:$0xff] %v589_v51   ;;  %v597_v53 = vld [vmem:[%s10658_s22 + $0x6a8] sm:$0xff]   ;;  %v601_v54 = vld [vmem:[%s10658_s22 + $0x6b0] sm:$0xff]  }
  0x4d   : > { %594 = vst [vmem:[%s10663_s23 + $0x3a0] sm:$0xff] %v593_v52   ;;  %v605_v55 = vld [vmem:[%s10658_s22 + $0x6b8] sm:$0xff]   ;;  %598 = vst [vmem:[%s10663_s23 + $0x3a8] sm:$0xff] %v597_v53   ;;  %v609_v56 = vld [vmem:[%s10658_s22 + $0x6c0] sm:$0xff]  }
  0x4e   : > { %602 = vst [vmem:[%s10663_s23 + $0x3b0] sm:$0xff] %v601_v54   ;;  %606 = vst [vmem:[%s10663_s23 + $0x3b8] sm:$0xff] %v605_v55   ;;  %v613_v57 = vld [vmem:[%s10658_s22 + $0x6c8] sm:$0xff]   ;;  %v617_v58 = vld [vmem:[%s10658_s22 + $0x6d0] sm:$0xff]  }
  0x4f   : > { %610 = vst [vmem:[%s10663_s23 + $0x3c0] sm:$0xff] %v609_v56   ;;  %614 = vst [vmem:[%s10663_s23 + $0x3c8] sm:$0xff] %v613_v57   ;;  %v621_v59 = vld [vmem:[%s10658_s22 + $0x6d8] sm:$0xff]   ;;  %v625_v60 = vld [vmem:[%s10658_s22 + $0x6e0] sm:$0xff]  }
  0x50   : > { %618 = vst [vmem:[%s10663_s23 + $0x3d0] sm:$0xff] %v617_v58   ;;  %v629_v61 = vld [vmem:[%s10658_s22 + $0x6e8] sm:$0xff]   ;;  %622 = vst [vmem:[%s10663_s23 + $0x3d8] sm:$0xff] %v621_v59   ;;  %v633_v62 = vld [vmem:[%s10658_s22 + $0x6f0] sm:$0xff]  }
  0x51   : > { %626 = vst [vmem:[%s10663_s23 + $0x3e0] sm:$0xff] %v625_v60   ;;  %630 = vst [vmem:[%s10663_s23 + $0x3e8] sm:$0xff] %v629_v61   ;;  %v637_v63 = vld [vmem:[%s10658_s22 + $0x6f8] sm:$0xff]   ;;  %v641_v0 = vld [vmem:[%s10658_s22 + $0x700] sm:$0xff]  }
  0x52   : > { %634 = vst [vmem:[%s10663_s23 + $0x3f0] sm:$0xff] %v633_v62   ;;  %638 = vst [vmem:[%s10663_s23 + $0x3f8] sm:$0xff] %v637_v63   ;;  %v645_v1 = vld [vmem:[%s10658_s22 + $0x708] sm:$0xff]   ;;  %v649_v2 = vld [vmem:[%s10658_s22 + $0x710] sm:$0xff]  }
  0x53   : > { %642 = vst [vmem:[%s10663_s23 + $0x400] sm:$0xff] %v641_v0   ;;  %v653_v3 = vld [vmem:[%s10658_s22 + $0x718] sm:$0xff]   ;;  %646 = vst [vmem:[%s10663_s23 + $0x408] sm:$0xff] %v645_v1   ;;  %v657_v4 = vld [vmem:[%s10658_s22 + $0x720] sm:$0xff]  }
  0x54   : > { %650 = vst [vmem:[%s10663_s23 + $0x410] sm:$0xff] %v649_v2   ;;  %654 = vst [vmem:[%s10663_s23 + $0x418] sm:$0xff] %v653_v3   ;;  %v661_v5 = vld [vmem:[%s10658_s22 + $0x728] sm:$0xff]   ;;  %v665_v6 = vld [vmem:[%s10658_s22 + $0x730] sm:$0xff]  }
  0x55   : > { %658 = vst [vmem:[%s10663_s23 + $0x420] sm:$0xff] %v657_v4   ;;  %662 = vst [vmem:[%s10663_s23 + $0x428] sm:$0xff] %v661_v5   ;;  %v669_v7 = vld [vmem:[%s10658_s22 + $0x738] sm:$0xff]   ;;  %v673_v8 = vld [vmem:[%s10658_s22 + $0x740] sm:$0xff]  }
  0x56   : > { %666 = vst [vmem:[%s10663_s23 + $0x430] sm:$0xff] %v665_v6   ;;  %v677_v9 = vld [vmem:[%s10658_s22 + $0x748] sm:$0xff]   ;;  %670 = vst [vmem:[%s10663_s23 + $0x438] sm:$0xff] %v669_v7   ;;  %v681_v10 = vld [vmem:[%s10658_s22 + $0x750] sm:$0xff]  }
  0x57   : > { %674 = vst [vmem:[%s10663_s23 + $0x440] sm:$0xff] %v673_v8   ;;  %678 = vst [vmem:[%s10663_s23 + $0x448] sm:$0xff] %v677_v9   ;;  %v685_v11 = vld [vmem:[%s10658_s22 + $0x758] sm:$0xff]   ;;  %v689_v12 = vld [vmem:[%s10658_s22 + $0x760] sm:$0xff]  }
  0x58   : > { %682 = vst [vmem:[%s10663_s23 + $0x450] sm:$0xff] %v681_v10   ;;  %686 = vst [vmem:[%s10663_s23 + $0x458] sm:$0xff] %v685_v11   ;;  %v693_v13 = vld [vmem:[%s10658_s22 + $0x768] sm:$0xff]   ;;  %v697_v14 = vld [vmem:[%s10658_s22 + $0x770] sm:$0xff]  }
  0x59   : > { %690 = vst [vmem:[%s10663_s23 + $0x460] sm:$0xff] %v689_v12   ;;  %v701_v15 = vld [vmem:[%s10658_s22 + $0x778] sm:$0xff]   ;;  %694 = vst [vmem:[%s10663_s23 + $0x468] sm:$0xff] %v693_v13  }
  0x5a   : > { %698 = vst [vmem:[%s10663_s23 + $0x470] sm:$0xff] %v697_v14   ;;  %702 = vst [vmem:[%s10663_s23 + $0x478] sm:$0xff] %v701_v15  }
  0x5b PF: > { %p8622_p5 = scmp.ge.s32.totalorder %s10605_s11, 1  ;;  %p1302_p6 = scmp.lt.s32.totalorder %s10605_s11, 3 }
  0x5d   : > { %p1303_p7 = pnand %p8622_p5, %p1302_p6 }
  0x5f   : > { %1306 = sbr.rel (%p1303_p7) target bundleno = 1088 (0x440), region = 65 }
  0x66   : > { %s1309_s24 = sand.u32 1, %s10597_s9   ;;  %v13124_v16 = vmov 0.0   ;;  %vm10608_vm0 = vmmov 0   ;;  %vm1640_vm1 = vcmask 64512   ;;  %vm4565_vm2 = vcmask 130048   ;;  %s8623_s29 = sshll.u32 %s8615_s12, 4 }
  0x67   : > { %9443 = vmatprep.subr.bf16.mxu0 %v13124_v16  ;;  %9449 = vmatprep.subr.bf16.mxu1 %v13124_v16  ;;  %s10021_s25 = smul.u32 1152, %s1309_s24  ;;  %p1333_p8 = scmp.lt.s32.totalorder %s8623_s29, 31  ;;  %vm8454_vm3 = vcmask 60416  }
  0x68   : > { %9445 = vmatprep.mubr.msk.bf16.mxu0 %vm10608_vm0, %v13124_v16  ;;  %9451 = vmatprep.mubr.msk.bf16.mxu1 %vm10608_vm0, %v13124_v16 }
  0x69   : > { %s10959_s26 = scalar_lea.vmem [#allocation2], %s10021_s25  ;;  %s13422_s29 = smov (!%p1333_p8, %s8623_s29), 31 }
  0x6a   : > { %v10049_v17 = vld [vmem:[%s10959_s26 + $0x180] sm:$0xff]   ;;  %v10050_v18 = vld [vmem:[%s10959_s26 + $0x188] sm:$0xff]   ;;  %v10053_v21 = vld [vmem:[%s10959_s26 + $0x190] sm:$0xff]   ;;  %s10022_s11 = smul.u32 24, %s13422_s29 }
  0x6b   : > { %v1645_v19 = vsel %vm1640_vm1, %v10049_v17, 0  ;;  %v1702_v20 = vsel %vm1640_vm1, %v10050_v18, 0  ;;  %v10054_v22 = vld [vmem:[%s10959_s26 + $0x198] sm:$0xff]   ;;  %v10051_v23 = vld [vmem:[%s10959_s26] sm:$0xff]   ;;  %v10052_v24 = vld [vmem:[%s10959_s26 + $0x8] sm:$0xff]   ;;  %v1759_v25 = vsel %vm1640_vm1, %v10053_v21, 0 }
  0x6c   : > { %9444 = vmatpush3.bf16.xpose.msra.mxu0 %v1645_v19  ;;  %9450 = vmatpush3.bf16.xpose.msra.mxu1 %v1702_v20  ;;  %v1816_v26 = vsel %vm1640_vm1, %v10054_v22, 0  ;;  %v10056_v27 = vld [vmem:[%s10959_s26 + $0x1a0] sm:$0xff]   ;;  %v10058_v28 = vld [vmem:[%s10959_s26 + $0x1a8] sm:$0xff]   ;;  %v10055_v29 = vld [vmem:[%s10959_s26 + $0x10] sm:$0xff]   ;;  %s12910_s3 = scalar_lea.vmem %s13123_s2, %s10022_s11 }
  0x6d   : > { %9455 = vmatprep.subr.bf16.mxu0 %v13124_v16  ;;  %9461 = vmatprep.subr.bf16.mxu1 %v13124_v16  ;;  %v10057_v30 = vld [vmem:[%s10959_s26 + $0x18] sm:$0xff]   ;;  %v1873_v31 = vsel %vm1640_vm1, %v10056_v27, 0  ;;  %v1930_v32 = vsel %vm1640_vm1, %v10058_v28, 0  ;;  %v10060_v33 = vld [vmem:[%s10959_s26 + $0x1b0] sm:$0xff]   ;;  %v10059_v35 = vld [vmem:[%s10959_s26 + $0x20] sm:$0xff]  }
  0x6e   : > { %v10062_v34 = vld [vmem:[%s10959_s26 + $0x1b8] sm:$0xff]   ;;  %v10061_v36 = vld [vmem:[%s10959_s26 + $0x28] sm:$0xff]   ;;  %v1987_v37 = vsel %vm1640_vm1, %v10060_v33, 0  ;;  %v10064_v39 = vld [vmem:[%s10959_s26 + $0x1c0] sm:$0xff]  }
  0x6f   : > { %v2044_v38 = vsel %vm1640_vm1, %v10062_v34, 0  ;;  %v10066_v40 = vld [vmem:[%s10959_s26 + $0x1c8] sm:$0xff]   ;;  %v10063_v41 = vld [vmem:[%s10959_s26 + $0x30] sm:$0xff]   ;;  %v10065_v42 = vld [vmem:[%s10959_s26 + $0x38] sm:$0xff]   ;;  %v2101_v43 = vsel %vm1640_vm1, %v10064_v39, 0 }
  0x70   : > { %v2158_v44 = vsel %vm1640_vm1, %v10066_v40, 0  ;;  %v10068_v45 = vld [vmem:[%s10959_s26 + $0x1d0] sm:$0xff]   ;;  %v10070_v46 = vld [vmem:[%s10959_s26 + $0x1d8] sm:$0xff]   ;;  %v10067_v47 = vld [vmem:[%s10959_s26 + $0x40] sm:$0xff]  }
  0x71   : > { %v10069_v48 = vld [vmem:[%s10959_s26 + $0x48] sm:$0xff]   ;;  %v2215_v49 = vsel %vm1640_vm1, %v10068_v45, 0  ;;  %v2272_v50 = vsel %vm1640_vm1, %v10070_v46, 0  ;;  %v10072_v51 = vld [vmem:[%s10959_s26 + $0x1e0] sm:$0xff]   ;;  %v10071_v53 = vld [vmem:[%s10959_s26 + $0x50] sm:$0xff]  }
  0x72   : > { %v10074_v52 = vld [vmem:[%s10959_s26 + $0x1e8] sm:$0xff]   ;;  %v10073_v54 = vld [vmem:[%s10959_s26 + $0x58] sm:$0xff]   ;;  %v2329_v55 = vsel %vm1640_vm1, %v10072_v51, 0  ;;  %v10076_v57 = vld [vmem:[%s10959_s26 + $0x1f0] sm:$0xff]  }
  0x73   : > { %9446 = vmatmul.mubr.msk.bf16.vlgmr.msra.gmra.mrb[0].mxu0 %vm1640_vm1, %v10051_v23  ;;  %9452 = vmatmul.mubr.msk.bf16.vlgmr.msra.gmra.mrb[0].mxu1 %vm1640_vm1, %v10052_v24  ;;  %v2386_v56 = vsel %vm1640_vm1, %v10074_v52, 0  ;;  %v10078_v58 = vld [vmem:[%s10959_s26 + $0x1f8] sm:$0xff]   ;;  %v10075_v59 = vld [vmem:[%s10959_s26 + $0x60] sm:$0xff]   ;;  %v10077_v60 = vld [vmem:[%s10959_s26 + $0x68] sm:$0xff]   ;;  %v2443_v61 = vsel %vm1640_vm1, %v10076_v57, 0 }
  0x74   : > { %9456 = vmatpush3.bf16.xpose.msra.mxu0 %v1759_v25  ;;  %9462 = vmatpush3.bf16.xpose.msra.mxu1 %v1816_v26  ;;  %v2500_v62 = vsel %vm1640_vm1, %v10078_v58, 0  ;;  %v10080_v63 = vld [vmem:[%s10959_s26 + $0x200] sm:$0xff]   ;;  %v10082_v0 = vld [vmem:[%s10959_s26 + $0x208] sm:$0xff]   ;;  %v10079_v1 = vld [vmem:[%s10959_s26 + $0x70] sm:$0xff]  }
  0x75   : > { %9457 = vmatprep.mubr.msk.bf16.mxu0 %vm10608_vm0, %v13124_v16  ;;  %9467 = vmatprep.subr.bf16.mxu0 %v13124_v16  ;;  %v10081_v2 = vld [vmem:[%s10959_s26 + $0x78] sm:$0xff]   ;;  %v2557_v3 = vsel %vm1640_vm1, %v10080_v63, 0  ;;  %v2614_v4 = vsel %vm1640_vm1, %v10082_v0, 0  ;;  %v10084_v5 = vld [vmem:[%s10959_s26 + $0x210] sm:$0xff]   ;;  %v10083_v7 = vld [vmem:[%s10959_s26 + $0x80] sm:$0xff]  }
  0x76   : > { %9463 = vmatprep.mubr.msk.bf16.mxu1 %vm10608_vm0, %v13124_v16  ;;  %9473 = vmatprep.subr.bf16.mxu1 %v13124_v16  ;;  %v10086_v6 = vld [vmem:[%s10959_s26 + $0x218] sm:$0xff]   ;;  %v10085_v8 = vld [vmem:[%s10959_s26 + $0x88] sm:$0xff]   ;;  %v2671_v9 = vsel %vm1640_vm1, %v10084_v5, 0  ;;  %v10088_v11 = vld [vmem:[%s10959_s26 + $0x220] sm:$0xff]  }
  0x77   : > { %v2728_v10 = vsel %vm1640_vm1, %v10086_v6, 0  ;;  %v10090_v12 = vld [vmem:[%s10959_s26 + $0x228] sm:$0xff]   ;;  %v10087_v13 = vld [vmem:[%s10959_s26 + $0x90] sm:$0xff]   ;;  %v10089_v14 = vld [vmem:[%s10959_s26 + $0x98] sm:$0xff]   ;;  %v2785_v15 = vsel %vm1640_vm1, %v10088_v11, 0 }
  0x78   : > { %v2842_v17 = vsel %vm1640_vm1, %v10090_v12, 0  ;;  %v10092_v18 = vld [vmem:[%s10959_s26 + $0x230] sm:$0xff]   ;;  %v10094_v19 = vld [vmem:[%s10959_s26 + $0x238] sm:$0xff]   ;;  %v10091_v20 = vld [vmem:[%s10959_s26 + $0xa0] sm:$0xff]  }
  0x79   : > { %v10093_v21 = vld [vmem:[%s10959_s26 + $0xa8] sm:$0xff]   ;;  %v2899_v22 = vsel %vm1640_vm1, %v10092_v18, 0  ;;  %v2956_v23 = vsel %vm1640_vm1, %v10094_v19, 0  ;;  %v10096_v24 = vld [vmem:[%s10959_s26 + $0x240] sm:$0xff]   ;;  %v10095_v26 = vld [vmem:[%s10959_s26 + $0xb0] sm:$0xff]  }
  0x7a   : > { %v10098_v25 = vld [vmem:[%s10959_s26 + $0x248] sm:$0xff]   ;;  %v10100_v27 = vld [vmem:[%s10959_s26 + $0x250] sm:$0xff]   ;;  %v10102_v28 = vld [vmem:[%s10959_s26 + $0x258] sm:$0xff]  }
  0x7b   : > { %9458 = vmatmul.mubr.msk.bf16.vlgmr.msra.gmra.mrb[4].mxu0 %vm1640_vm1, %v10055_v29  ;;  %9464 = vmatmul.mubr.msk.bf16.vlgmr.msra.gmra.mrb[4].mxu1 %vm1640_vm1, %v10057_v30  ;;  %v10104_v29 = vld [vmem:[%s10959_s26 + $0x260] sm:$0xff]   ;;  %v10106_v30 = vld [vmem:[%s10959_s26 + $0x268] sm:$0xff]   ;;  %v3070_v33 = vsel %vm1640_vm1, %v10098_v25, 0  ;;  %v3127_v34 = vsel %vm1640_vm1, %v10100_v27, 0  ;;  %v10110_v39 = vld [vmem:[%s10959_s26 + $0x278] sm:$0xff]  }
  0x7c   : > { %9468 = vmatpush3.bf16.xpose.msra.mxu0 %v1873_v31  ;;  %9474 = vmatpush3.bf16.xpose.msra.mxu1 %v1930_v32  ;;  %v10097_v31 = vld [vmem:[%s10959_s26 + $0xb8] sm:$0xff]   ;;  %v3013_v32 = vsel %vm1640_vm1, %v10096_v24, 0  ;;  %v10099_v40 = vld [vmem:[%s10959_s26 + $0xc0] sm:$0xff]   ;;  %v3412_v45 = vsel %vm1640_vm1, %v10110_v39, 0  ;;  %v10109_v51 = vld [vmem:[%s10959_s26 + $0xe8] sm:$0xff]  }
  0x7d   : > { %9469 = vmatprep.mubr.msk.bf16.mxu0 %vm10608_vm0, %v13124_v16  ;;  %9479 = vmatprep.subr.bf16.mxu0 %v13124_v16  ;;  %v10111_v52 = vld [vmem:[%s10959_s26 + $0xf0] sm:$0xff]   ;;  %v10117_v57 = vld [vmem:[%s10959_s26 + $0x108] sm:$0xff]   ;;  %v10121_v63 = vld [vmem:[%s10959_s26 + $0x118] sm:$0xff]  }
  0x7e   : > { %9475 = vmatprep.mubr.msk.bf16.mxu1 %vm10608_vm0, %v13124_v16  ;;  %9485 = vmatprep.subr.bf16.mxu1 %v13124_v16  ;;  %v10125_v5 = vld [vmem:[%s10959_s26 + $0x128] sm:$0xff]   ;;  %v10128_v11 = vld [vmem:[%s10959_s26 + $0x138] sm:$0xff]   ;;  %v10141_v27 = vld [vmem:[%s10959_s26 + $0x2f0] sm:$0xff]  }
  0x7f   : > { %v10132_v18 = vld [vmem:[%s10959_s26 + $0x148] sm:$0xff]   ;;  %v10136_v24 = vld [vmem:[%s10959_s26 + $0x158] sm:$0xff]  }
  0x83   : > { %9470 = vmatmul.mubr.msk.bf16.vlgmr.msra.gmra.mrb[8].mxu0 %vm1640_vm1, %v10059_v35  ;;  %9476 = vmatmul.mubr.msk.bf16.vlgmr.msra.gmra.mrb[8].mxu1 %vm1640_vm1, %v10061_v36  ;;  %v3184_v35 = vsel %vm1640_vm1, %v10102_v28, 0  ;;  %v3241_v36 = vsel %vm1640_vm1, %v10104_v29, 0  ;;  %v10142_v28 = vld [vmem:[%s10959_s26 + $0x2f8] sm:$0xff]   ;;  %v10139_v29 = vld [vmem:[%s10959_s26 + $0x160] sm:$0xff]  }
  0x84   : > { %9480 = vmatpush3.bf16.xpose.msra.mxu0 %v1987_v37  ;;  %9486 = vmatpush3.bf16.xpose.msra.mxu1 %v2044_v38  ;;  %v3298_v37 = vsel %vm1640_vm1, %v10106_v30, 0  ;;  %v10108_v38 = vld [vmem:[%s10959_s26 + $0x270] sm:$0xff]   ;;  %v10140_v30 = vld [vmem:[%s10959_s26 + $0x168] sm:$0xff]  }
  0x85   : > { %9481 = vmatprep.mubr.msk.bf16.mxu0 %vm10608_vm0, %v13124_v16  ;;  %9491 = vmatprep.subr.bf16.mxu0 %v13124_v16 }
  0x86   : > { %9487 = vmatprep.mubr.msk.bf16.mxu1 %vm10608_vm0, %v13124_v16  ;;  %9497 = vmatprep.subr.bf16.mxu1 %v13124_v16 }
  0x8b   : > { %9482 = vmatmul.mubr.msk.bf16.vlgmr.msra.gmra.mrb[12].mxu0 %vm1640_vm1, %v10063_v41  ;;  %9488 = vmatmul.mubr.msk.bf16.vlgmr.msra.gmra.mrb[12].mxu1 %vm1640_vm1, %v10065_v42  ;;  %v10112_v41 = vld [vmem:[%s10959_s26 + $0x280] sm:$0xff]   ;;  %v10114_v42 = vld [vmem:[%s10959_s26 + $0x288] sm:$0xff]  }
  0x8c   : > { %9492 = vmatpush3.bf16.xpose.msra.mxu0 %v2101_v43  ;;  %9498 = vmatpush3.bf16.xpose.msra.mxu1 %v2158_v44  ;;  %v10101_v43 = vld [vmem:[%s10959_s26 + $0xc8] sm:$0xff]   ;;  %v3355_v44 = vsel %vm1640_vm1, %v10108_v38, 0  ;;  %v3469_v46 = vsel %vm1640_vm1, %v10112_v41, 0 }
  0x8d   : > { %9493 = vmatprep.mubr.msk.bf16.mxu0 %vm10608_vm0, %v13124_v16  ;;  %9503 = vmatprep.subr.bf16.mxu0 %v13124_v16 }
  0x8e   : > { %9499 = vmatprep.mubr.msk.bf16.mxu1 %vm10608_vm0, %v13124_v16  ;;  %9509 = vmatprep.subr.bf16.mxu1 %v13124_v16 }
  0x93   : > { %9494 = vmatmul.mubr.msk.bf16.vlgmr.msra.gmra.mrb[16].mxu0 %vm1640_vm1, %v10067_v47  ;;  %9500 = vmatmul.mubr.msk.bf16.vlgmr.msra.gmra.mrb[16].mxu1 %vm1640_vm1, %v10069_v48  ;;  %v3526_v47 = vsel %vm1640_vm1, %v10114_v42, 0  ;;  %v10103_v48 = vld [vmem:[%s10959_s26 + $0xd0] sm:$0xff]  }
  0x94   : > { %9504 = vmatpush3.bf16.xpose.msra.mxu0 %v2215_v49  ;;  %9510 = vmatpush3.bf16.xpose.msra.mxu1 %v2272_v50  ;;  %v10105_v49 = vld [vmem:[%s10959_s26 + $0xd8] sm:$0xff]   ;;  %v10107_v50 = vld [vmem:[%s10959_s26 + $0xe0] sm:$0xff]  }
  0x95   : > { %9505 = vmatprep.mubr.msk.bf16.mxu0 %vm10608_vm0, %v13124_v16  ;;  %9515 = vmatprep.subr.bf16.mxu0 %v13124_v16 }
  0x96   : > { %9511 = vmatprep.mubr.msk.bf16.mxu1 %vm10608_vm0, %v13124_v16  ;;  %9521 = vmatprep.subr.bf16.mxu1 %v13124_v16 }
  0x9b   : > { %9506 = vmatmul.mubr.msk.bf16.vlgmr.msra.gmra.mrb[20].mxu0 %vm1640_vm1, %v10071_v53  ;;  %9512 = vmatmul.mubr.msk.bf16.vlgmr.msra.gmra.mrb[20].mxu1 %vm1640_vm1, %v10073_v54  ;;  %v10113_v53 = vld [vmem:[%s10959_s26 + $0xf8] sm:$0xff]   ;;  %v10116_v54 = vld [vmem:[%s10959_s26 + $0x290] sm:$0xff]  }
  0x9c   : > { %9516 = vmatpush3.bf16.xpose.msra.mxu0 %v2329_v55  ;;  %9522 = vmatpush3.bf16.xpose.msra.mxu1 %v2386_v56  ;;  %v10118_v55 = vld [vmem:[%s10959_s26 + $0x298] sm:$0xff]   ;;  %v10115_v56 = vld [vmem:[%s10959_s26 + $0x100] sm:$0xff]   ;;  %v3583_v58 = vsel %vm1640_vm1, %v10116_v54, 0 }
  0x9d   : > { %9517 = vmatprep.mubr.msk.bf16.mxu0 %vm10608_vm0, %v13124_v16  ;;  %9527 = vmatprep.subr.bf16.mxu0 %v13124_v16 }
  0x9e   : > { %9523 = vmatprep.mubr.msk.bf16.mxu1 %vm10608_vm0, %v13124_v16  ;;  %9533 = vmatprep.subr.bf16.mxu1 %v13124_v16 }
  0xa3   : > { %9518 = vmatmul.mubr.msk.bf16.vlgmr.msra.gmra.mrb[24].mxu0 %vm1640_vm1, %v10075_v59  ;;  %9524 = vmatmul.mubr.msk.bf16.vlgmr.msra.gmra.mrb[24].mxu1 %vm1640_vm1, %v10077_v60  ;;  %v3640_v59 = vsel %vm1640_vm1, %v10118_v55, 0  ;;  %v10120_v60 = vld [vmem:[%s10959_s26 + $0x2a0] sm:$0xff]  }
  0xa4   : > { %9528 = vmatpush3.bf16.xpose.msra.mxu0 %v2443_v61  ;;  %9534 = vmatpush3.bf16.xpose.msra.mxu1 %v2500_v62  ;;  %v10122_v61 = vld [vmem:[%s10959_s26 + $0x2a8] sm:$0xff]   ;;  %v10119_v62 = vld [vmem:[%s10959_s26 + $0x110] sm:$0xff]   ;;  %v3697_v0 = vsel %vm1640_vm1, %v10120_v60, 0 }
  0xa5   : > { %9529 = vmatprep.mubr.msk.bf16.mxu0 %vm10608_vm0, %v13124_v16  ;;  %9539 = vmatprep.subr.bf16.mxu0 %v13124_v16 }
  0xa6   : > { %9535 = vmatprep.mubr.msk.bf16.mxu1 %vm10608_vm0, %v13124_v16  ;;  %9545 = vmatprep.subr.bf16.mxu1 %v13124_v16 }
  0xab   : > { %9530 = vmatmul.mubr.msk.bf16.vlgmr.msra.gmra.mrb[28].mxu0 %vm1640_vm1, %v10079_v1  ;;  %9536 = vmatmul.mubr.msk.bf16.vlgmr.msra.gmra.mrb[28].mxu1 %vm1640_vm1, %v10081_v2  ;;  %v3754_v1 = vsel %vm1640_vm1, %v10122_v61, 0  ;;  %v10124_v2 = vld [vmem:[%s10959_s26 + $0x2b0] sm:$0xff]  }
  0xac   : > { %9540 = vmatpush3.bf16.xpose.msra.mxu0 %v2557_v3  ;;  %9546 = vmatpush3.bf16.xpose.msra.mxu1 %v2614_v4  ;;  %v10126_v3 = vld [vmem:[%s10959_s26 + $0x2b8] sm:$0xff]   ;;  %v10123_v4 = vld [vmem:[%s10959_s26 + $0x120] sm:$0xff]   ;;  %v3811_v6 = vsel %vm1640_vm1, %v10124_v2, 0 }
  0xad   : > { %9541 = vmatprep.mubr.msk.bf16.mxu0 %vm10608_vm0, %v13124_v16  ;;  %9551 = vmatprep.subr.bf16.mxu0 %v13124_v16 }
  0xae   : > { %9547 = vmatprep.mubr.msk.bf16.mxu1 %vm10608_vm0, %v13124_v16  ;;  %9557 = vmatprep.subr.bf16.mxu1 %v13124_v16 }
  0xb3   : > { %9542 = vmatmul.mubr.msk.bf16.vlgmr.msra.gmra.mrb[32].mxu0 %vm1640_vm1, %v10083_v7  ;;  %9548 = vmatmul.mubr.msk.bf16.vlgmr.msra.gmra.mrb[32].mxu1 %vm1640_vm1, %v10085_v8  ;;  %v3868_v7 = vsel %vm1640_vm1, %v10126_v3, 0  ;;  %v10129_v8 = vld [vmem:[%s10959_s26 + $0x2c0] sm:$0xff]   ;;  %v11345_v3 = vld [vmem:[%s13122_s1 + $0x28] sm:$0xff] }
  0xb4   : > { %9552 = vmatpush3.bf16.xpose.msra.mxu0 %v2671_v9  ;;  %9558 = vmatpush3.bf16.xpose.msra.mxu1 %v2728_v10  ;;  %v10130_v9 = vld [vmem:[%s10959_s26 + $0x2c8] sm:$0xff]   ;;  %v10127_v10 = vld [vmem:[%s10959_s26 + $0x130] sm:$0xff]   ;;  %v3925_v12 = vsel %vm1640_vm1, %v10129_v8, 0 }
  0xb5   : > { %9553 = vmatprep.mubr.msk.bf16.mxu0 %vm10608_vm0, %v13124_v16  ;;  %9563 = vmatprep.subr.bf16.mxu0 %v13124_v16 }
  0xb6   : > { %9559 = vmatprep.mubr.msk.bf16.mxu1 %vm10608_vm0, %v13124_v16  ;;  %9569 = vmatprep.subr.bf16.mxu1 %v13124_v16 }
  0xbb   : > { %9554 = vmatmul.mubr.msk.bf16.vlgmr.msra.gmra.mrb[36].mxu0 %vm1640_vm1, %v10087_v13  ;;  %9560 = vmatmul.mubr.msk.bf16.vlgmr.msra.gmra.mrb[36].mxu1 %vm1640_vm1, %v10089_v14  ;;  %v3982_v13 = vsel %vm1640_vm1, %v10130_v9, 0  ;;  %v10133_v14 = vld [vmem:[%s10959_s26 + $0x2d0] sm:$0xff]  }
  0xbc   : > { %9564 = vmatpush3.bf16.xpose.msra.mxu0 %v2785_v15  ;;  %9570 = vmatpush3.bf16.xpose.msra.mxu1 %v2842_v17  ;;  %v10134_v15 = vld [vmem:[%s10959_s26 + $0x2d8] sm:$0xff]   ;;  %v10131_v17 = vld [vmem:[%s10959_s26 + $0x140] sm:$0xff]   ;;  %v4039_v19 = vsel %vm1640_vm1, %v10133_v14, 0 }
  0xbd   : > { %9565 = vmatprep.mubr.msk.bf16.mxu0 %vm10608_vm0, %v13124_v16  ;;  %9575 = vmatprep.subr.bf16.mxu0 %v13124_v16 }
  0xbe   : > { %9571 = vmatprep.mubr.msk.bf16.mxu1 %vm10608_vm0, %v13124_v16  ;;  %9581 = vmatprep.subr.bf16.mxu1 %v13124_v16 }
  0xc3   : > { %9566 = vmatmul.mubr.msk.bf16.vlgmr.msra.gmra.mrb[40].mxu0 %vm1640_vm1, %v10091_v20  ;;  %9572 = vmatmul.mubr.msk.bf16.vlgmr.msra.gmra.mrb[40].mxu1 %vm1640_vm1, %v10093_v21  ;;  %v4096_v20 = vsel %vm1640_vm1, %v10134_v15, 0  ;;  %v10137_v21 = vld [vmem:[%s10959_s26 + $0x2e0] sm:$0xff]  }
  0xc4   : > { %9576 = vmatpush3.bf16.xpose.msra.mxu0 %v2899_v22  ;;  %9582 = vmatpush3.bf16.xpose.msra.mxu1 %v2956_v23  ;;  %v10138_v22 = vld [vmem:[%s10959_s26 + $0x2e8] sm:$0xff]   ;;  %v10135_v23 = vld [vmem:[%s10959_s26 + $0x150] sm:$0xff]   ;;  %v4153_v25 = vsel %vm1640_vm1, %v10137_v21, 0 }
  0xc5   : > { %9577 = vmatprep.mubr.msk.bf16.mxu0 %vm10608_vm0, %v13124_v16  ;;  %9587 = vmatprep.subr.bf16.mxu0 %v13124_v16 }
  0xc6   : > { %9583 = vmatprep.mubr.msk.bf16.mxu1 %vm10608_vm0, %v13124_v16  ;;  %9593 = vmatprep.subr.bf16.mxu1 %v13124_v16 }
  0xcb   : > { %9578 = vmatmul.mubr.msk.bf16.vlgmr.msra.gmra.mrb[44].mxu0 %vm1640_vm1, %v10095_v26  ;;  %9584 = vmatmul.mubr.msk.bf16.vlgmr.msra.gmra.mrb[44].mxu1 %vm1640_vm1, %v10097_v31  ;;  %v4210_v26 = vsel %vm1640_vm1, %v10138_v22, 0  ;;  %v4267_v31 = vsel %vm1640_vm1, %v10141_v27, 0 }
  0xcc   : > { %9588 = vmatpush3.bf16.xpose.msra.mxu0 %v3013_v32  ;;  %9594 = vmatpush3.bf16.xpose.msra.mxu1 %v3070_v33  ;;  %v4324_v32 = vsel %vm1640_vm1, %v10142_v28, 0  ;;  %v10143_v33 = vld [vmem:[%s10959_s26 + $0x170] sm:$0xff]  }
  0xcd   : > { %9589 = vmatprep.mubr.msk.bf16.mxu0 %vm10608_vm0, %v13124_v16  ;;  %9599 = vmatprep.subr.bf16.mxu0 %v13124_v16 }
  0xce   : > { %9595 = vmatprep.mubr.msk.bf16.mxu1 %vm10608_vm0, %v13124_v16  ;;  %9605 = vmatprep.subr.bf16.mxu1 %v13124_v16 }
  0xd3   : > { %9590 = vmatmul.mubr.msk.bf16.vlgmr.msra.gmra.mrb[48].mxu0 %vm1640_vm1, %v10099_v40  ;;  %9596 = vmatmul.mubr.msk.bf16.vlgmr.msra.gmra.mrb[48].mxu1 %vm1640_vm1, %v10101_v43  ;;  %v11305_v40 = vld [vmem:[%s13122_s1 + $0x10] sm:$0xff] }
  0xd4   : > { %9600 = vmatpush3.bf16.xpose.msra.mxu0 %v3127_v34  ;;  %9606 = vmatpush3.bf16.xpose.msra.mxu1 %v3184_v35  ;;  %v10144_v34 = vld [vmem:[%s10959_s26 + $0x178] sm:$0xff]  }
  0xd5   : > { %9601 = vmatprep.mubr.msk.bf16.mxu0 %vm10608_vm0, %v13124_v16  ;;  %9611 = vmatprep.subr.bf16.mxu0 %v13124_v16 }
  0xd6   : > { %9607 = vmatprep.mubr.msk.bf16.mxu1 %vm10608_vm0, %v13124_v16  ;;  %9617 = vmatprep.subr.bf16.mxu1 %v13124_v16 }
  0xdb   : > { %9602 = vmatmul.mubr.msk.bf16.vlgmr.msra.gmra.mrb[52].mxu0 %vm1640_vm1, %v10103_v48  ;;  %9608 = vmatmul.mubr.msk.bf16.vlgmr.msra.gmra.mrb[52].mxu1 %vm1640_vm1, %v10105_v49  ;;  %v11318_v49 = vld [vmem:[%s13122_s1 + $0x18] sm:$0xff] }
  0xdc   : > { %9612 = vmatpush3.bf16.xpose.msra.mxu0 %v3241_v36  ;;  %9618 = vmatpush3.bf16.xpose.msra.mxu1 %v3298_v37  ;;  %v11300_v36 = vld [vmem:[%s13122_s1] sm:$0xff] }
  0xdd   : > { %9613 = vmatprep.mubr.msk.bf16.mxu0 %vm10608_vm0, %v13124_v16  ;;  %9623 = vmatprep.subr.bf16.mxu0 %v13124_v16 }
  0xde   : > { %9619 = vmatprep.mubr.msk.bf16.mxu1 %vm10608_vm0, %v13124_v16  ;;  %9629 = vmatprep.subr.bf16.mxu1 %v13124_v16 }
  0xe3   : > { %9614 = vmatmul.mubr.msk.bf16.vlgmr.msra.gmra.mrb[56].mxu0 %vm1640_vm1, %v10107_v50  ;;  %9620 = vmatmul.mubr.msk.bf16.vlgmr.msra.gmra.mrb[56].mxu1 %vm1640_vm1, %v10109_v51 }
  0xe4   : > { %9624 = vmatpush3.bf16.xpose.msra.mxu0 %v3355_v44  ;;  %9630 = vmatpush3.bf16.xpose.msra.mxu1 %v3412_v45  ;;  %v11310_v44 = vld [vmem:[%s13122_s1 + $0x8] sm:$0xff] }
  0xe5   : > { %9625 = vmatprep.mubr.msk.bf16.mxu0 %vm10608_vm0, %v13124_v16  ;;  %9635 = vmatprep.subr.bf16.mxu0 %v13124_v16 }
  0xe6   : > { %9631 = vmatprep.mubr.msk.bf16.mxu1 %vm10608_vm0, %v13124_v16  ;;  %9641 = vmatprep.subr.bf16.mxu1 %v13124_v16 }
  0xeb   : > { %9626 = vmatmul.mubr.msk.bf16.vlgmr.msra.gmra.mrb[60].mxu0 %vm1640_vm1, %v10111_v52  ;;  %9632 = vmatmul.mubr.msk.bf16.vlgmr.msra.gmra.mrb[60].mxu1 %vm1640_vm1, %v10113_v53 }
  0xec   : > { %9636 = vmatpush3.bf16.xpose.msra.mxu0 %v3469_v46  ;;  %9642 = vmatpush3.bf16.xpose.msra.mxu1 %v3526_v47 }
  0xed   : > { %9637 = vmatprep.mubr.msk.bf16.mxu0 %vm10608_vm0, %v13124_v16  ;;  %9647 = vmatprep.subr.bf16.mxu0 %v13124_v16 }
  0xee   : > { %9643 = vmatprep.mubr.msk.bf16.mxu1 %vm10608_vm0, %v13124_v16  ;;  %9653 = vmatprep.subr.bf16.mxu1 %v13124_v16 }
  0xf3   : > { %9638 = vmatmul.mubr.msk.bf16.vlgmr.msra.gmra.mrb[64].mxu0 %vm1640_vm1, %v10115_v56  ;;  %9644 = vmatmul.mubr.msk.bf16.vlgmr.msra.gmra.mrb[64].mxu1 %vm1640_vm1, %v10117_v57 }
  0xf4   : > { %9648 = vmatpush3.bf16.xpose.msra.mxu0 %v3583_v58  ;;  %9654 = vmatpush3.bf16.xpose.msra.mxu1 %v3640_v59  ;;  %v11336_v58 = vld [vmem:[%s13122_s1 + $0x20] sm:$0xff] }
  0xf5   : > { %9649 = vmatprep.mubr.msk.bf16.mxu0 %vm10608_vm0, %v13124_v16  ;;  %9659 = vmatprep.subr.bf16.mxu0 %v13124_v16 }
  0xf6   : > { %9655 = vmatprep.mubr.msk.bf16.mxu1 %vm10608_vm0, %v13124_v16  ;;  %9665 = vmatprep.subr.bf16.mxu1 %v13124_v16 }
  0xfb   : > { %9650 = vmatmul.mubr.msk.bf16.vlgmr.msra.gmra.mrb[68].mxu0 %vm1640_vm1, %v10119_v62  ;;  %9656 = vmatmul.mubr.msk.bf16.vlgmr.msra.gmra.mrb[68].mxu1 %vm1640_vm1, %v10121_v63 }
  0xfc   : > { %9660 = vmatpush3.bf16.xpose.msra.mxu0 %v3697_v0  ;;  %9666 = vmatpush3.bf16.xpose.msra.mxu1 %v3754_v1 }
  0xfd   : > { %9661 = vmatprep.mubr.msk.bf16.mxu0 %vm10608_vm0, %v13124_v16  ;;  %9671 = vmatprep.subr.bf16.mxu0 %v13124_v16 }
  0xfe   : > { %9667 = vmatprep.mubr.msk.bf16.mxu1 %vm10608_vm0, %v13124_v16  ;;  %9677 = vmatprep.subr.bf16.mxu1 %v13124_v16 }
 0x103   : > { %9662 = vmatmul.mubr.msk.bf16.vlgmr.msra.gmra.mrb[72].mxu0 %vm1640_vm1, %v10123_v4  ;;  %9668 = vmatmul.mubr.msk.bf16.vlgmr.msra.gmra.mrb[72].mxu1 %vm1640_vm1, %v10125_v5 }
 0x104   : > { %9672 = vmatpush3.bf16.xpose.msra.mxu0 %v3811_v6  ;;  %9678 = vmatpush3.bf16.xpose.msra.mxu1 %v3868_v7 }
 0x105   : > { %9673 = vmatprep.mubr.msk.bf16.mxu0 %vm10608_vm0, %v13124_v16  ;;  %9679 = vmatprep.mubr.msk.bf16.mxu1 %vm10608_vm0, %v13124_v16 }
 0x106   : > { %9683 = vmatprep.subr.bf16.mxu0 %v13124_v16  ;;  %9689 = vmatprep.subr.bf16.mxu1 %v13124_v16 }
 0x10b   : > { %9674 = vmatmul.mubr.msk.bf16.vlgmr.msra.gmra.mrb[76].mxu0 %vm1640_vm1, %v10127_v10  ;;  %9680 = vmatmul.mubr.msk.bf16.vlgmr.msra.gmra.mrb[76].mxu1 %vm1640_vm1, %v10128_v11 }
 0x10c   : > { %9684 = vmatpush3.bf16.xpose.msra.mxu0 %v3925_v12  ;;  %9690 = vmatpush3.bf16.xpose.msra.mxu1 %v3982_v13 }
 0x10d   : > { %9685 = vmatprep.mubr.msk.bf16.mxu0 %vm10608_vm0, %v13124_v16  ;;  %9691 = vmatprep.mubr.msk.bf16.mxu1 %vm10608_vm0, %v13124_v16 }
 0x10e   : > { %9695 = vmatprep.subr.bf16.mxu0 %v13124_v16  ;;  %9701 = vmatprep.subr.bf16.mxu1 %v13124_v16 }
 0x113   : > { %9686 = vmatmul.mubr.msk.bf16.vlgmr.msra.gmra.mrb[80].mxu0 %vm1640_vm1, %v10131_v17  ;;  %9692 = vmatmul.mubr.msk.bf16.vlgmr.msra.gmra.mrb[80].mxu1 %vm1640_vm1, %v10132_v18 }
 0x114   : > { %9696 = vmatpush3.bf16.xpose.msra.mxu0 %v4039_v19  ;;  %9702 = vmatpush3.bf16.xpose.msra.mxu1 %v4096_v20 }
 0x115   : > { %9697 = vmatprep.mubr.msk.bf16.mxu0 %vm10608_vm0, %v13124_v16  ;;  %9703 = vmatprep.mubr.msk.bf16.mxu1 %vm10608_vm0, %v13124_v16 }
 0x116   : > { %9707 = vmatprep.subr.bf16.mxu0 %v13124_v16  ;;  %9713 = vmatprep.subr.bf16.mxu1 %v13124_v16 }
 0x11b   : > { %9698 = vmatmul.mubr.msk.bf16.vlgmr.msra.gmra.mrb[84].mxu0 %vm1640_vm1, %v10135_v23  ;;  %9704 = vmatmul.mubr.msk.bf16.vlgmr.msra.gmra.mrb[84].mxu1 %vm1640_vm1, %v10136_v24 }
 0x11c   : > { %9708 = vmatpush3.bf16.xpose.msra.mxu0 %v4153_v25  ;;  %9714 = vmatpush3.bf16.xpose.msra.mxu1 %v4210_v26 }
 0x11d   : > { %9709 = vmatprep.mubr.msk.bf16.mxu0 %vm10608_vm0, %v13124_v16  ;;  %9715 = vmatprep.mubr.msk.bf16.mxu1 %vm10608_vm0, %v13124_v16 }
 0x11e   : > { %9719 = vmatprep.subr.bf16.mxu0 %v13124_v16  ;;  %9725 = vmatprep.subr.bf16.mxu1 %v13124_v16 }
 0x123   : > { %9710 = vmatmul.mubr.msk.bf16.vlgmr.msra.gmra.mrb[88].mxu0 %vm1640_vm1, %v10139_v29  ;;  %9716 = vmatmul.mubr.msk.bf16.vlgmr.msra.gmra.mrb[88].mxu1 %vm1640_vm1, %v10140_v30 }
 0x124   : > { %9720 = vmatpush3.bf16.xpose.msra.mxu0 %v4267_v31  ;;  %9726 = vmatpush3.bf16.xpose.msra.mxu1 %v4324_v32 }
 0x125   : > { %9721 = vmatprep.mubr.msk.bf16.mxu0 %vm10608_vm0, %v13124_v16  ;;  %9727 = vmatprep.mubr.msk.bf16.mxu1 %vm10608_vm0, %v13124_v16 }
 0x126   : > { %9731 = vmatprep.subr.bf16.mxu0 %v13124_v16  ;;  %9737 = vmatprep.subr.bf16.mxu1 %v13124_v16 }
 0x12b   : > { %9722 = vmatmul.mubr.msk.bf16.vlgmr.msra.gmra.mrb[92].mxu0 %vm1640_vm1, %v10143_v33  ;;  %9728 = vmatmul.mubr.msk.bf16.vlgmr.msra.gmra.mrb[92].mxu1 %vm1640_vm1, %v10144_v34 }
 0x12c   : > { %9733 = vmatprep.mubr.msk.bf16.mxu0 %vm10608_vm0, %v13124_v16  ;;  %9739 = vmatprep.mubr.msk.bf16.mxu1 %vm10608_vm0, %v13124_v16 }
 0x146   : > { %v1681_v35 = vpop.f32.mrb[0].mxu0  ;;  %v1738_v38 = vpop.f32.mrb[0].mxu1 }
 0x147   : > { %v4367_v37 = vmul.f32 0.35355338, %v1681_v35  ;;  %v9447_v39 = vpop.f32.mrb[1].mxu0  ;;  %v4369_v41 = vmul.f32 0.35355338, %v1738_v38  ;;  %v9453_v42 = vpop.f32.mrb[1].mxu1 }
 0x148   : > { %v1684_v43 = vpop.f32.mrb[2].mxu0  ;;  %v1741_v46 = vpop.f32.mrb[2].mxu1 }
 0x149   : > { %v4368_v45 = vmul.f32 0.35355338, %v1684_v43  ;;  %v9448_v47 = vpop.f32.mrb[3].mxu0  ;;  %v11313_v48 = vadd.f32 %v11300_v36, %v4367_v37  ;;  %v4370_v50 = vmul.f32 0.35355338, %v1741_v46  ;;  %v9454_v51 = vpop.f32.mrb[3].mxu1  ;;  %v11321_v52 = vadd.f32 %v11305_v40, %v4369_v41 }
 0x14b   : > { %v4566_v53 = vsel %vm4565_vm2, %v11313_v48, -inf  ;;  %v11326_v54 = vadd.f32 %v11310_v44, %v4368_v45  ;;  %v4572_v55 = vsel %vm4565_vm2, %v11321_v52, -inf  ;;  %v11331_v56 = vadd.f32 %v11318_v49, %v4370_v50 }
 0x14c   : > { %4567 = vmax.xlane.f32.xlu0 %v4566_v53  ;;  %4573 = vmax.xlane.f32.xlu1 %v4572_v55 }
 0x14d   : > { %v4569_v62 = vsel %vm4565_vm2, %v11326_v54, -inf  ;;  %v4575_v63 = vsel %vm4565_vm2, %v11331_v56, -inf }
 0x14e   : > { %v1795_v57 = vpop.f32.mrb[4].mxu0  ;;  %v1852_v61 = vpop.f32.mrb[4].mxu1 }
 0x14f   : > { %v4371_v59 = vmul.f32 0.35355338, %v1795_v57  ;;  %v9459_v60 = vpop.f32.mrb[5].mxu0  ;;  %v4373_v0 = vmul.f32 0.35355338, %v1852_v61  ;;  %v9465_v2 = vpop.f32.mrb[5].mxu1 }
 0x150   : > { %4570 = vmax.xlane.f32.xlu0 %v4569_v62  ;;  %v1798_v1 = vpop.f32.mrb[6].mxu0  ;;  %4576 = vmax.xlane.f32.xlu1 %v4575_v63  ;;  %v1855_v6 = vpop.f32.mrb[6].mxu1 }
 0x151   : > { %v4372_v4 = vmul.f32 0.35355338, %v1798_v1  ;;  %v9460_v5 = vpop.f32.mrb[7].mxu0  ;;  %v11348_v7 = vadd.f32 %v11336_v58, %v4371_v59  ;;  %v4374_v8 = vmul.f32 0.35355338, %v1855_v6  ;;  %v9466_v9 = vpop.f32.mrb[7].mxu1  ;;  %v11351_v10 = vadd.f32 %v11300_v36, %v4373_v0 }
 0x153   : > { %v4578_v11 = vsel %vm4565_vm2, %v11348_v7, -inf  ;;  %v11356_v12 = vadd.f32 %v11345_v3, %v4372_v4  ;;  %v4584_v14 = vsel %vm4565_vm2, %v11351_v10, -inf  ;;  %v11363_v15 = vadd.f32 %v11310_v44, %v4374_v8 }
 0x154   : > { %4579 = vmax.xlane.f32.xlu0 %v4578_v11 }
 0x155   : > { %v4581_v13 = vsel %vm4565_vm2, %v11356_v12, -inf  ;;  %v4587_v27 = vsel %vm4565_vm2, %v11363_v15, -inf }
 0x156   : > { %4582 = vmax.xlane.f32.xlu1 %v4581_v13  ;;  %v1909_v17 = vpop.f32.mrb[8].mxu0  ;;  %v1966_v20 = vpop.f32.mrb[8].mxu1 }
 0x157   : > { %v4375_v18 = vmul.f32 0.35355338, %v1909_v17  ;;  %v9471_v19 = vpop.f32.mrb[9].mxu0  ;;  %v4377_v21 = vmul.f32 0.35355338, %v1966_v20  ;;  %v9477_v23 = vpop.f32.mrb[9].mxu1 }
 0x158   : > { %4585 = vmax.xlane.f32.xlu0 %v4584_v14  ;;  %v1912_v22 = vpop.f32.mrb[10].mxu0  ;;  %v1969_v26 = vpop.f32.mrb[10].mxu1 }
 0x159   : > { %v4376_v24 = vmul.f32 0.35355338, %v1912_v22  ;;  %v9472_v25 = vpop.f32.mrb[11].mxu0  ;;  %v11368_v28 = vadd.f32 %v11305_v40, %v4375_v18  ;;  %v4378_v29 = vmul.f32 0.35355338, %v1969_v26  ;;  %v9478_v30 = vpop.f32.mrb[11].mxu1  ;;  %v11371_v31 = vadd.f32 %v11336_v58, %v4377_v21 }
 0x15a   : > { %4588 = vmax.xlane.f32.xlu1 %v4587_v27 }
 0x15b   : > { %v4590_v32 = vsel %vm4565_vm2, %v11368_v28, -inf  ;;  %v11376_v33 = vadd.f32 %v11318_v49, %v4376_v24  ;;  %v4596_v35 = vsel %vm4565_vm2, %v11371_v31, -inf  ;;  %v11383_v37 = vadd.f32 %v11345_v3, %v4378_v29 }
 0x15c   : > { %4591 = vmax.xlane.f32.xlu0 %v4590_v32 }
 0x15d   : > { %v4593_v34 = vsel %vm4565_vm2, %v11376_v33, -inf  ;;  %v4599_v53 = vsel %vm4565_vm2, %v11383_v37, -inf }
 0x15e   : > { %4594 = vmax.xlane.f32.xlu1 %v4593_v34  ;;  %v2023_v38 = vpop.f32.mrb[12].mxu0  ;;  %v2080_v42 = vpop.f32.mrb[12].mxu1 }
 0x15f   : > { %v4379_v39 = vmul.f32 0.35355338, %v2023_v38  ;;  %v9483_v41 = vpop.f32.mrb[13].mxu0  ;;  %v4381_v43 = vmul.f32 0.35355338, %v2080_v42  ;;  %v9489_v46 = vpop.f32.mrb[13].mxu1 }
 0x160   : > { %4597 = vmax.xlane.f32.xlu0 %v4596_v35  ;;  %v2026_v45 = vpop.f32.mrb[14].mxu0  ;;  %v2083_v51 = vpop.f32.mrb[14].mxu1 }
 0x161   : > { %v4380_v47 = vmul.f32 0.35355338, %v2026_v45  ;;  %v9484_v50 = vpop.f32.mrb[15].mxu0  ;;  %v11388_v55 = vadd.f32 %v11300_v36, %v4379_v39  ;;  %v4382_v57 = vmul.f32 0.35355338, %v2083_v51  ;;  %v9490_v59 = vpop.f32.mrb[15].mxu1  ;;  %v11391_v60 = vadd.f32 %v11305_v40, %v4381_v43 }
 0x162   : > { %4600 = vmax.xlane.f32.xlu1 %v4599_v53 }
 0x163   : > { %v4602_v61 = vsel %vm4565_vm2, %v11388_v55, -inf  ;;  %v11396_v62 = vadd.f32 %v11310_v44, %v4380_v47  ;;  %v4608_v0 = vsel %vm4565_vm2, %v11391_v60, -inf  ;;  %v11403_v1 = vadd.f32 %v11318_v49, %v4382_v57 }
 0x164   : > { %4603 = vmax.xlane.f32.xlu0 %v4602_v61 }
 0x165   : > { %v4605_v63 = vsel %vm4565_vm2, %v11396_v62, -inf  ;;  %v4611_v18 = vsel %vm4565_vm2, %v11403_v1, -inf }
 0x166   : > { %4606 = vmax.xlane.f32.xlu1 %v4605_v63  ;;  %v2137_v2 = vpop.f32.mrb[16].mxu0  ;;  %v2194_v6 = vpop.f32.mrb[16].mxu1 }
 0x167   : > { %v4383_v4 = vmul.f32 0.35355338, %v2137_v2  ;;  %v9495_v5 = vpop.f32.mrb[17].mxu0  ;;  %v4385_v8 = vmul.f32 0.35355338, %v2194_v6  ;;  %v9501_v11 = vpop.f32.mrb[17].mxu1 }
 0x168   : > { %4609 = vmax.xlane.f32.xlu0 %v4608_v0  ;;  %v2140_v9 = vpop.f32.mrb[18].mxu0  ;;  %v2197_v17 = vpop.f32.mrb[18].mxu1 }
 0x169   : > { %v4384_v13 = vmul.f32 0.35355338, %v2140_v9  ;;  %v9496_v14 = vpop.f32.mrb[19].mxu0  ;;  %v11408_v19 = vadd.f32 %v11336_v58, %v4383_v4  ;;  %v4386_v20 = vmul.f32 0.35355338, %v2197_v17  ;;  %v9502_v21 = vpop.f32.mrb[19].mxu1  ;;  %v11411_v22 = vadd.f32 %v11300_v36, %v4385_v8 }
 0x16a   : > { %4612 = vmax.xlane.f32.xlu1 %v4611_v18 }
 0x16b   : > { %v4614_v23 = vsel %vm4565_vm2, %v11408_v19, -inf  ;;  %v11416_v24 = vadd.f32 %v11345_v3, %v4384_v13  ;;  %v4620_v26 = vsel %vm4565_vm2, %v11411_v22, -inf  ;;  %v11423_v27 = vadd.f32 %v11310_v44, %v4386_v20 }
 0x16c   : > { %4615 = vmax.xlane.f32.xlu0 %v4614_v23 }
 0x16d   : > { %v4617_v25 = vsel %vm4565_vm2, %v11416_v24, -inf  ;;  %v4623_v45 = vsel %vm4565_vm2, %v11423_v27, -inf }
 0x16e   : > { %4618 = vmax.xlane.f32.xlu1 %v4617_v25  ;;  %v2251_v29 = vpop.f32.mrb[20].mxu0  ;;  %v2308_v34 = vpop.f32.mrb[20].mxu1 }
 0x16f   : > { %v4387_v30 = vmul.f32 0.35355338, %v2251_v29  ;;  %v9507_v32 = vpop.f32.mrb[21].mxu0  ;;  %v4389_v35 = vmul.f32 0.35355338, %v2308_v34  ;;  %v9513_v39 = vpop.f32.mrb[21].mxu1 }
 0x170   : > { %4621 = vmax.xlane.f32.xlu0 %v4620_v26  ;;  %v2254_v38 = vpop.f32.mrb[22].mxu0  ;;  %v2311_v43 = vpop.f32.mrb[22].mxu1 }
 0x171   : > { %v4388_v41 = vmul.f32 0.35355338, %v2254_v38  ;;  %v9508_v42 = vpop.f32.mrb[23].mxu0  ;;  %v11428_v46 = vadd.f32 %v11305_v40, %v4387_v30  ;;  %v4390_v47 = vmul.f32 0.35355338, %v2311_v43  ;;  %v9514_v50 = vpop.f32.mrb[23].mxu1  ;;  %v11431_v51 = vadd.f32 %v11336_v58, %v4389_v35 }
 0x172   : > { %4624 = vmax.xlane.f32.xlu1 %v4623_v45 }
 0x173   : > { %v4626_v53 = vsel %vm4565_vm2, %v11428_v46, -inf  ;;  %v11436_v57 = vadd.f32 %v11318_v49, %v4388_v41  ;;  %v4632_v61 = vsel %vm4565_vm2, %v11431_v51, -inf  ;;  %v11443_v63 = vadd.f32 %v11345_v3, %v4390_v47 }
 0x174   : > { %4627 = vmax.xlane.f32.xlu0 %v4626_v53 }
 0x175   : > { %v4629_v59 = vsel %vm4565_vm2, %v11436_v57, -inf  ;;  %v4635_v17 = vsel %vm4565_vm2, %v11443_v63, -inf }
 0x176   : > { %4630 = vmax.xlane.f32.xlu1 %v4629_v59  ;;  %v2365_v0 = vpop.f32.mrb[24].mxu0  ;;  %v2422_v5 = vpop.f32.mrb[24].mxu1 }
 0x177   : > { %v4391_v2 = vmul.f32 0.35355338, %v2365_v0  ;;  %v9519_v4 = vpop.f32.mrb[25].mxu0  ;;  %v4393_v6 = vmul.f32 0.35355338, %v2422_v5  ;;  %v9525_v9 = vpop.f32.mrb[25].mxu1 }
 0x178   : > { %4633 = vmax.xlane.f32.xlu0 %v4632_v61  ;;  %v2368_v8 = vpop.f32.mrb[26].mxu0  ;;  %v2425_v14 = vpop.f32.mrb[26].mxu1 }
 0x179   : > { %v4392_v11 = vmul.f32 0.35355338, %v2368_v8  ;;  %v9520_v13 = vpop.f32.mrb[27].mxu0  ;;  %v11448_v18 = vadd.f32 %v11300_v36, %v4391_v2  ;;  %v4394_v20 = vmul.f32 0.35355338, %v2425_v14  ;;  %v9526_v21 = vpop.f32.mrb[27].mxu1  ;;  %v11451_v23 = vadd.f32 %v11305_v40, %v4393_v6 }
 0x17a   : > { %4636 = vmax.xlane.f32.xlu1 %v4635_v17 }
 0x17b   : > { %v4638_v25 = vsel %vm4565_vm2, %v11448_v18, -inf  ;;  %v11456_v26 = vadd.f32 %v11310_v44, %v4392_v11  ;;  %v4644_v30 = vsel %vm4565_vm2, %v11451_v23, -inf  ;;  %v11463_v32 = vadd.f32 %v11318_v49, %v4394_v20 }
 0x17c   : > { %4639 = vmax.xlane.f32.xlu0 %v4638_v25 }
 0x17d   : > { %v4641_v29 = vsel %vm4565_vm2, %v11456_v26, -inf  ;;  %v4647_v53 = vsel %vm4565_vm2, %v11463_v32, -inf }
 0x17e   : > { %4642 = vmax.xlane.f32.xlu1 %v4641_v29  ;;  %v2479_v34 = vpop.f32.mrb[28].mxu0  ;;  %v2536_v39 = vpop.f32.mrb[28].mxu1 }
 0x17f   : > { %v4395_v35 = vmul.f32 0.35355338, %v2479_v34  ;;  %v9531_v38 = vpop.f32.mrb[29].mxu0  ;;  %v4397_v41 = vmul.f32 0.35355338, %v2536_v39  ;;  %v9537_v43 = vpop.f32.mrb[29].mxu1 }
 0x180   : > { %4645 = vmax.xlane.f32.xlu0 %v4644_v30  ;;  %v2482_v42 = vpop.f32.mrb[30].mxu0  ;;  %v2539_v50 = vpop.f32.mrb[30].mxu1 }
 0x181   : > { %v4396_v45 = vmul.f32 0.35355338, %v2482_v42  ;;  %v9532_v47 = vpop.f32.mrb[31].mxu0  ;;  %v11468_v59 = vadd.f32 %v11336_v58, %v4395_v35  ;;  %v4398_v61 = vmul.f32 0.35355338, %v2539_v50  ;;  %v9538_v0 = vpop.f32.mrb[31].mxu1  ;;  %v11471_v2 = vadd.f32 %v11300_v36, %v4397_v41 }
 0x182   : > { %4648 = vmax.xlane.f32.xlu1 %v4647_v53 }
 0x183   : > { %v4650_v4 = vsel %vm4565_vm2, %v11468_v59, -inf  ;;  %v11476_v5 = vadd.f32 %v11345_v3, %v4396_v45  ;;  %v4656_v8 = vsel %vm4565_vm2, %v11471_v2, -inf  ;;  %v11483_v9 = vadd.f32 %v11310_v44, %v4398_v61 }
 0x184   : > { %4651 = vmax.xlane.f32.xlu0 %v4650_v4 }
 0x185   : > { %v4653_v6 = vsel %vm4565_vm2, %v11476_v5, -inf  ;;  %v4659_v35 = vsel %vm4565_vm2, %v11483_v9, -inf }
 0x186   : > { %4654 = vmax.xlane.f32.xlu1 %v4653_v6  ;;  %v2593_v11 = vpop.f32.mrb[32].mxu0  ;;  %v2650_v17 = vpop.f32.mrb[32].mxu1 }
 0x187   : > { %v4399_v13 = vmul.f32 0.35355338, %v2593_v11  ;;  %v9543_v14 = vpop.f32.mrb[33].mxu0  ;;  %v4401_v20 = vmul.f32 0.35355338, %v2650_v17  ;;  %v9549_v25 = vpop.f32.mrb[33].mxu1 }
 0x188   : > { %4657 = vmax.xlane.f32.xlu0 %v4656_v8  ;;  %v2596_v21 = vpop.f32.mrb[34].mxu0  ;;  %v2653_v34 = vpop.f32.mrb[34].mxu1 }
 0x189   : > { %v4400_v29 = vmul.f32 0.35355338, %v2596_v21  ;;  %v9544_v30 = vpop.f32.mrb[35].mxu0  ;;  %v11488_v38 = vadd.f32 %v11305_v40, %v4399_v13  ;;  %v4402_v39 = vmul.f32 0.35355338, %v2653_v34  ;;  %v9550_v41 = vpop.f32.mrb[35].mxu1  ;;  %v11491_v42 = vadd.f32 %v11336_v58, %v4401_v20 }
 0x18a   : > { %4660 = vmax.xlane.f32.xlu1 %v4659_v35 }
 0x18b   : > { %v4662_v43 = vsel %vm4565_vm2, %v11488_v38, -inf  ;;  %v11496_v45 = vadd.f32 %v11318_v49, %v4400_v29  ;;  %v4668_v50 = vsel %vm4565_vm2, %v11491_v42, -inf  ;;  %v11503_v53 = vadd.f32 %v11345_v3, %v4402_v39 }
 0x18c   : > { %4663 = vmax.xlane.f32.xlu0 %v4662_v43 }
 0x18d   : > { %v4665_v47 = vsel %vm4565_vm2, %v11496_v45, -inf  ;;  %v4671_v21 = vsel %vm4565_vm2, %v11503_v53, -inf }
 0x18e   : > { %4666 = vmax.xlane.f32.xlu1 %v4665_v47  ;;  %v2707_v61 = vpop.f32.mrb[36].mxu0  ;;  %v2764_v6 = vpop.f32.mrb[36].mxu1 }
 0x18f   : > { %v4403_v0 = vmul.f32 0.35355338, %v2707_v61  ;;  %v9555_v4 = vpop.f32.mrb[37].mxu0  ;;  %v4405_v8 = vmul.f32 0.35355338, %v2764_v6  ;;  %v9561_v13 = vpop.f32.mrb[37].mxu1 }
 0x190   : > { %4669 = vmax.xlane.f32.xlu0 %v4668_v50  ;;  %v2710_v11 = vpop.f32.mrb[38].mxu0  ;;  %v2767_v20 = vpop.f32.mrb[38].mxu1 }
 0x191   : > { %v4404_v14 = vmul.f32 0.35355338, %v2710_v11  ;;  %v9556_v17 = vpop.f32.mrb[39].mxu0  ;;  %v11508_v25 = vadd.f32 %v11300_v36, %v4403_v0  ;;  %v4406_v29 = vmul.f32 0.35355338, %v2767_v20  ;;  %v9562_v30 = vpop.f32.mrb[39].mxu1  ;;  %v11511_v34 = vadd.f32 %v11305_v40, %v4405_v8 }
 0x192   : > { %4672 = vmax.xlane.f32.xlu1 %v4671_v21 }
 0x193   : > { %13223 = vst [vmem:[#allocation3_spill] sm:$0xff] %v11511_v34  ;;  %v4674_v35 = vsel %vm4565_vm2, %v11508_v25, -inf  ;;  %v11516_v39 = vadd.f32 %v11310_v44, %v4404_v14  ;;  %v4680_v43 = vsel %vm4565_vm2, %v11511_v34, -inf  ;;  %v11523_v47 = vadd.f32 %v11318_v49, %v4406_v29 }
 0x194   : > { %4675 = vmax.xlane.f32.xlu0 %v4674_v35 }
 0x195   : > { %v4677_v41 = vsel %vm4565_vm2, %v11516_v39, -inf  ;;  %13224 = vst [vmem:[#allocation4_spill] sm:$0xff] %v11523_v47  ;;  %v4683_v20 = vsel %vm4565_vm2, %v11523_v47, -inf }
 0x196   : > { %4678 = vmax.xlane.f32.xlu1 %v4677_v41  ;;  %v2821_v50 = vpop.f32.mrb[40].mxu0  ;;  %v2878_v4 = vpop.f32.mrb[40].mxu1 }
 0x197   : > { %v4407_v61 = vmul.f32 0.35355338, %v2821_v50  ;;  %v9567_v0 = vpop.f32.mrb[41].mxu0  ;;  %v4409_v6 = vmul.f32 0.35355338, %v2878_v4  ;;  %v9573_v11 = vpop.f32.mrb[41].mxu1 }
 0x198   : > { %4681 = vmax.xlane.f32.xlu0 %v4680_v43  ;;  %v2824_v8 = vpop.f32.mrb[42].mxu0  ;;  %v2881_v17 = vpop.f32.mrb[42].mxu1 }
 0x199   : > { %v4408_v13 = vmul.f32 0.35355338, %v2824_v8  ;;  %v9568_v14 = vpop.f32.mrb[43].mxu0  ;;  %v11528_v21 = vadd.f32 %v11336_v58, %v4407_v61  ;;  %v4410_v29 = vmul.f32 0.35355338, %v2881_v17  ;;  %v9574_v30 = vpop.f32.mrb[43].mxu1  ;;  %v11531_v35 = vadd.f32 %v11300_v36, %v4409_v6 }
 0x19a   : > { %4684 = vmax.xlane.f32.xlu1 %v4683_v20 }
 0x19b   : > { %13225 = vst [vmem:[#allocation5_spill] sm:$0xff] %v11528_v21  ;;  %13226 = vst [vmem:[#allocation6_spill] sm:$0xff] %v11531_v35  ;;  %v4686_v41 = vsel %vm4565_vm2, %v11528_v21, -inf  ;;  %v11536_v43 = vadd.f32 %v11345_v3, %v4408_v13  ;;  %v4692_v61 = vsel %vm4565_vm2, %v11531_v35, -inf  ;;  %v11543_v0 = vadd.f32 %v11310_v44, %v4410_v29 }
 0x19c   : > { %4687 = vmax.xlane.f32.xlu0 %v4686_v41 }
 0x19d   : > { %13227 = vst [vmem:[#allocation7_spill] sm:$0xff] %v11536_v43  ;;  %v4689_v50 = vsel %vm4565_vm2, %v11536_v43, -inf  ;;  %13228 = vst [vmem:[#allocation8_spill] sm:$0xff] %v11543_v0  ;;  %v4695_v16 = vsel %vm4565_vm2, %v11543_v0, -inf }
 0x19e   : > { %4690 = vmax.xlane.f32.xlu1 %v4689_v50  ;;  %v2935_v4 = vpop.f32.mrb[44].mxu0  ;;  %v2992_v11 = vpop.f32.mrb[44].mxu1 }
 0x19f   : > { %v4411_v6 = vmul.f32 0.35355338, %v2935_v4  ;;  %v9579_v8 = vpop.f32.mrb[45].mxu0  ;;  %v4413_v14 = vmul.f32 0.35355338, %v2992_v11  ;;  %v9585_v13 = vpop.f32.mrb[45].mxu1 }
 0x1a0   : > { %4693 = vmax.xlane.f32.xlu0 %v4692_v61  ;;  %v2938_v17 = vpop.f32.mrb[46].mxu0  ;;  %v2995_v41 = vpop.f32.mrb[46].mxu1 }
 0x1a1   : > { %v4412_v20 = vmul.f32 0.35355338, %v2938_v17  ;;  %v9580_v30 = vpop.f32.mrb[47].mxu0  ;;  %v11548_v35 = vadd.f32 %v11305_v40, %v4411_v6  ;;  %v4414_v29 = vmul.f32 0.35355338, %v2995_v41  ;;  %v9586_v50 = vpop.f32.mrb[47].mxu1  ;;  %v11551_v4 = vadd.f32 %v11336_v58, %v4413_v14 }
 0x1a2   : > { %4696 = vmax.xlane.f32.xlu1 %v4695_v16 }
 0x1a3   : > { %13229 = vst [vmem:[#allocation9_spill] sm:$0xff] %v11548_v35  ;;  %13230 = vst [vmem:[#allocation10_spill] sm:$0xff] %v11551_v4  ;;  %v4698_v61 = vsel %vm4565_vm2, %v11548_v35, -inf  ;;  %v11556_v8 = vadd.f32 %v11318_v49, %v4412_v20  ;;  %v4704_v6 = vsel %vm4565_vm2, %v11551_v4, -inf  ;;  %v11563_v17 = vadd.f32 %v11345_v3, %v4414_v29 }
 0x1a4   : > { %4699 = vmax.xlane.f32.xlu0 %v4698_v61 }
 0x1a5   : > { %13231 = vst [vmem:[#allocation11_spill] sm:$0xff] %v11556_v8  ;;  %v4701_v11 = vsel %vm4565_vm2, %v11556_v8, -inf  ;;  %13232 = vst [vmem:[#allocation12_spill] sm:$0xff] %v11563_v17  ;;  %v4707_v8 = vsel %vm4565_vm2, %v11563_v17, -inf }
 0x1a6   : > { %4702 = vmax.xlane.f32.xlu1 %v4701_v11  ;;  %v3049_v16 = vpop.f32.mrb[48].mxu0  ;;  %v3106_v30 = vpop.f32.mrb[48].mxu1 }
 0x1a7   : > { %v4415_v14 = vmul.f32 0.35355338, %v3049_v16  ;;  %v9591_v13 = vpop.f32.mrb[49].mxu0  ;;  %v4417_v41 = vmul.f32 0.35355338, %v3106_v30  ;;  %v9597_v20 = vpop.f32.mrb[49].mxu1 }
 0x1a8   : > { %4705 = vmax.xlane.f32.xlu0 %v4704_v6  ;;  %v3052_v50 = vpop.f32.mrb[50].mxu0  ;;  %v3109_v0 = vpop.f32.mrb[50].mxu1 }
 0x1a9   : > { %v4416_v35 = vmul.f32 0.35355338, %v3052_v50  ;;  %v9592_v61 = vpop.f32.mrb[51].mxu0  ;;  %v11568_v4 = vadd.f32 %v11300_v36, %v4415_v14  ;;  %v4418_v29 = vmul.f32 0.35355338, %v3109_v0  ;;  %v9598_v11 = vpop.f32.mrb[51].mxu1  ;;  %v11571_v16 = vadd.f32 %v11305_v40, %v4417_v41 }
 0x1aa   : > { %4708 = vmax.xlane.f32.xlu1 %v4707_v8 }
 0x1ab   : > { %13233 = vst [vmem:[#allocation13_spill] sm:$0xff] %v11568_v4  ;;  %13234 = vst [vmem:[#allocation14_spill] sm:$0xff] %v11571_v16  ;;  %v4710_v6 = vsel %vm4565_vm2, %v11568_v4, -inf  ;;  %v11576_v13 = vadd.f32 %v11310_v44, %v4416_v35  ;;  %v4716_v14 = vsel %vm4565_vm2, %v11571_v16, -inf  ;;  %v11583_v0 = vadd.f32 %v11318_v49, %v4418_v29 }
 0x1ac   : > { %4711 = vmax.xlane.f32.xlu0 %v4710_v6 }
 0x1ad   : > { %13235 = vst [vmem:[#allocation15_spill] sm:$0xff] %v11576_v13  ;;  %v4713_v30 = vsel %vm4565_vm2, %v11576_v13, -inf  ;;  %13236 = vst [vmem:[#allocation16_spill] sm:$0xff] %v11583_v0  ;;  %v4719_v13 = vsel %vm4565_vm2, %v11583_v0, -inf }
 0x1ae   : > { %4714 = vmax.xlane.f32.xlu1 %v4713_v30  ;;  %v3163_v8 = vpop.f32.mrb[52].mxu0  ;;  %v3220_v20 = vpop.f32.mrb[52].mxu1 }
 0x1af   : > { %v4419_v41 = vmul.f32 0.35355338, %v3163_v8  ;;  %v9603_v50 = vpop.f32.mrb[53].mxu0  ;;  %v4421_v61 = vmul.f32 0.35355338, %v3220_v20  ;;  %v9609_v35 = vpop.f32.mrb[53].mxu1 }
 0x1b0   : > { %4717 = vmax.xlane.f32.xlu0 %v4716_v14  ;;  %v3166_v11 = vpop.f32.mrb[54].mxu0  ;;  %v3223_v17 = vpop.f32.mrb[54].mxu1 }
 0x1b1   : > { %v4420_v4 = vmul.f32 0.35355338, %v3166_v11  ;;  %v9604_v6 = vpop.f32.mrb[55].mxu0  ;;  %v11588_v16 = vadd.f32 %v11336_v58, %v4419_v41  ;;  %v4422_v29 = vmul.f32 0.35355338, %v3223_v17  ;;  %v9610_v30 = vpop.f32.mrb[55].mxu1  ;;  %v11591_v8 = vadd.f32 %v11300_v36, %v4421_v61 }
 0x1b2   : > { %4720 = vmax.xlane.f32.xlu1 %v4719_v13 }
 0x1b3   : > { %13237 = vst [vmem:[#allocation17_spill] sm:$0xff] %v11588_v16  ;;  %13238 = vst [vmem:[#allocation18_spill] sm:$0xff] %v11591_v8  ;;  %v4722_v14 = vsel %vm4565_vm2, %v11588_v16, -inf  ;;  %v11596_v50 = vadd.f32 %v11345_v3, %v4420_v4  ;;  %v4728_v41 = vsel %vm4565_vm2, %v11591_v8, -inf  ;;  %v11603_v17 = vadd.f32 %v11310_v44, %v4422_v29 }
 0x1b4   : > { %4723 = vmax.xlane.f32.xlu0 %v4722_v14 }
 0x1b5   : > { %13239 = vst [vmem:[#allocation19_spill] sm:$0xff] %v11596_v50  ;;  %v4725_v20 = vsel %vm4565_vm2, %v11596_v50, -inf  ;;  %13240 = vst [vmem:[#allocation20_spill] sm:$0xff] %v11603_v17  ;;  %v4731_v50 = vsel %vm4565_vm2, %v11603_v17, -inf }
 0x1b6   : > { %4726 = vmax.xlane.f32.xlu1 %v4725_v20  ;;  %v3277_v13 = vpop.f32.mrb[56].mxu0  ;;  %v3334_v35 = vpop.f32.mrb[56].mxu1 }
 0x1b7   : > { %v4423_v61 = vmul.f32 0.35355338, %v3277_v13  ;;  %v9615_v11 = vpop.f32.mrb[57].mxu0  ;;  %v4425_v6 = vmul.f32 0.35355338, %v3334_v35  ;;  %v9621_v4 = vpop.f32.mrb[57].mxu1 }
 0x1b8   : > { %4729 = vmax.xlane.f32.xlu0 %v4728_v41  ;;  %v3280_v30 = vpop.f32.mrb[58].mxu0  ;;  %v3337_v0 = vpop.f32.mrb[58].mxu1 }
 0x1b9   : > { %v4424_v16 = vmul.f32 0.35355338, %v3280_v30  ;;  %v9616_v14 = vpop.f32.mrb[59].mxu0  ;;  %v11608_v8 = vadd.f32 %v11305_v40, %v4423_v61  ;;  %v4426_v29 = vmul.f32 0.35355338, %v3337_v0  ;;  %v9622_v20 = vpop.f32.mrb[59].mxu1  ;;  %v11611_v13 = vadd.f32 %v11336_v58, %v4425_v6 }
 0x1ba   : > { %4732 = vmax.xlane.f32.xlu1 %v4731_v50 }
 0x1bb   : > { %13241 = vst [vmem:[#allocation21_spill] sm:$0xff] %v11608_v8  ;;  %13242 = vst [vmem:[#allocation22_spill] sm:$0xff] %v11611_v13  ;;  %v4734_v41 = vsel %vm4565_vm2, %v11608_v8, -inf  ;;  %v11616_v11 = vadd.f32 %v11318_v49, %v4424_v16  ;;  %v4740_v61 = vsel %vm4565_vm2, %v11611_v13, -inf  ;;  %v11623_v0 = vadd.f32 %v11345_v3, %v4426_v29 }
 0x1bc   : > { %4735 = vmax.xlane.f32.xlu0 %v4734_v41 }
 0x1bd   : > { %13243 = vst [vmem:[#allocation23_spill] sm:$0xff] %v11616_v11  ;;  %v4737_v35 = vsel %vm4565_vm2, %v11616_v11, -inf  ;;  %13244 = vst [vmem:[#allocation24_spill] sm:$0xff] %v11623_v0  ;;  %v4743_v11 = vsel %vm4565_vm2, %v11623_v0, -inf }
 0x1be   : > { %4738 = vmax.xlane.f32.xlu1 %v4737_v35  ;;  %v3391_v50 = vpop.f32.mrb[60].mxu0  ;;  %v3448_v4 = vpop.f32.mrb[60].mxu1 }
 0x1bf   : > { %v4427_v6 = vmul.f32 0.35355338, %v3391_v50  ;;  %v9627_v30 = vpop.f32.mrb[61].mxu0  ;;  %v4429_v14 = vmul.f32 0.35355338, %v3448_v4  ;;  %v9633_v16 = vpop.f32.mrb[61].mxu1 }
 0x1c0   : > { %4741 = vmax.xlane.f32.xlu0 %v4740_v61  ;;  %v3394_v20 = vpop.f32.mrb[62].mxu0  ;;  %v3451_v17 = vpop.f32.mrb[62].mxu1 }
 0x1c1   : > { %v4428_v8 = vmul.f32 0.35355338, %v3394_v20  ;;  %v9628_v41 = vpop.f32.mrb[63].mxu0  ;;  %v11628_v13 = vadd.f32 %v11300_v36, %v4427_v6  ;;  %v4430_v29 = vmul.f32 0.35355338, %v3451_v17  ;;  %v9634_v35 = vpop.f32.mrb[63].mxu1  ;;  %v11631_v50 = vadd.f32 %v11305_v40, %v4429_v14 }
 0x1c2   : > { %4744 = vmax.xlane.f32.xlu1 %v4743_v11 }
 0x1c3   : > { %13245 = vst [vmem:[#allocation25_spill] sm:$0xff] %v11628_v13  ;;  %13246 = vst [vmem:[#allocation26_spill] sm:$0xff] %v11631_v50  ;;  %v4746_v61 = vsel %vm4565_vm2, %v11628_v13, -inf  ;;  %v11636_v30 = vadd.f32 %v11310_v44, %v4428_v8  ;;  %v4752_v6 = vsel %vm4565_vm2, %v11631_v50, -inf  ;;  %v11643_v17 = vadd.f32 %v11318_v49, %v4430_v29 }
 0x1c4   : > { %4747 = vmax.xlane.f32.xlu0 %v4746_v61 }
 0x1c5   : > { %13247 = vst [vmem:[#allocation27_spill] sm:$0xff] %v11636_v30  ;;  %v4749_v4 = vsel %vm4565_vm2, %v11636_v30, -inf  ;;  %13248 = vst [vmem:[#allocation28_spill] sm:$0xff] %v11643_v17  ;;  %v4755_v30 = vsel %vm4565_vm2, %v11643_v17, -inf }
 0x1c6   : > { %4750 = vmax.xlane.f32.xlu1 %v4749_v4  ;;  %v3505_v11 = vpop.f32.mrb[64].mxu0  ;;  %v3562_v16 = vpop.f32.mrb[64].mxu1 }
 0x1c7   : > { %v4431_v14 = vmul.f32 0.35355338, %v3505_v11  ;;  %v9639_v20 = vpop.f32.mrb[65].mxu0  ;;  %v4433_v41 = vmul.f32 0.35355338, %v3562_v16  ;;  %v9645_v8 = vpop.f32.mrb[65].mxu1 }
 0x1c8   : > { %4753 = vmax.xlane.f32.xlu0 %v4752_v6  ;;  %v3508_v35 = vpop.f32.mrb[66].mxu0  ;;  %v3565_v0 = vpop.f32.mrb[66].mxu1 }
 0x1c9   : > { %v4432_v13 = vmul.f32 0.35355338, %v3508_v35  ;;  %v9640_v61 = vpop.f32.mrb[67].mxu0  ;;  %v11648_v50 = vadd.f32 %v11336_v58, %v4431_v14  ;;  %v4434_v29 = vmul.f32 0.35355338, %v3565_v0  ;;  %v9646_v4 = vpop.f32.mrb[67].mxu1  ;;  %v11651_v11 = vadd.f32 %v11300_v36, %v4433_v41 }
 0x1ca   : > { %4756 = vmax.xlane.f32.xlu1 %v4755_v30 }
 0x1cb   : > { %13249 = vst [vmem:[#allocation29_spill] sm:$0xff] %v11648_v50  ;;  %13250 = vst [vmem:[#allocation30_spill] sm:$0xff] %v11651_v11  ;;  %v4758_v6 = vsel %vm4565_vm2, %v11648_v50, -inf  ;;  %v11656_v20 = vadd.f32 %v11345_v3, %v4432_v13  ;;  %v4764_v14 = vsel %vm4565_vm2, %v11651_v11, -inf  ;;  %v11663_v0 = vadd.f32 %v11310_v44, %v4434_v29 }
 0x1cc   : > { %4759 = vmax.xlane.f32.xlu0 %v4758_v6 }
 0x1cd   : > { %13251 = vst [vmem:[#allocation31_spill] sm:$0xff] %v11656_v20  ;;  %v4761_v16 = vsel %vm4565_vm2, %v11656_v20, -inf  ;;  %13252 = vst [vmem:[#allocation32_spill] sm:$0xff] %v11663_v0  ;;  %v4767_v20 = vsel %vm4565_vm2, %v11663_v0, -inf }
 0x1ce   : > { %4762 = vmax.xlane.f32.xlu1 %v4761_v16  ;;  %v3619_v30 = vpop.f32.mrb[68].mxu0  ;;  %v3676_v8 = vpop.f32.mrb[68].mxu1 }
 0x1cf   : > { %v4435_v41 = vmul.f32 0.35355338, %v3619_v30  ;;  %v9651_v35 = vpop.f32.mrb[69].mxu0  ;;  %v4437_v61 = vmul.f32 0.35355338, %v3676_v8  ;;  %v9657_v13 = vpop.f32.mrb[69].mxu1 }
 0x1d0   : > { %4765 = vmax.xlane.f32.xlu0 %v4764_v14  ;;  %v3622_v4 = vpop.f32.mrb[70].mxu0  ;;  %v3679_v17 = vpop.f32.mrb[70].mxu1 }
 0x1d1   : > { %v4436_v50 = vmul.f32 0.35355338, %v3622_v4  ;;  %v9652_v6 = vpop.f32.mrb[71].mxu0  ;;  %v11668_v11 = vadd.f32 %v11305_v40, %v4435_v41  ;;  %v4438_v29 = vmul.f32 0.35355338, %v3679_v17  ;;  %v9658_v16 = vpop.f32.mrb[71].mxu1  ;;  %v11671_v30 = vadd.f32 %v11336_v58, %v4437_v61 }
 0x1d2   : > { %4768 = vmax.xlane.f32.xlu1 %v4767_v20 }
 0x1d3   : > { %13253 = vst [vmem:[#allocation33_spill] sm:$0xff] %v11668_v11  ;;  %13254 = vst [vmem:[#allocation34_spill] sm:$0xff] %v11671_v30  ;;  %v4770_v14 = vsel %vm4565_vm2, %v11668_v11, -inf  ;;  %v11676_v35 = vadd.f32 %v11318_v49, %v4436_v50  ;;  %v4776_v41 = vsel %vm4565_vm2, %v11671_v30, -inf  ;;  %v11683_v17 = vadd.f32 %v11345_v3, %v4438_v29 }
 0x1d4   : > { %4771 = vmax.xlane.f32.xlu0 %v4770_v14 }
 0x1d5   : > { %13255 = vst [vmem:[#allocation35_spill] sm:$0xff] %v11676_v35  ;;  %v4773_v8 = vsel %vm4565_vm2, %v11676_v35, -inf  ;;  %13256 = vst [vmem:[#allocation36_spill] sm:$0xff] %v11683_v17  ;;  %v4779_v35 = vsel %vm4565_vm2, %v11683_v17, -inf }
 0x1d6   : > { %4774 = vmax.xlane.f32.xlu1 %v4773_v8  ;;  %v3733_v20 = vpop.f32.mrb[72].mxu0  ;;  %v3790_v13 = vpop.f32.mrb[72].mxu1 }
 0x1d7   : > { %v4439_v61 = vmul.f32 0.35355338, %v3733_v20  ;;  %v9663_v4 = vpop.f32.mrb[73].mxu0  ;;  %v4441_v6 = vmul.f32 0.35355338, %v3790_v13  ;;  %v9669_v50 = vpop.f32.mrb[73].mxu1 }
 0x1d8   : > { %4777 = vmax.xlane.f32.xlu0 %v4776_v41  ;;  %v3736_v16 = vpop.f32.mrb[74].mxu0  ;;  %v3793_v43 = vpop.f32.mrb[74].mxu1 }
 0x1d9   : > { %v4440_v11 = vmul.f32 0.35355338, %v3736_v16  ;;  %v4568_v14 = vpop.xlane.xlu0 %4567  ;;  %v9664_v0 = vpop.f32.mrb[75].mxu0  ;;  %v11688_v30 = vadd.f32 %v11300_v36, %v4439_v61  ;;  %v11692_v20 = vadd.f32 %v11305_v40, %v4441_v6  ;;  %v4442_v4 = vmul.f32 0.35355338, %v3793_v43 }
 0x1da   : > { %v4574_v29 = vpop.xlane.xlu1 %4573  ;;  %v4854_v8 = vsub.f32 %v11313_v48, %v4568_v14  ;;  %4780 = vmax.xlane.f32.xlu1 %v4779_v35  ;;  %v9670_v13 = vpop.f32.mrb[75].mxu1 }
 0x1db   : > { %13257 = vst [vmem:[#allocation37_spill] sm:$0xff] %v11688_v30  ;;  %13258 = vst [vmem:[#allocation38_spill] sm:$0xff] %v11692_v20  ;;  %v4856_v41 = vsub.f32 %v11321_v52, %v4574_v29  ;;  %v4782_v0 = vsel %vm4565_vm2, %v11688_v30, -inf  ;;  %v11698_v16 = vadd.f32 %v11310_v44, %v4440_v11  ;;  %v4788_v40 = vsel %vm4565_vm2, %v11692_v20, -inf }
 0x1dc   : > { %v4950_v61 = vmul.f32 1.442695, %v4854_v8  ;;  %4783 = vmax.xlane.f32.xlu0 %v4782_v0  ;;  %v11705_v52 = vadd.f32 %v11318_v49, %v4442_v4 }
 0x1dd   : > { %13259 = vst [vmem:[#allocation39_spill] sm:$0xff] %v11698_v16  ;;  %v4954_v50 = vmul.f32 1.442695, %v4856_v41  ;;  %v4571_v17 = vpop.xlane.xlu0 %4570  ;;  %v4785_v48 = vsel %vm4565_vm2, %v11698_v16, -inf }
 0x1de   : > { %13260 = vst [vmem:[#allocation40_spill] sm:$0xff] %v11705_v52  ;;  %10193 = vpow2.f32 %v4950_v61  ;;  %v4577_v43 = vpop.xlane.xlu1 %4576  ;;  %v4855_v35 = vsub.f32 %v11326_v54, %v4571_v17  ;;  %4786 = vmax.xlane.f32.xlu1 %v4785_v48  ;;  %v3847_v11 = vpop.f32.mrb[76].mxu0  ;;  %v4791_v54 = vsel %vm4565_vm2, %v11705_v52, -inf }
 0x1df   : > { %v4857_v6 = vsub.f32 %v11331_v56, %v4577_v43  ;;  %v4443_v14 = vmul.f32 0.35355338, %v3847_v11  ;;  %v9675_v29 = vpop.f32.mrb[77].mxu0  ;;  %v3904_v8 = vpop.f32.mrb[76].mxu1  ;;  %10195 = vpow2.f32 %v4954_v50 }
 0x1e0   : > { %v4952_v41 = vmul.f32 1.442695, %v4855_v35  ;;  %v4445_v13 = vmul.f32 0.35355338, %v3904_v8  ;;  %4789 = vmax.xlane.f32.xlu0 %v4788_v40  ;;  %v3850_v0 = vpop.f32.mrb[78].mxu0  ;;  %v9681_v20 = vpop.f32.mrb[77].mxu1 }
 0x1e1   : > { %v4956_v16 = vmul.f32 1.442695, %v4857_v6  ;;  %v4444_v49 = vmul.f32 0.35355338, %v3850_v0  ;;  %v4580_v4 = vpop.xlane.xlu0 %4579  ;;  %v9676_v61 = vpop.f32.mrb[79].mxu0  ;;  %v11712_v17 = vadd.f32 %v11336_v58, %v4443_v14 }
 0x1e2   : > { %10197 = vpow2.f32 %v4952_v41  ;;  %v3907_v56 = vpop.f32.mrb[78].mxu1  ;;  %4792 = vmax.xlane.f32.xlu1 %v4791_v54  ;;  %v11715_v50 = vadd.f32 %v11300_v36, %v4445_v13  ;;  %v4858_v14 = vsub.f32 %v11348_v7, %v4580_v4 }
 0x1e3   : > { %13261 = vst [vmem:[#allocation41_spill] sm:$0xff] %v11712_v17  ;;  %v4446_v48 = vmul.f32 0.35355338, %v3907_v56  ;;  %v9682_v40 = vpop.f32.mrb[79].mxu1  ;;  %v4583_v43 = vpop.xlane.xlu1 %4582  ;;  %v4794_v20 = vsel %vm4565_vm2, %v11712_v17, -inf  ;;  %v11720_v35 = vadd.f32 %v11345_v3, %v4444_v49  ;;  %10199 = vpow2.f32 %v4956_v16 }
 0x1e4   : > { %13262 = vst [vmem:[#allocation42_spill] sm:$0xff] %v11715_v50  ;;  %4795 = vmax.xlane.f32.xlu0 %v4794_v20  ;;  %v4800_v6 = vsel %vm4565_vm2, %v11715_v50, -inf  ;;  %v4859_v16 = vsub.f32 %v11356_v12, %v4583_v43  ;;  %v4958_v7 = vmul.f32 1.442695, %v4858_v14  ;;  %v11750_v14 = vld [vmem:[%s13122_s1 + $0x10] sm:$0xff] }
 0x1e5   : > { %13263 = vst [vmem:[#allocation43_spill] sm:$0xff] %v11720_v35  ;;  %v4586_v11 = vpop.xlane.xlu0 %4585  ;;  %v4797_v58 = vsel %vm4565_vm2, %v11720_v35, -inf  ;;  %v11727_v36 = vadd.f32 %v11310_v44, %v4446_v48 }
 0x1e6   : > { %4798 = vmax.xlane.f32.xlu1 %v4797_v58  ;;  %v3961_v29 = vpop.f32.mrb[80].mxu0  ;;  %v4018_v49 = vpop.f32.mrb[80].mxu1  ;;  %v4860_v4 = vsub.f32 %v11351_v10, %v4586_v11  ;;  %v4960_v58 = vmul.f32 1.442695, %v4859_v16  ;;  %10201 = vpow2.f32 %v4958_v7 }
 0x1e7   : > { %13264 = vst [vmem:[#allocation44_spill] sm:$0xff] %v11727_v36  ;;  %v4589_v8 = vpop.xlane.xlu1 %4588  ;;  %v9687_v41 = vpop.f32.mrb[81].mxu0  ;;  %v4447_v13 = vmul.f32 0.35355338, %v3961_v29  ;;  %v4803_v44 = vsel %vm4565_vm2, %v11727_v36, -inf }
 0x1e8   : > { %v11730_v3 = vpop.eup %10193  ;;  %4801 = vmax.xlane.f32.xlu0 %v4800_v6  ;;  %v3964_v0 = vpop.f32.mrb[82].mxu0  ;;  %v4861_v6 = vsub.f32 %v11363_v15, %v4589_v8  ;;  %v4962_v15 = vmul.f32 1.442695, %v4860_v4  ;;  %10203 = vpow2.f32 %v4960_v58 }
 0x1e9   : > { %13265 = vst [vmem:[#allocation45_spill] sm:$0xff] %v11730_v3  ;;  %v11733_v61 = vpop.xlane.xlu0 %4591  ;;  %v9688_v54 = vpop.f32.mrb[83].mxu0  ;;  %v5142_v12 = vsel %vm4565_vm2, %v11730_v3, 0.0  ;;  %v11753_v10 = vadd.f32 %v11750_v14, %v4447_v13 }
 0x1ea   : > { %v11737_v56 = vpop.eup %10195  ;;  %4804 = vmax.xlane.f32.xlu1 %v4803_v44  ;;  %v9693_v48 = vpop.f32.mrb[81].mxu1  ;;  %v4448_v44 = vmul.f32 0.35355338, %v3964_v0  ;;  %v4449_v54 = vmul.f32 0.35355338, %v4018_v49  ;;  %10205 = vpow2.f32 %v4962_v15 }
 0x1eb   : > { %13266 = vst [vmem:[#allocation46_spill] sm:$0xff] %v11737_v56  ;;  %v11740_v40 = vpop.xlane.xlu1 %4594  ;;  %v4021_v43 = vpop.f32.mrb[82].mxu1  ;;  %13268 = vst [vmem:[#allocation48_spill] sm:$0xff] %v11753_v10  ;;  %v4806_v36 = vsel %vm4565_vm2, %v11753_v10, -inf }
 0x1ec   : > { %v11744_v20 = vpop.eup %10197  ;;  %5143 = vadd.xlane.f32.xlu0 %v5142_v12  ;;  %v9694_v29 = vpop.f32.mrb[83].mxu1  ;;  %v5148_v12 = vsel %vm4565_vm2, %v11737_v56, 0.0  ;;  %v4450_v7 = vmul.f32 0.35355338, %v4021_v43 }
 0x1ed   : > { %13267 = vst [vmem:[#allocation47_spill] sm:$0xff] %v11744_v20  ;;  %v11755_v11 = vpop.xlane.xlu0 %4597  ;;  %v5145_v41 = vsel %vm4565_vm2, %v11744_v20, 0.0  ;;  %v11759_v16 = vpop.eup %10199  ;;  %v4964_v29 = vmul.f32 1.442695, %v4861_v6  ;;  %v11782_v6 = vld [vmem:[%s13122_s1 + $0x20] sm:$0xff] }
 0x1ee   : > { %13269 = vst [vmem:[#allocation49_spill] sm:$0xff] %v11759_v16  ;;  %5146 = vadd.xlane.f32.xlu1 %v5145_v41  ;;  %v4075_v8 = vpop.f32.mrb[84].mxu0  ;;  %v4132_v49 = vpop.f32.mrb[84].mxu1  ;;  %v5151_v4 = vsel %vm4565_vm2, %v11759_v16, 0.0  ;;  %v11774_v41 = vld [vmem:[%s13122_s1 + $0x18] sm:$0xff]  ;;  %v4864_v20 = vsub.f32 %v11371_v31, %v11755_v11  ;;  %v11838_v31 = vld [vmem:[%s13122_s1] sm:$0xff] }
 0x1ef   : > { %v11761_v48 = vpop.xlane.xlu1 %4600  ;;  %v9699_v13 = vpop.f32.mrb[85].mxu0  ;;  %v11777_v58 = vadd.f32 %v11774_v41, %v4448_v44  ;;  %10207 = vpow2.f32 %v4964_v29 }
 0x1f0   : > { %5149 = vadd.xlane.f32.xlu0 %v5148_v12  ;;  %v4078_v0 = vpop.f32.mrb[86].mxu0  ;;  %v11785_v12 = vadd.f32 %v11782_v6, %v4449_v54  ;;  %v9705_v13 = vpop.f32.mrb[85].mxu1  ;;  %v11798_v54 = vld [vmem:[%s13122_s1 + $0x28] sm:$0xff] }
 0x1f1   : > { %v11767_v50 = vpop.xlane.xlu0 %4603  ;;  %13270 = vst [vmem:[#allocation50_spill] sm:$0xff] %v11777_v58  ;;  %v9700_v43 = vpop.f32.mrb[87].mxu0  ;;  %v4809_v52 = vsel %vm4565_vm2, %v11777_v58, -inf  ;;  %v11801_v15 = vadd.f32 %v11798_v54, %v4450_v7  ;;  %v4863_v13 = vsub.f32 %v11376_v33, %v11740_v40 }
 0x1f2   : > { %13271 = vst [vmem:[#allocation51_spill] sm:$0xff] %v11785_v12  ;;  %5152 = vadd.xlane.f32.xlu1 %v5151_v4  ;;  %v4135_v35 = vpop.f32.mrb[86].mxu1  ;;  %v4812_v16 = vsel %vm4565_vm2, %v11785_v12, -inf  ;;  %v11809_v43 = vpop.eup %10201  ;;  %v4451_v12 = vmul.f32 0.35355338, %v4075_v8 }
 0x1f3   : > { %v11787_v10 = vpop.xlane.xlu1 %4606  ;;  %v9706_v17 = vpop.f32.mrb[87].mxu1  ;;  %13272 = vst [vmem:[#allocation52_spill] sm:$0xff] %v11801_v15  ;;  %13273 = vst [vmem:[#allocation53_spill] sm:$0xff] %v11809_v43  ;;  %v4968_v30 = vmul.f32 1.442695, %v4863_v13 }
 0x1f4   : > { %4807 = vmax.xlane.f32.xlu0 %v4806_v36  ;;  %v4862_v36 = vsub.f32 %v11368_v28, %v11733_v61  ;;  %v4815_v28 = vsel %vm4565_vm2, %v11801_v15, -inf  ;;  %v11821_v61 = vpop.eup %10203  ;;  %v11841_v11 = vadd.f32 %v11838_v31, %v4451_v12  ;;  %v4452_v15 = vmul.f32 0.35355338, %v4078_v0 }
 0x1f5   : > { %v11789_v44 = vpop.xlane.xlu0 %4609  ;;  %13274 = vst [vmem:[#allocation54_spill] sm:$0xff] %v11821_v61  ;;  %v11831_v3 = vpop.eup %10205  ;;  %v4453_v13 = vmul.f32 0.35355338, %v4132_v49 }
 0x1f6   : > { %4810 = vmax.xlane.f32.xlu1 %v4809_v52  ;;  %v11805_v17 = vpop.f32.mrb[88].mxu0  ;;  %v11815_v7 = vpop.f32.mrb[88].mxu1  ;;  %13275 = vst [vmem:[#allocation55_spill] sm:$0xff] %v11831_v3  ;;  %13276 = vst [vmem:[#allocation56_spill] sm:$0xff] %v11841_v11  ;;  %v5160_v12 = vsel %vm4565_vm2, %v11831_v3, 0.0  ;;  %v4818_v0 = vsel %vm4565_vm2, %v11841_v11, -inf }
 0x1f7   : > { %v11807_v29 = vpop.xlane.xlu1 %4612  ;;  %v9711_v4 = vpop.f32.mrb[89].mxu0 }
 0x1f8   : > { %4813 = vmax.xlane.f32.xlu0 %v4812_v16  ;;  %v11813_v58 = vpop.f32.mrb[90].mxu0  ;;  %v4966_v4 = vmul.f32 1.442695, %v4862_v36  ;;  %v9717_v33 = vpop.f32.mrb[89].mxu1  ;;  %v5154_v16 = vsel %vm4565_vm2, %v11809_v43, 0.0 }
 0x1f9   : > { %v11817_v56 = vpop.xlane.xlu0 %4615  ;;  %v9712_v52 = vpop.f32.mrb[91].mxu0  ;;  %v5157_v33 = vsel %vm4565_vm2, %v11821_v61, 0.0 }
 0x1fa   : > { %4816 = vmax.xlane.f32.xlu1 %v4815_v28  ;;  %v11829_v8 = vpop.f32.mrb[90].mxu1  ;;  %v4865_v52 = vsub.f32 %v11383_v37, %v11761_v48  ;;  %v11847_v43 = vpop.eup %10207  ;;  %10209 = vpow2.f32 %v4966_v4  ;;  %v4970_v37 = vmul.f32 1.442695, %v4864_v20  ;;  %v4454_v4 = vmul.f32 0.35355338, %v4135_v35 }
 0x1fb   : > { %v11825_v40 = vpop.xlane.xlu1 %4618  ;;  %v9718_v36 = vpop.f32.mrb[91].mxu1  ;;  %13277 = vst [vmem:[#allocation57_spill] sm:$0xff] %v11847_v43  ;;  %10211 = vpow2.f32 %v4968_v30 }
 0x1fc   : > { %5155 = vadd.xlane.f32.xlu0 %v5154_v16  ;;  %v4972_v21 = vmul.f32 1.442695, %v4865_v52  ;;  %v11874_v52 = vadd.f32 %v11750_v14, %v4453_v13  ;;  %10213 = vpow2.f32 %v4970_v37 }
 0x1fd   : > { %v11843_v28 = vpop.xlane.xlu0 %4621 }
 0x1fe   : > { %5158 = vadd.xlane.f32.xlu1 %v5157_v33  ;;  %v11849_v48 = vpop.f32.mrb[92].mxu0  ;;  %v11859_v61 = vpop.f32.mrb[92].mxu1  ;;  %v5163_v33 = vsel %vm4565_vm2, %v11847_v43, 0.0  ;;  %13279 = vst [vmem:[#allocation59_spill] sm:$0xff] %v11874_v52  ;;  %10215 = vpow2.f32 %v4972_v21  ;;  %v4824_v13 = vsel %vm4565_vm2, %v11874_v52, -inf  ;;  %v10145_v21 = vld [vmem:[%s10959_s26 + $0x300] sm:$0xff]  }
 0x1ff   : > { %v11851_v16 = vpop.xlane.xlu1 %4624  ;;  %v9723_v36 = vpop.f32.mrb[93].mxu0  ;;  %v4455_v52 = vmul.f32 0.35355338, %v11805_v17  ;;  %9732 = vmatpush3.bf16.msra.mxu0 %v10145_v21  ;;  %v4869_v17 = vsub.f32 %v11403_v1, %v11807_v29 }
 0x200   : > { %5161 = vadd.xlane.f32.xlu0 %v5160_v12  ;;  %v11857_v49 = vpop.f32.mrb[94].mxu0  ;;  %v11868_v36 = vld [vmem:[%s13122_s1 + $0x8] sm:$0xff]  ;;  %v9729_v11 = vpop.f32.mrb[93].mxu1 }
 0x201   : > { %v11861_v20 = vpop.xlane.xlu0 %4627  ;;  %v11871_v30 = vadd.f32 %v11868_v36, %v4452_v15  ;;  %v9724_v12 = vpop.f32.mrb[95].mxu0  ;;  %v4866_v11 = vsub.f32 %v11388_v55, %v11767_v50  ;;  %v4980_v29 = vmul.f32 1.442695, %v4869_v17 }
 0x202   : > { %5164 = vadd.xlane.f32.xlu1 %v5163_v33  ;;  %v11878_v3 = vpop.f32.mrb[94].mxu1  ;;  %v11887_v12 = vadd.f32 %v11774_v41, %v4454_v4 }
 0x203   : > { %13278 = vst [vmem:[#allocation58_spill] sm:$0xff] %v11871_v30  ;;  %v11876_v35 = vpop.xlane.xlu1 %4630  ;;  %v9730_v43 = vpop.f32.mrb[95].mxu1  ;;  %v4821_v15 = vsel %vm4565_vm2, %v11871_v30, -inf  ;;  %v4974_v50 = vmul.f32 1.442695, %v4866_v11  ;;  %v13282_v30 = vmov 0.0  }
 0x204   : > { %4819 = vmax.xlane.f32.xlu0 %v4818_v0  ;;  %13280 = vst [vmem:[#allocation60_spill] sm:$0xff] %v11887_v12  ;;  %v11894_v43 = vpop.eup %10209  ;;  %v4867_v0 = vsub.f32 %v11396_v62, %v11787_v10  ;;  %v4827_v4 = vsel %vm4565_vm2, %v11887_v12, -inf  ;;  %9743 = vmatprep.subr.bf16.mxu0 %v13282_v30  ;;  %v10146_v10 = vld [vmem:[%s10959_s26 + $0x308] sm:$0xff]   ;;  %v4456_v11 = vmul.f32 0.35355338, %v11813_v58 }
 0x205   : > { %v11880_v47 = vpop.xlane.xlu0 %4633  ;;  %13281 = vst [vmem:[#allocation61_spill] sm:$0xff] %v11894_v43  ;;  %v11903_v55 = vpop.eup %10211  ;;  %v5166_v62 = vsel %vm4565_vm2, %v11894_v43, 0.0  ;;  %9738 = vmatpush3.bf16.msra.mxu1 %v10146_v10  ;;  %10217 = vpow2.f32 %v4974_v50  ;;  %v4458_v50 = vmul.f32 0.35355338, %v11829_v8 }
 0x206   : > { %4822 = vmax.xlane.f32.xlu1 %v4821_v15  ;;  %v4868_v15 = vsub.f32 %v11391_v60, %v11789_v44  ;;  %v4976_v12 = vmul.f32 1.442695, %v4867_v0  ;;  %v11919_v60 = vadd.f32 %v11782_v6, %v4455_v52  ;;  %v5169_v21 = vsel %vm4565_vm2, %v11903_v55, 0.0  ;;  %9749 = vmatprep.subr.bf16.mxu1 %v13282_v30 }
 0x207   : > { %v11891_v37 = vpop.xlane.xlu1 %4636  ;;  %v11934_v52 = vadd.f32 %v11798_v54, %v4456_v11  ;;  %v11949_v17 = vadd.f32 %v11868_v36, %v4458_v50  ;;  %v4871_v36 = vsub.f32 %v11416_v24, %v11825_v40  ;;  %v4459_v50 = vmul.f32 0.35355338, %v11849_v48 }
 0x208   : > { %4825 = vmax.xlane.f32.xlu0 %v4824_v13  ;;  %v11913_v13 = vpop.eup %10213  ;;  %v4978_v0 = vmul.f32 1.442695, %v4868_v15  ;;  %10219 = vpow2.f32 %v4976_v12  ;;  %v4830_v10 = vsel %vm4565_vm2, %v11919_v60, -inf  ;;  %v4460_v48 = vmul.f32 0.35355338, %v11857_v49 }
 0x209   : > { %v11898_v33 = vpop.xlane.xlu0 %4639  ;;  %v11926_v43 = vpop.eup %10215  ;;  %v5172_v58 = vsel %vm4565_vm2, %v11913_v13, 0.0  ;;  %13283 = vst [vmem:[#allocation62_spill] sm:$0xff] %v11949_v17  ;;  %v4833_v8 = vsel %vm4565_vm2, %v11934_v52, -inf }
 0x20a   : > { %4828 = vmax.xlane.f32.xlu1 %v4827_v4  ;;  %v4457_v4 = vmul.f32 0.35355338, %v11815_v7  ;;  %v5175_v15 = vsel %vm4565_vm2, %v11926_v43, 0.0  ;;  %10221 = vpow2.f32 %v4978_v0 }
 0x20b   : > { %v11908_v34 = vpop.xlane.xlu1 %4642  ;;  %10223 = vpow2.f32 %v4980_v29  ;;  %v4839_v29 = vsel %vm4565_vm2, %v11949_v17, -inf }
 0x20c   : > { %5167 = vadd.xlane.f32.xlu0 %v5166_v62  ;;  %v11937_v7 = vadd.f32 %v11838_v31, %v4457_v4 }
 0x20d   : > { %v11921_v44 = vpop.xlane.xlu0 %4645 }
 0x20e   : > { %5170 = vadd.xlane.f32.xlu1 %v5169_v21  ;;  %v4836_v11 = vsel %vm4565_vm2, %v11937_v7, -inf  ;;  %v4870_v21 = vsub.f32 %v11408_v19, %v11817_v56  ;;  %v4872_v19 = vsub.f32 %v11411_v22, %v11843_v28  ;;  %v4461_v28 = vmul.f32 0.35355338, %v11859_v61 }
 0x20f   : > { %v11929_v1 = vpop.xlane.xlu1 %4648  ;;  %v11961_v0 = vpop.eup %10217  ;;  %v12002_v61 = vadd.f32 %v11774_v41, %v4460_v48 }
 0x210   : > { %5173 = vadd.xlane.f32.xlu0 %v5172_v58  ;;  %v5178_v24 = vsel %vm4565_vm2, %v11961_v0, 0.0 }
 0x211   : > { %v11939_v62 = vpop.xlane.xlu0 %4651  ;;  %v4845_v48 = vsel %vm4565_vm2, %v12002_v61, -inf }
 0x212   : > { %5176 = vadd.xlane.f32.xlu1 %v5175_v15  ;;  %v11970_v15 = vpop.eup %10219 }
 0x213   : > { %v11946_v12 = vpop.xlane.xlu1 %4654  ;;  %v5181_v22 = vsel %vm4565_vm2, %v11970_v15, 0.0 }
 0x214   : > { %4831 = vmax.xlane.f32.xlu0 %v4830_v10  ;;  %v4982_v10 = vmul.f32 1.442695, %v4870_v21  ;;  %v11978_v40 = vpop.eup %10221  ;;  %v11984_v21 = vadd.f32 %v11750_v14, %v4459_v50  ;;  %v4875_v50 = vsub.f32 %v11436_v57, %v11876_v35  ;;  %v4876_v57 = vsub.f32 %v11431_v51, %v11880_v47 }
 0x215   : > { %v11951_v31 = vpop.xlane.xlu0 %4657  ;;  %v5184_v14 = vsel %vm4565_vm2, %v11978_v40, 0.0  ;;  %v4877_v35 = vsub.f32 %v11443_v63, %v11891_v37  ;;  %v4879_v37 = vsub.f32 %v11456_v26, %v11908_v34 }
 0x216   : > { %4834 = vmax.xlane.f32.xlu1 %v4833_v8  ;;  %v4984_v8 = vmul.f32 1.442695, %v4871_v36  ;;  %10225 = vpow2.f32 %v4982_v10  ;;  %v4986_v36 = vmul.f32 1.442695, %v4872_v19  ;;  %v12005_v10 = vadd.f32 %v11782_v6, %v4461_v28 }
 0x217   : > { %v11959_v4 = vpop.xlane.xlu1 %4660  ;;  %v4992_v6 = vmul.f32 1.442695, %v4875_v50  ;;  %v4994_v47 = vmul.f32 1.442695, %v4876_v57  ;;  %v5000_v34 = vmul.f32 1.442695, %v4879_v37 }
 0x218   : > { %4837 = vmax.xlane.f32.xlu0 %v4836_v11  ;;  %v4873_v11 = vsub.f32 %v11423_v27, %v11851_v16  ;;  %v4874_v27 = vsub.f32 %v11428_v46, %v11861_v20  ;;  %10227 = vpow2.f32 %v4984_v8  ;;  %v4462_v46 = vmul.f32 0.35355338, %v11878_v3 }
 0x219   : > { %v11965_v58 = vpop.xlane.xlu0 %4663  ;;  %10229 = vpow2.f32 %v4986_v36  ;;  %v4848_v51 = vsel %vm4565_vm2, %v12005_v10, -inf  ;;  %v4885_v37 = vsub.f32 %v11483_v9, %v11959_v4 }
 0x21a   : > { %4840 = vmax.xlane.f32.xlu1 %v4839_v29  ;;  %v11991_v29 = vpop.eup %10223  ;;  %v4988_v49 = vmul.f32 1.442695, %v4873_v11  ;;  %v4990_v8 = vmul.f32 1.442695, %v4874_v27  ;;  %v12021_v3 = vadd.f32 %v11798_v54, %v4462_v46  ;;  %v4996_v54 = vmul.f32 1.442695, %v4877_v35 }
 0x21b   : > { %v11974_v56 = vpop.xlane.xlu1 %4666  ;;  %v5187_v20 = vsel %vm4565_vm2, %v11991_v29, 0.0  ;;  %v4881_v46 = vsub.f32 %v11463_v32, %v11929_v1  ;;  %v4883_v35 = vsub.f32 %v11476_v5, %v11946_v12  ;;  %v5012_v4 = vmul.f32 1.442695, %v4885_v37 }
 0x21c   : > { %5179 = vadd.xlane.f32.xlu0 %v5178_v24  ;;  %v4842_v24 = vsel %vm4565_vm2, %v11984_v21, -inf  ;;  %10231 = vpow2.f32 %v4988_v49  ;;  %v4851_v27 = vsel %vm4565_vm2, %v12021_v3, -inf }
 0x21d   : > { %v11986_v17 = vpop.xlane.xlu0 %4669  ;;  %10233 = vpow2.f32 %v4990_v8  ;;  %v4882_v8 = vsub.f32 %v11468_v59, %v11939_v62  ;;  %v5004_v1 = vmul.f32 1.442695, %v4881_v46  ;;  %v5008_v12 = vmul.f32 1.442695, %v4883_v35 }
 0x21e   : > { %5182 = vadd.xlane.f32.xlu1 %v5181_v22  ;;  %v4878_v22 = vsub.f32 %v11448_v18, %v11898_v33  ;;  %10235 = vpow2.f32 %v4992_v6  ;;  %v4880_v33 = vsub.f32 %v11451_v23, %v11921_v44  ;;  %v4887_v46 = vsub.f32 %v11496_v45, %v11974_v56 }
 0x21f   : > { %v11995_v16 = vpop.xlane.xlu1 %4672  ;;  %10237 = vpow2.f32 %v4994_v47  ;;  %v5006_v62 = vmul.f32 1.442695, %v4882_v8  ;;  %v4884_v47 = vsub.f32 %v11471_v2, %v11951_v31  ;;  %v4888_v8 = vsub.f32 %v11491_v42, %v11986_v17 }
 0x220   : > { %5185 = vadd.xlane.f32.xlu0 %v5184_v14  ;;  %v12033_v63 = vpop.eup %10225  ;;  %v4998_v18 = vmul.f32 1.442695, %v4878_v22  ;;  %10239 = vpow2.f32 %v4996_v54  ;;  %v5002_v44 = vmul.f32 1.442695, %v4880_v33  ;;  %v4886_v33 = vsub.f32 %v11488_v38, %v11965_v58 }
 0x221   : > { %v12007_v19 = vpop.xlane.xlu0 %4675  ;;  %v5190_v50 = vsel %vm4565_vm2, %v12033_v63, 0.0  ;;  %v5010_v31 = vmul.f32 1.442695, %v4884_v47  ;;  %v5016_v56 = vmul.f32 1.442695, %v4887_v46  ;;  %v4889_v35 = vsub.f32 %v11503_v53, %v11995_v16 }
 0x222   : > { %5188 = vadd.xlane.f32.xlu1 %v5187_v20  ;;  %v12041_v14 = vpop.eup %10227  ;;  %10241 = vpow2.f32 %v4998_v18  ;;  %v5014_v58 = vmul.f32 1.442695, %v4886_v33  ;;  %v5018_v17 = vmul.f32 1.442695, %v4888_v8  ;;  %v4890_v47 = vsub.f32 %v11508_v25, %v12007_v19  ;;  %v13284_v33 = vld [vmem:[#allocation3_spill] sm:$0xff] }
 0x223   : > { %v12016_v41 = vpop.xlane.xlu1 %4678  ;;  %v12049_v26 = vpop.eup %10229  ;;  %10243 = vpow2.f32 %v5000_v34  ;;  %v5020_v16 = vmul.f32 1.442695, %v4889_v35  ;;  %v13287_v35 = vld [vmem:[#allocation5_spill] sm:$0xff] }
 0x224   : > { %4843 = vmax.xlane.f32.xlu0 %v4842_v24  ;;  %v5193_v24 = vsel %vm4565_vm2, %v12041_v14, 0.0  ;;  %v5196_v6 = vsel %vm4565_vm2, %v12049_v26, 0.0  ;;  %10245 = vpow2.f32 %v5002_v44  ;;  %v4891_v37 = vsub.f32 %v11516_v39, %v12016_v41 }
 0x225   : > { %v12023_v11 = vpop.xlane.xlu0 %4681  ;;  %10247 = vpow2.f32 %v5004_v1  ;;  %v5022_v19 = vmul.f32 1.442695, %v4890_v47 }
 0x226   : > { %4846 = vmax.xlane.f32.xlu1 %v4845_v48  ;;  %v12057_v23 = vpop.eup %10231  ;;  %10249 = vpow2.f32 %v5006_v62  ;;  %v5024_v41 = vmul.f32 1.442695, %v4891_v37 }
 0x227   : > { %v12031_v28 = vpop.xlane.xlu1 %4684  ;;  %v12065_v32 = vpop.eup %10233  ;;  %10251 = vpow2.f32 %v5008_v12 }
 0x228   : > { %4849 = vmax.xlane.f32.xlu0 %v4848_v51  ;;  %v5199_v51 = vsel %vm4565_vm2, %v12057_v23, 0.0  ;;  %v12073_v59 = vpop.eup %10235  ;;  %v5202_v54 = vsel %vm4565_vm2, %v12065_v32, 0.0  ;;  %10253 = vpow2.f32 %v5010_v31 }
 0x229   : > { %v12037_v36 = vpop.xlane.xlu0 %4687  ;;  %v12081_v5 = vpop.eup %10237  ;;  %v5205_v18 = vsel %vm4565_vm2, %v12073_v59, 0.0  ;;  %10255 = vpow2.f32 %v5012_v4 }
 0x22a   : > { %4852 = vmax.xlane.f32.xlu1 %v4851_v27  ;;  %v12089_v2 = vpop.eup %10239  ;;  %v5208_v34 = vsel %vm4565_vm2, %v12081_v5, 0.0  ;;  %10257 = vpow2.f32 %v5014_v58 }
 0x22b   : > { %v12045_v49 = vpop.xlane.xlu1 %4690  ;;  %v5211_v44 = vsel %vm4565_vm2, %v12089_v2, 0.0  ;;  %10259 = vpow2.f32 %v5016_v56 }
 0x22c   : > { %5191 = vadd.xlane.f32.xlu0 %v5190_v50  ;;  %v12097_v9 = vpop.eup %10241  ;;  %10261 = vpow2.f32 %v5018_v17 }
 0x22d   : > { %v12053_v20 = vpop.xlane.xlu0 %4693  ;;  %v12105_v38 = vpop.eup %10243  ;;  %v5214_v1 = vsel %vm4565_vm2, %v12097_v9, 0.0  ;;  %10263 = vpow2.f32 %v5020_v16  ;;  %v13289_v16 = vld [vmem:[#allocation7_spill] sm:$0xff] }
 0x22e   : > { %5194 = vadd.xlane.f32.xlu1 %v5193_v24  ;;  %v12113_v45 = vpop.eup %10245  ;;  %v5217_v62 = vsel %vm4565_vm2, %v12105_v38, 0.0  ;;  %10265 = vpow2.f32 %v5022_v19  ;;  %v4895_v37 = vsub.f32 %v13289_v16, %v12045_v49  ;;  %v13295_v16 = vld [vmem:[#allocation9_spill] sm:$0xff] }
 0x22f   : > { %v12061_v57 = vpop.xlane.xlu1 %4696  ;;  %v12121_v42 = vpop.eup %10247  ;;  %v5220_v12 = vsel %vm4565_vm2, %v12113_v45, 0.0  ;;  %10267 = vpow2.f32 %v5024_v41 }
 0x230   : > { %5197 = vadd.xlane.f32.xlu0 %v5196_v6  ;;  %v12129_v53 = vpop.eup %10249  ;;  %v5223_v31 = vsel %vm4565_vm2, %v12121_v42, 0.0 }
 0x231   : > { %v12069_v48 = vpop.xlane.xlu0 %4699  ;;  %v12137_v25 = vpop.eup %10251  ;;  %v5226_v46 = vsel %vm4565_vm2, %v12129_v53, 0.0 }
 0x232   : > { %5200 = vadd.xlane.f32.xlu1 %v5199_v51  ;;  %v12145_v39 = vpop.eup %10253 }
 0x233   : > { %v12077_v22 = vpop.xlane.xlu1 %4702  ;;  %v5232_v47 = vsel %vm4565_vm2, %v12145_v39, 0.0 }
 0x234   : > { %5203 = vadd.xlane.f32.xlu0 %v5202_v54 }
 0x235   : > { %v12085_v27 = vpop.xlane.xlu0 %4705 }
 0x236   : > { %5206 = vadd.xlane.f32.xlu1 %v5205_v18 }
 0x237   : > { %v12093_v50 = vpop.xlane.xlu1 %4708 }
 0x238   : > { %5209 = vadd.xlane.f32.xlu0 %v5208_v34  ;;  %v4892_v34 = vsub.f32 %v13284_v33, %v12023_v11  ;;  %v12153_v11 = vpop.eup %10255 }
 0x239   : > { %v12101_v24 = vpop.xlane.xlu0 %4711  ;;  %13286 = vst [vmem:[#allocation3_spill] sm:$0xff] %v12153_v11  ;;  %v5235_v19 = vsel %vm4565_vm2, %v12153_v11, 0.0 }
 0x23a   : > { %5212 = vadd.xlane.f32.xlu1 %v5211_v44  ;;  %v13285_v44 = vld [vmem:[#allocation4_spill] sm:$0xff]  ;;  %v5026_v56 = vmul.f32 1.442695, %v4892_v34  ;;  %v13291_v34 = vld [vmem:[#allocation6_spill] sm:$0xff] }
 0x23b   : > { %v12109_v6 = vpop.xlane.xlu1 %4714  ;;  %v4893_v58 = vsub.f32 %v13285_v44, %v12031_v28  ;;  %v12161_v28 = vpop.eup %10257 }
 0x23c   : > { %5215 = vadd.xlane.f32.xlu0 %v5214_v1  ;;  %v5229_v1 = vsel %vm4565_vm2, %v12137_v25, 0.0  ;;  %13288 = vst [vmem:[#allocation4_spill] sm:$0xff] %v12161_v28  ;;  %10269 = vpow2.f32 %v5026_v56  ;;  %v5238_v41 = vsel %vm4565_vm2, %v12161_v28, 0.0 }
 0x23d   : > { %v12117_v51 = vpop.xlane.xlu0 %4717 }
 0x23e   : > { %5218 = vadd.xlane.f32.xlu1 %v5217_v62  ;;  %v4894_v62 = vsub.f32 %v13287_v35, %v12037_v36  ;;  %v12169_v36 = vpop.eup %10259 }
 0x23f   : > { %v12125_v54 = vpop.xlane.xlu1 %4720  ;;  %13290 = vst [vmem:[#allocation5_spill] sm:$0xff] %v12169_v36  ;;  %v12177_v49 = vpop.eup %10261  ;;  %v5241_v56 = vsel %vm4565_vm2, %v12169_v36, 0.0 }
 0x240   : > { %5221 = vadd.xlane.f32.xlu0 %v5220_v12  ;;  %v5028_v12 = vmul.f32 1.442695, %v4893_v58  ;;  %v5030_v33 = vmul.f32 1.442695, %v4894_v62  ;;  %13292 = vst [vmem:[#allocation7_spill] sm:$0xff] %v12177_v49 }
 0x241   : > { %v12133_v18 = vpop.xlane.xlu0 %4723  ;;  %v5032_v58 = vmul.f32 1.442695, %v4895_v37 }
 0x242   : > { %5224 = vadd.xlane.f32.xlu1 %v5223_v31  ;;  %10271 = vpow2.f32 %v5028_v12  ;;  %v5244_v12 = vsel %vm4565_vm2, %v12177_v49, 0.0 }
 0x243   : > { %v12141_v4 = vpop.xlane.xlu1 %4726  ;;  %10273 = vpow2.f32 %v5030_v33 }
 0x244   : > { %5227 = vadd.xlane.f32.xlu0 %v5226_v46  ;;  %v4896_v46 = vsub.f32 %v13291_v34, %v12053_v20  ;;  %v12185_v20 = vpop.eup %10263  ;;  %10275 = vpow2.f32 %v5032_v58 }
 0x245   : > { %v12149_v8 = vpop.xlane.xlu0 %4729  ;;  %13294 = vst [vmem:[#allocation6_spill] sm:$0xff] %v12185_v20  ;;  %v5247_v33 = vsel %vm4565_vm2, %v12185_v20, 0.0 }
 0x246   : > { %5230 = vadd.xlane.f32.xlu1 %v5229_v1  ;;  %v13293_v1 = vld [vmem:[#allocation8_spill] sm:$0xff]  ;;  %v5034_v62 = vmul.f32 1.442695, %v4896_v46 }
 0x247   : > { %v12157_v17 = vpop.xlane.xlu1 %4732  ;;  %v4897_v35 = vsub.f32 %v13293_v1, %v12061_v57  ;;  %v12193_v57 = vpop.eup %10265 }
 0x248   : > { %5233 = vadd.xlane.f32.xlu0 %v5232_v47  ;;  %13296 = vst [vmem:[#allocation8_spill] sm:$0xff] %v12193_v57  ;;  %10277 = vpow2.f32 %v5034_v62  ;;  %v5250_v58 = vsel %vm4565_vm2, %v12193_v57, 0.0 }
 0x249   : > { %v12165_v31 = vpop.xlane.xlu0 %4735  ;;  %v5036_v37 = vmul.f32 1.442695, %v4897_v35 }
 0x24a   : > { %5236 = vadd.xlane.f32.xlu1 %v5235_v19  ;;  %v4898_v19 = vsub.f32 %v13295_v16, %v12069_v48  ;;  %v12201_v48 = vpop.eup %10267 }
 0x24b   : > { %v12173_v44 = vpop.xlane.xlu1 %4738  ;;  %13298 = vst [vmem:[#allocation9_spill] sm:$0xff] %v12201_v48  ;;  %10279 = vpow2.f32 %v5036_v37  ;;  %v5253_v62 = vsel %vm4565_vm2, %v12201_v48, 0.0 }
 0x24c   : > { %5239 = vadd.xlane.f32.xlu0 %v5238_v41  ;;  %v13297_v41 = vld [vmem:[#allocation11_spill] sm:$0xff]  ;;  %v5038_v46 = vmul.f32 1.442695, %v4898_v19 }
 0x24d   : > { %v12181_v47 = vpop.xlane.xlu0 %4741  ;;  %v4899_v1 = vsub.f32 %v13297_v41, %v12077_v22  ;;  %v12209_v22 = vpop.eup %10269 }
 0x24e   : > { %5242 = vadd.xlane.f32.xlu1 %v5241_v56  ;;  %v13299_v56 = vld [vmem:[#allocation10_spill] sm:$0xff]  ;;  %13300 = vst [vmem:[#allocation11_spill] sm:$0xff] %v12209_v22  ;;  %10281 = vpow2.f32 %v5038_v46  ;;  %v5256_v37 = vsel %vm4565_vm2, %v12209_v22, 0.0 }
 0x24f   : > { %v12189_v34 = vpop.xlane.xlu1 %4744  ;;  %v4900_v16 = vsub.f32 %v13299_v56, %v12085_v27  ;;  %v5040_v35 = vmul.f32 1.442695, %v4899_v1  ;;  %v12217_v27 = vpop.eup %10271 }
 0x250   : > { %5245 = vadd.xlane.f32.xlu0 %v5244_v12  ;;  %v13301_v12 = vld [vmem:[#allocation12_spill] sm:$0xff]  ;;  %13302 = vst [vmem:[#allocation10_spill] sm:$0xff] %v12217_v27  ;;  %v5259_v46 = vsel %vm4565_vm2, %v12217_v27, 0.0 }
 0x251   : > { %v12197_v36 = vpop.xlane.xlu0 %4747  ;;  %v4901_v41 = vsub.f32 %v13301_v12, %v12093_v50  ;;  %v5042_v19 = vmul.f32 1.442695, %v4900_v16  ;;  %v12225_v50 = vpop.eup %10273  ;;  %10283 = vpow2.f32 %v5040_v35 }
 0x252   : > { %5248 = vadd.xlane.f32.xlu1 %v5247_v33  ;;  %v13303_v33 = vld [vmem:[#allocation13_spill] sm:$0xff]  ;;  %13304 = vst [vmem:[#allocation12_spill] sm:$0xff] %v12225_v50  ;;  %v5262_v35 = vsel %vm4565_vm2, %v12225_v50, 0.0 }
 0x253   : > { %v12205_v49 = vpop.xlane.xlu1 %4750  ;;  %v4902_v56 = vsub.f32 %v13303_v33, %v12101_v24  ;;  %v5044_v1 = vmul.f32 1.442695, %v4901_v41  ;;  %v12233_v24 = vpop.eup %10275  ;;  %10285 = vpow2.f32 %v5042_v19 }
 0x254   : > { %5251 = vadd.xlane.f32.xlu0 %v5250_v58  ;;  %v13305_v58 = vld [vmem:[#allocation15_spill] sm:$0xff]  ;;  %13306 = vst [vmem:[#allocation13_spill] sm:$0xff] %v12233_v24  ;;  %v5265_v19 = vsel %vm4565_vm2, %v12233_v24, 0.0 }
 0x255   : > { %v12213_v20 = vpop.xlane.xlu0 %4753  ;;  %v4903_v12 = vsub.f32 %v13305_v58, %v12109_v6  ;;  %v5046_v16 = vmul.f32 1.442695, %v4902_v56  ;;  %v12241_v6 = vpop.eup %10277  ;;  %10287 = vpow2.f32 %v5044_v1 }
 0x256   : > { %5254 = vadd.xlane.f32.xlu1 %v5253_v62  ;;  %v13307_v62 = vld [vmem:[#allocation14_spill] sm:$0xff]  ;;  %13308 = vst [vmem:[#allocation15_spill] sm:$0xff] %v12241_v6  ;;  %v5268_v1 = vsel %vm4565_vm2, %v12241_v6, 0.0 }
 0x257   : > { %v12221_v57 = vpop.xlane.xlu1 %4756  ;;  %v4904_v33 = vsub.f32 %v13307_v62, %v12117_v51  ;;  %v5048_v41 = vmul.f32 1.442695, %v4903_v12  ;;  %v12249_v51 = vpop.eup %10279  ;;  %10289 = vpow2.f32 %v5046_v16 }
 0x258   : > { %5257 = vadd.xlane.f32.xlu0 %v5256_v37  ;;  %v13309_v37 = vld [vmem:[#allocation16_spill] sm:$0xff]  ;;  %13310 = vst [vmem:[#allocation14_spill] sm:$0xff] %v12249_v51  ;;  %v5271_v16 = vsel %vm4565_vm2, %v12249_v51, 0.0 }
 0x259   : > { %v12229_v48 = vpop.xlane.xlu0 %4759  ;;  %v4905_v58 = vsub.f32 %v13309_v37, %v12125_v54  ;;  %v5050_v56 = vmul.f32 1.442695, %v4904_v33  ;;  %v12257_v54 = vpop.eup %10281  ;;  %10291 = vpow2.f32 %v5048_v41 }
 0x25a   : > { %5260 = vadd.xlane.f32.xlu1 %v5259_v46  ;;  %v13311_v46 = vld [vmem:[#allocation17_spill] sm:$0xff]  ;;  %13312 = vst [vmem:[#allocation16_spill] sm:$0xff] %v12257_v54  ;;  %v5274_v41 = vsel %vm4565_vm2, %v12257_v54, 0.0 }
 0x25b   : > { %v12237_v22 = vpop.xlane.xlu1 %4762  ;;  %v4906_v62 = vsub.f32 %v13311_v46, %v12133_v18  ;;  %v5052_v12 = vmul.f32 1.442695, %v4905_v58  ;;  %v12265_v18 = vpop.eup %10283  ;;  %10293 = vpow2.f32 %v5050_v56 }
 0x25c   : > { %5263 = vadd.xlane.f32.xlu0 %v5262_v35  ;;  %v13313_v35 = vld [vmem:[#allocation19_spill] sm:$0xff]  ;;  %13314 = vst [vmem:[#allocation17_spill] sm:$0xff] %v12265_v18  ;;  %v5277_v56 = vsel %vm4565_vm2, %v12265_v18, 0.0 }
 0x25d   : > { %v12245_v27 = vpop.xlane.xlu0 %4765  ;;  %v4907_v37 = vsub.f32 %v13313_v35, %v12141_v4  ;;  %v5054_v33 = vmul.f32 1.442695, %v4906_v62  ;;  %v12273_v4 = vpop.eup %10285  ;;  %10295 = vpow2.f32 %v5052_v12 }
 0x25e   : > { %5266 = vadd.xlane.f32.xlu1 %v5265_v19  ;;  %v13315_v19 = vld [vmem:[#allocation18_spill] sm:$0xff]  ;;  %13316 = vst [vmem:[#allocation19_spill] sm:$0xff] %v12273_v4  ;;  %v5280_v12 = vsel %vm4565_vm2, %v12273_v4, 0.0 }
 0x25f   : > { %v12253_v50 = vpop.xlane.xlu1 %4768  ;;  %v4908_v46 = vsub.f32 %v13315_v19, %v12149_v8  ;;  %v5056_v58 = vmul.f32 1.442695, %v4907_v37  ;;  %v12281_v8 = vpop.eup %10287  ;;  %10297 = vpow2.f32 %v5054_v33 }
 0x260   : > { %5269 = vadd.xlane.f32.xlu0 %v5268_v1  ;;  %v13317_v1 = vld [vmem:[#allocation20_spill] sm:$0xff]  ;;  %13318 = vst [vmem:[#allocation18_spill] sm:$0xff] %v12281_v8  ;;  %v5283_v33 = vsel %vm4565_vm2, %v12281_v8, 0.0 }
 0x261   : > { %v12261_v24 = vpop.xlane.xlu0 %4771  ;;  %v4909_v35 = vsub.f32 %v13317_v1, %v12157_v17  ;;  %v5058_v62 = vmul.f32 1.442695, %v4908_v46  ;;  %v12289_v17 = vpop.eup %10289  ;;  %10299 = vpow2.f32 %v5056_v58 }
 0x262   : > { %5272 = vadd.xlane.f32.xlu1 %v5271_v16  ;;  %v13319_v16 = vld [vmem:[#allocation21_spill] sm:$0xff]  ;;  %13320 = vst [vmem:[#allocation20_spill] sm:$0xff] %v12289_v17  ;;  %v5286_v58 = vsel %vm4565_vm2, %v12289_v17, 0.0 }
 0x263   : > { %v12269_v6 = vpop.xlane.xlu1 %4774  ;;  %v4910_v19 = vsub.f32 %v13319_v16, %v12165_v31  ;;  %v5060_v37 = vmul.f32 1.442695, %v4909_v35  ;;  %v12297_v31 = vpop.eup %10291  ;;  %10301 = vpow2.f32 %v5058_v62 }
 0x264   : > { %5275 = vadd.xlane.f32.xlu0 %v5274_v41  ;;  %v13321_v41 = vld [vmem:[#allocation23_spill] sm:$0xff]  ;;  %13322 = vst [vmem:[#allocation21_spill] sm:$0xff] %v12297_v31  ;;  %v5289_v62 = vsel %vm4565_vm2, %v12297_v31, 0.0 }
 0x265   : > { %v12277_v51 = vpop.xlane.xlu0 %4777  ;;  %v4911_v1 = vsub.f32 %v13321_v41, %v12173_v44  ;;  %v5062_v46 = vmul.f32 1.442695, %v4910_v19  ;;  %v12305_v44 = vpop.eup %10293  ;;  %10303 = vpow2.f32 %v5060_v37 }
 0x266   : > { %5278 = vadd.xlane.f32.xlu1 %v5277_v56  ;;  %v13323_v56 = vld [vmem:[#allocation22_spill] sm:$0xff]  ;;  %13324 = vst [vmem:[#allocation23_spill] sm:$0xff] %v12305_v44  ;;  %v5292_v37 = vsel %vm4565_vm2, %v12305_v44, 0.0  ;;  %v13332_v44 = vld [vmem:[#allocation28_spill] sm:$0xff] }
 0x267   : > { %v12285_v54 = vpop.xlane.xlu1 %4780  ;;  %v4912_v16 = vsub.f32 %v13323_v56, %v12181_v47  ;;  %v5064_v35 = vmul.f32 1.442695, %v4911_v1  ;;  %v12313_v47 = vpop.eup %10295  ;;  %10305 = vpow2.f32 %v5062_v46  ;;  %v13330_v46 = vld [vmem:[#allocation26_spill] sm:$0xff] }
 0x268   : > { %5281 = vadd.xlane.f32.xlu0 %v5280_v12  ;;  %v13325_v12 = vld [vmem:[#allocation24_spill] sm:$0xff]  ;;  %13326 = vst [vmem:[#allocation22_spill] sm:$0xff] %v12313_v47 }
 0x269   : > { %v12293_v18 = vpop.xlane.xlu0 %4783  ;;  %v4913_v41 = vsub.f32 %v13325_v12, %v12189_v34  ;;  %v5066_v19 = vmul.f32 1.442695, %v4912_v16  ;;  %v12321_v34 = vpop.eup %10297  ;;  %10307 = vpow2.f32 %v5064_v35  ;;  %v4916_v16 = vsub.f32 %v13330_v46, %v12213_v20 }
 0x26a   : > { %5284 = vadd.xlane.f32.xlu1 %v5283_v33  ;;  %v13327_v33 = vld [vmem:[#allocation25_spill] sm:$0xff]  ;;  %13328 = vst [vmem:[#allocation24_spill] sm:$0xff] %v12321_v34  ;;  %v4917_v35 = vsub.f32 %v13332_v44, %v12221_v57 }
 0x26b   : > { %v12301_v4 = vpop.xlane.xlu1 %4786  ;;  %v4914_v56 = vsub.f32 %v13327_v33, %v12197_v36  ;;  %v5068_v1 = vmul.f32 1.442695, %v4913_v41  ;;  %v5295_v36 = vsel %vm4565_vm2, %v12313_v47, 0.0  ;;  %10309 = vpow2.f32 %v5066_v19 }
 0x26c   : > { %5287 = vadd.xlane.f32.xlu0 %v5286_v58  ;;  %v13329_v58 = vld [vmem:[#allocation27_spill] sm:$0xff]  ;;  %v5074_v47 = vmul.f32 1.442695, %v4916_v16 }
 0x26d   : > { %v12309_v8 = vpop.xlane.xlu0 %4789  ;;  %v4915_v12 = vsub.f32 %v13329_v58, %v12205_v49  ;;  %v5070_v33 = vmul.f32 1.442695, %v4914_v56  ;;  %v5298_v49 = vsel %vm4565_vm2, %v12321_v34, 0.0  ;;  %10311 = vpow2.f32 %v5068_v1  ;;  %v13334_v58 = vld [vmem:[#allocation29_spill] sm:$0xff] }
 0x26e   : > { %5290 = vadd.xlane.f32.xlu1 %v5289_v62  ;;  %v12331_v62 = vpop.eup %10299  ;;  %v4918_v46 = vsub.f32 %v13334_v58, %v12229_v48  ;;  %v5076_v56 = vmul.f32 1.442695, %v4917_v35 }
 0x26f   : > { %v12317_v17 = vpop.xlane.xlu1 %4792  ;;  %13331 = vst [vmem:[#allocation25_spill] sm:$0xff] %v12331_v62  ;;  %v5072_v20 = vmul.f32 1.442695, %v4915_v12  ;;  %v5301_v57 = vsel %vm4565_vm2, %v12331_v62, 0.0  ;;  %10313 = vpow2.f32 %v5070_v33 }
 0x270   : > { %5293 = vadd.xlane.f32.xlu0 %v5292_v37  ;;  %v12339_v37 = vpop.eup %10301  ;;  %v5078_v16 = vmul.f32 1.442695, %v4918_v46 }
 0x271   : > { %v12327_v31 = vpop.xlane.xlu0 %4795  ;;  %13333 = vst [vmem:[#allocation27_spill] sm:$0xff] %v12339_v37  ;;  %v12347_v44 = vpop.eup %10303  ;;  %v5304_v48 = vsel %vm4565_vm2, %v12339_v37, 0.0  ;;  %10315 = vpow2.f32 %v5072_v20  ;;  %v13354_v37 = vld [vmem:[#allocation47_spill] sm:$0xff] }
 0x272   : > { %5296 = vadd.xlane.f32.xlu1 %v5295_v36  ;;  %13335 = vst [vmem:[#allocation26_spill] sm:$0xff] %v12347_v44  ;;  %v13336_v36 = vld [vmem:[#allocation31_spill] sm:$0xff]  ;;  %v12355_v12 = vpop.eup %10305  ;;  %10317 = vpow2.f32 %v5074_v47  ;;  %v5307_v33 = vsel %vm4565_vm2, %v12347_v44, 0.0  ;;  %v13341_v47 = vld [vmem:[#allocation32_spill] sm:$0xff] }
 0x273   : > { %v12335_v41 = vpop.xlane.xlu1 %4798  ;;  %v4919_v34 = vsub.f32 %v13336_v36, %v12237_v22  ;;  %13337 = vst [vmem:[#allocation28_spill] sm:$0xff] %v12355_v12  ;;  %v12359_v35 = vpop.eup %10307  ;;  %10319 = vpow2.f32 %v5076_v56  ;;  %v13339_v22 = vld [vmem:[#allocation30_spill] sm:$0xff]  ;;  %v5310_v20 = vsel %vm4565_vm2, %v12355_v12, 0.0 }
 0x274   : > { %5299 = vadd.xlane.f32.xlu0 %v5298_v49  ;;  %13338 = vst [vmem:[#allocation29_spill] sm:$0xff] %v12359_v35  ;;  %v4920_v58 = vsub.f32 %v13339_v22, %v12245_v27  ;;  %v5313_v56 = vsel %vm4565_vm2, %v12359_v35, 0.0 }
 0x275   : > { %v12343_v19 = vpop.xlane.xlu0 %4801  ;;  %v12365_v46 = vpop.eup %10309 }
 0x276   : > { %5302 = vadd.xlane.f32.xlu1 %v5301_v57  ;;  %v5080_v57 = vmul.f32 1.442695, %v4919_v34  ;;  %13340 = vst [vmem:[#allocation31_spill] sm:$0xff] %v12365_v46  ;;  %v5082_v34 = vmul.f32 1.442695, %v4920_v58  ;;  %v13346_v58 = vld [vmem:[#allocation34_spill] sm:$0xff] }
 0x277   : > { %v12351_v1 = vpop.xlane.xlu1 %4804  ;;  %v12371_v27 = vpop.eup %10311  ;;  %v4924_v35 = vsub.f32 %v13346_v58, %v12277_v51 }
 0x278   : > { %5305 = vadd.xlane.f32.xlu0 %v5304_v48  ;;  %v4921_v48 = vsub.f32 %v13341_v47, %v12253_v50  ;;  %13342 = vst [vmem:[#allocation30_spill] sm:$0xff] %v12371_v27 }
 0x279   : > { %v5144_v49 = vpop.xlane.xlu0 %5143  ;;  %v12377_v50 = vpop.eup %10313 }
 0x27a   : > { %5308 = vadd.xlane.f32.xlu1 %v5307_v33  ;;  %10321 = vrcp.f32 %v5144_v49  ;;  %v13343_v49 = vld [vmem:[#allocation33_spill] sm:$0xff]  ;;  %13344 = vst [vmem:[#allocation32_spill] sm:$0xff] %v12377_v50  ;;  %v5322_v51 = vsel %vm4565_vm2, %v12377_v50, 0.0 }
 0x27b   : > { %v5147_v36 = vpop.xlane.xlu1 %5146  ;;  %10323 = vpow2.f32 %v5078_v16  ;;  %v4922_v33 = vsub.f32 %v13343_v49, %v12261_v24  ;;  %v5316_v16 = vsel %vm4565_vm2, %v12365_v46, 0.0  ;;  %v5319_v24 = vsel %vm4565_vm2, %v12371_v27, 0.0 }
 0x27c   : > { %5311 = vadd.xlane.f32.xlu0 %v5310_v20  ;;  %10325 = vrcp.f32 %v5147_v36  ;;  %v5084_v36 = vmul.f32 1.442695, %v4921_v48  ;;  %v13345_v20 = vld [vmem:[#allocation35_spill] sm:$0xff] }
 0x27d   : > { %v5150_v44 = vpop.xlane.xlu0 %5149  ;;  %v4923_v47 = vsub.f32 %v13345_v20, %v12269_v6  ;;  %v13351_v20 = vld [vmem:[#allocation37_spill] sm:$0xff] }
 0x27e   : > { %10327 = vrcp.f32 %v5150_v44  ;;  %5314 = vadd.xlane.f32.xlu1 %v5313_v56  ;;  %v12387_v44 = vpop.eup %10315  ;;  %v13348_v56 = vld [vmem:[#allocation36_spill] sm:$0xff]  ;;  %v4926_v58 = vsub.f32 %v13351_v20, %v12293_v18  ;;  %v13353_v20 = vld [vmem:[#allocation45_spill] sm:$0xff] }
 0x27f   : > { %10329 = vpow2.f32 %v5080_v57  ;;  %v5153_v22 = vpop.xlane.xlu1 %5152  ;;  %13347 = vst [vmem:[#allocation33_spill] sm:$0xff] %v12387_v44  ;;  %v5086_v57 = vmul.f32 1.442695, %v4922_v33  ;;  %v4925_v48 = vsub.f32 %v13348_v56, %v12285_v54  ;;  %v12391_v49 = vpop.eup %10317  ;;  %v5090_v33 = vmul.f32 1.442695, %v4924_v35 }
 0x280   : > { %10331 = vrcp.f32 %v5153_v22  ;;  %5317 = vadd.xlane.f32.xlu0 %v5316_v16  ;;  %13349 = vst [vmem:[#allocation35_spill] sm:$0xff] %v12391_v49  ;;  %v12397_v22 = vpop.eup %10319  ;;  %v5088_v16 = vmul.f32 1.442695, %v4923_v47  ;;  %v5325_v54 = vsel %vm4565_vm2, %v12387_v44, 0.0  ;;  %v5328_v18 = vsel %vm4565_vm2, %v12391_v49, 0.0  ;;  %v13355_v49 = vld [vmem:[#allocation38_spill] sm:$0xff] }
 0x281   : > { %v12383_v12 = vpop.xlane.xlu0 %4807  ;;  %10333 = vpow2.f32 %v5082_v34  ;;  %13350 = vst [vmem:[#allocation34_spill] sm:$0xff] %v12397_v22  ;;  %v5092_v56 = vmul.f32 1.442695, %v4925_v48 }
 0x282   : > { %5320 = vadd.xlane.f32.xlu1 %v5319_v24  ;;  %10335 = vpow2.f32 %v5084_v36  ;;  %v13352_v36 = vld [vmem:[#allocation39_spill] sm:$0xff] }
 0x283   : > { %v12393_v6 = vpop.xlane.xlu1 %4810  ;;  %10337 = vpow2.f32 %v5086_v57  ;;  %v4927_v47 = vsub.f32 %v13352_v36, %v12301_v4  ;;  %v5331_v4 = vsel %vm4565_vm2, %v12397_v22, 0.0 }
 0x284   : > { %5323 = vadd.xlane.f32.xlu0 %v5322_v51  ;;  %v10322_v34 = vpop.eup %10321  ;;  %10339 = vpow2.f32 %v5088_v16  ;;  %v5094_v51 = vmul.f32 1.442695, %v4926_v58  ;;  %v4928_v16 = vsub.f32 %v13355_v49, %v12309_v8  ;;  %v10148_v8 = vld [vmem:[%s10959_s26 + $0x318] sm:$0xff]  }
 0x285   : > { %v12401_v27 = vpop.xlane.xlu0 %4813  ;;  %v12405_v24 = vpop.eup %10323  ;;  %v5526_v44 = vmul.f32 %v10322_v34, %v13353_v20  ;;  %10341 = vpow2.f32 %v5090_v33  ;;  %v13356_v34 = vld [vmem:[#allocation46_spill] sm:$0xff]  ;;  %v13357_v33 = vld [vmem:[#allocation49_spill] sm:$0xff] }
 0x286   : > { %5326 = vadd.xlane.f32.xlu1 %v5325_v54  ;;  %v10326_v50 = vpop.eup %10325  ;;  %v10147_v54 = vld [vmem:[%s10959_s26 + $0x310] sm:$0xff]   ;;  %10343 = vpow2.f32 %v5092_v56  ;;  %v13358_v56 = vld [vmem:[#allocation40_spill] sm:$0xff] }
 0x287   : > { %v12409_v46 = vpop.xlane.xlu1 %4816  ;;  %v5527_v62 = vmul.f32 %v10326_v50, %v13354_v37  ;;  %v5334_v37 = vsel %vm4565_vm2, %v12405_v24, 0.0  ;;  %v5096_v50 = vmul.f32 1.442695, %v4927_v47  ;;  %v4929_v11 = vsub.f32 %v13358_v56, %v12317_v17 }
 0x288   : > { %v10328_v35 = vpop.eup %10327  ;;  %5329 = vadd.xlane.f32.xlu0 %v5328_v18 }
 0x289   : > { %v12415_v57 = vpop.eup %10329  ;;  %v5156_v48 = vpop.xlane.xlu0 %5155  ;;  %v5622_v58 = vpack.c.bf16 %v5527_v62, %v5526_v44  ;;  %v5528_v18 = vmul.f32 %v10328_v35, %v13356_v34  ;;  %v5098_v35 = vmul.f32 1.442695, %v4928_v16  ;;  %v13364_v34 = vld [vmem:[#allocation44_spill] sm:$0xff] }
 0x28a   : > { %v10332_v36 = vpop.eup %10331  ;;  %5332 = vadd.xlane.f32.xlu1 %v5331_v4  ;;  %10345 = vrcp.f32 %v5156_v48  ;;  %v5337_v44 = vsel %vm4565_vm2, %v12415_v57, 0.0 }
 0x28b   : > { %v5529_v20 = vmul.f32 %v10332_v36, %v13357_v33  ;;  %v5159_v28 = vpop.xlane.xlu1 %5158  ;;  %v12426_v22 = vpop.eup %10333  ;;  %10347 = vpow2.f32 %v5094_v51  ;;  %9734 = vmatmul.mubr.msk.bf16.vlgmr.msra.gmra.mrb[96].mxu0 %vm4565_vm2, %v5622_v58  ;;  %v13359_v51 = vld [vmem:[#allocation41_spill] sm:$0xff]  ;;  %v13361_v36 = vld [vmem:[#allocation43_spill] sm:$0xff] }
 0x28c   : > { %5335 = vadd.xlane.f32.xlu0 %v5334_v37  ;;  %10349 = vrcp.f32 %v5159_v28  ;;  %9744 = vmatpush3.bf16.msra.mxu0 %v10147_v54  ;;  %v12436_v47 = vpop.eup %10335  ;;  %v4930_v17 = vsub.f32 %v13359_v51, %v12327_v31  ;;  %v5340_v48 = vsel %vm4565_vm2, %v12426_v22, 0.0  ;;  %v5100_v54 = vmul.f32 1.442695, %v4929_v11  ;;  %v13362_v31 = vld [vmem:[#allocation42_spill] sm:$0xff] }
 0x28d   : > { %v5162_v62 = vpop.xlane.xlu0 %5161  ;;  %v5623_v49 = vpack.c.bf16 %v5529_v20, %v5528_v18  ;;  %9745 = vmatprep.mubr.msk.bf16.mxu0 %vm10608_vm0, %v13282_v30  ;;  %9755 = vmatprep.subr.bf16.mxu0 %v13282_v30  ;;  %v12444_v4 = vpop.eup %10337  ;;  %v4931_v16 = vsub.f32 %v13361_v36, %v12335_v41  ;;  %v4932_v58 = vsub.f32 %v13362_v31, %v12343_v19 }
 0x28e   : > { %10351 = vrcp.f32 %v5162_v62  ;;  %5338 = vadd.xlane.f32.xlu1 %v5337_v44  ;;  %13360 = vst [vmem:[#allocation36_spill] sm:$0xff] %v12444_v4  ;;  %v12457_v11 = vpop.eup %10339  ;;  %v5102_v41 = vmul.f32 1.442695, %v4930_v17  ;;  %v4933_v18 = vsub.f32 %v13364_v34, %v12351_v1  ;;  %v5346_v20 = vsel %vm4565_vm2, %v12444_v4, 0.0  ;;  %v13367_v62 = vld [vmem:[#allocation48_spill] sm:$0xff] }
 0x28f   : > { %10353 = vpow2.f32 %v5096_v50  ;;  %9740 = vmatmul.mubr.msk.bf16.vlgmr.msra.gmra.mrb[96].mxu1 %vm4565_vm2, %v5623_v49  ;;  %v5165_v28 = vpop.xlane.xlu1 %5164  ;;  %v5343_v50 = vsel %vm4565_vm2, %v12436_v47, 0.0  ;;  %13363 = vst [vmem:[#allocation37_spill] sm:$0xff] %v12457_v11  ;;  %v12461_v33 = vpop.eup %10341  ;;  %v4934_v44 = vsub.f32 %v13367_v62, %v12383_v12  ;;  %v5349_v1 = vsel %vm4565_vm2, %v12457_v11, 0.0 }
 0x290   : > { %10355 = vrcp.f32 %v5165_v28  ;;  %5341 = vadd.xlane.f32.xlu0 %v5340_v48  ;;  %9750 = vmatpush3.bf16.msra.mxu1 %v10148_v8  ;;  %13365 = vst [vmem:[#allocation39_spill] sm:$0xff] %v12461_v33  ;;  %v12467_v56 = vpop.eup %10343  ;;  %v5104_v8 = vmul.f32 1.442695, %v4931_v16  ;;  %v5108_v28 = vmul.f32 1.442695, %v4933_v18  ;;  %v5352_v12 = vsel %vm4565_vm2, %v12461_v33, 0.0 }
 0x291   : > { %v12450_v37 = vpop.xlane.xlu0 %4819  ;;  %9751 = vmatprep.mubr.msk.bf16.mxu1 %vm10608_vm0, %v13282_v30  ;;  %9761 = vmatprep.subr.bf16.mxu1 %v13282_v30  ;;  %10357 = vpow2.f32 %v5098_v35  ;;  %13366 = vst [vmem:[#allocation45_spill] sm:$0xff] %v12467_v56  ;;  %v5106_v35 = vmul.f32 1.442695, %v4932_v58  ;;  %v5110_v58 = vmul.f32 1.442695, %v4934_v44  ;;  %v13371_v33 = vld [vmem:[#allocation51_spill] sm:$0xff] }
 0x292   : > { %5344 = vadd.xlane.f32.xlu1 %v5343_v50  ;;  %10359 = vpow2.f32 %v5100_v54  ;;  %v13368_v54 = vld [vmem:[#allocation50_spill] sm:$0xff]  ;;  %v13369_v50 = vld [vmem:[#allocation53_spill] sm:$0xff] }
 0x293   : > { %v12463_v19 = vpop.xlane.xlu1 %4822  ;;  %10361 = vpow2.f32 %v5102_v41  ;;  %v4935_v36 = vsub.f32 %v13368_v54, %v12393_v6  ;;  %v5355_v6 = vsel %vm4565_vm2, %v12467_v56, 0.0 }
 0x294   : > { %5347 = vadd.xlane.f32.xlu0 %v5346_v20  ;;  %v10346_v49 = vpop.eup %10345  ;;  %10363 = vpow2.f32 %v5104_v8  ;;  %v13370_v20 = vld [vmem:[#allocation54_spill] sm:$0xff]  ;;  %v4936_v8 = vsub.f32 %v13371_v33, %v12401_v27  ;;  %v10150_v27 = vld [vmem:[%s10959_s26 + $0x328] sm:$0xff]  }
 0x295   : > { %v12471_v51 = vpop.xlane.xlu0 %4825  ;;  %v12475_v17 = vpop.eup %10347  ;;  %v5530_v34 = vmul.f32 %v10346_v49, %v13369_v50  ;;  %10365 = vpow2.f32 %v5106_v35  ;;  %v13373_v35 = vld [vmem:[#allocation57_spill] sm:$0xff] }
 0x296   : > { %5350 = vadd.xlane.f32.xlu1 %v5349_v1  ;;  %v10350_v48 = vpop.eup %10349  ;;  %v10149_v1 = vld [vmem:[%s10959_s26 + $0x320] sm:$0xff]   ;;  %10367 = vpow2.f32 %v5108_v28  ;;  %v5358_v49 = vsel %vm4565_vm2, %v12475_v17, 0.0  ;;  %v13374_v28 = vld [vmem:[#allocation52_spill] sm:$0xff] }
 0x297   : > { %v12479_v16 = vpop.xlane.xlu1 %4828  ;;  %v5531_v62 = vmul.f32 %v10350_v48, %v13370_v20  ;;  %v5112_v48 = vmul.f32 1.442695, %v4935_v36  ;;  %v4937_v4 = vsub.f32 %v13374_v28, %v12409_v46 }
 0x298   : > { %v10352_v31 = vpop.eup %10351  ;;  %5353 = vadd.xlane.f32.xlu0 %v5352_v12  ;;  %v13372_v12 = vld [vmem:[#allocation55_spill] sm:$0xff] }
 0x299   : > { %v12485_v41 = vpop.eup %10353  ;;  %v5168_v18 = vpop.xlane.xlu0 %5167  ;;  %v5624_v44 = vpack.c.bf16 %v5531_v62, %v5530_v34  ;;  %v5532_v50 = vmul.f32 %v10352_v31, %v13372_v12  ;;  %v13375_v62 = vld [vmem:[#allocation56_spill] sm:$0xff] }
 0x29a   : > { %v10356_v54 = vpop.eup %10355  ;;  %5356 = vadd.xlane.f32.xlu1 %v5355_v6  ;;  %10369 = vrcp.f32 %v5168_v18  ;;  %v5361_v36 = vsel %vm4565_vm2, %v12485_v41, 0.0  ;;  %v4938_v46 = vsub.f32 %v13375_v62, %v12450_v37  ;;  %v13377_v37 = vld [vmem:[#allocation59_spill] sm:$0xff] }
 0x29b   : > { %v5533_v20 = vmul.f32 %v10356_v54, %v13373_v35  ;;  %v5171_v11 = vpop.xlane.xlu1 %5170  ;;  %v12496_v56 = vpop.eup %10357  ;;  %10371 = vpow2.f32 %v5110_v58  ;;  %9746 = vmatmul.mubr.msk.bf16.vlgmr.msra.gmra.mrb[100].mxu0 %vm4565_vm2, %v5624_v44  ;;  %v5114_v58 = vmul.f32 1.442695, %v4936_v8  ;;  %v13376_v54 = vld [vmem:[#allocation58_spill] sm:$0xff]  ;;  %v4940_v44 = vsub.f32 %v13377_v37, %v12471_v51 }
 0x29c   : > { %5359 = vadd.xlane.f32.xlu0 %v5358_v49  ;;  %10373 = vrcp.f32 %v5171_v11  ;;  %9756 = vmatpush3.bf16.msra.mxu0 %v10149_v1  ;;  %v12506_v34 = vpop.eup %10359  ;;  %v5364_v18 = vsel %vm4565_vm2, %v12496_v56, 0.0  ;;  %v5116_v1 = vmul.f32 1.442695, %v4937_v4  ;;  %v4939_v8 = vsub.f32 %v13376_v54, %v12463_v19  ;;  %v13378_v19 = vld [vmem:[#allocation60_spill] sm:$0xff] }
 0x29d   : > { %v5174_v33 = vpop.xlane.xlu0 %5173  ;;  %v5625_v31 = vpack.c.bf16 %v5533_v20, %v5532_v50  ;;  %9757 = vmatprep.mubr.msk.bf16.mxu0 %vm10608_vm0, %v13282_v30  ;;  %9767 = vmatprep.subr.bf16.mxu0 %v13282_v30  ;;  %v12514_v6 = vpop.eup %10361  ;;  %v5118_v4 = vmul.f32 1.442695, %v4938_v46  ;;  %v4941_v50 = vsub.f32 %v13378_v19, %v12479_v16 }
 0x29e   : > { %10375 = vrcp.f32 %v5174_v33  ;;  %5362 = vadd.xlane.f32.xlu1 %v5361_v36  ;;  %v12525_v12 = vpop.eup %10363  ;;  %v5370_v20 = vsel %vm4565_vm2, %v12514_v6, 0.0 }
 0x29f   : > { %10377 = vpow2.f32 %v5112_v48  ;;  %9752 = vmatmul.mubr.msk.bf16.vlgmr.msra.gmra.mrb[100].mxu1 %vm4565_vm2, %v5625_v31  ;;  %v5177_v11 = vpop.xlane.xlu1 %5176  ;;  %v5367_v48 = vsel %vm4565_vm2, %v12506_v34, 0.0  ;;  %v12529_v35 = vpop.eup %10365  ;;  %v5122_v31 = vmul.f32 1.442695, %v4940_v44  ;;  %v5373_v16 = vsel %vm4565_vm2, %v12525_v12, 0.0 }
 0x2a0   : > { %10379 = vrcp.f32 %v5177_v11  ;;  %5365 = vadd.xlane.f32.xlu0 %v5364_v18  ;;  %9762 = vmatpush3.bf16.msra.mxu1 %v10150_v27  ;;  %v12533_v28 = vpop.eup %10367  ;;  %v5120_v27 = vmul.f32 1.442695, %v4939_v8  ;;  %v5124_v46 = vmul.f32 1.442695, %v4941_v50  ;;  %v13379_v8 = vld [vmem:[#allocation61_spill] sm:$0xff] }
 0x2a1   : > { %v4832_v49 = vpop.xlane.xlu0 %4831  ;;  %9763 = vmatprep.mubr.msk.bf16.mxu1 %vm10608_vm0, %v13282_v30  ;;  %9773 = vmatprep.subr.bf16.mxu1 %v13282_v30  ;;  %10381 = vpow2.f32 %v5114_v58  ;;  %v5379_v19 = vsel %vm4565_vm2, %v12533_v28, 0.0 }
 0x2a2   : > { %5368 = vadd.xlane.f32.xlu1 %v5367_v48  ;;  %10383 = vpow2.f32 %v5116_v1  ;;  %v4942_v33 = vsub.f32 %v11919_v60, %v4832_v49  ;;  %v5376_v60 = vsel %vm4565_vm2, %v12529_v35, 0.0 }
 0x2a3   : > { %v4835_v51 = vpop.xlane.xlu1 %4834  ;;  %10385 = vpow2.f32 %v5118_v4 }
 0x2a4   : > { %5371 = vadd.xlane.f32.xlu0 %v5370_v20  ;;  %v10370_v36 = vpop.eup %10369  ;;  %v4943_v18 = vsub.f32 %v11934_v52, %v4835_v51  ;;  %10387 = vpow2.f32 %v5120_v27  ;;  %v5126_v49 = vmul.f32 1.442695, %v4942_v33  ;;  %v10151_v52 = vld [vmem:[%s10959_s26 + $0x330] sm:$0xff]  }
 0x2a5   : > { %v4838_v58 = vpop.xlane.xlu0 %4837  ;;  %v12538_v62 = vpop.eup %10371  ;;  %v5534_v37 = vmul.f32 %v10370_v36, %v13379_v8  ;;  %10389 = vpow2.f32 %v5122_v31 }
 0x2a6   : > { %5374 = vadd.xlane.f32.xlu1 %v5373_v16  ;;  %v10374_v11 = vpop.eup %10373  ;;  %10391 = vpow2.f32 %v5124_v46  ;;  %v4944_v51 = vsub.f32 %v11937_v7, %v4838_v58  ;;  %v5128_v36 = vmul.f32 1.442695, %v4943_v18  ;;  %v10152_v7 = vld [vmem:[%s10959_s26 + $0x338] sm:$0xff]  }
 0x2a7   : > { %v4841_v1 = vpop.xlane.xlu1 %4840  ;;  %v5535_v44 = vmul.f32 %v10374_v11, %v11903_v55  ;;  %v5382_v55 = vsel %vm4565_vm2, %v12538_v62, 0.0  ;;  %v13380_v11 = vld [vmem:[#allocation62_spill] sm:$0xff] }
 0x2a8   : > { %v10376_v54 = vpop.eup %10375  ;;  %5377 = vadd.xlane.f32.xlu0 %v5376_v60  ;;  %v4945_v60 = vsub.f32 %v13380_v11, %v4841_v1  ;;  %v5130_v18 = vmul.f32 1.442695, %v4944_v51 }
 0x2a9   : > { %v12545_v48 = vpop.eup %10377  ;;  %v5180_v4 = vpop.xlane.xlu0 %5179  ;;  %v5626_v20 = vpack.c.bf16 %v5535_v44, %v5534_v37  ;;  %v5536_v27 = vmul.f32 %v10376_v54, %v11913_v13 }
 0x2aa   : > { %v10380_v50 = vpop.eup %10379  ;;  %5380 = vadd.xlane.f32.xlu1 %v5379_v19  ;;  %10393 = vrcp.f32 %v5180_v4  ;;  %v5385_v46 = vsel %vm4565_vm2, %v12545_v48, 0.0  ;;  %v5132_v37 = vmul.f32 1.442695, %v4945_v60 }
 0x2ab   : > { %v5537_v33 = vmul.f32 %v10380_v50, %v11926_v43  ;;  %v5183_v31 = vpop.xlane.xlu1 %5182  ;;  %v12555_v16 = vpop.eup %10381  ;;  %10395 = vpow2.f32 %v5126_v49  ;;  %9758 = vmatmul.mubr.msk.bf16.vlgmr.msra.gmra.mrb[104].mxu0 %vm4565_vm2, %v5626_v20 }
 0x2ac   : > { %5383 = vadd.xlane.f32.xlu0 %v5382_v55  ;;  %10397 = vrcp.f32 %v5183_v31  ;;  %9768 = vmatpush3.bf16.msra.mxu0 %v10151_v52  ;;  %v12564_v43 = vpop.eup %10383  ;;  %v5388_v54 = vsel %vm4565_vm2, %v12555_v16, 0.0 }
 0x2ad   : > { %v5186_v58 = vpop.xlane.xlu0 %5185  ;;  %v5627_v13 = vpack.c.bf16 %v5537_v33, %v5536_v27  ;;  %9769 = vmatprep.mubr.msk.bf16.mxu0 %vm10608_vm0, %v13282_v30  ;;  %9779 = vmatprep.subr.bf16.mxu0 %v13282_v30  ;;  %v12570_v8 = vpop.eup %10385  ;;  %v5391_v49 = vsel %vm4565_vm2, %v12564_v43, 0.0 }
 0x2ae   : > { %10399 = vrcp.f32 %v5186_v58  ;;  %5386 = vadd.xlane.f32.xlu1 %v5385_v46  ;;  %v12577_v4 = vpop.eup %10387  ;;  %v5394_v51 = vsel %vm4565_vm2, %v12570_v8, 0.0 }
 0x2af   : > { %10401 = vpow2.f32 %v5128_v36  ;;  %9764 = vmatmul.mubr.msk.bf16.vlgmr.msra.gmra.mrb[104].mxu1 %vm4565_vm2, %v5627_v13  ;;  %v5189_v1 = vpop.xlane.xlu1 %5188  ;;  %v12580_v52 = vpop.eup %10389  ;;  %v5397_v31 = vsel %vm4565_vm2, %v12577_v4, 0.0 }
 0x2b0   : > { %10403 = vrcp.f32 %v5189_v1  ;;  %5389 = vadd.xlane.f32.xlu0 %v5388_v54  ;;  %9774 = vmatpush3.bf16.msra.mxu1 %v10152_v7  ;;  %v12584_v20 = vpop.eup %10391 }
 0x2b1   : > { %v4844_v44 = vpop.xlane.xlu0 %4843  ;;  %9775 = vmatprep.mubr.msk.bf16.mxu1 %vm10608_vm0, %v13282_v30  ;;  %9785 = vmatprep.subr.bf16.mxu1 %v13282_v30  ;;  %10405 = vpow2.f32 %v5130_v18 }
 0x2b2   : > { %v4946_v19 = vsub.f32 %v11984_v21, %v4844_v44  ;;  %5392 = vadd.xlane.f32.xlu1 %v5391_v49  ;;  %10407 = vpow2.f32 %v5132_v37 }
 0x2b3   : > { %v4847_v50 = vpop.xlane.xlu1 %4846 }
 0x2b4   : > { %v5134_v55 = vmul.f32 1.442695, %v4946_v19  ;;  %v4947_v27 = vsub.f32 %v12002_v61, %v4847_v50  ;;  %5395 = vadd.xlane.f32.xlu0 %v5394_v51  ;;  %v10394_v33 = vpop.eup %10393  ;;  %v5400_v61 = vsel %vm4565_vm2, %v12580_v52, 0.0 }
 0x2b5   : > { %v4850_v36 = vpop.xlane.xlu0 %4849  ;;  %v12589_v21 = vpop.eup %10395  ;;  %v5538_v58 = vmul.f32 %v10394_v33, %v11961_v0  ;;  %v10153_v0 = vld [vmem:[%s10959_s26 + $0x340] sm:$0xff]   ;;  %v10154_v33 = vld [vmem:[%s10959_s26 + $0x348] sm:$0xff]  }
 0x2b6   : > { %10409 = vpow2.f32 %v5134_v55  ;;  %v5136_v11 = vmul.f32 1.442695, %v4947_v27  ;;  %v4948_v60 = vsub.f32 %v12005_v10, %v4850_v36  ;;  %5398 = vadd.xlane.f32.xlu1 %v5397_v31  ;;  %v10398_v7 = vpop.eup %10397  ;;  %v5403_v10 = vsel %vm4565_vm2, %v12584_v20, 0.0 }
 0x2b7   : > { %v4853_v46 = vpop.xlane.xlu1 %4852  ;;  %v5539_v18 = vmul.f32 %v10398_v7, %v11970_v15  ;;  %v5406_v55 = vsel %vm4565_vm2, %v12589_v21, 0.0 }
 0x2b8   : > { %v10400_v13 = vpop.eup %10399  ;;  %10411 = vpow2.f32 %v5136_v11  ;;  %v5138_v1 = vmul.f32 1.442695, %v4948_v60  ;;  %v4949_v54 = vsub.f32 %v12021_v3, %v4853_v46  ;;  %5401 = vadd.xlane.f32.xlu0 %v5400_v61 }
 0x2b9   : > { %v12597_v37 = vpop.eup %10401  ;;  %v5192_v44 = vpop.xlane.xlu0 %5191  ;;  %v5628_v50 = vpack.c.bf16 %v5539_v18, %v5538_v58  ;;  %v5540_v15 = vmul.f32 %v10400_v13, %v11978_v40 }
 0x2ba   : > { %v10404_v49 = vpop.eup %10403  ;;  %10413 = vpow2.f32 %v5138_v1  ;;  %v5140_v19 = vmul.f32 1.442695, %v4949_v54  ;;  %5404 = vadd.xlane.f32.xlu1 %v5403_v10  ;;  %v5409_v31 = vsel %vm4565_vm2, %v12597_v37, 0.0 }
 0x2bb   : > { %v5541_v51 = vmul.f32 %v10404_v49, %v11991_v29  ;;  %10415 = vrcp.f32 %v5192_v44  ;;  %v5195_v3 = vpop.xlane.xlu1 %5194  ;;  %v12606_v27 = vpop.eup %10405  ;;  %9770 = vmatmul.mubr.msk.bf16.vlgmr.msra.gmra.mrb[108].mxu0 %vm4565_vm2, %v5628_v50 }
 0x2bc   : > { %10417 = vpow2.f32 %v5140_v19  ;;  %5407 = vadd.xlane.f32.xlu0 %v5406_v55  ;;  %9780 = vmatpush3.bf16.msra.mxu0 %v10153_v0  ;;  %v12614_v29 = vpop.eup %10407  ;;  %v5412_v60 = vsel %vm4565_vm2, %v12606_v27, 0.0 }
 0x2bd   : > { %10419 = vrcp.f32 %v5195_v3  ;;  %v5198_v36 = vpop.xlane.xlu0 %5197  ;;  %v5629_v40 = vpack.c.bf16 %v5541_v51, %v5540_v15  ;;  %9781 = vmatprep.mubr.msk.bf16.mxu0 %vm10608_vm0, %v13282_v30  ;;  %9791 = vmatprep.subr.bf16.mxu0 %v13282_v30  ;;  %v5415_v46 = vsel %vm4565_vm2, %v12614_v29, 0.0 }
 0x2be   : > { %10421 = vrcp.f32 %v5198_v36  ;;  %5410 = vadd.xlane.f32.xlu1 %v5409_v31  ;;  %v10155_v36 = vld [vmem:[%s10959_s26 + $0x350] sm:$0xff]  }
 0x2bf   : > { %9776 = vmatmul.mubr.msk.bf16.vlgmr.msra.gmra.mrb[108].mxu1 %vm4565_vm2, %v5629_v40  ;;  %v5201_v11 = vpop.xlane.xlu1 %5200 }
 0x2c0   : > { %v12620_v7 = vpop.eup %10409  ;;  %10423 = vrcp.f32 %v5201_v11  ;;  %5413 = vadd.xlane.f32.xlu0 %v5412_v60  ;;  %9786 = vmatpush3.bf16.msra.mxu1 %v10154_v33 }
 0x2c1   : > { %v5204_v58 = vpop.xlane.xlu0 %5203  ;;  %9787 = vmatprep.mubr.msk.bf16.mxu1 %vm10608_vm0, %v13282_v30  ;;  %9797 = vmatprep.subr.bf16.mxu1 %v13282_v30  ;;  %v5418_v18 = vsel %vm4565_vm2, %v12620_v7, 0.0 }
 0x2c2   : > { %v12627_v61 = vpop.eup %10411  ;;  %10425 = vrcp.f32 %v5204_v58  ;;  %5416 = vadd.xlane.f32.xlu1 %v5415_v46 }
 0x2c3   : > { %v5207_v13 = vpop.xlane.xlu1 %5206  ;;  %v5421_v10 = vsel %vm4565_vm2, %v12627_v61, 0.0 }
 0x2c4   : > { %v12631_v1 = vpop.eup %10413  ;;  %10427 = vrcp.f32 %v5207_v13  ;;  %5419 = vadd.xlane.f32.xlu0 %v5418_v18 }
 0x2c5   : > { %v10416_v54 = vpop.eup %10415  ;;  %v5210_v44 = vpop.xlane.xlu0 %5209  ;;  %v5424_v50 = vsel %vm4565_vm2, %v12631_v1, 0.0 }
 0x2c6   : > { %v12635_v0 = vpop.eup %10417  ;;  %10429 = vrcp.f32 %v5210_v44  ;;  %5422 = vadd.xlane.f32.xlu1 %v5421_v10  ;;  %v5542_v51 = vmul.f32 %v10416_v54, %v12033_v63 }
 0x2c7   : > { %v10420_v49 = vpop.eup %10419  ;;  %v5213_v19 = vpop.xlane.xlu1 %5212  ;;  %v5427_v33 = vsel %vm4565_vm2, %v12635_v0, 0.0 }
 0x2c8   : > { %v10422_v15 = vpop.eup %10421  ;;  %v5543_v3 = vmul.f32 %v10420_v49, %v12041_v14  ;;  %10431 = vrcp.f32 %v5213_v19  ;;  %5425 = vadd.xlane.f32.xlu0 %v5424_v50  ;;  %v10156_v14 = vld [vmem:[%s10959_s26 + $0x358] sm:$0xff]   ;;  %v10157_v19 = vld [vmem:[%s10959_s26 + $0x360] sm:$0xff]  }
 0x2c9   : > { %v5216_v55 = vpop.xlane.xlu0 %5215  ;;  %v5544_v11 = vmul.f32 %v10422_v15, %v12049_v26 }
 0x2ca   : > { %v10424_v31 = vpop.eup %10423  ;;  %10433 = vrcp.f32 %v5216_v55  ;;  %5428 = vadd.xlane.f32.xlu1 %v5427_v33  ;;  %v5630_v40 = vpack.c.bf16 %v5543_v3, %v5542_v51  ;;  %v10158_v3 = vld [vmem:[%s10959_s26 + $0x368] sm:$0xff]  }
 0x2cb   : > { %v5545_v60 = vmul.f32 %v10424_v31, %v12057_v23  ;;  %v5219_v58 = vpop.xlane.xlu1 %5218 }
 0x2cc   : > { %v10426_v63 = vpop.eup %10425  ;;  %9782 = vmatmul.mubr.msk.bf16.vlgmr.msra.gmra.mrb[112].mxu0 %vm4565_vm2, %v5630_v40  ;;  %10435 = vrcp.f32 %v5219_v58  ;;  %v10159_v58 = vld [vmem:[%s10959_s26 + $0x370] sm:$0xff]  }
 0x2cd   : > { %v5222_v46 = vpop.xlane.xlu0 %5221  ;;  %v5631_v13 = vpack.c.bf16 %v5545_v60, %v5544_v11  ;;  %9792 = vmatpush3.bf16.msra.mxu0 %v10155_v36  ;;  %9793 = vmatprep.mubr.msk.bf16.mxu0 %vm10608_vm0, %v13282_v30  ;;  %v5546_v26 = vmul.f32 %v10426_v63, %v12065_v32 }
 0x2ce   : > { %v10428_v18 = vpop.eup %10427  ;;  %10437 = vrcp.f32 %v5222_v46  ;;  %9803 = vmatprep.subr.bf16.mxu0 %v13282_v30 }
 0x2cf   : > { %v5547_v23 = vmul.f32 %v10428_v18, %v12073_v59  ;;  %9788 = vmatmul.mubr.msk.bf16.vlgmr.msra.gmra.mrb[112].mxu1 %vm4565_vm2, %v5631_v13  ;;  %v5225_v54 = vpop.xlane.xlu1 %5224  ;;  %v10160_v13 = vld [vmem:[%s10959_s26 + $0x378] sm:$0xff]  }
 0x2d0   : > { %v10430_v44 = vpop.eup %10429  ;;  %10439 = vrcp.f32 %v5225_v54  ;;  %9798 = vmatpush3.bf16.msra.mxu1 %v10156_v14  ;;  %9799 = vmatprep.mubr.msk.bf16.mxu1 %vm10608_vm0, %v13282_v30 }
 0x2d1   : > { %v5228_v10 = vpop.xlane.xlu0 %5227  ;;  %v5632_v49 = vpack.c.bf16 %v5547_v23, %v5546_v26  ;;  %9809 = vmatprep.subr.bf16.mxu1 %v13282_v30  ;;  %v5548_v32 = vmul.f32 %v10430_v44, %v12081_v5 }
 0x2d2   : > { %v10432_v50 = vpop.eup %10431  ;;  %10441 = vrcp.f32 %v5228_v10 }
 0x2d3   : > { %v5549_v59 = vmul.f32 %v10432_v50, %v12089_v2  ;;  %v5231_v15 = vpop.xlane.xlu1 %5230 }
 0x2d4   : > { %v10434_v51 = vpop.eup %10433  ;;  %9794 = vmatmul.mubr.msk.bf16.vlgmr.msra.gmra.mrb[116].mxu0 %vm4565_vm2, %v5632_v49  ;;  %10443 = vrcp.f32 %v5231_v15 }
 0x2d5   : > { %v5234_v55 = vpop.xlane.xlu0 %5233  ;;  %v5633_v33 = vpack.c.bf16 %v5549_v59, %v5548_v32  ;;  %9804 = vmatpush3.bf16.msra.mxu0 %v10157_v19  ;;  %9805 = vmatprep.mubr.msk.bf16.mxu0 %vm10608_vm0, %v13282_v30  ;;  %v5550_v5 = vmul.f32 %v10434_v51, %v12097_v9  ;;  %v10161_v19 = vld [vmem:[%s10959_s26 + $0x380] sm:$0xff]   ;;  %v10162_v51 = vld [vmem:[%s10959_s26 + $0x388] sm:$0xff]  }
 0x2d6   : > { %v10436_v36 = vpop.eup %10435  ;;  %10445 = vrcp.f32 %v5234_v55  ;;  %9815 = vmatprep.subr.bf16.mxu0 %v13282_v30 }
 0x2d7   : > { %v5551_v2 = vmul.f32 %v10436_v36, %v12105_v38  ;;  %9800 = vmatmul.mubr.msk.bf16.vlgmr.msra.gmra.mrb[116].mxu1 %vm4565_vm2, %v5633_v33  ;;  %v5237_v31 = vpop.xlane.xlu1 %5236 }
 0x2d8   : > { %v10438_v40 = vpop.eup %10437  ;;  %10447 = vrcp.f32 %v5237_v31  ;;  %9810 = vmatpush3.bf16.msra.mxu1 %v10158_v3  ;;  %9811 = vmatprep.mubr.msk.bf16.mxu1 %vm10608_vm0, %v13282_v30 }
 0x2d9   : > { %v5240_v11 = vpop.xlane.xlu0 %5239  ;;  %v5634_v60 = vpack.c.bf16 %v5551_v2, %v5550_v5  ;;  %9821 = vmatprep.subr.bf16.mxu1 %v13282_v30  ;;  %v5552_v9 = vmul.f32 %v10438_v40, %v12113_v45  ;;  %v13383_v5 = vld [vmem:[#allocation5_spill] sm:$0xff] }
 0x2da   : > { %v10440_v63 = vpop.eup %10439  ;;  %10449 = vrcp.f32 %v5240_v11 }
 0x2db   : > { %v5553_v38 = vmul.f32 %v10440_v63, %v12121_v42  ;;  %v5243_v14 = vpop.xlane.xlu1 %5242 }
 0x2dc   : > { %v10442_v46 = vpop.eup %10441  ;;  %9806 = vmatmul.mubr.msk.bf16.vlgmr.msra.gmra.mrb[120].mxu0 %vm4565_vm2, %v5634_v60  ;;  %10451 = vrcp.f32 %v5243_v14  ;;  %v13385_v14 = vld [vmem:[#allocation6_spill] sm:$0xff] }
 0x2dd   : > { %v5246_v18 = vpop.xlane.xlu0 %5245  ;;  %v5635_v26 = vpack.c.bf16 %v5553_v38, %v5552_v9  ;;  %9816 = vmatpush3.bf16.msra.mxu0 %v10159_v58  ;;  %9817 = vmatprep.mubr.msk.bf16.mxu0 %vm10608_vm0, %v13282_v30  ;;  %v5554_v45 = vmul.f32 %v10442_v46, %v12129_v53  ;;  %v10163_v58 = vld [vmem:[%s10959_s26 + $0x390] sm:$0xff]   ;;  %v13384_v9 = vld [vmem:[#allocation7_spill] sm:$0xff] }
 0x2de   : > { %v10444_v23 = vpop.eup %10443  ;;  %10453 = vrcp.f32 %v5246_v18  ;;  %9827 = vmatprep.subr.bf16.mxu0 %v13282_v30 }
 0x2df   : > { %v5555_v42 = vmul.f32 %v10444_v23, %v12137_v25  ;;  %9812 = vmatmul.mubr.msk.bf16.vlgmr.msra.gmra.mrb[120].mxu1 %vm4565_vm2, %v5635_v26  ;;  %v5249_v54 = vpop.xlane.xlu1 %5248  ;;  %v13381_v25 = vld [vmem:[#allocation3_spill] sm:$0xff]  ;;  %v10164_v26 = vld [vmem:[%s10959_s26 + $0x398] sm:$0xff]  }
 0x2e0   : > { %v10446_v44 = vpop.eup %10445  ;;  %10455 = vrcp.f32 %v5249_v54  ;;  %9822 = vmatpush3.bf16.msra.mxu1 %v10160_v13  ;;  %9823 = vmatprep.mubr.msk.bf16.mxu1 %vm10608_vm0, %v13282_v30  ;;  %v13386_v54 = vld [vmem:[#allocation8_spill] sm:$0xff] }
 0x2e1   : > { %v5252_v10 = vpop.xlane.xlu0 %5251  ;;  %v5636_v49 = vpack.c.bf16 %v5555_v42, %v5554_v45  ;;  %9833 = vmatprep.subr.bf16.mxu1 %v13282_v30  ;;  %v5556_v53 = vmul.f32 %v10446_v44, %v12145_v39  ;;  %v13382_v39 = vld [vmem:[#allocation4_spill] sm:$0xff] }
 0x2e2   : > { %v10448_v50 = vpop.eup %10447  ;;  %10457 = vrcp.f32 %v5252_v10  ;;  %v13387_v10 = vld [vmem:[#allocation9_spill] sm:$0xff] }
 0x2e3   : > { %v5557_v32 = vmul.f32 %v10448_v50, %v13381_v25  ;;  %v5255_v59 = vpop.xlane.xlu1 %5254 }
 0x2e4   : > { %v10450_v15 = vpop.eup %10449  ;;  %9818 = vmatmul.mubr.msk.bf16.vlgmr.msra.gmra.mrb[124].mxu0 %vm4565_vm2, %v5636_v49  ;;  %10459 = vrcp.f32 %v5255_v59 }
 0x2e5   : > { %v5258_v3 = vpop.xlane.xlu0 %5257  ;;  %v5637_v55 = vpack.c.bf16 %v5557_v32, %v5556_v53  ;;  %9828 = vmatpush3.bf16.msra.mxu0 %v10161_v19  ;;  %9829 = vmatprep.mubr.msk.bf16.mxu0 %vm10608_vm0, %v13282_v30  ;;  %v5558_v36 = vmul.f32 %v10450_v15, %v13382_v39  ;;  %v10165_v32 = vld [vmem:[%s10959_s26 + $0x3a0] sm:$0xff]  }
 0x2e6   : > { %v10452_v33 = vpop.eup %10451  ;;  %10461 = vrcp.f32 %v5258_v3  ;;  %9839 = vmatprep.subr.bf16.mxu0 %v13282_v30  ;;  %v13388_v15 = vld [vmem:[#allocation11_spill] sm:$0xff]  ;;  %v13389_v3 = vld [vmem:[#allocation10_spill] sm:$0xff] }
 0x2e7   : > { %v5559_v2 = vmul.f32 %v10452_v33, %v13383_v5  ;;  %9824 = vmatmul.mubr.msk.bf16.vlgmr.msra.gmra.mrb[124].mxu1 %vm4565_vm2, %v5637_v55  ;;  %v5261_v31 = vpop.xlane.xlu1 %5260 }
 0x2e8   : > { %v10454_v40 = vpop.eup %10453  ;;  %10463 = vrcp.f32 %v5261_v31  ;;  %9834 = vmatpush3.bf16.msra.mxu1 %v10162_v51  ;;  %9835 = vmatprep.mubr.msk.bf16.mxu1 %vm10608_vm0, %v13282_v30 }
 0x2e9   : > { %v5264_v11 = vpop.xlane.xlu0 %5263  ;;  %v5638_v60 = vpack.c.bf16 %v5559_v2, %v5558_v36  ;;  %9845 = vmatprep.subr.bf16.mxu1 %v13282_v30  ;;  %v5560_v38 = vmul.f32 %v10454_v40, %v13384_v9  ;;  %v10166_v36 = vld [vmem:[%s10959_s26 + $0x3a8] sm:$0xff]  }
 0x2ea   : > { %v10456_v63 = vpop.eup %10455  ;;  %10465 = vrcp.f32 %v5264_v11  ;;  %v13390_v40 = vld [vmem:[#allocation12_spill] sm:$0xff] }
 0x2eb   : > { %v5561_v46 = vmul.f32 %v10456_v63, %v13385_v14  ;;  %v5267_v13 = vpop.xlane.xlu1 %5266 }
 0x2ec   : > { %v10458_v18 = vpop.eup %10457  ;;  %9830 = vmatmul.mubr.msk.bf16.vlgmr.msra.gmra.mrb[128].mxu0 %vm4565_vm2, %v5638_v60  ;;  %10467 = vrcp.f32 %v5267_v13  ;;  %v13391_v60 = vld [vmem:[#allocation13_spill] sm:$0xff] }
 0x2ed   : > { %v5270_v23 = vpop.xlane.xlu0 %5269  ;;  %v5639_v45 = vpack.c.bf16 %v5561_v46, %v5560_v38  ;;  %9840 = vmatpush3.bf16.msra.mxu0 %v10163_v58  ;;  %9841 = vmatprep.mubr.msk.bf16.mxu0 %vm10608_vm0, %v13282_v30  ;;  %v5562_v44 = vmul.f32 %v10458_v18, %v13386_v54  ;;  %v10167_v46 = vld [vmem:[%s10959_s26 + $0x3b0] sm:$0xff]   ;;  %v13392_v18 = vld [vmem:[#allocation15_spill] sm:$0xff] }
 0x2ee   : > { %v10460_v42 = vpop.eup %10459  ;;  %10469 = vrcp.f32 %v5270_v23  ;;  %9851 = vmatprep.subr.bf16.mxu0 %v13282_v30  ;;  %v13393_v23 = vld [vmem:[#allocation14_spill] sm:$0xff] }
 0x2ef   : > { %v5563_v49 = vmul.f32 %v10460_v42, %v13387_v10  ;;  %9836 = vmatmul.mubr.msk.bf16.vlgmr.msra.gmra.mrb[128].mxu1 %vm4565_vm2, %v5639_v45  ;;  %v5273_v19 = vpop.xlane.xlu1 %5272 }
 0x2f0   : > { %v10462_v50 = vpop.eup %10461  ;;  %10471 = vrcp.f32 %v5273_v19  ;;  %9846 = vmatpush3.bf16.msra.mxu1 %v10164_v26  ;;  %9847 = vmatprep.mubr.msk.bf16.mxu1 %vm10608_vm0, %v13282_v30 }
 0x2f1   : > { %v5276_v53 = vpop.xlane.xlu0 %5275  ;;  %v5640_v25 = vpack.c.bf16 %v5563_v49, %v5562_v44  ;;  %9857 = vmatprep.subr.bf16.mxu1 %v13282_v30  ;;  %v5564_v51 = vmul.f32 %v10462_v50, %v13388_v15  ;;  %v10168_v44 = vld [vmem:[%s10959_s26 + $0x3b8] sm:$0xff]   ;;  %v13394_v50 = vld [vmem:[#allocation16_spill] sm:$0xff] }
 0x2f2   : > { %v10464_v59 = vpop.eup %10463  ;;  %10473 = vrcp.f32 %v5276_v53 }
 0x2f3   : > { %v5565_v55 = vmul.f32 %v10464_v59, %v13389_v3  ;;  %v5279_v33 = vpop.xlane.xlu1 %5278 }
 0x2f4   : > { %v10466_v39 = vpop.eup %10465  ;;  %9842 = vmatmul.mubr.msk.bf16.vlgmr.msra.gmra.mrb[132].mxu0 %vm4565_vm2, %v5640_v25  ;;  %10475 = vrcp.f32 %v5279_v33  ;;  %v13395_v25 = vld [vmem:[#allocation17_spill] sm:$0xff] }
 0x2f5   : > { %v5282_v5 = vpop.xlane.xlu0 %5281  ;;  %v5641_v2 = vpack.c.bf16 %v5565_v55, %v5564_v51  ;;  %9852 = vmatpush3.bf16.msra.mxu0 %v10165_v32  ;;  %9853 = vmatprep.mubr.msk.bf16.mxu0 %vm10608_vm0, %v13282_v30  ;;  %v5566_v11 = vmul.f32 %v10466_v39, %v13390_v40  ;;  %v10169_v55 = vld [vmem:[%s10959_s26 + $0x3c0] sm:$0xff]  }
 0x2f6   : > { %v10468_v31 = vpop.eup %10467  ;;  %10477 = vrcp.f32 %v5282_v5  ;;  %9863 = vmatprep.subr.bf16.mxu0 %v13282_v30  ;;  %v13396_v39 = vld [vmem:[#allocation19_spill] sm:$0xff]  ;;  %v13397_v5 = vld [vmem:[#allocation18_spill] sm:$0xff] }
 0x2f7   : > { %v5567_v58 = vmul.f32 %v10468_v31, %v13391_v60  ;;  %9848 = vmatmul.mubr.msk.bf16.vlgmr.msra.gmra.mrb[132].mxu1 %vm4565_vm2, %v5641_v2  ;;  %v5285_v63 = vpop.xlane.xlu1 %5284 }
 0x2f8   : > { %v10470_v9 = vpop.eup %10469  ;;  %10479 = vrcp.f32 %v5285_v63  ;;  %9858 = vmatpush3.bf16.msra.mxu1 %v10166_v36  ;;  %9859 = vmatprep.mubr.msk.bf16.mxu1 %vm10608_vm0, %v13282_v30 }
 0x2f9   : > { %v5288_v38 = vpop.xlane.xlu0 %5287  ;;  %v5642_v14 = vpack.c.bf16 %v5567_v58, %v5566_v11  ;;  %9869 = vmatprep.subr.bf16.mxu1 %v13282_v30  ;;  %v5568_v26 = vmul.f32 %v10470_v9, %v13392_v18  ;;  %v10170_v11 = vld [vmem:[%s10959_s26 + $0x3c8] sm:$0xff]  }
 0x2fa   : > { %v10472_v13 = vpop.eup %10471  ;;  %10481 = vrcp.f32 %v5288_v38  ;;  %v13398_v9 = vld [vmem:[#allocation20_spill] sm:$0xff] }
 0x2fb   : > { %v5569_v45 = vmul.f32 %v10472_v13, %v13393_v23  ;;  %v5291_v42 = vpop.xlane.xlu1 %5290 }
 0x2fc   : > { %v10474_v54 = vpop.eup %10473  ;;  %9854 = vmatmul.mubr.msk.bf16.vlgmr.msra.gmra.mrb[136].mxu0 %vm4565_vm2, %v5642_v14  ;;  %10483 = vrcp.f32 %v5291_v42  ;;  %v13399_v14 = vld [vmem:[#allocation21_spill] sm:$0xff] }
 0x2fd   : > { %v5294_v10 = vpop.xlane.xlu0 %5293  ;;  %v5643_v49 = vpack.c.bf16 %v5569_v45, %v5568_v26  ;;  %9864 = vmatpush3.bf16.msra.mxu0 %v10167_v46  ;;  %9865 = vmatprep.mubr.msk.bf16.mxu0 %vm10608_vm0, %v13282_v30  ;;  %v5570_v53 = vmul.f32 %v10474_v54, %v13394_v50  ;;  %v10171_v45 = vld [vmem:[%s10959_s26 + $0x3d0] sm:$0xff]   ;;  %v13400_v54 = vld [vmem:[#allocation23_spill] sm:$0xff] }
 0x2fe   : > { %v10476_v19 = vpop.eup %10475  ;;  %10485 = vrcp.f32 %v5294_v10  ;;  %9875 = vmatprep.subr.bf16.mxu0 %v13282_v30  ;;  %v13401_v10 = vld [vmem:[#allocation22_spill] sm:$0xff] }
 0x2ff   : > { %v5571_v32 = vmul.f32 %v10476_v19, %v13395_v25  ;;  %9860 = vmatmul.mubr.msk.bf16.vlgmr.msra.gmra.mrb[136].mxu1 %vm4565_vm2, %v5643_v49  ;;  %v5297_v59 = vpop.xlane.xlu1 %5296 }
 0x300   : > { %v10478_v15 = vpop.eup %10477  ;;  %10487 = vrcp.f32 %v5297_v59  ;;  %9870 = vmatpush3.bf16.msra.mxu1 %v10168_v44  ;;  %9871 = vmatprep.mubr.msk.bf16.mxu1 %vm10608_vm0, %v13282_v30 }
 0x301   : > { %v5300_v51 = vpop.xlane.xlu0 %5299  ;;  %v5644_v3 = vpack.c.bf16 %v5571_v32, %v5570_v53  ;;  %9881 = vmatprep.subr.bf16.mxu1 %v13282_v30  ;;  %v5572_v36 = vmul.f32 %v10478_v15, %v13396_v39  ;;  %v10172_v53 = vld [vmem:[%s10959_s26 + $0x3d8] sm:$0xff]   ;;  %v13402_v15 = vld [vmem:[#allocation24_spill] sm:$0xff] }
 0x302   : > { %v10480_v33 = vpop.eup %10479  ;;  %10489 = vrcp.f32 %v5300_v51 }
 0x303   : > { %v5573_v2 = vmul.f32 %v10480_v33, %v13397_v5  ;;  %v5303_v31 = vpop.xlane.xlu1 %5302 }
 0x304   : > { %v10482_v40 = vpop.eup %10481  ;;  %9866 = vmatmul.mubr.msk.bf16.vlgmr.msra.gmra.mrb[140].mxu0 %vm4565_vm2, %v5644_v3  ;;  %10491 = vrcp.f32 %v5303_v31  ;;  %v13403_v3 = vld [vmem:[#allocation25_spill] sm:$0xff] }
 0x305   : > { %v5306_v60 = vpop.xlane.xlu0 %5305  ;;  %v5645_v58 = vpack.c.bf16 %v5573_v2, %v5572_v36  ;;  %9876 = vmatpush3.bf16.msra.mxu0 %v10169_v55  ;;  %9877 = vmatprep.mubr.msk.bf16.mxu0 %vm10608_vm0, %v13282_v30  ;;  %v5574_v38 = vmul.f32 %v10482_v40, %v13398_v9  ;;  %v10173_v2 = vld [vmem:[%s10959_s26 + $0x3e0] sm:$0xff]  }
 0x306   : > { %v10484_v63 = vpop.eup %10483  ;;  %10493 = vrcp.f32 %v5306_v60  ;;  %9887 = vmatprep.subr.bf16.mxu0 %v13282_v30  ;;  %v13404_v40 = vld [vmem:[#allocation27_spill] sm:$0xff]  ;;  %v13405_v60 = vld [vmem:[#allocation26_spill] sm:$0xff] }
 0x307   : > { %v5575_v46 = vmul.f32 %v10484_v63, %v13399_v14  ;;  %9872 = vmatmul.mubr.msk.bf16.vlgmr.msra.gmra.mrb[140].mxu1 %vm4565_vm2, %v5645_v58  ;;  %v5309_v13 = vpop.xlane.xlu1 %5308 }
 0x308   : > { %v10486_v18 = vpop.eup %10485  ;;  %10495 = vrcp.f32 %v5309_v13  ;;  %9882 = vmatpush3.bf16.msra.mxu1 %v10170_v11  ;;  %9883 = vmatprep.mubr.msk.bf16.mxu1 %vm10608_vm0, %v13282_v30 }
 0x309   : > { %v5312_v26 = vpop.xlane.xlu0 %5311  ;;  %v5646_v23 = vpack.c.bf16 %v5575_v46, %v5574_v38  ;;  %9893 = vmatprep.subr.bf16.mxu1 %v13282_v30  ;;  %v5576_v44 = vmul.f32 %v10486_v18, %v13400_v54  ;;  %v10174_v38 = vld [vmem:[%s10959_s26 + $0x3e8] sm:$0xff]  }
 0x30a   : > { %v10488_v42 = vpop.eup %10487  ;;  %10497 = vrcp.f32 %v5312_v26  ;;  %v13406_v18 = vld [vmem:[#allocation28_spill] sm:$0xff] }
 0x30b   : > { %v5577_v49 = vmul.f32 %v10488_v42, %v13401_v10  ;;  %v5315_v19 = vpop.xlane.xlu1 %5314 }
 0x30c   : > { %v10490_v50 = vpop.eup %10489  ;;  %9878 = vmatmul.mubr.msk.bf16.vlgmr.msra.gmra.mrb[144].mxu0 %vm4565_vm2, %v5646_v23  ;;  %10499 = vrcp.f32 %v5315_v19  ;;  %v13407_v23 = vld [vmem:[#allocation29_spill] sm:$0xff] }
 0x30d   : > { %v5318_v25 = vpop.xlane.xlu0 %5317  ;;  %v5647_v32 = vpack.c.bf16 %v5577_v49, %v5576_v44  ;;  %9888 = vmatpush3.bf16.msra.mxu0 %v10171_v45  ;;  %9889 = vmatprep.mubr.msk.bf16.mxu0 %vm10608_vm0, %v13282_v30  ;;  %v5578_v51 = vmul.f32 %v10490_v50, %v13402_v15  ;;  %v10175_v49 = vld [vmem:[%s10959_s26 + $0x3f0] sm:$0xff]   ;;  %v13408_v50 = vld [vmem:[#allocation31_spill] sm:$0xff] }
 0x30e   : > { %v10492_v59 = vpop.eup %10491  ;;  %10501 = vrcp.f32 %v5318_v25  ;;  %9899 = vmatprep.subr.bf16.mxu0 %v13282_v30  ;;  %v13409_v25 = vld [vmem:[#allocation30_spill] sm:$0xff] }
 0x30f   : > { %v5579_v55 = vmul.f32 %v10492_v59, %v13403_v3  ;;  %9884 = vmatmul.mubr.msk.bf16.vlgmr.msra.gmra.mrb[144].mxu1 %vm4565_vm2, %v5647_v32  ;;  %v5321_v33 = vpop.xlane.xlu1 %5320 }
 0x310   : > { %v10494_v39 = vpop.eup %10493  ;;  %10503 = vrcp.f32 %v5321_v33  ;;  %9894 = vmatpush3.bf16.msra.mxu1 %v10172_v53  ;;  %9895 = vmatprep.mubr.msk.bf16.mxu1 %vm10608_vm0, %v13282_v30 }
 0x311   : > { %v5324_v36 = vpop.xlane.xlu0 %5323  ;;  %v5648_v5 = vpack.c.bf16 %v5579_v55, %v5578_v51  ;;  %9905 = vmatprep.subr.bf16.mxu1 %v13282_v30  ;;  %v5580_v11 = vmul.f32 %v10494_v39, %v13404_v40  ;;  %v10176_v51 = vld [vmem:[%s10959_s26 + $0x3f8] sm:$0xff]   ;;  %v13410_v39 = vld [vmem:[#allocation32_spill] sm:$0xff] }
 0x312   : > { %v10496_v31 = vpop.eup %10495  ;;  %10505 = vrcp.f32 %v5324_v36 }
 0x313   : > { %v5581_v58 = vmul.f32 %v10496_v31, %v13405_v60  ;;  %v5327_v63 = vpop.xlane.xlu1 %5326 }
 0x314   : > { %v10498_v9 = vpop.eup %10497  ;;  %9890 = vmatmul.mubr.msk.bf16.vlgmr.msra.gmra.mrb[148].mxu0 %vm4565_vm2, %v5648_v5  ;;  %10507 = vrcp.f32 %v5327_v63  ;;  %v13411_v5 = vld [vmem:[#allocation33_spill] sm:$0xff] }
 0x315   : > { %v5330_v14 = vpop.xlane.xlu0 %5329  ;;  %v5649_v46 = vpack.c.bf16 %v5581_v58, %v5580_v11  ;;  %9900 = vmatpush3.bf16.msra.mxu0 %v10173_v2  ;;  %9901 = vmatprep.mubr.msk.bf16.mxu0 %vm10608_vm0, %v13282_v30  ;;  %v5582_v26 = vmul.f32 %v10498_v9, %v13406_v18  ;;  %v10177_v58 = vld [vmem:[%s10959_s26 + $0x400] sm:$0xff]  }
 0x316   : > { %v10500_v13 = vpop.eup %10499  ;;  %10509 = vrcp.f32 %v5330_v14  ;;  %9911 = vmatprep.subr.bf16.mxu0 %v13282_v30  ;;  %v13412_v9 = vld [vmem:[#allocation35_spill] sm:$0xff]  ;;  %v13413_v14 = vld [vmem:[#allocation34_spill] sm:$0xff] }
 0x317   : > { %v5583_v45 = vmul.f32 %v10500_v13, %v13407_v23  ;;  %9896 = vmatmul.mubr.msk.bf16.vlgmr.msra.gmra.mrb[148].mxu1 %vm4565_vm2, %v5649_v46  ;;  %v5333_v42 = vpop.xlane.xlu1 %5332 }
 0x318   : > { %v10502_v54 = vpop.eup %10501  ;;  %10511 = vrcp.f32 %v5333_v42  ;;  %9906 = vmatpush3.bf16.msra.mxu1 %v10174_v38  ;;  %9907 = vmatprep.mubr.msk.bf16.mxu1 %vm10608_vm0, %v13282_v30 }
 0x319   : > { %v5336_v44 = vpop.xlane.xlu0 %5335  ;;  %v5650_v10 = vpack.c.bf16 %v5583_v45, %v5582_v26  ;;  %9917 = vmatprep.subr.bf16.mxu1 %v13282_v30  ;;  %v5584_v53 = vmul.f32 %v10502_v54, %v13408_v50  ;;  %v10178_v26 = vld [vmem:[%s10959_s26 + $0x408] sm:$0xff]  }
 0x31a   : > { %v10504_v19 = vpop.eup %10503  ;;  %10513 = vrcp.f32 %v5336_v44 }
 0x31b   : > { %v5585_v32 = vmul.f32 %v10504_v19, %v13409_v25  ;;  %v5339_v59 = vpop.xlane.xlu1 %5338 }
 0x31c   : > { %v10506_v15 = vpop.eup %10505  ;;  %9902 = vmatmul.mubr.msk.bf16.vlgmr.msra.gmra.mrb[152].mxu0 %vm4565_vm2, %v5650_v10  ;;  %10515 = vrcp.f32 %v5339_v59 }
 0x31d   : > { %v5342_v3 = vpop.xlane.xlu0 %5341  ;;  %v5651_v55 = vpack.c.bf16 %v5585_v32, %v5584_v53  ;;  %9912 = vmatpush3.bf16.msra.mxu0 %v10175_v49  ;;  %9913 = vmatprep.mubr.msk.bf16.mxu0 %vm10608_vm0, %v13282_v30  ;;  %v5586_v36 = vmul.f32 %v10506_v15, %v13410_v39  ;;  %v10179_v53 = vld [vmem:[%s10959_s26 + $0x410] sm:$0xff]   ;;  %v10180_v15 = vld [vmem:[%s10959_s26 + $0x418] sm:$0xff]  }
 0x31e   : > { %v10508_v33 = vpop.eup %10507  ;;  %10517 = vrcp.f32 %v5342_v3  ;;  %9923 = vmatprep.subr.bf16.mxu0 %v13282_v30 }
 0x31f   : > { %v5587_v2 = vmul.f32 %v10508_v33, %v13411_v5  ;;  %9908 = vmatmul.mubr.msk.bf16.vlgmr.msra.gmra.mrb[152].mxu1 %vm4565_vm2, %v5651_v55  ;;  %v5345_v31 = vpop.xlane.xlu1 %5344 }
 0x320   : > { %v10510_v40 = vpop.eup %10509  ;;  %10519 = vrcp.f32 %v5345_v31  ;;  %9918 = vmatpush3.bf16.msra.mxu1 %v10176_v51  ;;  %9919 = vmatprep.mubr.msk.bf16.mxu1 %vm10608_vm0, %v13282_v30 }
 0x321   : > { %v5348_v11 = vpop.xlane.xlu0 %5347  ;;  %v5652_v60 = vpack.c.bf16 %v5587_v2, %v5586_v36  ;;  %9929 = vmatprep.subr.bf16.mxu1 %v13282_v30  ;;  %v5588_v38 = vmul.f32 %v10510_v40, %v13412_v9  ;;  %v10181_v40 = vld [vmem:[%s10959_s26 + $0x420] sm:$0xff]  }
 0x322   : > { %v10512_v63 = vpop.eup %10511  ;;  %10521 = vrcp.f32 %v5348_v11 }
 0x323   : > { %v5589_v46 = vmul.f32 %v10512_v63, %v13413_v14  ;;  %v5351_v13 = vpop.xlane.xlu1 %5350  ;;  %v13417_v63 = vld [vmem:[#allocation45_spill] sm:$0xff] }
 0x324   : > { %v10514_v18 = vpop.eup %10513  ;;  %9914 = vmatmul.mubr.msk.bf16.vlgmr.msra.gmra.mrb[156].mxu0 %vm4565_vm2, %v5652_v60  ;;  %10523 = vrcp.f32 %v5351_v13  ;;  %v13416_v60 = vld [vmem:[#allocation39_spill] sm:$0xff] }
 0x325   : > { %v5354_v23 = vpop.xlane.xlu0 %5353  ;;  %v5653_v45 = vpack.c.bf16 %v5589_v46, %v5588_v38  ;;  %9924 = vmatpush3.bf16.msra.mxu0 %v10177_v58  ;;  %9925 = vmatprep.mubr.msk.bf16.mxu0 %vm10608_vm0, %v13282_v30  ;;  %v5590_v54 = vmul.f32 %v10514_v18, %v12405_v24  ;;  %v10182_v46 = vld [vmem:[%s10959_s26 + $0x428] sm:$0xff]  }
 0x326   : > { %v10516_v42 = vpop.eup %10515  ;;  %10525 = vrcp.f32 %v5354_v23  ;;  %9935 = vmatprep.subr.bf16.mxu0 %v13282_v30 }
 0x327   : > { %v5591_v44 = vmul.f32 %v10516_v42, %v12415_v57  ;;  %9920 = vmatmul.mubr.msk.bf16.vlgmr.msra.gmra.mrb[156].mxu1 %vm4565_vm2, %v5653_v45  ;;  %v5357_v10 = vpop.xlane.xlu1 %5356 }
 0x328   : > { %v10518_v49 = vpop.eup %10517  ;;  %10527 = vrcp.f32 %v5357_v10  ;;  %9930 = vmatpush3.bf16.msra.mxu1 %v10178_v26  ;;  %9931 = vmatprep.mubr.msk.bf16.mxu1 %vm10608_vm0, %v13282_v30 }
 0x329   : > { %v5360_v19 = vpop.xlane.xlu0 %5359  ;;  %v5654_v50 = vpack.c.bf16 %v5591_v44, %v5590_v54  ;;  %9941 = vmatprep.subr.bf16.mxu1 %v13282_v30  ;;  %v5592_v24 = vmul.f32 %v10518_v49, %v12426_v22  ;;  %v13414_v22 = vld [vmem:[#allocation36_spill] sm:$0xff]  ;;  %v10183_v49 = vld [vmem:[%s10959_s26 + $0x430] sm:$0xff]  }
 0x32a   : > { %v10520_v25 = vpop.eup %10519  ;;  %10529 = vrcp.f32 %v5360_v19 }
 0x32b   : > { %v5593_v57 = vmul.f32 %v10520_v25, %v12436_v47  ;;  %v5363_v32 = vpop.xlane.xlu1 %5362  ;;  %v13415_v47 = vld [vmem:[#allocation37_spill] sm:$0xff]  ;;  %v10184_v25 = vld [vmem:[%s10959_s26 + $0x438] sm:$0xff]  }
 0x32c   : > { %v10522_v59 = vpop.eup %10521  ;;  %9926 = vmatmul.mubr.msk.bf16.vlgmr.msra.gmra.mrb[160].mxu0 %vm4565_vm2, %v5654_v50  ;;  %10531 = vrcp.f32 %v5363_v32 }
 0x32d   : > { %v5366_v51 = vpop.xlane.xlu0 %5365  ;;  %v5655_v3 = vpack.c.bf16 %v5593_v57, %v5592_v24  ;;  %9936 = vmatpush3.bf16.msra.mxu0 %v10179_v53  ;;  %9937 = vmatprep.mubr.msk.bf16.mxu0 %vm10608_vm0, %v13282_v30  ;;  %v5594_v33 = vmul.f32 %v10522_v59, %v13414_v22 }
 0x32e   : > { %v10524_v55 = vpop.eup %10523  ;;  %10533 = vrcp.f32 %v5366_v51  ;;  %9947 = vmatprep.subr.bf16.mxu0 %v13282_v30 }
 0x32f   : > { %v5595_v39 = vmul.f32 %v10524_v55, %v13415_v47  ;;  %9932 = vmatmul.mubr.msk.bf16.vlgmr.msra.gmra.mrb[160].mxu1 %vm4565_vm2, %v5655_v3  ;;  %v5369_v36 = vpop.xlane.xlu1 %5368  ;;  %v10185_v55 = vld [vmem:[%s10959_s26 + $0x440] sm:$0xff]  }
 0x330   : > { %v10526_v5 = vpop.eup %10525  ;;  %10535 = vrcp.f32 %v5369_v36  ;;  %9942 = vmatpush3.bf16.msra.mxu1 %v10180_v15  ;;  %9943 = vmatprep.mubr.msk.bf16.mxu1 %vm10608_vm0, %v13282_v30 }
 0x331   : > { %v5372_v2 = vpop.xlane.xlu0 %5371  ;;  %v5656_v31 = vpack.c.bf16 %v5595_v39, %v5594_v33  ;;  %9953 = vmatprep.subr.bf16.mxu1 %v13282_v30  ;;  %v5596_v58 = vmul.f32 %v10526_v5, %v13416_v60  ;;  %v10186_v39 = vld [vmem:[%s10959_s26 + $0x448] sm:$0xff]  }
 0x332   : > { %v10528_v11 = vpop.eup %10527  ;;  %10537 = vrcp.f32 %v5372_v2 }
 0x333   : > { %v5597_v9 = vmul.f32 %v10528_v11, %v13417_v63  ;;  %v5375_v38 = vpop.xlane.xlu1 %5374 }
 0x334   : > { %v10530_v14 = vpop.eup %10529  ;;  %9938 = vmatmul.mubr.msk.bf16.vlgmr.msra.gmra.mrb[164].mxu0 %vm4565_vm2, %v5656_v31  ;;  %10539 = vrcp.f32 %v5375_v38 }
 0x335   : > { %v5378_v13 = vpop.xlane.xlu0 %5377  ;;  %v5657_v18 = vpack.c.bf16 %v5597_v9, %v5596_v58  ;;  %9948 = vmatpush3.bf16.msra.mxu0 %v10181_v40  ;;  %9949 = vmatprep.mubr.msk.bf16.mxu0 %vm10608_vm0, %v13282_v30  ;;  %v5598_v23 = vmul.f32 %v10530_v14, %v12475_v17  ;;  %v10187_v58 = vld [vmem:[%s10959_s26 + $0x450] sm:$0xff]   ;;  %v10188_v14 = vld [vmem:[%s10959_s26 + $0x458] sm:$0xff]  }
 0x336   : > { %v10532_v26 = vpop.eup %10531  ;;  %10541 = vrcp.f32 %v5378_v13  ;;  %9959 = vmatprep.subr.bf16.mxu0 %v13282_v30 }
 0x337   : > { %v5599_v45 = vmul.f32 %v10532_v26, %v12485_v41  ;;  %9944 = vmatmul.mubr.msk.bf16.vlgmr.msra.gmra.mrb[164].mxu1 %vm4565_vm2, %v5657_v18  ;;  %v5381_v42 = vpop.xlane.xlu1 %5380 }
 0x338   : > { %v10534_v54 = vpop.eup %10533  ;;  %10543 = vrcp.f32 %v5381_v42  ;;  %9954 = vmatpush3.bf16.msra.mxu1 %v10182_v46  ;;  %9955 = vmatprep.mubr.msk.bf16.mxu1 %vm10608_vm0, %v13282_v30 }
 0x339   : > { %v5384_v44 = vpop.xlane.xlu0 %5383  ;;  %v5658_v10 = vpack.c.bf16 %v5599_v45, %v5598_v23  ;;  %9965 = vmatprep.subr.bf16.mxu1 %v13282_v30  ;;  %v5600_v17 = vmul.f32 %v10534_v54, %v12496_v56  ;;  %v10189_v54 = vld [vmem:[%s10959_s26 + $0x460] sm:$0xff]  }
 0x33a   : > { %v10536_v19 = vpop.eup %10535  ;;  %10545 = vrcp.f32 %v5384_v44 }
 0x33b   : > { %v5601_v41 = vmul.f32 %v10536_v19, %v12506_v34  ;;  %v5387_v50 = vpop.xlane.xlu1 %5386  ;;  %v10190_v19 = vld [vmem:[%s10959_s26 + $0x468] sm:$0xff]  }
 0x33c   : > { %v10538_v53 = vpop.eup %10537  ;;  %9950 = vmatmul.mubr.msk.bf16.vlgmr.msra.gmra.mrb[168].mxu0 %vm4565_vm2, %v5658_v10  ;;  %10547 = vrcp.f32 %v5387_v50 }
 0x33d   : > { %v5390_v24 = vpop.xlane.xlu0 %5389  ;;  %v5659_v57 = vpack.c.bf16 %v5601_v41, %v5600_v17  ;;  %9960 = vmatpush3.bf16.msra.mxu0 %v10183_v49  ;;  %9961 = vmatprep.mubr.msk.bf16.mxu0 %vm10608_vm0, %v13282_v30  ;;  %v5602_v56 = vmul.f32 %v10538_v53, %v12514_v6 }
 0x33e   : > { %v10540_v32 = vpop.eup %10539  ;;  %10549 = vrcp.f32 %v5390_v24  ;;  %9971 = vmatprep.subr.bf16.mxu0 %v13282_v30 }
 0x33f   : > { %v5603_v34 = vmul.f32 %v10540_v32, %v12525_v12  ;;  %9956 = vmatmul.mubr.msk.bf16.vlgmr.msra.gmra.mrb[168].mxu1 %vm4565_vm2, %v5659_v57  ;;  %v5393_v59 = vpop.xlane.xlu1 %5392  ;;  %v10191_v57 = vld [vmem:[%s10959_s26 + $0x470] sm:$0xff]  }
 0x340   : > { %v10542_v15 = vpop.eup %10541  ;;  %10551 = vrcp.f32 %v5393_v59  ;;  %9966 = vmatpush3.bf16.msra.mxu1 %v10184_v25  ;;  %9967 = vmatprep.mubr.msk.bf16.mxu1 %vm10608_vm0, %v13282_v30 }
 0x341   : > { %v5396_v51 = vpop.xlane.xlu0 %5395  ;;  %v5660_v3 = vpack.c.bf16 %v5603_v34, %v5602_v56  ;;  %9977 = vmatprep.subr.bf16.mxu1 %v13282_v30  ;;  %v5604_v6 = vmul.f32 %v10542_v15, %v12529_v35  ;;  %v10192_v34 = vld [vmem:[%s10959_s26 + $0x478] sm:$0xff]  }
 0x342   : > { %v10544_v22 = vpop.eup %10543  ;;  %10553 = vrcp.f32 %v5396_v51 }
 0x343   : > { %v5605_v12 = vmul.f32 %v10544_v22, %v12533_v28  ;;  %v5399_v33 = vpop.xlane.xlu1 %5398 }
 0x344   : > { %v10546_v47 = vpop.eup %10545  ;;  %9962 = vmatmul.mubr.msk.bf16.vlgmr.msra.gmra.mrb[172].mxu0 %vm4565_vm2, %v5660_v3  ;;  %10555 = vrcp.f32 %v5399_v33 }
 0x345   : > { %v5402_v36 = vpop.xlane.xlu0 %5401  ;;  %v5661_v5 = vpack.c.bf16 %v5605_v12, %v5604_v6  ;;  %9972 = vmatpush3.bf16.msra.mxu0 %v10185_v55  ;;  %9973 = vmatprep.mubr.msk.bf16.mxu0 %vm10608_vm0, %v13282_v30  ;;  %v5606_v35 = vmul.f32 %v10546_v47, %v12538_v62 }
 0x346   : > { %v10548_v2 = vpop.eup %10547  ;;  %10557 = vrcp.f32 %v5402_v36  ;;  %9983 = vmatprep.subr.bf16.mxu0 %v13282_v30 }
 0x347   : > { %v5607_v28 = vmul.f32 %v10548_v2, %v12545_v48  ;;  %9968 = vmatmul.mubr.msk.bf16.vlgmr.msra.gmra.mrb[172].mxu1 %vm4565_vm2, %v5661_v5  ;;  %v5405_v31 = vpop.xlane.xlu1 %5404 }
 0x348   : > { %v10550_v40 = vpop.eup %10549  ;;  %10559 = vrcp.f32 %v5405_v31  ;;  %9978 = vmatpush3.bf16.msra.mxu1 %v10186_v39  ;;  %9979 = vmatprep.mubr.msk.bf16.mxu1 %vm10608_vm0, %v13282_v30 }
 0x349   : > { %v5408_v11 = vpop.xlane.xlu0 %5407  ;;  %v5662_v60 = vpack.c.bf16 %v5607_v28, %v5606_v35  ;;  %9989 = vmatprep.subr.bf16.mxu1 %v13282_v30  ;;  %v5608_v62 = vmul.f32 %v10550_v40, %v12555_v16 }
 0x34a   : > { %v10552_v63 = vpop.eup %10551  ;;  %10561 = vrcp.f32 %v5408_v11 }
 0x34b   : > { %v5609_v48 = vmul.f32 %v10552_v63, %v12564_v43  ;;  %v5411_v9 = vpop.xlane.xlu1 %5410 }
 0x34c   : > { %v10554_v38 = vpop.eup %10553  ;;  %9974 = vmatmul.mubr.msk.bf16.vlgmr.msra.gmra.mrb[176].mxu0 %vm4565_vm2, %v5662_v60  ;;  %10563 = vrcp.f32 %v5411_v9 }
 0x34d   : > { %v5414_v46 = vpop.xlane.xlu0 %5413  ;;  %v5663_v13 = vpack.c.bf16 %v5609_v48, %v5608_v62  ;;  %9984 = vmatpush3.bf16.msra.mxu0 %v10187_v58  ;;  %9985 = vmatprep.mubr.msk.bf16.mxu0 %vm10608_vm0, %v13282_v30  ;;  %v5610_v16 = vmul.f32 %v10554_v38, %v12570_v8 }
 0x34e   : > { %v10556_v18 = vpop.eup %10555  ;;  %10565 = vrcp.f32 %v5414_v46  ;;  %9995 = vmatprep.subr.bf16.mxu0 %v13282_v30 }
 0x34f   : > { %v5611_v43 = vmul.f32 %v10556_v18, %v12577_v4  ;;  %9980 = vmatmul.mubr.msk.bf16.vlgmr.msra.gmra.mrb[176].mxu1 %vm4565_vm2, %v5663_v13  ;;  %v5417_v26 = vpop.xlane.xlu1 %5416 }
 0x350   : > { %v10558_v23 = vpop.eup %10557  ;;  %10567 = vrcp.f32 %v5417_v26  ;;  %9990 = vmatpush3.bf16.msra.mxu1 %v10188_v14  ;;  %9991 = vmatprep.mubr.msk.bf16.mxu1 %vm10608_vm0, %v13282_v30 }
 0x351   : > { %v5420_v45 = vpop.xlane.xlu0 %5419  ;;  %v5664_v42 = vpack.c.bf16 %v5611_v43, %v5610_v16  ;;  %10001 = vmatprep.subr.bf16.mxu1 %v13282_v30  ;;  %v5612_v4 = vmul.f32 %v10558_v23, %v12580_v52 }
 0x352   : > { %v10560_v8 = vpop.eup %10559  ;;  %10569 = vrcp.f32 %v5420_v45 }
 0x353   : > { %v5613_v44 = vmul.f32 %v10560_v8, %v12584_v20  ;;  %v5423_v10 = vpop.xlane.xlu1 %5422 }
 0x354   : > { %v10562_v49 = vpop.eup %10561  ;;  %9986 = vmatmul.mubr.msk.bf16.vlgmr.msra.gmra.mrb[180].mxu0 %vm4565_vm2, %v5664_v42  ;;  %10571 = vrcp.f32 %v5423_v10 }
 0x355   : > { %v5426_v17 = vpop.xlane.xlu0 %5425  ;;  %v5665_v41 = vpack.c.bf16 %v5613_v44, %v5612_v4  ;;  %9996 = vmatpush3.bf16.msra.mxu0 %v10189_v54  ;;  %9997 = vmatprep.mubr.msk.bf16.mxu0 %vm10608_vm0, %v13282_v30  ;;  %v5614_v52 = vmul.f32 %v10562_v49, %v12589_v21 }
 0x356   : > { %v10564_v50 = vpop.eup %10563  ;;  %10573 = vrcp.f32 %v5426_v17  ;;  %10007 = vmatprep.subr.bf16.mxu0 %v13282_v30 }
 0x357   : > { %v5615_v20 = vmul.f32 %v10564_v50, %v12597_v37  ;;  %9992 = vmatmul.mubr.msk.bf16.vlgmr.msra.gmra.mrb[180].mxu1 %vm4565_vm2, %v5665_v41  ;;  %v5429_v53 = vpop.xlane.xlu1 %5428 }
 0x358   : > { %v10566_v25 = vpop.eup %10565  ;;  %10575 = vrcp.f32 %v5429_v53  ;;  %10002 = vmatpush3.bf16.msra.mxu1 %v10190_v19  ;;  %10003 = vmatprep.mubr.msk.bf16.mxu1 %vm10608_vm0, %v13282_v30 }
 0x359   : > { %v5666_v24 = vpack.c.bf16 %v5615_v20, %v5614_v52  ;;  %10013 = vmatprep.subr.bf16.mxu1 %v13282_v30  ;;  %v5616_v21 = vmul.f32 %v10566_v25, %v12606_v27 }
 0x35a   : > { %v10568_v32 = vpop.eup %10567 }
 0x35b   : > { %v5617_v37 = vmul.f32 %v10568_v32, %v12614_v29 }
 0x35c   : > { %v10570_v56 = vpop.eup %10569  ;;  %9998 = vmatmul.mubr.msk.bf16.vlgmr.msra.gmra.mrb[184].mxu0 %vm4565_vm2, %v5666_v24 }
 0x35d   : > { %v5667_v59 = vpack.c.bf16 %v5617_v37, %v5616_v21  ;;  %10008 = vmatpush3.bf16.msra.mxu0 %v10191_v57  ;;  %10009 = vmatprep.mubr.msk.bf16.mxu0 %vm10608_vm0, %v13282_v30  ;;  %v5618_v51 = vmul.f32 %v10570_v56, %v12620_v7 }
 0x35e   : > { %v10572_v15 = vpop.eup %10571  ;;  %v5713_v27 = vpop.f32.mrb[96].mxu0 }
 0x35f   : > { %v5619_v3 = vmul.f32 %v10572_v15, %v12627_v61  ;;  %10004 = vmatmul.mubr.msk.bf16.vlgmr.msra.gmra.mrb[184].mxu1 %vm4565_vm2, %v5667_v59  ;;  %v9155_v55 = vpack.c.bf16 %v5713_v27, %v5713_v27  ;;  %v9735_v22 = vpop.f32.mrb[97].mxu0 }
 0x360   : > { %v10574_v29 = vpop.eup %10573  ;;  %10014 = vmatpush3.bf16.msra.mxu1 %v10192_v34  ;;  %10015 = vmatprep.mubr.msk.bf16.mxu1 %vm10608_vm0, %v13282_v30  ;;  %v5716_v7 = vpop.f32.mrb[98].mxu0 }
 0x361   : > { %v5668_v61 = vpack.c.bf16 %v5619_v3, %v5618_v51  ;;  %8455 = vst.msk [vmem:[%s12910_s3] sm:$0xf] %vm8454_vm3, %v9155_v55  ;;  %v9156_v12 = vpack.c.bf16 %v5716_v7, %v5716_v7  ;;  %v9736_v33 = vpop.f32.mrb[99].mxu0  ;;  %v5620_v39 = vmul.f32 %v10574_v29, %v12631_v1 }
 0x362   : > { %v10576_v6 = vpop.eup %10575  ;;  %v5763_v47 = vpop.f32.mrb[96].mxu1 }
 0x363   : > { %v5621_v36 = vmul.f32 %v10576_v6, %v12635_v0  ;;  %v9157_v5 = vpack.c.bf16 %v5763_v47, %v5763_v47  ;;  %v9741_v2 = vpop.f32.mrb[97].mxu1  ;;  %8456 = vst.msk [vmem:[%s12910_s3 + $0x4] sm:$0xf] %vm8454_vm3, %v9156_v12 }
 0x364   : > { %10010 = vmatmul.mubr.msk.bf16.vlgmr.msra.gmra.mrb[188].mxu0 %vm4565_vm2, %v5668_v61  ;;  %v5766_v30 = vpop.f32.mrb[98].mxu1 }
 0x365   : > { %8457 = vst.msk [vmem:[%s12910_s3 + $0x8] sm:$0xf] %vm8454_vm3, %v9157_v5  ;;  %v9158_v35 = vpack.c.bf16 %v5766_v30, %v5766_v30  ;;  %v9742_v28 = vpop.f32.mrb[99].mxu1  ;;  %v5669_v31 = vpack.c.bf16 %v5621_v36, %v5620_v39 }
 0x367   : > { %8458 = vst.msk [vmem:[%s12910_s3 + $0xc] sm:$0xf] %vm8454_vm3, %v9158_v35  ;;  %10016 = vmatmul.mubr.msk.bf16.vlgmr.msra.gmra.mrb[188].mxu1 %vm4565_vm2, %v5669_v31 }
 0x36e   : > { %v5813_v1 = vpop.f32.mrb[100].mxu0 }
 0x36f   : > { %v9159_v0 = vpack.c.bf16 %v5813_v1, %v5813_v1  ;;  %v9747_v40 = vpop.f32.mrb[101].mxu0 }
 0x370   : > { %v5816_v11 = vpop.f32.mrb[102].mxu0 }
 0x371   : > { %8459 = vst.msk [vmem:[%s12910_s3 + $0x10] sm:$0xf] %vm8454_vm3, %v9159_v0  ;;  %v9160_v60 = vpack.c.bf16 %v5816_v11, %v5816_v11  ;;  %v9748_v58 = vpop.f32.mrb[103].mxu0 }
 0x372   : > { %v5863_v63 = vpop.f32.mrb[100].mxu1 }
 0x373   : > { %v9161_v62 = vpack.c.bf16 %v5863_v63, %v5863_v63  ;;  %v9753_v48 = vpop.f32.mrb[101].mxu1  ;;  %8460 = vst.msk [vmem:[%s12910_s3 + $0x14] sm:$0xf] %vm8454_vm3, %v9160_v60 }
 0x374   : > { %v5866_v9 = vpop.f32.mrb[102].mxu1 }
 0x375   : > { %8461 = vst.msk [vmem:[%s12910_s3 + $0x18] sm:$0xf] %vm8454_vm3, %v9161_v62  ;;  %v9162_v38 = vpack.c.bf16 %v5866_v9, %v5866_v9  ;;  %v9754_v14 = vpop.f32.mrb[103].mxu1 }
 0x377   : > { %8462 = vst.msk [vmem:[%s12910_s3 + $0x1c] sm:$0xf] %vm8454_vm3, %v9162_v38 }
 0x37e   : > { %v5913_v46 = vpop.f32.mrb[104].mxu0 }
 0x37f   : > { %v9163_v13 = vpack.c.bf16 %v5913_v46, %v5913_v46  ;;  %v9759_v18 = vpop.f32.mrb[105].mxu0 }
 0x380   : > { %v5916_v16 = vpop.f32.mrb[106].mxu0 }
 0x381   : > { %8463 = vst.msk [vmem:[%s12910_s3 + $0x20] sm:$0xf] %vm8454_vm3, %v9163_v13  ;;  %v9164_v43 = vpack.c.bf16 %v5916_v16, %v5916_v16  ;;  %v9760_v26 = vpop.f32.mrb[107].mxu0 }
 0x382   : > { %v5963_v23 = vpop.f32.mrb[104].mxu1 }
 0x383   : > { %v9165_v45 = vpack.c.bf16 %v5963_v23, %v5963_v23  ;;  %v9765_v42 = vpop.f32.mrb[105].mxu1  ;;  %8464 = vst.msk [vmem:[%s12910_s3 + $0x24] sm:$0xf] %vm8454_vm3, %v9164_v43 }
 0x384   : > { %v5966_v54 = vpop.f32.mrb[106].mxu1 }
 0x385   : > { %8465 = vst.msk [vmem:[%s12910_s3 + $0x28] sm:$0xf] %vm8454_vm3, %v9165_v45  ;;  %v9166_v8 = vpack.c.bf16 %v5966_v54, %v5966_v54  ;;  %v9766_v4 = vpop.f32.mrb[107].mxu1 }
 0x387   : > { %8466 = vst.msk [vmem:[%s12910_s3 + $0x2c] sm:$0xf] %vm8454_vm3, %v9166_v8 }
 0x38e   : > { %v6013_v44 = vpop.f32.mrb[108].mxu0 }
 0x38f   : > { %v9167_v10 = vpack.c.bf16 %v6013_v44, %v6013_v44  ;;  %v9771_v49 = vpop.f32.mrb[109].mxu0 }
 0x390   : > { %v6016_v19 = vpop.f32.mrb[110].mxu0 }
 0x391   : > { %8467 = vst.msk [vmem:[%s12910_s3 + $0x30] sm:$0xf] %vm8454_vm3, %v9167_v10  ;;  %v9168_v17 = vpack.c.bf16 %v6016_v19, %v6016_v19  ;;  %v9772_v41 = vpop.f32.mrb[111].mxu0 }
 0x392   : > { %v6063_v50 = vpop.f32.mrb[108].mxu1 }
 0x393   : > { %v9169_v52 = vpack.c.bf16 %v6063_v50, %v6063_v50  ;;  %v9777_v20 = vpop.f32.mrb[109].mxu1  ;;  %8468 = vst.msk [vmem:[%s12910_s3 + $0x34] sm:$0xf] %vm8454_vm3, %v9168_v17 }
 0x394   : > { %v6066_v53 = vpop.f32.mrb[110].mxu1 }
 0x395   : > { %8469 = vst.msk [vmem:[%s12910_s3 + $0x38] sm:$0xf] %vm8454_vm3, %v9169_v52  ;;  %v9170_v25 = vpack.c.bf16 %v6066_v53, %v6066_v53  ;;  %v9778_v24 = vpop.f32.mrb[111].mxu1 }
 0x397   : > { %8470 = vst.msk [vmem:[%s12910_s3 + $0x3c] sm:$0xf] %vm8454_vm3, %v9170_v25 }
 0x39f   : > { %v6113_v57 = vpop.f32.mrb[112].mxu0 }
 0x3a0   : > { %v9171_v32 = vpack.c.bf16 %v6113_v57, %v6113_v57  ;;  %v9783_v21 = vpop.f32.mrb[113].mxu0 }
 0x3a1   : > { %v6116_v37 = vpop.f32.mrb[114].mxu0 }
 0x3a2   : > { %8471 = vst.msk [vmem:[%s12910_s3 + $0x40] sm:$0xf] %vm8454_vm3, %v9171_v32  ;;  %v9172_v56 = vpack.c.bf16 %v6116_v37, %v6116_v37  ;;  %v9784_v34 = vpop.f32.mrb[115].mxu0  ;;  %v6163_v59 = vpop.f32.mrb[112].mxu1 }
 0x3a3   : > { %v9173_v15 = vpack.c.bf16 %v6163_v59, %v6163_v59  ;;  %v9789_v51 = vpop.f32.mrb[113].mxu1 }
 0x3a4   : > { %8472 = vst.msk [vmem:[%s12910_s3 + $0x44] sm:$0xf] %vm8454_vm3, %v9172_v56  ;;  %v6166_v3 = vpop.f32.mrb[114].mxu1 }
 0x3a5   : > { %8473 = vst.msk [vmem:[%s12910_s3 + $0x48] sm:$0xf] %vm8454_vm3, %v9173_v15  ;;  %v9174_v27 = vpack.c.bf16 %v6166_v3, %v6166_v3  ;;  %v9790_v29 = vpop.f32.mrb[115].mxu1 }
 0x3a7   : > { %8474 = vst.msk [vmem:[%s12910_s3 + $0x4c] sm:$0xf] %vm8454_vm3, %v9174_v27  ;;  %v6213_v55 = vpop.f32.mrb[116].mxu0 }
 0x3a8   : > { %v9175_v22 = vpack.c.bf16 %v6213_v55, %v6213_v55  ;;  %v9795_v7 = vpop.f32.mrb[117].mxu0 }
 0x3a9   : > { %v6216_v61 = vpop.f32.mrb[118].mxu0 }
 0x3aa   : > { %8475 = vst.msk [vmem:[%s12910_s3 + $0x50] sm:$0xf] %vm8454_vm3, %v9175_v22  ;;  %v9176_v6 = vpack.c.bf16 %v6216_v61, %v6216_v61  ;;  %v9796_v12 = vpop.f32.mrb[119].mxu0  ;;  %v6263_v33 = vpop.f32.mrb[116].mxu1 }
 0x3ab   : > { %v9177_v47 = vpack.c.bf16 %v6263_v33, %v6263_v33  ;;  %v9801_v39 = vpop.f32.mrb[117].mxu1 }
 0x3ac   : > { %8476 = vst.msk [vmem:[%s12910_s3 + $0x54] sm:$0xf] %vm8454_vm3, %v9176_v6  ;;  %v6266_v36 = vpop.f32.mrb[118].mxu1 }
 0x3ad   : > { %8477 = vst.msk [vmem:[%s12910_s3 + $0x58] sm:$0xf] %vm8454_vm3, %v9177_v47  ;;  %v9178_v5 = vpack.c.bf16 %v6266_v36, %v6266_v36  ;;  %v9802_v2 = vpop.f32.mrb[119].mxu1 }
 0x3af   : > { %8478 = vst.msk [vmem:[%s12910_s3 + $0x5c] sm:$0xf] %vm8454_vm3, %v9178_v5  ;;  %v6313_v30 = vpop.f32.mrb[120].mxu0 }
 0x3b0   : > { %v9179_v35 = vpack.c.bf16 %v6313_v30, %v6313_v30  ;;  %v9807_v28 = vpop.f32.mrb[121].mxu0 }
 0x3b1   : > { %v6316_v31 = vpop.f32.mrb[122].mxu0 }
 0x3b2   : > { %8479 = vst.msk [vmem:[%s12910_s3 + $0x60] sm:$0xf] %vm8454_vm3, %v9179_v35  ;;  %v9180_v1 = vpack.c.bf16 %v6316_v31, %v6316_v31  ;;  %v9808_v0 = vpop.f32.mrb[123].mxu0  ;;  %v6363_v40 = vpop.f32.mrb[120].mxu1 }
 0x3b3   : > { %v9181_v11 = vpack.c.bf16 %v6363_v40, %v6363_v40  ;;  %v9813_v60 = vpop.f32.mrb[121].mxu1 }
 0x3b4   : > { %8480 = vst.msk [vmem:[%s12910_s3 + $0x64] sm:$0xf] %vm8454_vm3, %v9180_v1  ;;  %v6366_v58 = vpop.f32.mrb[122].mxu1 }
 0x3b5   : > { %8481 = vst.msk [vmem:[%s12910_s3 + $0x68] sm:$0xf] %vm8454_vm3, %v9181_v11  ;;  %v9182_v63 = vpack.c.bf16 %v6366_v58, %v6366_v58  ;;  %v9814_v62 = vpop.f32.mrb[123].mxu1 }
 0x3b7   : > { %8482 = vst.msk [vmem:[%s12910_s3 + $0x6c] sm:$0xf] %vm8454_vm3, %v9182_v63  ;;  %v6413_v48 = vpop.f32.mrb[124].mxu0 }
 0x3b8   : > { %v9183_v9 = vpack.c.bf16 %v6413_v48, %v6413_v48  ;;  %v9819_v38 = vpop.f32.mrb[125].mxu0 }
 0x3b9   : > { %v6416_v14 = vpop.f32.mrb[126].mxu0 }
 0x3ba   : > { %8483 = vst.msk [vmem:[%s12910_s3 + $0x70] sm:$0xf] %vm8454_vm3, %v9183_v9  ;;  %v9184_v46 = vpack.c.bf16 %v6416_v14, %v6416_v14  ;;  %v9820_v13 = vpop.f32.mrb[127].mxu0  ;;  %v6463_v18 = vpop.f32.mrb[124].mxu1 }
 0x3bb   : > { %v9185_v16 = vpack.c.bf16 %v6463_v18, %v6463_v18  ;;  %v9825_v43 = vpop.f32.mrb[125].mxu1 }
 0x3bc   : > { %8484 = vst.msk [vmem:[%s12910_s3 + $0x74] sm:$0xf] %vm8454_vm3, %v9184_v46  ;;  %v6466_v26 = vpop.f32.mrb[126].mxu1 }
 0x3bd   : > { %8485 = vst.msk [vmem:[%s12910_s3 + $0x78] sm:$0xf] %vm8454_vm3, %v9185_v16  ;;  %v9186_v23 = vpack.c.bf16 %v6466_v26, %v6466_v26  ;;  %v9826_v45 = vpop.f32.mrb[127].mxu1 }
 0x3bf   : > { %8486 = vst.msk [vmem:[%s12910_s3 + $0x7c] sm:$0xf] %vm8454_vm3, %v9186_v23  ;;  %v6513_v42 = vpop.f32.mrb[128].mxu0 }
 0x3c0   : > { %v9187_v54 = vpack.c.bf16 %v6513_v42, %v6513_v42  ;;  %v9831_v8 = vpop.f32.mrb[129].mxu0 }
 0x3c1   : > { %v6516_v4 = vpop.f32.mrb[130].mxu0 }
 0x3c2   : > { %8487 = vst.msk [vmem:[%s12910_s3 + $0x80] sm:$0xf] %vm8454_vm3, %v9187_v54  ;;  %v9188_v44 = vpack.c.bf16 %v6516_v4, %v6516_v4  ;;  %v9832_v10 = vpop.f32.mrb[131].mxu0  ;;  %v6563_v49 = vpop.f32.mrb[128].mxu1 }
 0x3c3   : > { %v9189_v19 = vpack.c.bf16 %v6563_v49, %v6563_v49  ;;  %v9837_v17 = vpop.f32.mrb[129].mxu1 }
 0x3c4   : > { %8488 = vst.msk [vmem:[%s12910_s3 + $0x84] sm:$0xf] %vm8454_vm3, %v9188_v44  ;;  %v6566_v41 = vpop.f32.mrb[130].mxu1 }
 0x3c5   : > { %8489 = vst.msk [vmem:[%s12910_s3 + $0x88] sm:$0xf] %vm8454_vm3, %v9189_v19  ;;  %v9190_v50 = vpack.c.bf16 %v6566_v41, %v6566_v41  ;;  %v9838_v52 = vpop.f32.mrb[131].mxu1 }
 0x3c7   : > { %8490 = vst.msk [vmem:[%s12910_s3 + $0x8c] sm:$0xf] %vm8454_vm3, %v9190_v50  ;;  %v6613_v20 = vpop.f32.mrb[132].mxu0 }
 0x3c8   : > { %v9191_v53 = vpack.c.bf16 %v6613_v20, %v6613_v20  ;;  %v9843_v25 = vpop.f32.mrb[133].mxu0 }
 0x3c9   : > { %v6616_v24 = vpop.f32.mrb[134].mxu0 }
 0x3ca   : > { %8491 = vst.msk [vmem:[%s12910_s3 + $0x90] sm:$0xf] %vm8454_vm3, %v9191_v53  ;;  %v9192_v57 = vpack.c.bf16 %v6616_v24, %v6616_v24  ;;  %v9844_v32 = vpop.f32.mrb[135].mxu0  ;;  %v6663_v21 = vpop.f32.mrb[132].mxu1 }
 0x3cb   : > { %v9193_v37 = vpack.c.bf16 %v6663_v21, %v6663_v21  ;;  %v9849_v56 = vpop.f32.mrb[133].mxu1 }
 0x3cc   : > { %8492 = vst.msk [vmem:[%s12910_s3 + $0x94] sm:$0xf] %vm8454_vm3, %v9192_v57  ;;  %v6666_v34 = vpop.f32.mrb[134].mxu1 }
 0x3cd   : > { %8493 = vst.msk [vmem:[%s12910_s3 + $0x98] sm:$0xf] %vm8454_vm3, %v9193_v37  ;;  %v9194_v59 = vpack.c.bf16 %v6666_v34, %v6666_v34  ;;  %v9850_v15 = vpop.f32.mrb[135].mxu1 }
 0x3cf   : > { %8494 = vst.msk [vmem:[%s12910_s3 + $0x9c] sm:$0xf] %vm8454_vm3, %v9194_v59  ;;  %v6713_v51 = vpop.f32.mrb[136].mxu0 }
 0x3d0   : > { %v9195_v3 = vpack.c.bf16 %v6713_v51, %v6713_v51  ;;  %v9855_v27 = vpop.f32.mrb[137].mxu0 }
 0x3d1   : > { %v6716_v29 = vpop.f32.mrb[138].mxu0 }
 0x3d2   : > { %8495 = vst.msk [vmem:[%s12910_s3 + $0xa0] sm:$0xf] %vm8454_vm3, %v9195_v3  ;;  %v9196_v55 = vpack.c.bf16 %v6716_v29, %v6716_v29  ;;  %v9856_v22 = vpop.f32.mrb[139].mxu0  ;;  %v6763_v7 = vpop.f32.mrb[136].mxu1 }
 0x3d3   : > { %v9197_v61 = vpack.c.bf16 %v6763_v7, %v6763_v7  ;;  %v9861_v6 = vpop.f32.mrb[137].mxu1 }
 0x3d4   : > { %8496 = vst.msk [vmem:[%s12910_s3 + $0xa4] sm:$0xf] %vm8454_vm3, %v9196_v55  ;;  %v6766_v12 = vpop.f32.mrb[138].mxu1 }
 0x3d5   : > { %8497 = vst.msk [vmem:[%s12910_s3 + $0xa8] sm:$0xf] %vm8454_vm3, %v9197_v61  ;;  %v9198_v33 = vpack.c.bf16 %v6766_v12, %v6766_v12  ;;  %v9862_v47 = vpop.f32.mrb[139].mxu1 }
 0x3d7   : > { %8498 = vst.msk [vmem:[%s12910_s3 + $0xac] sm:$0xf] %vm8454_vm3, %v9198_v33  ;;  %v6813_v39 = vpop.f32.mrb[140].mxu0 }
 0x3d8   : > { %v9199_v36 = vpack.c.bf16 %v6813_v39, %v6813_v39  ;;  %v9867_v5 = vpop.f32.mrb[141].mxu0 }
 0x3d9   : > { %v6816_v2 = vpop.f32.mrb[142].mxu0 }
 0x3da   : > { %8499 = vst.msk [vmem:[%s12910_s3 + $0xb0] sm:$0xf] %vm8454_vm3, %v9199_v36  ;;  %v9200_v30 = vpack.c.bf16 %v6816_v2, %v6816_v2  ;;  %v9868_v35 = vpop.f32.mrb[143].mxu0  ;;  %v6863_v28 = vpop.f32.mrb[140].mxu1 }
 0x3db   : > { %v9201_v31 = vpack.c.bf16 %v6863_v28, %v6863_v28  ;;  %v9873_v1 = vpop.f32.mrb[141].mxu1 }
 0x3dc   : > { %8500 = vst.msk [vmem:[%s12910_s3 + $0xb4] sm:$0xf] %vm8454_vm3, %v9200_v30  ;;  %v6866_v0 = vpop.f32.mrb[142].mxu1 }
 0x3dd   : > { %8501 = vst.msk [vmem:[%s12910_s3 + $0xb8] sm:$0xf] %vm8454_vm3, %v9201_v31  ;;  %v9202_v40 = vpack.c.bf16 %v6866_v0, %v6866_v0  ;;  %v9874_v11 = vpop.f32.mrb[143].mxu1 }
 0x3df   : > { %8502 = vst.msk [vmem:[%s12910_s3 + $0xbc] sm:$0xf] %vm8454_vm3, %v9202_v40  ;;  %v6913_v60 = vpop.f32.mrb[144].mxu0 }
 0x3e0   : > { %v9203_v58 = vpack.c.bf16 %v6913_v60, %v6913_v60  ;;  %v9879_v63 = vpop.f32.mrb[145].mxu0 }
 0x3e1   : > { %v6916_v62 = vpop.f32.mrb[146].mxu0 }
 0x3e2   : > { %8503 = vst.msk [vmem:[%s12910_s3 + $0xc0] sm:$0xf] %vm8454_vm3, %v9203_v58  ;;  %v9204_v48 = vpack.c.bf16 %v6916_v62, %v6916_v62  ;;  %v9880_v9 = vpop.f32.mrb[147].mxu0  ;;  %v6963_v38 = vpop.f32.mrb[144].mxu1 }
 0x3e3   : > { %v9205_v14 = vpack.c.bf16 %v6963_v38, %v6963_v38  ;;  %v9885_v46 = vpop.f32.mrb[145].mxu1 }
 0x3e4   : > { %8504 = vst.msk [vmem:[%s12910_s3 + $0xc4] sm:$0xf] %vm8454_vm3, %v9204_v48  ;;  %v6966_v13 = vpop.f32.mrb[146].mxu1 }
 0x3e5   : > { %8505 = vst.msk [vmem:[%s12910_s3 + $0xc8] sm:$0xf] %vm8454_vm3, %v9205_v14  ;;  %v9206_v18 = vpack.c.bf16 %v6966_v13, %v6966_v13  ;;  %v9886_v16 = vpop.f32.mrb[147].mxu1 }
 0x3e7   : > { %8506 = vst.msk [vmem:[%s12910_s3 + $0xcc] sm:$0xf] %vm8454_vm3, %v9206_v18  ;;  %v7013_v43 = vpop.f32.mrb[148].mxu0 }
 0x3e8   : > { %v9207_v26 = vpack.c.bf16 %v7013_v43, %v7013_v43  ;;  %v9891_v23 = vpop.f32.mrb[149].mxu0 }
 0x3e9   : > { %v7016_v45 = vpop.f32.mrb[150].mxu0 }
 0x3ea   : > { %8507 = vst.msk [vmem:[%s12910_s3 + $0xd0] sm:$0xf] %vm8454_vm3, %v9207_v26  ;;  %v9208_v42 = vpack.c.bf16 %v7016_v45, %v7016_v45  ;;  %v9892_v54 = vpop.f32.mrb[151].mxu0  ;;  %v7063_v8 = vpop.f32.mrb[148].mxu1 }
 0x3eb   : > { %v9209_v4 = vpack.c.bf16 %v7063_v8, %v7063_v8  ;;  %v9897_v44 = vpop.f32.mrb[149].mxu1 }
 0x3ec   : > { %8508 = vst.msk [vmem:[%s12910_s3 + $0xd4] sm:$0xf] %vm8454_vm3, %v9208_v42  ;;  %v7066_v10 = vpop.f32.mrb[150].mxu1 }
 0x3ed   : > { %8509 = vst.msk [vmem:[%s12910_s3 + $0xd8] sm:$0xf] %vm8454_vm3, %v9209_v4  ;;  %v9210_v49 = vpack.c.bf16 %v7066_v10, %v7066_v10  ;;  %v9898_v19 = vpop.f32.mrb[151].mxu1 }
 0x3ef   : > { %8510 = vst.msk [vmem:[%s12910_s3 + $0xdc] sm:$0xf] %vm8454_vm3, %v9210_v49  ;;  %v7113_v17 = vpop.f32.mrb[152].mxu0 }
 0x3f0   : > { %v9211_v41 = vpack.c.bf16 %v7113_v17, %v7113_v17  ;;  %v9903_v50 = vpop.f32.mrb[153].mxu0 }
 0x3f1   : > { %v7116_v52 = vpop.f32.mrb[154].mxu0 }
 0x3f2   : > { %8511 = vst.msk [vmem:[%s12910_s3 + $0xe0] sm:$0xf] %vm8454_vm3, %v9211_v41  ;;  %v9212_v20 = vpack.c.bf16 %v7116_v52, %v7116_v52  ;;  %v9904_v53 = vpop.f32.mrb[155].mxu0  ;;  %v7163_v25 = vpop.f32.mrb[152].mxu1 }
 0x3f3   : > { %v9213_v24 = vpack.c.bf16 %v7163_v25, %v7163_v25  ;;  %v9909_v57 = vpop.f32.mrb[153].mxu1 }
 0x3f4   : > { %8512 = vst.msk [vmem:[%s12910_s3 + $0xe4] sm:$0xf] %vm8454_vm3, %v9212_v20  ;;  %v7166_v32 = vpop.f32.mrb[154].mxu1 }
 0x3f5   : > { %8513 = vst.msk [vmem:[%s12910_s3 + $0xe8] sm:$0xf] %vm8454_vm3, %v9213_v24  ;;  %v9214_v21 = vpack.c.bf16 %v7166_v32, %v7166_v32  ;;  %v9910_v37 = vpop.f32.mrb[155].mxu1 }
 0x3f7   : > { %8514 = vst.msk [vmem:[%s12910_s3 + $0xec] sm:$0xf] %vm8454_vm3, %v9214_v21  ;;  %v7213_v56 = vpop.f32.mrb[156].mxu0 }
 0x3f8   : > { %v9215_v34 = vpack.c.bf16 %v7213_v56, %v7213_v56  ;;  %v9915_v59 = vpop.f32.mrb[157].mxu0 }
 0x3f9   : > { %v7216_v15 = vpop.f32.mrb[158].mxu0 }
 0x3fa   : > { %8515 = vst.msk [vmem:[%s12910_s3 + $0xf0] sm:$0xf] %vm8454_vm3, %v9215_v34  ;;  %v9216_v51 = vpack.c.bf16 %v7216_v15, %v7216_v15  ;;  %v9916_v3 = vpop.f32.mrb[159].mxu0  ;;  %v7263_v27 = vpop.f32.mrb[156].mxu1 }
 0x3fb   : > { %v9217_v29 = vpack.c.bf16 %v7263_v27, %v7263_v27  ;;  %v9921_v55 = vpop.f32.mrb[157].mxu1 }
 0x3fc   : > { %8516 = vst.msk [vmem:[%s12910_s3 + $0xf4] sm:$0xf] %vm8454_vm3, %v9216_v51  ;;  %v7266_v22 = vpop.f32.mrb[158].mxu1 }
 0x3fd   : > { %8517 = vst.msk [vmem:[%s12910_s3 + $0xf8] sm:$0xf] %vm8454_vm3, %v9217_v29  ;;  %v9218_v7 = vpack.c.bf16 %v7266_v22, %v7266_v22  ;;  %v9922_v61 = vpop.f32.mrb[159].mxu1 }
 0x3ff   : > { %8518 = vst.msk [vmem:[%s12910_s3 + $0xfc] sm:$0xf] %vm8454_vm3, %v9218_v7  ;;  %v7313_v6 = vpop.f32.mrb[160].mxu0 }
 0x400   : > { %v9219_v12 = vpack.c.bf16 %v7313_v6, %v7313_v6  ;;  %v9927_v33 = vpop.f32.mrb[161].mxu0 }
 0x401   : > { %v7316_v47 = vpop.f32.mrb[162].mxu0 }
 0x402   : > { %8519 = vst.msk [vmem:[%s12910_s3 + $0x100] sm:$0xf] %vm8454_vm3, %v9219_v12  ;;  %v9220_v39 = vpack.c.bf16 %v7316_v47, %v7316_v47  ;;  %v9928_v36 = vpop.f32.mrb[163].mxu0  ;;  %v7363_v5 = vpop.f32.mrb[160].mxu1 }
 0x403   : > { %v9221_v2 = vpack.c.bf16 %v7363_v5, %v7363_v5  ;;  %v9933_v30 = vpop.f32.mrb[161].mxu1 }
 0x404   : > { %8520 = vst.msk [vmem:[%s12910_s3 + $0x104] sm:$0xf] %vm8454_vm3, %v9220_v39  ;;  %v7366_v35 = vpop.f32.mrb[162].mxu1 }
 0x405   : > { %8521 = vst.msk [vmem:[%s12910_s3 + $0x108] sm:$0xf] %vm8454_vm3, %v9221_v2  ;;  %v9222_v28 = vpack.c.bf16 %v7366_v35, %v7366_v35  ;;  %v9934_v31 = vpop.f32.mrb[163].mxu1 }
 0x407   : > { %8522 = vst.msk [vmem:[%s12910_s3 + $0x10c] sm:$0xf] %vm8454_vm3, %v9222_v28  ;;  %v7413_v1 = vpop.f32.mrb[164].mxu0 }
 0x408   : > { %v9223_v0 = vpack.c.bf16 %v7413_v1, %v7413_v1  ;;  %v9939_v40 = vpop.f32.mrb[165].mxu0 }
 0x409   : > { %v7416_v11 = vpop.f32.mrb[166].mxu0 }
 0x40a   : > { %8523 = vst.msk [vmem:[%s12910_s3 + $0x110] sm:$0xf] %vm8454_vm3, %v9223_v0  ;;  %v9224_v60 = vpack.c.bf16 %v7416_v11, %v7416_v11  ;;  %v9940_v58 = vpop.f32.mrb[167].mxu0  ;;  %v7463_v63 = vpop.f32.mrb[164].mxu1 }
 0x40b   : > { %v9225_v62 = vpack.c.bf16 %v7463_v63, %v7463_v63  ;;  %v9945_v48 = vpop.f32.mrb[165].mxu1 }
 0x40c   : > { %8524 = vst.msk [vmem:[%s12910_s3 + $0x114] sm:$0xf] %vm8454_vm3, %v9224_v60  ;;  %v7466_v9 = vpop.f32.mrb[166].mxu1 }
 0x40d   : > { %8525 = vst.msk [vmem:[%s12910_s3 + $0x118] sm:$0xf] %vm8454_vm3, %v9225_v62  ;;  %v9226_v38 = vpack.c.bf16 %v7466_v9, %v7466_v9  ;;  %v9946_v14 = vpop.f32.mrb[167].mxu1 }
 0x40f   : > { %8526 = vst.msk [vmem:[%s12910_s3 + $0x11c] sm:$0xf] %vm8454_vm3, %v9226_v38  ;;  %v7513_v46 = vpop.f32.mrb[168].mxu0 }
 0x410   : > { %v9227_v13 = vpack.c.bf16 %v7513_v46, %v7513_v46  ;;  %v9951_v18 = vpop.f32.mrb[169].mxu0 }
 0x411   : > { %v7516_v16 = vpop.f32.mrb[170].mxu0 }
 0x412   : > { %8527 = vst.msk [vmem:[%s12910_s3 + $0x120] sm:$0xf] %vm8454_vm3, %v9227_v13  ;;  %v9228_v43 = vpack.c.bf16 %v7516_v16, %v7516_v16  ;;  %v9952_v26 = vpop.f32.mrb[171].mxu0  ;;  %v7563_v23 = vpop.f32.mrb[168].mxu1 }
 0x413   : > { %v9229_v45 = vpack.c.bf16 %v7563_v23, %v7563_v23  ;;  %v9957_v42 = vpop.f32.mrb[169].mxu1 }
 0x414   : > { %8528 = vst.msk [vmem:[%s12910_s3 + $0x124] sm:$0xf] %vm8454_vm3, %v9228_v43  ;;  %v7566_v54 = vpop.f32.mrb[170].mxu1 }
 0x415   : > { %8529 = vst.msk [vmem:[%s12910_s3 + $0x128] sm:$0xf] %vm8454_vm3, %v9229_v45  ;;  %v9230_v8 = vpack.c.bf16 %v7566_v54, %v7566_v54  ;;  %v9958_v4 = vpop.f32.mrb[171].mxu1 }
 0x417   : > { %8530 = vst.msk [vmem:[%s12910_s3 + $0x12c] sm:$0xf] %vm8454_vm3, %v9230_v8  ;;  %v7613_v44 = vpop.f32.mrb[172].mxu0 }
 0x418   : > { %v9231_v10 = vpack.c.bf16 %v7613_v44, %v7613_v44  ;;  %v9963_v49 = vpop.f32.mrb[173].mxu0 }
 0x419   : > { %v7616_v19 = vpop.f32.mrb[174].mxu0 }
 0x41a   : > { %8531 = vst.msk [vmem:[%s12910_s3 + $0x130] sm:$0xf] %vm8454_vm3, %v9231_v10  ;;  %v9232_v17 = vpack.c.bf16 %v7616_v19, %v7616_v19  ;;  %v9964_v41 = vpop.f32.mrb[175].mxu0  ;;  %v7663_v50 = vpop.f32.mrb[172].mxu1 }
 0x41b   : > { %v9233_v52 = vpack.c.bf16 %v7663_v50, %v7663_v50  ;;  %v9969_v20 = vpop.f32.mrb[173].mxu1 }
 0x41c   : > { %8532 = vst.msk [vmem:[%s12910_s3 + $0x134] sm:$0xf] %vm8454_vm3, %v9232_v17  ;;  %v7666_v53 = vpop.f32.mrb[174].mxu1 }
 0x41d   : > { %8533 = vst.msk [vmem:[%s12910_s3 + $0x138] sm:$0xf] %vm8454_vm3, %v9233_v52  ;;  %v9234_v25 = vpack.c.bf16 %v7666_v53, %v7666_v53  ;;  %v9970_v24 = vpop.f32.mrb[175].mxu1 }
 0x41f   : > { %8534 = vst.msk [vmem:[%s12910_s3 + $0x13c] sm:$0xf] %vm8454_vm3, %v9234_v25  ;;  %v7713_v57 = vpop.f32.mrb[176].mxu0 }
 0x420   : > { %v9235_v32 = vpack.c.bf16 %v7713_v57, %v7713_v57  ;;  %v9975_v21 = vpop.f32.mrb[177].mxu0 }
 0x421   : > { %v7716_v37 = vpop.f32.mrb[178].mxu0 }
 0x422   : > { %8535 = vst.msk [vmem:[%s12910_s3 + $0x140] sm:$0xf] %vm8454_vm3, %v9235_v32  ;;  %v9236_v56 = vpack.c.bf16 %v7716_v37, %v7716_v37  ;;  %v9976_v34 = vpop.f32.mrb[179].mxu0  ;;  %v7763_v59 = vpop.f32.mrb[176].mxu1 }
 0x423   : > { %v9237_v15 = vpack.c.bf16 %v7763_v59, %v7763_v59  ;;  %v9981_v51 = vpop.f32.mrb[177].mxu1 }
 0x424   : > { %8536 = vst.msk [vmem:[%s12910_s3 + $0x144] sm:$0xf] %vm8454_vm3, %v9236_v56  ;;  %v7766_v3 = vpop.f32.mrb[178].mxu1 }
 0x425   : > { %8537 = vst.msk [vmem:[%s12910_s3 + $0x148] sm:$0xf] %vm8454_vm3, %v9237_v15  ;;  %v9238_v27 = vpack.c.bf16 %v7766_v3, %v7766_v3  ;;  %v9982_v29 = vpop.f32.mrb[179].mxu1 }
 0x427   : > { %8538 = vst.msk [vmem:[%s12910_s3 + $0x14c] sm:$0xf] %vm8454_vm3, %v9238_v27  ;;  %v7813_v55 = vpop.f32.mrb[180].mxu0 }
 0x428   : > { %v9239_v22 = vpack.c.bf16 %v7813_v55, %v7813_v55  ;;  %v9987_v7 = vpop.f32.mrb[181].mxu0 }
 0x429   : > { %v7816_v61 = vpop.f32.mrb[182].mxu0 }
 0x42a   : > { %8539 = vst.msk [vmem:[%s12910_s3 + $0x150] sm:$0xf] %vm8454_vm3, %v9239_v22  ;;  %v9240_v6 = vpack.c.bf16 %v7816_v61, %v7816_v61  ;;  %v9988_v12 = vpop.f32.mrb[183].mxu0  ;;  %v7863_v33 = vpop.f32.mrb[180].mxu1 }
 0x42b   : > { %v9241_v47 = vpack.c.bf16 %v7863_v33, %v7863_v33  ;;  %v9993_v39 = vpop.f32.mrb[181].mxu1 }
 0x42c   : > { %8540 = vst.msk [vmem:[%s12910_s3 + $0x154] sm:$0xf] %vm8454_vm3, %v9240_v6  ;;  %v7866_v36 = vpop.f32.mrb[182].mxu1 }
 0x42d   : > { %8541 = vst.msk [vmem:[%s12910_s3 + $0x158] sm:$0xf] %vm8454_vm3, %v9241_v47  ;;  %v9242_v5 = vpack.c.bf16 %v7866_v36, %v7866_v36  ;;  %v9994_v2 = vpop.f32.mrb[183].mxu1 }
 0x42f   : > { %8542 = vst.msk [vmem:[%s12910_s3 + $0x15c] sm:$0xf] %vm8454_vm3, %v9242_v5  ;;  %v7913_v30 = vpop.f32.mrb[184].mxu0 }
 0x430   : > { %v9243_v35 = vpack.c.bf16 %v7913_v30, %v7913_v30  ;;  %v9999_v28 = vpop.f32.mrb[185].mxu0 }
 0x431   : > { %v7916_v31 = vpop.f32.mrb[186].mxu0 }
 0x432   : > { %8543 = vst.msk [vmem:[%s12910_s3 + $0x160] sm:$0xf] %vm8454_vm3, %v9243_v35  ;;  %v9244_v1 = vpack.c.bf16 %v7916_v31, %v7916_v31  ;;  %v10000_v0 = vpop.f32.mrb[187].mxu0  ;;  %v7963_v40 = vpop.f32.mrb[184].mxu1 }
 0x433   : > { %v9245_v11 = vpack.c.bf16 %v7963_v40, %v7963_v40  ;;  %v10005_v60 = vpop.f32.mrb[185].mxu1 }
 0x434   : > { %8544 = vst.msk [vmem:[%s12910_s3 + $0x164] sm:$0xf] %vm8454_vm3, %v9244_v1  ;;  %v7966_v58 = vpop.f32.mrb[186].mxu1 }
 0x435   : > { %8545 = vst.msk [vmem:[%s12910_s3 + $0x168] sm:$0xf] %vm8454_vm3, %v9245_v11  ;;  %v9246_v63 = vpack.c.bf16 %v7966_v58, %v7966_v58  ;;  %v10006_v62 = vpop.f32.mrb[187].mxu1 }
 0x437   : > { %8546 = vst.msk [vmem:[%s12910_s3 + $0x16c] sm:$0xf] %vm8454_vm3, %v9246_v63  ;;  %v8013_v48 = vpop.f32.mrb[188].mxu0 }
 0x438   : > { %v9247_v9 = vpack.c.bf16 %v8013_v48, %v8013_v48  ;;  %v10011_v38 = vpop.f32.mrb[189].mxu0 }
 0x439   : > { %v8016_v14 = vpop.f32.mrb[190].mxu0 }
 0x43a   : > { %8547 = vst.msk [vmem:[%s12910_s3 + $0x170] sm:$0xf] %vm8454_vm3, %v9247_v9  ;;  %v9248_v46 = vpack.c.bf16 %v8016_v14, %v8016_v14  ;;  %v10012_v13 = vpop.f32.mrb[191].mxu0  ;;  %v8063_v18 = vpop.f32.mrb[188].mxu1 }
 0x43b   : > { %v9249_v16 = vpack.c.bf16 %v8063_v18, %v8063_v18  ;;  %v10017_v43 = vpop.f32.mrb[189].mxu1 }
 0x43c   : > { %8548 = vst.msk [vmem:[%s12910_s3 + $0x174] sm:$0xf] %vm8454_vm3, %v9248_v46  ;;  %v8066_v26 = vpop.f32.mrb[190].mxu1 }
 0x43d   : > { %8549 = vst.msk [vmem:[%s12910_s3 + $0x178] sm:$0xf] %vm8454_vm3, %v9249_v16  ;;  %v9250_v23 = vpack.c.bf16 %v8066_v26, %v8066_v26  ;;  %v10018_v45 = vpop.f32.mrb[191].mxu1 }
 0x43f   : > { %8550 = vst.msk [vmem:[%s12910_s3 + $0x17c] sm:$0xf] %vm8454_vm3, %v9250_v23 }
 0x440 PF: > { %p9_p9 = scmp.ge.s32.totalorder %s10641_s13, 4   ;;  %s13418_s9 = smov %s10601_s10 }
 0x441   : > { %s13419_s10 = smov %s10650_s16  ;;  %s13420_s11 = smov %s10641_s13 }
 0x442   :  { %11 = sbr.rel (!%p9_p9) target bundleno = 2 (0x2), region = 106 }

// kernel: channelwise_attention_forward.7
= control target key start
LH: loop header
LB: loop body
LE: loop exit
PB: predicated region body
PF: predicated region fallthrough
CT: control target
= control target key end

     0   :  { %s597_s0 = inlined_call_operand.vmem [shape: bf16[3,2,1,8,256], index: 0, kind: input, shape index: {}]   ;;  %s598_s1 = inlined_call_operand.<no memory space> [shape: f32[1], index: 1, kind: input, shape index: {}]   ;;  %s599_s2 = inlined_call_operand.vmem [shape: bf16[2,1,8,256], index: 2, kind: output, shape index: {}]  }
   0x1   :  { %7 = sst [smem:[#allocation2]] %s598_s1 }
   0x2   :  { %s535_s11 = smov 0   ;;  %s537_s12 = smov 0  }
   0x3   :  { %s539_s13 = smov 0  }
   0x4 LB: > { %s428_s1 = sadd.s32 4294967295, %s513_s13   ;;  %s552_s14 = sadd.s32 1, %s513_s13   ;;  %s513_s13 = sphi %s539_s13, %s602_s13   ;;  %s509_s12 = sphi %s537_s12, %s601_s12   ;;  %s505_s11 = sphi %s535_s11, %s600_s11  }
   0x5   : > { %s17_s15 = ssub.s32 %s513_s13, %s552_s14  ;;  %s20_s16 = sadd.s32 1, %s509_s12 }
   0x6   : > { %p18_p0 = scmp.eq.s32.totalorder %s17_s15, 0  ;;  %p27_p1 = scmp.ne.s32.totalorder %s509_s12, %s505_s11 }
   0x7   : > { %p28_p2 = scmp.eq.s32.totalorder %s513_s13, 0  ;;  %p431_p4 = scmp.ge.s32.totalorder %s513_s13, 2 }
   0x8   : > { %s561_s17 = scalar_select %p18_p0, %s509_s12, %s20_s16  }
   0x9   : > { %p29_p3 = por %p28_p2, %p27_p1  ;;  %103 = sbr.rel (%p431_p4) target bundleno = 23 (0x17), region = 20 }
  0x10   : > { %106 = sbr.rel (!%p29_p3) target bundleno = 23 (0x17), region = 24  ;;  %s108_s18 = sand.u32 (%p29_p3), 1, %s509_s12  }
  0x11   : > { %s450_s19 = sshll.u32 (%p29_p3), %s513_s13, 3  ;;  %s453_s20 = smul.u32 (%p29_p3), 24, %s108_s18 }
  0x12   : > { %s113_s23 = scalar_lea.vmem (%p29_p3), %s597_s0, %s450_s19 }
  0x13   : > { %v145_v0 = vld [vmem:[%s113_s23] sm:$0xff] (%p29_p3)  ;;  %v147_v1 = vld [vmem:[%s113_s23 + $0x10] sm:$0xff] (%p29_p3)  ;;  %s110_s24 = scalar_lea.vmem (%p29_p3), [#allocation3], %s453_s20 }
  0x14   : > { %v149_v2 = vld [vmem:[%s113_s23 + $0x20] sm:$0xff] (%p29_p3)  ;;  %146 = vst [vmem:[%s110_s24] sm:$0xff] (%p29_p3), %v145_v0  ;;  %148 = vst [vmem:[%s110_s24 + $0x8] sm:$0xff] (%p29_p3), %v147_v1 }
  0x15   : > { %150 = vst [vmem:[%s110_s24 + $0x10] sm:$0xff] (%p29_p3), %v149_v2 }
  0x17 PF: > { %p434_p5 = scmp.ge.s32.totalorder %s513_s13, 1  ;;  %p155_p6 = scmp.lt.s32.totalorder %s513_s13, 3 }
  0x19   : > { %p156_p7 = pnand %p434_p5, %p155_p6 }
  0x1a   : > { %s162_s25 = sand.u32 (!%p156_p7), 1, %s505_s11   ;;  %v515_v16 = vmov (!%p156_p7), 839922192   ;;  %v218_v18 = vlaneseq (!%p156_p7)  ;;  %s210_s28 = sld [smem:[#allocation2]] (!%p156_p7)  ;;  %vm289_vm0 = vcmask (!%p156_p7), 64512   ;;  %vm310_vm1 = vcmask (!%p156_p7), 1043456  }
  0x1b   : > { %159 = sbr.rel (%p156_p7) target bundleno = 953 (0x3b9), region = 62  ;;  %v216_v17 = vunpack.c.l.s4 (!%p156_p7), %v515_v16  ;;  %v516_v50 = vmov (!%p156_p7), 0   ;;  %p183_p8 = scmp.lt.s32.totalorder (!%p156_p7), %s428_s1, 1 }
  0x1c   : > { %s454_s26 = smul.u32 (!%p156_p7), 24, %s162_s25  ;;  %v219_v21 = vshrl.u32 (!%p156_p7), %v218_v18, 7  ;;  %349 = vmatprep.mubr.bf16.mxu1 (!%p156_p7), %v516_v50 }
  0x1d   : > { %v217_v20 = vunpack.c.0.s8 (!%p156_p7), %v216_v17 }
  0x1e   : > { %s572_s27 = scalar_lea.vmem (!%p156_p7), [#allocation3], %s454_s26 }
  0x1f   : > { %v437_v3 = vld [vmem:[%s572_s27 + $0x8] sm:$0xff] (!%p156_p7)  ;;  %v189_v4 = vld [vmem:[%s572_s27] sm:$0xff] (!%p156_p7)  ;;  %v220_v22 = vsub.s32 (!%p156_p7), %v217_v20, %v219_v21  ;;  %v438_v47 = vld [vmem:[%s572_s27 + $0x10] sm:$0xff] (!%p156_p7) }
  0x20   : > { %v200_v5 = vmul.bf16 (!%p156_p7), %v437_v3, %v437_v3  ;;  %v194_v6 = vmul.bf16 (!%p156_p7), %v189_v4, %v189_v4  ;;  %v211_v25 = vstv (!%p156_p7), %s210_s28  ;;  %v444_v48 = vcombine.high (!%p156_p7), %v438_v47, %v438_v47 }
  0x21   : > { %v443_v49 = vcombine.low (!%p156_p7), %v438_v47, %v438_v47 }
  0x22   : > { %v201_v7 = vunpack.c.l.bf16 %v200_v5  ;;  %v202_v8 = vunpack.c.h.bf16 %v200_v5  ;;  %v195_v9 = vunpack.c.l.bf16 %v194_v6  ;;  %v196_v10 = vunpack.c.h.bf16 %v194_v6  ;;  %445 = vmatprep.subr.msk.bf16.mxu1 %vm310_vm1, %v444_v48  ;;  %s604_s1 = smov (!%p183_p8, %s428_s1), 1 }
  0x23   : > { %v312_v51 = vsel %vm310_vm1, %v443_v49, 0  ;;  %s451_s29 = sshll.u32 %s604_s1, 3 }
  0x24   : > { %v203_v11 = vadd.f32 %v202_v8, %v201_v7  ;;  %v197_v12 = vadd.f32 %v196_v10, %v195_v9  ;;  %318 = vmatpush1.bf16.msra.mxu1 %v312_v51  ;;  %s187_s4 = scalar_lea.vmem %s599_s2, %s451_s29 }
  0x26   : > { %204 = vadd.xlane.f32.xlu0 %v203_v11 }
  0x2a   : > { %198 = vadd.xlane.f32.xlu0 %v197_v12 }
  0xb3   : > { %v205_v13 = vpop.xlane.xlu0 %204 }
  0xb4   : > { %v208_v14 = vmax.f32 %v205_v13, 1e-24 }
  0xb6   : > { %483 = vrsqrt.f32 %v208_v14 }
  0xb7   : > { %v199_v15 = vpop.xlane.xlu0 %198 }
  0xb8   : > { %v206_v19 = vmax.f32 %v199_v15, 1e-24 }
  0xba   : > { %485 = vrsqrt.f32 %v206_v19 }
  0xc0   : > { %v484_v23 = vpop.eup %483 }
  0xc1   : > { %v224_v24 = vpack.c.bf16 %v484_v23, %v484_v23 }
  0xc3   : > { %v232_v26 = vrot.slane %v224_v24, %v220_v22 }
  0xc4   : > { %v486_v27 = vpop.eup %485 }
  0xc5   : > { %v234_v28 = vmul.bf16 %v437_v3, %v232_v26  ;;  %v212_v29 = vmul.f32 %v486_v27, %v211_v25 }
  0xc7   : > { %v442_v30 = vcombine.high %v234_v28, %v234_v28  ;;  %v441_v31 = vcombine.low %v234_v28, %v234_v28  ;;  %v213_v32 = vpack.c.bf16 %v212_v29, %v212_v29 }
  0xc9   : > { %249 = vmatprep.subr.bf16.mxu0 %v442_v30  ;;  %v221_v33 = vrot.slane %v213_v32, %v220_v22 }
  0xca   : > { %250 = vmatpush1.bf16.xpose.msra.mxu0 %v441_v31 }
  0xcb   : > { %v223_v34 = vmul.bf16 %v221_v33, %v189_v4 }
  0xcd   : > { %v440_v35 = vcombine.high %v223_v34, %v223_v34  ;;  %v439_v36 = vcombine.low %v223_v34, %v223_v34 }
  0xcf   : > { %281 = vmatprep.mubr.bf16.mxu0 %v440_v35 }
  0xd1   : > { %282 = vmatmul.mubr.bf16.vlgmr.msra.gmra.mrb[0].mxu0 %v439_v36 }
 0x1a4   : > { %v283_v37 = vpop.f32.mrb[0].mxu0 }
 0x1a5   : > { %v285_v38 = vpop.f32.mrb[1].mxu0  ;;  %v290_v39 = vsel %vm289_vm0, %v283_v37, -inf }
 0x1a6   : > { %291 = vmax.xlane.f32.xlu1 %v290_v39  ;;  %v286_v40 = vpop.f32.mrb[2].mxu0 }
 0x1a7   : > { %v287_v41 = vpop.f32.mrb[3].mxu0 }
 0x233   : > { %v292_v42 = vpop.xlane.xlu1 %291 }
 0x234   : > { %v293_v43 = vsub.f32 %v283_v37, %v292_v42 }
 0x236   : > { %v294_v44 = vmul.f32 1.442695, %v293_v43 }
 0x238   : > { %487 = vpow2.f32 %v294_v44 }
 0x242   : > { %v488_v45 = vpop.eup %487 }
 0x243   : > { %v296_v46 = vsel %vm289_vm0, %v488_v45, 0.0 }
 0x244   : > { %297 = vadd.xlane.f32.xlu1 %v296_v46 }
 0x2d1   : > { %v298_v52 = vpop.xlane.xlu1 %297 }
 0x2d2   : > { %489 = vrcp.f32 %v298_v52 }
 0x2dc   : > { %v490_v53 = vpop.eup %489 }
 0x2dd   : > { %v300_v54 = vmul.f32 %v490_v53, %v488_v45 }
 0x2df   : > { %v301_v55 = vpack.c.bf16 %v300_v54, %v300_v54 }
 0x2e1   : > { %446 = vmatmul.mubr.msk.bf16.vlgmr.msra.gmra.mrb[0].mxu1 %vm289_vm0, %v301_v55 }
 0x3b4   : > { %v351_v56 = vpop.f32.mrb[0].mxu1 }
 0x3b5   : > { %v353_v57 = vpop.f32.mrb[1].mxu1 }
 0x3b6   : > { %v452_v58 = vpack.c.bf16 %v353_v57, %v351_v56  ;;  %v355_v59 = vpop.f32.mrb[2].mxu1 }
 0x3b7   : > { %v356_v60 = vpop.f32.mrb[3].mxu1 }
 0x3b8   : > { %366 = vst [vmem:[%s187_s4] sm:$0xff] %v452_v58 }
 0x3b9 PF: > { %p10_p9 = scmp.ge.s32.totalorder %s552_s14, 4   ;;  %s600_s11 = smov %s509_s12 }
 0x3ba   : > { %s601_s12 = smov %s561_s17  ;;  %s602_s13 = smov %s552_s14 }
 0x3bb   :  { %12 = sbr.rel (!%p10_p9) target bundleno = 4 (0x4), region = 103 }

</bundles_post_ra>
